<compile_context>
chip_gen: v6e
topology: v6e:2x2x1
jax: 0.10.0
libtpu: 0.0.40
codegen_flags: <defaults>
</compile_context>

<pallas_src>
import jax
import jax.numpy as jnp
from jax.experimental import pallas as pl
from jax.experimental.pallas import tpu as pltpu


def _leaky_relu(x, slope=0.2):
    return jnp.where(x > 0, x, slope * x)


def discriminator_kernel(zT_ref,
                         w1_ref, b1_ref,
                         w2_ref, b2_ref,
                         w3_ref, b3_ref,
                         w4_ref, b4_ref,
                         out_ref):
    # zT_ref: (dim, tile_b) bf16 ; w*: (out, in) bf16 ; b*: (out, 1) f32
    x = zT_ref[...]                                                    # bf16

    h = jnp.dot(w1_ref[...], x, preferred_element_type=jnp.float32) + b1_ref[...]
    h = _leaky_relu(h).astype(jnp.bfloat16)                            # (512, tile_b)

    h = jnp.dot(w2_ref[...], h, preferred_element_type=jnp.float32) + b2_ref[...]
    h = _leaky_relu(h).astype(jnp.bfloat16)                            # (256, tile_b)

    h = jnp.dot(w3_ref[...], h, preferred_element_type=jnp.float32) + b3_ref[...]
    h = _leaky_relu(h).astype(jnp.bfloat16)                            # (256, tile_b)

    logits = jnp.dot(w4_ref[...], h, preferred_element_type=jnp.float32) + b4_ref[...]
    # sigmoid: exp and the approximate reciprocal both go to the EUP slot.
    out_ref[...] = pl.reciprocal(1.0 + jnp.exp(-logits), approx=True).astype(out_ref.dtype)


def _round_up(x, m):
    return ((x + m - 1) // m) * m


def discriminator_forward(z, params, *, tile_b=512):
    """z: (batch, dim) f32. params: PyTorch-style w* (out, in), b* (out,)."""
    batch, dim = z.shape

    # Clamp the batch tile to the 128-aligned batch (avoids over-padding tiny
    # batches) and pad the batch up to a multiple of the tile.
    tile_b = max(128, min(tile_b, _round_up(batch, 128)))
    padded_batch = _round_up(batch, tile_b)

    # Batch lives on the lane axis inside the kernel -> present z transposed.
    zT = jnp.transpose(z).astype(jnp.bfloat16)
    if padded_batch != batch:
        zT = jnp.pad(zT, ((0, 0), (0, padded_batch - batch)))

    # bf16 weights for the MXU (halves weight DMA); f32 biases as (out, 1).
    w1 = params["w1"].astype(jnp.bfloat16)
    w2 = params["w2"].astype(jnp.bfloat16)
    w3 = params["w3"].astype(jnp.bfloat16)
    w4 = params["w4"].astype(jnp.bfloat16)
    b1 = params["b1"].reshape(-1, 1).astype(jnp.float32)
    b2 = params["b2"].reshape(-1, 1).astype(jnp.float32)
    b3 = params["b3"].reshape(-1, 1).astype(jnp.float32)
    b4 = params["b4"].reshape(-1, 1).astype(jnp.float32)

    grid = (padded_batch // tile_b,)

    def resident_spec(shape):
        # Same block every grid step -> fetched into VMEM once, stays resident.
        return pl.BlockSpec(shape, lambda i: (0, 0))

    in_specs = [
        pl.BlockSpec((dim, tile_b), lambda i: (0, i)),   # z^T, tiled over batch
        resident_spec(w1.shape), resident_spec(b1.shape),
        resident_spec(w2.shape), resident_spec(b2.shape),
        resident_spec(w3.shape), resident_spec(b3.shape),
        resident_spec(w4.shape), resident_spec(b4.shape),
    ]
    out_specs = pl.BlockSpec((1, tile_b), lambda i: (0, i))   # lane-dense store

    flops = 2 * padded_batch * (dim * 512 + 512 * 256 + 256 * 256 + 256 * 1)
    weight_bytes = sum(int(w.size) * 2 for w in (w1, w2, w3, w4))
    bias_bytes = sum(int(b.size) * 4 for b in (b1, b2, b3, b4))
    bytes_accessed = int(zT.size) * 2 + weight_bytes + bias_bytes + padded_batch * 4

    out = pl.pallas_call(
        discriminator_kernel,
        out_shape=jax.ShapeDtypeStruct((1, padded_batch), jnp.float32),
        grid=grid,
        in_specs=in_specs,
        out_specs=out_specs,
        compiler_params=pltpu.CompilerParams(
            dimension_semantics=("parallel",),   # megacore-shardable batch axis
            vmem_limit_bytes=32 << 20,           # actual footprint is a few MiB
        ),
        cost_estimate=pl.CostEstimate(
            flops=flops,
            transcendentals=2 * padded_batch,    # exp + reciprocal per element
            bytes_accessed=bytes_accessed,
        ),
    )(zT, w1, b1, w2, b2, w3, b3, w4, b4)

    return out[0, :batch].reshape(batch, 1)


def init_params(key, dim):
    """nn.Linear default init: U(-1/sqrt(fan_in), +1/sqrt(fan_in)); W is (out, in)."""
    sizes = [(dim, 512), (512, 256), (256, 256), (256, 1)]
    params = {}
    keys = jax.random.split(key, 2 * len(sizes))
    for i, (fan_in, fan_out) in enumerate(sizes):
        bound = 1.0 / float(fan_in) ** 0.5
        params[f"w{i + 1}"] = jax.random.uniform(
            keys[2 * i], (fan_out, fan_in), minval=-bound, maxval=bound,
            dtype=jnp.float32)
        params[f"b{i + 1}"] = jax.random.uniform(
            keys[2 * i + 1], (fan_out,), minval=-bound, maxval=bound,
            dtype=jnp.float32)
    return params


def reference_forward(z, params):
    h = z @ params["w1"].T + params["b1"]
    h = jnp.where(h > 0, h, 0.2 * h)
    h = h @ params["w2"].T + params["b2"]
    h = jnp.where(h > 0, h, 0.2 * h)
    h = h @ params["w3"].T + params["b3"]
    h = jnp.where(h > 0, h, 0.2 * h)
    logits = h @ params["w4"].T + params["b4"]
    return jax.nn.sigmoid(logits)


# TODO(synk): reinitialize()/weight_reset is host-side parameter re-init (call
# init_params again with a new key); it is not a device kernel and is not lowered.

if __name__ == "__main__":
    key = jax.random.PRNGKey(0)
    k_params, k_z = jax.random.split(key)

    batch, dim = 300, 32          # batch deliberately not a multiple of the tile
    params = init_params(k_params, dim)
    z = jax.random.normal(k_z, (batch, dim), dtype=jnp.float32)

    ref = reference_forward(z, params)

    # Exercise both the single-step (default tile) and multi-step + padded paths.
    for tb in (512, 128):
        out = jax.block_until_ready(discriminator_forward(z, params, tile_b=tb))
        assert out.shape == (batch, 1)
        # bf16 matmuls + approx-reciprocal sigmoid -> relaxed tolerance.
        assert jnp.allclose(out, ref, atol=2e-2, rtol=2e-2), (
            tb, float(jnp.max(jnp.abs(out - ref))))

    print("KERNEL_OK")
</pallas_src>

<mosaic_0001>
module attributes {stable_mosaic.version = 11 : i64} {
  func.func @discriminator_kernel(%arg0: i32, %arg1: memref<32x384xbf16, #tpu.memory_space<vmem>>, %arg2: memref<512x32xbf16, #tpu.memory_space<vmem>>, %arg3: memref<512x1xf32, #tpu.memory_space<vmem>>, %arg4: memref<256x512xbf16, #tpu.memory_space<vmem>>, %arg5: memref<256x1xf32, #tpu.memory_space<vmem>>, %arg6: memref<256x256xbf16, #tpu.memory_space<vmem>>, %arg7: memref<256x1xf32, #tpu.memory_space<vmem>>, %arg8: memref<1x256xbf16, #tpu.memory_space<vmem>>, %arg9: memref<1x1xf32, #tpu.memory_space<vmem>>, %arg10: memref<1x384xf32, #tpu.memory_space<vmem>>) attributes {dimension_semantics = [#tpu.dimension_semantics<parallel>], iteration_bounds = array<i64: 1>, scalar_prefetch = 0 : i64, scratch_operands = 0 : i64, tpu.core_type = #tpu.core_type<tc>, window_params = [{transform_indices = @transform_0, window_bounds = array<i64: 32, 384>}, {pipeline_mode = #tpu.pipeline_mode<synchronous>, transform_indices = @transform_1, window_bounds = array<i64: 512, 32>}, {pipeline_mode = #tpu.pipeline_mode<synchronous>, transform_indices = @transform_2, window_bounds = array<i64: 512, 1>}, {pipeline_mode = #tpu.pipeline_mode<synchronous>, transform_indices = @transform_3, window_bounds = array<i64: 256, 512>}, {pipeline_mode = #tpu.pipeline_mode<synchronous>, transform_indices = @transform_4, window_bounds = array<i64: 256, 1>}, {pipeline_mode = #tpu.pipeline_mode<synchronous>, transform_indices = @transform_5, window_bounds = array<i64: 256, 256>}, {pipeline_mode = #tpu.pipeline_mode<synchronous>, transform_indices = @transform_6, window_bounds = array<i64: 256, 1>}, {pipeline_mode = #tpu.pipeline_mode<synchronous>, transform_indices = @transform_7, window_bounds = array<i64: 1, 256>}, {pipeline_mode = #tpu.pipeline_mode<synchronous>, transform_indices = @transform_8, window_bounds = array<i64: 1, 1>}, {transform_indices = @transform_9, window_bounds = array<i64: 1, 384>}]} {
    %c0 = arith.constant 0 : index
    %c0_0 = arith.constant 0 : index
    %0 = vector.load %arg1[%c0, %c0_0] : memref<32x384xbf16, #tpu.memory_space<vmem>>, vector<32x384xbf16>
    %c0_1 = arith.constant 0 : index
    %c0_2 = arith.constant 0 : index
    %1 = vector.load %arg2[%c0_1, %c0_2] : memref<512x32xbf16, #tpu.memory_space<vmem>>, vector<512x32xbf16>
    %cst = arith.constant dense<0.000000e+00> : vector<512x384xf32>
    %2 = tpu.matmul %1, %0, %cst {dimension_numbers = #tpu.dot_dimension_numbers<[1], [0], [0], [1], [0, 0, 1, 1], [], []>} : vector<512x32xbf16>, vector<32x384xbf16>, vector<512x384xf32> -> vector<512x384xf32>
    %c0_3 = arith.constant 0 : index
    %c0_4 = arith.constant 0 : index
    %3 = vector.load %arg3[%c0_3, %c0_4] : memref<512x1xf32, #tpu.memory_space<vmem>>, vector<512x1xf32>
    %4 = vector.broadcast %3 : vector<512x1xf32> to vector<512x384xf32>
    %5 = arith.addf %2, %4 : vector<512x384xf32>
    %cst_5 = arith.constant 0.000000e+00 : f32
    %6 = vector.broadcast %cst_5 : f32 to vector<512x384xf32>
    %7 = arith.cmpf ogt, %5, %6 : vector<512x384xf32>
    %cst_6 = arith.constant 2.000000e-01 : f32
    %8 = vector.broadcast %cst_6 : f32 to vector<512x384xf32>
    %9 = arith.mulf %8, %5 : vector<512x384xf32>
    %10 = arith.select %7, %5, %9 : vector<512x384xi1>, vector<512x384xf32>
    %11 = arith.truncf %10 : vector<512x384xf32> to vector<512x384xbf16>
    %c0_7 = arith.constant 0 : index
    %c0_8 = arith.constant 0 : index
    %12 = vector.load %arg4[%c0_7, %c0_8] : memref<256x512xbf16, #tpu.memory_space<vmem>>, vector<256x512xbf16>
    %cst_9 = arith.constant dense<0.000000e+00> : vector<256x384xf32>
    %13 = tpu.matmul %12, %11, %cst_9 {dimension_numbers = #tpu.dot_dimension_numbers<[1], [0], [0], [1], [0, 0, 1, 1], [], []>} : vector<256x512xbf16>, vector<512x384xbf16>, vector<256x384xf32> -> vector<256x384xf32>
    %c0_10 = arith.constant 0 : index
    %c0_11 = arith.constant 0 : index
    %14 = vector.load %arg5[%c0_10, %c0_11] : memref<256x1xf32, #tpu.memory_space<vmem>>, vector<256x1xf32>
    %15 = vector.broadcast %14 : vector<256x1xf32> to vector<256x384xf32>
    %16 = arith.addf %13, %15 : vector<256x384xf32>
    %cst_12 = arith.constant 0.000000e+00 : f32
    %17 = vector.broadcast %cst_12 : f32 to vector<256x384xf32>
    %18 = arith.cmpf ogt, %16, %17 : vector<256x384xf32>
    %cst_13 = arith.constant 2.000000e-01 : f32
    %19 = vector.broadcast %cst_13 : f32 to vector<256x384xf32>
    %20 = arith.mulf %19, %16 : vector<256x384xf32>
    %21 = arith.select %18, %16, %20 : vector<256x384xi1>, vector<256x384xf32>
    %22 = arith.truncf %21 : vector<256x384xf32> to vector<256x384xbf16>
    %c0_14 = arith.constant 0 : index
    %c0_15 = arith.constant 0 : index
    %23 = vector.load %arg6[%c0_14, %c0_15] : memref<256x256xbf16, #tpu.memory_space<vmem>>, vector<256x256xbf16>
    %cst_16 = arith.constant dense<0.000000e+00> : vector<256x384xf32>
    %24 = tpu.matmul %23, %22, %cst_16 {dimension_numbers = #tpu.dot_dimension_numbers<[1], [0], [0], [1], [0, 0, 1, 1], [], []>} : vector<256x256xbf16>, vector<256x384xbf16>, vector<256x384xf32> -> vector<256x384xf32>
    %c0_17 = arith.constant 0 : index
    %c0_18 = arith.constant 0 : index
    %25 = vector.load %arg7[%c0_17, %c0_18] : memref<256x1xf32, #tpu.memory_space<vmem>>, vector<256x1xf32>
    %26 = vector.broadcast %25 : vector<256x1xf32> to vector<256x384xf32>
    %27 = arith.addf %24, %26 : vector<256x384xf32>
    %cst_19 = arith.constant 0.000000e+00 : f32
    %28 = vector.broadcast %cst_19 : f32 to vector<256x384xf32>
    %29 = arith.cmpf ogt, %27, %28 : vector<256x384xf32>
    %cst_20 = arith.constant 2.000000e-01 : f32
    %30 = vector.broadcast %cst_20 : f32 to vector<256x384xf32>
    %31 = arith.mulf %30, %27 : vector<256x384xf32>
    %32 = arith.select %29, %27, %31 : vector<256x384xi1>, vector<256x384xf32>
    %33 = arith.truncf %32 : vector<256x384xf32> to vector<256x384xbf16>
    %c0_21 = arith.constant 0 : index
    %c0_22 = arith.constant 0 : index
    %34 = vector.load %arg8[%c0_21, %c0_22] : memref<1x256xbf16, #tpu.memory_space<vmem>>, vector<1x256xbf16>
    %cst_23 = arith.constant dense<0.000000e+00> : vector<1x384xf32>
    %35 = tpu.matmul %34, %33, %cst_23 {dimension_numbers = #tpu.dot_dimension_numbers<[1], [0], [0], [1], [0, 0, 1, 1], [], []>} : vector<1x256xbf16>, vector<256x384xbf16>, vector<1x384xf32> -> vector<1x384xf32>
    %c0_24 = arith.constant 0 : index
    %c0_25 = arith.constant 0 : index
    %36 = vector.load %arg9[%c0_24, %c0_25] : memref<1x1xf32, #tpu.memory_space<vmem>>, vector<1x1xf32>
    %37 = vector.broadcast %36 : vector<1x1xf32> to vector<1x384xf32>
    %38 = arith.addf %35, %37 : vector<1x384xf32>
    %cst_26 = arith.constant 0.000000e+00 : f32
    %39 = vector.broadcast %cst_26 : f32 to vector<1x384xf32>
    %40 = arith.subf %39, %38 : vector<1x384xf32>
    %41 = math.exp %40 : vector<1x384xf32>
    %cst_27 = arith.constant 1.000000e+00 : f32
    %42 = vector.broadcast %cst_27 : f32 to vector<1x384xf32>
    %43 = arith.addf %42, %41 : vector<1x384xf32>
    %44 = tpu.reciprocal %43 {approx = true} : vector<1x384xf32> -> vector<1x384xf32>
    %c0_28 = arith.constant 0 : index
    %c0_29 = arith.constant 0 : index
    %45 = vector.load %arg10[%c0_28, %c0_29] : memref<1x384xf32, #tpu.memory_space<vmem>>, vector<1x384xf32>
    tpu.vector_store %arg10[%c0_28, %c0_29], %44 {strides = array<i32>} : memref<1x384xf32, #tpu.memory_space<vmem>>, vector<1x384xf32>,
    return
  }
  func.func @transform_0(%arg0: i32) -> (i32, i32) {
    %c0_i32 = arith.constant 0 : i32
    %c0_i32_0 = arith.constant 0 : i32
    return %c0_i32, %arg0 : i32, i32
  }
  func.func @transform_1(%arg0: i32) -> (i32, i32) {
    %c0_i32 = arith.constant 0 : i32
    %c0_i32_0 = arith.constant 0 : i32
    %c0_i32_1 = arith.constant 0 : i32
    return %c0_i32, %c0_i32_0 : i32, i32
  }
  func.func @transform_2(%arg0: i32) -> (i32, i32) {
    %c0_i32 = arith.constant 0 : i32
    %c0_i32_0 = arith.constant 0 : i32
    %c0_i32_1 = arith.constant 0 : i32
    return %c0_i32, %c0_i32_0 : i32, i32
  }
  func.func @transform_3(%arg0: i32) -> (i32, i32) {
    %c0_i32 = arith.constant 0 : i32
    %c0_i32_0 = arith.constant 0 : i32
    %c0_i32_1 = arith.constant 0 : i32
    return %c0_i32, %c0_i32_0 : i32, i32
  }
  func.func @transform_4(%arg0: i32) -> (i32, i32) {
    %c0_i32 = arith.constant 0 : i32
    %c0_i32_0 = arith.constant 0 : i32
    %c0_i32_1 = arith.constant 0 : i32
    return %c0_i32, %c0_i32_0 : i32, i32
  }
  func.func @transform_5(%arg0: i32) -> (i32, i32) {
    %c0_i32 = arith.constant 0 : i32
    %c0_i32_0 = arith.constant 0 : i32
    %c0_i32_1 = arith.constant 0 : i32
    return %c0_i32, %c0_i32_0 : i32, i32
  }
  func.func @transform_6(%arg0: i32) -> (i32, i32) {
    %c0_i32 = arith.constant 0 : i32
    %c0_i32_0 = arith.constant 0 : i32
    %c0_i32_1 = arith.constant 0 : i32
    return %c0_i32, %c0_i32_0 : i32, i32
  }
  func.func @transform_7(%arg0: i32) -> (i32, i32) {
    %c0_i32 = arith.constant 0 : i32
    %c0_i32_0 = arith.constant 0 : i32
    %c0_i32_1 = arith.constant 0 : i32
    return %c0_i32, %c0_i32_0 : i32, i32
  }
  func.func @transform_8(%arg0: i32) -> (i32, i32) {
    %c0_i32 = arith.constant 0 : i32
    %c0_i32_0 = arith.constant 0 : i32
    %c0_i32_1 = arith.constant 0 : i32
    return %c0_i32, %c0_i32_0 : i32, i32
  }
  func.func @transform_9(%arg0: i32) -> (i32, i32) {
    %c0_i32 = arith.constant 0 : i32
    %c0_i32_0 = arith.constant 0 : i32
    return %c0_i32, %arg0 : i32, i32
  }
}

</mosaic_0001>

<bundles_post_ra>
// kernel: tpu_custom_call.1
= control target key start
LH: loop header
LB: loop body
LE: loop exit
PB: predicated region body
PF: predicated region fallthrough
CT: control target
= control target key end

     0   :  { %s10251_s0 = inlined_call_operand.vmem [shape: bf16[32,384], index: 0, kind: input, shape index: {}]   ;;  %s10252_s1 = inlined_call_operand.vmem [shape: bf16[512,32], index: 1, kind: input, shape index: {}]   ;;  %s10253_s2 = inlined_call_operand.vmem [shape: f32[512,1], index: 2, kind: input, shape index: {}]   ;;  %s10254_s3 = inlined_call_operand.vmem [shape: bf16[256,512], index: 3, kind: input, shape index: {}]   ;;  %s10255_s4 = inlined_call_operand.vmem [shape: f32[256,1], index: 4, kind: input, shape index: {}]   ;;  %s10256_s5 = inlined_call_operand.vmem [shape: bf16[256,256], index: 5, kind: input, shape index: {}]   ;;  %s10257_s6 = inlined_call_operand.vmem [shape: f32[256,1], index: 6, kind: input, shape index: {}]   ;;  %s10258_s7 = inlined_call_operand.vmem [shape: bf16[1,256], index: 7, kind: input, shape index: {}]   ;;  %s10259_s8 = inlined_call_operand.<no memory space> [shape: f32[1,1], index: 8, kind: input, shape index: {}]   ;;  %s10260_s9 = inlined_call_operand.hbm [shape: f32[1,384], index: 9, kind: output, shape index: {}]  }
   0x1   :  { %v14_v0 = vstv %s10259_s8 }
   0x2   :  { %15 = vst [vmem:[#allocation2] sm:$0x1] %v14_v0 }
   0x3   :  { %v5635_v1 = vld [vmem:[%s10251_s0 + $0x1c] ss:$12 sps:$4 sm:$0xff]   ;;  %v5637_v2 = vld [vmem:[%s10251_s0 + $0x18] ss:$12 sps:$4 sm:$0xff]   ;;  %v5861_v3 = vmov 0   ;;  %v122_v4 = vld [vmem:[%s10253_s2 + $0x70] sm:$0xff] }
   0x4   :  { %5633 = vset.pattern.permute.xlu0 %v5861_v3  ;;  %5634 = vset.pattern.permute.xlu1 %v5861_v3  ;;  %v5638_v5 = vld [vmem:[%s10251_s0 + $0x4] ss:$12 sps:$4 sm:$0xff]   ;;  %v5640_v6 = vld [vmem:[%s10251_s0] ss:$12 sps:$4 sm:$0xff]   ;;  %v123_v8 = vld [vmem:[%s10253_s2 + $0x78] sm:$0xff]  ;;  %vm684_vm0 = vcmask 261120  }
   0x5   :  { %793 = vmatprep.subr.bf16.mxu0 %v5635_v1  ;;  %244 = vperm.xlu0 %5633, %v122_v4   ;;  %v154_v7 = vld [vmem:[%s10253_s2 + $0x170] sm:$0xff]  ;;  %v155_v9 = vld [vmem:[%s10253_s2 + $0x178] sm:$0xff]  ;;  %v5948_v10 = vld [vmem:[%s10252_s1] sm:$0xff]  }
   0x6   :  { %794 = vmatpush1.bf16.msra.mxu0 %v5637_v2  ;;  %813 = vmatprep.mubr.bf16.mxu0 %v5861_v3  ;;  %v120_v11 = vld [vmem:[%s10253_s2 + $0x60] sm:$0xff]  ;;  %v121_v12 = vld [vmem:[%s10253_s2 + $0x68] sm:$0xff]  ;;  %v5961_v13 = vld [vmem:[%s10252_s1 + $0xd8] sm:$0xff]  }
   0x7   :  { %795 = vmatprep.subr.bf16.mxu0 %v5638_v5  ;;  %404 = vperm.xlu1 %5634, %v154_v7   ;;  %v152_v14 = vld [vmem:[%s10253_s2 + $0x160] sm:$0xff]  ;;  %v153_v15 = vld [vmem:[%s10253_s2 + $0x168] sm:$0xff]  ;;  %v118_v17 = vld [vmem:[%s10253_s2 + $0x50] sm:$0xff] }
   0x8   :  { %5626 = vmatprep.subr.bf16.mxu1 %v5635_v1  ;;  %1083 = vmatprep.mubr.bf16.mxu1 %v5861_v3  ;;  %v5973_v16 = vld [vmem:[%s10252_s1 + $0x8] sm:$0xff]   ;;  %v119_v18 = vld [vmem:[%s10253_s2 + $0x58] sm:$0xff]  ;;  %v5989_v19 = vld [vmem:[%s10252_s1 + $0xe0] sm:$0xff]  }
   0x9   :  { %249 = vperm.xlu0 %5633, %v123_v8   ;;  %5628 = vmatpush1.bf16.msra.mxu1 %v5637_v2  ;;  %v150_v20 = vld [vmem:[%s10253_s2 + $0x150] sm:$0xff]  ;;  %v151_v22 = vld [vmem:[%s10253_s2 + $0x158] sm:$0xff]  ;;  %v5652_v23 = vld [vmem:[%s10251_s0 + $0x20] ss:$12 sps:$4 sm:$0xff]  }
   0xa   :  { %796 = vmatpush1.bf16.msra.mxu0 %v5640_v6  ;;  %5627 = vmatprep.subr.bf16.mxu1 %v5638_v5  ;;  %v5998_v21 = vld [vmem:[%s10252_s1 + $0x10] sm:$0xff]   ;;  %v116_v24 = vld [vmem:[%s10253_s2 + $0x40] sm:$0xff]  ;;  %v117_v25 = vld [vmem:[%s10253_s2 + $0x48] sm:$0xff] }
   0xb   :  { %409 = vperm.xlu1 %5634, %v155_v9   ;;  %v5654_v26 = vld [vmem:[%s10251_s0 + $0x8] ss:$12 sps:$4 sm:$0xff]   ;;  %v148_v28 = vld [vmem:[%s10253_s2 + $0x140] sm:$0xff]  ;;  %v5646_v30 = vld [vmem:[%s10252_s1 + $0x18] sm:$0xff]  }
   0xc   :  { %v6023_v27 = vld [vmem:[%s10252_s1 + $0xe8] sm:$0xff]   ;;  %v114_v31 = vld [vmem:[%s10253_s2 + $0x30] sm:$0xff]  ;;  %v115_v32 = vld [vmem:[%s10253_s2 + $0x38] sm:$0xff] }
   0xd   :  { %5005 = vmatmul.mubr.msk.bf16.vlgmr.msra.gmra.mxu0 %vm684_vm0, %v5948_v10  ;;  %234 = vperm.xlu0 %5633, %v120_v11   ;;  %v149_v29 = vld [vmem:[%s10253_s2 + $0x148] sm:$0xff]  ;;  %v6048_v33 = vld [vmem:[%s10252_s1 + $0xf0] sm:$0xff]   ;;  %v147_v35 = vld [vmem:[%s10253_s2 + $0x138] sm:$0xff] }
   0xe   :  { %823 = vmatprep.mubr.bf16.mxu0 %v5861_v3  ;;  %5629 = vmatpush1.bf16.msra.mxu1 %v5640_v6  ;;  %v146_v34 = vld [vmem:[%s10253_s2 + $0x130] sm:$0xff]  ;;  %v5648_v36 = vld [vmem:[%s10252_s1 + $0x20] sm:$0xff]   ;;  %v113_v38 = vld [vmem:[%s10253_s2 + $0x28] sm:$0xff] }
   0xf   :  { %239 = vperm.xlu1 %5634, %v121_v12   ;;  %5558 = vmatprep.subr.bf16.mxu1 %v5652_v23  ;;  %v112_v37 = vld [vmem:[%s10253_s2 + $0x20] sm:$0xff]  ;;  %v6073_v39 = vld [vmem:[%s10252_s1 + $0xf8] sm:$0xff]   ;;  %v145_v41 = vld [vmem:[%s10253_s2 + $0x128] sm:$0xff] }
  0x10   :  { %v144_v40 = vld [vmem:[%s10253_s2 + $0x120] sm:$0xff]  ;;  %v5650_v42 = vld [vmem:[%s10252_s1 + $0x28] sm:$0xff]   ;;  %v110_v43 = vld [vmem:[%s10253_s2 + $0x10] sm:$0xff] }
  0x11   :  { %394 = vperm.xlu0 %5633, %v152_v14   ;;  %5032 = vmatmul.mubr.msk.bf16.vlgmr.msra.gmra.mxu1 %vm684_vm0, %v5961_v13  ;;  %v111_v44 = vld [vmem:[%s10253_s2 + $0x18] sm:$0xff]  ;;  %v142_v45 = vld [vmem:[%s10253_s2 + $0x110] sm:$0xff]  ;;  %v108_v48 = vld [vmem:[%s10253_s2] sm:$0xff] }
  0x12   :  { %1093 = vmatprep.mubr.bf16.mxu1 %v5861_v3  ;;  %5559 = vmatpush3.bf16.msra.mxu1 %v5652_v23  ;;  %v143_v46 = vld [vmem:[%s10253_s2 + $0x118] sm:$0xff]  ;;  %v5653_v47 = vld [vmem:[%s10252_s1 + $0x30] sm:$0xff]   ;;  %v109_v49 = vld [vmem:[%s10253_s2 + $0x8] sm:$0xff] }
  0x13   :  { %399 = vperm.xlu1 %5634, %v153_v15   ;;  %5560 = vmatprep.subr.bf16.mxu1 %v5654_v26  ;;  %v140_v50 = vld [vmem:[%s10253_s2 + $0x100] sm:$0xff]  ;;  %v141_v51 = vld [vmem:[%s10253_s2 + $0x108] sm:$0xff]  ;;  %v5655_v52 = vld [vmem:[%s10252_s1 + $0x38] sm:$0xff]  }
  0x14   :  { %v138_v53 = vld [vmem:[%s10253_s2 + $0xf0] sm:$0xff]  ;;  %v139_v54 = vld [vmem:[%s10253_s2 + $0xf8] sm:$0xff]  ;;  %v5656_v56 = vld [vmem:[%s10252_s1 + $0x40] sm:$0xff]  }
  0x15   :  { %5006 = vmatmul.mubr.msk.bf16.gmra.mxu0 %vm684_vm0, %v5973_v16  ;;  %224 = vperm.xlu0 %5633, %v118_v17   ;;  %v170_v55 = vld [vmem:[%s10253_s2 + $0x1f0] sm:$0xff]  ;;  %v171_v57 = vld [vmem:[%s10253_s2 + $0x1f8] sm:$0xff]  ;;  %v136_v58 = vld [vmem:[%s10253_s2 + $0xe0] sm:$0xff] }
  0x16   :  { %833 = vmatprep.mubr.bf16.mxu0 %v5861_v3  ;;  %5561 = vmatpush3.bf16.msra.mxu1 %v5654_v26  ;;  %v137_v59 = vld [vmem:[%s10253_s2 + $0xe8] sm:$0xff]  ;;  %v168_v60 = vld [vmem:[%s10253_s2 + $0x1e0] sm:$0xff]  ;;  %v134_v63 = vld [vmem:[%s10253_s2 + $0xd0] sm:$0xff] }
  0x17   :  { %229 = vperm.xlu1 %5634, %v119_v18   ;;  %v5657_v61 = vld [vmem:[%s10252_s1 + $0x48] sm:$0xff]   ;;  %v135_v0 = vld [vmem:[%s10253_s2 + $0xd8] sm:$0xff]  ;;  %v166_v1 = vld [vmem:[%s10253_s2 + $0x1d0] sm:$0xff] }
  0x18   :  { %v169_v62 = vld [vmem:[%s10253_s2 + $0x1e8] sm:$0xff]  ;;  %v5658_v2 = vld [vmem:[%s10252_s1 + $0x50] sm:$0xff]   ;;  %v167_v4 = vld [vmem:[%s10253_s2 + $0x1d8] sm:$0xff] }
  0x19   :  { %384 = vperm.xlu0 %5633, %v150_v20   ;;  %5033 = vmatmul.mubr.msk.bf16.gmra.mxu1 %vm684_vm0, %v5989_v19  ;;  %v132_v5 = vld [vmem:[%s10253_s2 + $0xc0] sm:$0xff]  ;;  %v133_v6 = vld [vmem:[%s10253_s2 + $0xc8] sm:$0xff]  ;;  %v5659_v8 = vld [vmem:[%s10252_s1 + $0x58] sm:$0xff]  }
  0x1a   :  { %1103 = vmatprep.mubr.bf16.mxu1 %v5861_v3  ;;  %v164_v7 = vld [vmem:[%s10253_s2 + $0x1c0] sm:$0xff]  ;;  %v130_v11 = vld [vmem:[%s10253_s2 + $0xb0] sm:$0xff]  ;;  %v131_v12 = vld [vmem:[%s10253_s2 + $0xb8] sm:$0xff] }
  0x1b   :  { %389 = vperm.xlu1 %5634, %v151_v22   ;;  %v5660_v9 = vld [vmem:[%s10252_s1 + $0x60] sm:$0xff]   ;;  %v162_v14 = vld [vmem:[%s10253_s2 + $0x1b0] sm:$0xff]  ;;  %v5661_v15 = vld [vmem:[%s10252_s1 + $0x68] sm:$0xff]  }
  0x1c   :  { %v163_v17 = vld [vmem:[%s10253_s2 + $0x1b8] sm:$0xff]  ;;  %v128_v18 = vld [vmem:[%s10253_s2 + $0xa0] sm:$0xff]  ;;  %v129_v20 = vld [vmem:[%s10253_s2 + $0xa8] sm:$0xff] }
  0x1d   :  { %5007 = vmatmul.mubr.msk.bf16.gmra.mxu0 %vm684_vm0, %v5998_v21  ;;  %214 = vperm.xlu0 %5633, %v116_v24   ;;  %v5663_v22 = vld [vmem:[%s10252_s1 + $0x78] sm:$0xff]   ;;  %v5664_v23 = vld [vmem:[%s10252_s1 + $0x80] sm:$0xff]  }
  0x1e   :  { %843 = vmatprep.mubr.bf16.mxu0 %v5861_v3 }
  0x1f   :  { %219 = vperm.xlu1 %5634, %v117_v25  }
  0x21   :  { %374 = vperm.xlu0 %5633, %v148_v28   ;;  %5034 = vmatmul.mubr.msk.bf16.gmra.mxu1 %vm684_vm0, %v6023_v27 }
  0x22   :  { %1113 = vmatprep.mubr.bf16.mxu1 %v5861_v3 }
  0x23   :  { %379 = vperm.xlu1 %5634, %v149_v29  }
  0x25   :  { %5008 = vmatmul.mubr.msk.bf16.gmra.mxu0 %vm684_vm0, %v5646_v30  ;;  %204 = vperm.xlu0 %5633, %v114_v31  }
  0x26   :  { %853 = vmatprep.mubr.bf16.mxu0 %v5861_v3 }
  0x27   :  { %209 = vperm.xlu1 %5634, %v115_v32  }
  0x29   :  { %364 = vperm.xlu0 %5633, %v146_v34   ;;  %5035 = vmatmul.mubr.msk.bf16.gmra.mxu1 %vm684_vm0, %v6048_v33 }
  0x2a   :  { %1123 = vmatprep.mubr.bf16.mxu1 %v5861_v3 }
  0x2b   :  { %369 = vperm.xlu1 %5634, %v147_v35  }
  0x2d   :  { %5009 = vmatmul.mubr.msk.bf16.gmra.mxu0 %vm684_vm0, %v5648_v36  ;;  %194 = vperm.xlu0 %5633, %v112_v37  }
  0x2e   :  { %863 = vmatprep.mubr.bf16.mxu0 %v5861_v3 }
  0x2f   :  { %199 = vperm.xlu1 %5634, %v113_v38  }
  0x31   :  { %354 = vperm.xlu0 %5633, %v144_v40   ;;  %5036 = vmatmul.mubr.msk.bf16.gmra.mxu1 %vm684_vm0, %v6073_v39 }
  0x32   :  { %5562 = vmatprep.mubr.msk.bf16.mxu1 %vm684_vm0, %v5948_v10  ;;  %v165_v10 = vld [vmem:[%s10253_s2 + $0x1c8] sm:$0xff] }
  0x33   :  { %359 = vperm.xlu1 %5634, %v145_v41  }
  0x35   :  { %5010 = vmatmul.mubr.msk.bf16.gmra.mxu0 %vm684_vm0, %v5650_v42  ;;  %184 = vperm.xlu0 %5633, %v110_v43  }
  0x36   :  { %873 = vmatprep.mubr.bf16.mxu0 %v5861_v3 }
  0x37   :  { %189 = vperm.xlu1 %5634, %v111_v44  }
  0x39   :  { %344 = vperm.xlu0 %5633, %v142_v45   ;;  %5563 = vmatmul.mubr.msk.bf16.vlgmr.msra.gmra.mxu1 %vm684_vm0, %v5973_v16  ;;  %v5662_v16 = vld [vmem:[%s10252_s1 + $0x70] sm:$0xff]  }
  0x3a   :  { %5566 = vmatprep.mubr.msk.bf16.mxu1 %vm684_vm0, %v5998_v21  ;;  %v160_v21 = vld [vmem:[%s10253_s2 + $0x1a0] sm:$0xff] }
  0x3b   :  { %349 = vperm.xlu1 %5634, %v143_v46  }
  0x3d   :  { %5011 = vmatmul.mubr.msk.bf16.gmra.mxu0 %vm684_vm0, %v5653_v47  ;;  %174 = vperm.xlu0 %5633, %v108_v48  }
  0x3e   :  { %883 = vmatprep.mubr.bf16.mxu0 %v5861_v3 }
  0x3f   :  { %179 = vperm.xlu1 %5634, %v109_v49  }
  0x41   :  { %334 = vperm.xlu0 %5633, %v140_v50   ;;  %5567 = vmatmul.mubr.msk.bf16.gmra.mxu1 %vm684_vm0, %v5646_v30 }
  0x42   :  { %5570 = vmatprep.mubr.msk.bf16.mxu1 %vm684_vm0, %v5648_v36 }
  0x43   :  { %339 = vperm.xlu1 %5634, %v141_v51  }
  0x45   :  { %5012 = vmatmul.mubr.msk.bf16.gmra.mxu0 %vm684_vm0, %v5655_v52  ;;  %324 = vperm.xlu0 %5633, %v138_v53  }
  0x46   :  { %893 = vmatprep.mubr.bf16.mxu0 %v5861_v3 }
  0x47   :  { %329 = vperm.xlu1 %5634, %v139_v54  }
  0x49   :  { %484 = vperm.xlu0 %5633, %v170_v55   ;;  %5571 = vmatmul.mubr.msk.bf16.gmra.mxu1 %vm684_vm0, %v5650_v42 }
  0x4a   :  { %5574 = vmatprep.mubr.msk.bf16.mxu1 %vm684_vm0, %v5653_v47 }
  0x4b   :  { %489 = vperm.xlu1 %5634, %v171_v57  }
  0x4d   :  { %5013 = vmatmul.mubr.msk.bf16.gmra.mxu0 %vm684_vm0, %v5656_v56  ;;  %314 = vperm.xlu0 %5633, %v136_v58  }
  0x4e   :  { %903 = vmatprep.mubr.bf16.mxu0 %v5861_v3 }
  0x4f   :  { %319 = vperm.xlu1 %5634, %v137_v59  }
  0x51   :  { %474 = vperm.xlu0 %5633, %v168_v60   ;;  %5575 = vmatmul.mubr.msk.bf16.gmra.mxu1 %vm684_vm0, %v5655_v52 }
  0x52   :  { %5578 = vmatprep.mubr.msk.bf16.mxu1 %vm684_vm0, %v5656_v56 }
  0x53   :  { %479 = vperm.xlu1 %5634, %v169_v62  }
  0x55   :  { %5014 = vmatmul.mubr.msk.bf16.gmra.mxu0 %vm684_vm0, %v5657_v61  ;;  %304 = vperm.xlu0 %5633, %v134_v63  }
  0x56   :  { %913 = vmatprep.mubr.bf16.mxu0 %v5861_v3 }
  0x57   :  { %309 = vperm.xlu1 %5634, %v135_v0  }
  0x59   :  { %464 = vperm.xlu0 %5633, %v166_v1   ;;  %5579 = vmatmul.mubr.msk.bf16.gmra.mxu1 %vm684_vm0, %v5657_v61 }
  0x5a   :  { %5582 = vmatprep.mubr.msk.bf16.mxu1 %vm684_vm0, %v5658_v2 }
  0x5b   :  { %469 = vperm.xlu1 %5634, %v167_v4  }
  0x5d   :  { %5015 = vmatmul.mubr.msk.bf16.gmra.mxu0 %vm684_vm0, %v5658_v2  ;;  %294 = vperm.xlu0 %5633, %v132_v5  }
  0x5e   :  { %923 = vmatprep.mubr.bf16.mxu0 %v5861_v3 }
  0x5f   :  { %299 = vperm.xlu1 %5634, %v133_v6  }
  0x61   :  { %454 = vperm.xlu0 %5633, %v164_v7   ;;  %5583 = vmatmul.mubr.msk.bf16.gmra.mxu1 %vm684_vm0, %v5659_v8 }
  0x62   :  { %5586 = vmatprep.mubr.msk.bf16.mxu1 %vm684_vm0, %v5660_v9 }
  0x63   :  { %459 = vperm.xlu1 %5634, %v165_v10  }
  0x65   :  { %5016 = vmatmul.mubr.msk.bf16.gmra.mxu0 %vm684_vm0, %v5659_v8  ;;  %284 = vperm.xlu0 %5633, %v130_v11  }
  0x66   :  { %933 = vmatprep.mubr.bf16.mxu0 %v5861_v3 }
  0x67   :  { %289 = vperm.xlu1 %5634, %v131_v12  }
  0x69   :  { %444 = vperm.xlu0 %5633, %v162_v14   ;;  %5587 = vmatmul.mubr.msk.bf16.gmra.mxu1 %vm684_vm0, %v5661_v15 }
  0x6a   :  { %5590 = vmatprep.mubr.msk.bf16.mxu1 %vm684_vm0, %v5662_v16 }
  0x6b   :  { %449 = vperm.xlu1 %5634, %v163_v17  }
  0x6d   :  { %5017 = vmatmul.mubr.msk.bf16.gmra.mxu0 %vm684_vm0, %v5660_v9  ;;  %274 = vperm.xlu0 %5633, %v128_v18  }
  0x6e   :  { %943 = vmatprep.mubr.bf16.mxu0 %v5861_v3 }
  0x6f   :  { %16 = vsyncpa [#allocation4], 0  ;;  %279 = vperm.xlu1 %5634, %v129_v20   ;;  %v161_v24 = vld [vmem:[%s10253_s2 + $0x1a8] sm:$0xff]  ;;  %v126_v25 = vld [vmem:[%s10253_s2 + $0x90] sm:$0xff] }
  0x70   :  { %v127_v26 = vld [vmem:[%s10253_s2 + $0x98] sm:$0xff]  ;;  %v6262_v28 = vld [vmem:[%s10252_s1 + $0x88] sm:$0xff]   ;;  %v158_v29 = vld [vmem:[%s10253_s2 + $0x190] sm:$0xff] }
  0x71   :  { %434 = vperm.xlu0 %5633, %v160_v21   ;;  %5591 = vmatmul.mubr.msk.bf16.gmra.mxu1 %vm684_vm0, %v5663_v22  ;;  %v6271_v30 = vld [vmem:[%s10252_s1 + $0x90] sm:$0xff]   ;;  %v159_v31 = vld [vmem:[%s10253_s2 + $0x198] sm:$0xff]  ;;  %v124_v32 = vld [vmem:[%s10253_s2 + $0x80] sm:$0xff] }
  0x72   :  { %5594 = vmatprep.mubr.msk.bf16.mxu1 %vm684_vm0, %v5664_v23  ;;  %v125_v34 = vld [vmem:[%s10253_s2 + $0x88] sm:$0xff]  ;;  %v6290_v35 = vld [vmem:[%s10252_s1 + $0x98] sm:$0xff]   ;;  %v156_v36 = vld [vmem:[%s10253_s2 + $0x180] sm:$0xff] }
  0x73   :  { %439 = vperm.xlu1 %5634, %v161_v24   ;;  %v6299_v37 = vld [vmem:[%s10252_s1 + $0xa0] sm:$0xff]   ;;  %v157_v40 = vld [vmem:[%s10253_s2 + $0x188] sm:$0xff]  ;;  %v2173_v42 = vld [vmem:[%s10255_s4 + $0x70] sm:$0xff] }
  0x74   :  { %v2174_v44 = vld [vmem:[%s10255_s4 + $0x78] sm:$0xff]  ;;  %v6324_v45 = vld [vmem:[%s10252_s1 + $0xa8] sm:$0xff]   ;;  %v2171_v47 = vld [vmem:[%s10255_s4 + $0x60] sm:$0xff] }
  0x75   :  { %5018 = vmatmul.mubr.msk.bf16.gmra.mxu0 %vm684_vm0, %v5661_v15  ;;  %264 = vperm.xlu0 %5633, %v126_v25   ;;  %v6335_v48 = vld [vmem:[%s10252_s1 + $0xb0] sm:$0xff]   ;;  %v2172_v50 = vld [vmem:[%s10255_s4 + $0x68] sm:$0xff]  ;;  %v2170_v54 = vld [vmem:[%s10255_s4 + $0x58] sm:$0xff] }
  0x76   :  { %953 = vmatprep.mubr.bf16.mxu0 %v5861_v3  ;;  %v2169_v52 = vld [vmem:[%s10255_s4 + $0x50] sm:$0xff]  ;;  %v6360_v55 = vld [vmem:[%s10252_s1 + $0xb8] sm:$0xff]   ;;  %v2167_v57 = vld [vmem:[%s10255_s4 + $0x40] sm:$0xff] }
  0x77   :  { %269 = vperm.xlu1 %5634, %v127_v26   ;;  %v6371_v58 = vld [vmem:[%s10252_s1 + $0xc0] sm:$0xff]   ;;  %v2168_v60 = vld [vmem:[%s10255_s4 + $0x48] sm:$0xff]  ;;  %v2165_v62 = vld [vmem:[%s10255_s4 + $0x30] sm:$0xff] }
  0x78   :  { %v2166_v0 = vld [vmem:[%s10255_s4 + $0x38] sm:$0xff]  ;;  %v6397_v1 = vld [vmem:[%s10252_s1 + $0xc8] sm:$0xff]   ;;  %v2163_v4 = vld [vmem:[%s10255_s4 + $0x20] sm:$0xff] }
  0x79   :  { %424 = vperm.xlu0 %5633, %v158_v29   ;;  %5595 = vmatmul.mubr.msk.bf16.gmra.mxu1 %vm684_vm0, %v6262_v28  ;;  %v6408_v5 = vld [vmem:[%s10252_s1 + $0xd0] sm:$0xff]   ;;  %v2164_v7 = vld [vmem:[%s10255_s4 + $0x28] sm:$0xff]  ;;  %v2162_v11 = vld [vmem:[%s10255_s4 + $0x18] sm:$0xff] }
  0x7a   :  { %5598 = vmatprep.mubr.msk.bf16.mxu1 %vm684_vm0, %v6271_v30  ;;  %v2161_v9 = vld [vmem:[%s10255_s4 + $0x10] sm:$0xff]  ;;  %v2159_v14 = vld [vmem:[%s10255_s4] sm:$0xff]  ;;  %v2190_v21 = vld [vmem:[%s10255_s4 + $0xf8] sm:$0xff] }
  0x7b   :  { %429 = vperm.xlu1 %5634, %v159_v31   ;;  %v2189_v18 = vld [vmem:[%s10255_s4 + $0xf0] sm:$0xff]  ;;  %v2183_v29 = vld [vmem:[%s10255_s4 + $0xc0] sm:$0xff] }
  0x7c   :  { %v2185_v25 = vld [vmem:[%s10255_s4 + $0xd0] sm:$0xff] }
  0x7d   :  { %5019 = vmatmul.mubr.msk.bf16.gmra.mxu0 %vm684_vm0, %v5662_v16  ;;  %254 = vperm.xlu0 %5633, %v124_v32   ;;  %v2160_v16 = vld [vmem:[%s10255_s4 + $0x8] sm:$0xff]  ;;  %v2181_v32 = vld [vmem:[%s10255_s4 + $0xb0] sm:$0xff] }
  0x7e   :  { %963 = vmatprep.mubr.bf16.mxu0 %v5861_v3 }
  0x7f   :  { %259 = vperm.xlu1 %5634, %v125_v34  }
  0x80   :  { %v6301_v38 = vpop.permute.xlu0 %244 }
  0x81   :  { %10504 = vst [vmem:[#allocation6_spill] sm:$0xff] %v6301_v38  ;;  %414 = vperm.xlu0 %5633, %v156_v36   ;;  %5599 = vmatmul.mubr.msk.bf16.gmra.mxu1 %vm684_vm0, %v6290_v35 }
  0x82   :  { %v6308_v41 = vpop.permute.xlu1 %404  ;;  %5602 = vmatprep.mubr.msk.bf16.mxu1 %vm684_vm0, %v6299_v37 }
  0x83   :  { %10505 = vst [vmem:[#allocation7_spill] sm:$0xff] %v6308_v41  ;;  %419 = vperm.xlu1 %5634, %v157_v40   ;;  %v2180_v40 = vld [vmem:[%s10255_s4 + $0xa8] sm:$0xff] }
  0x84   :  { %v6315_v43 = vpop.permute.xlu0 %249 }
  0x85   :  { %10506 = vst [vmem:[#allocation8_spill] sm:$0xff] %v6315_v43  ;;  %5020 = vmatmul.mubr.msk.bf16.gmra.mxu0 %vm684_vm0, %v5663_v22  ;;  %2263 = vperm.xlu0 %5633, %v2173_v42   ;;  %v2187_v22 = vld [vmem:[%s10255_s4 + $0xe0] sm:$0xff] }
  0x86   :  { %v6326_v46 = vpop.permute.xlu1 %409  ;;  %973 = vmatprep.mubr.bf16.mxu0 %v5861_v3 }
  0x87   :  { %10507 = vst [vmem:[#allocation9_spill] sm:$0xff] %v6326_v46  ;;  %2268 = vperm.xlu1 %5634, %v2174_v44   ;;  %v2177_v44 = vld [vmem:[%s10255_s4 + $0x90] sm:$0xff] }
  0x88   :  { %v6337_v49 = vpop.permute.xlu0 %234 }
  0x89   :  { %10508 = vst [vmem:[#allocation10_spill] sm:$0xff] %v6337_v49  ;;  %2253 = vperm.xlu0 %5633, %v2171_v47   ;;  %5603 = vmatmul.mubr.msk.bf16.gmra.mxu1 %vm684_vm0, %v6324_v45  ;;  %v2178_v47 = vld [vmem:[%s10255_s4 + $0x98] sm:$0xff] }
  0x8a   :  { %v6344_v51 = vpop.permute.xlu1 %239  ;;  %5606 = vmatprep.mubr.msk.bf16.mxu1 %vm684_vm0, %v6335_v48 }
  0x8b   :  { %10509 = vst [vmem:[#allocation11_spill] sm:$0xff] %v6344_v51  ;;  %2258 = vperm.xlu1 %5634, %v2172_v50  }
  0x8c   :  { %v6351_v53 = vpop.permute.xlu0 %394 }
  0x8d   :  { %10510 = vst [vmem:[#allocation12_spill] sm:$0xff] %v6351_v53  ;;  %5021 = vmatmul.mubr.msk.bf16.gmra.mxu0 %vm684_vm0, %v5664_v23  ;;  %2243 = vperm.xlu0 %5633, %v2169_v52   ;;  %v2188_v23 = vld [vmem:[%s10255_s4 + $0xe8] sm:$0xff]  ;;  %v2175_v52 = vld [vmem:[%s10255_s4 + $0x80] sm:$0xff] }
  0x8e   :  { %v6362_v56 = vpop.permute.xlu1 %399  ;;  %983 = vmatprep.mubr.bf16.mxu0 %v5861_v3 }
  0x8f   :  { %10511 = vst [vmem:[#allocation13_spill] sm:$0xff] %v6362_v56  ;;  %2248 = vperm.xlu1 %5634, %v2170_v54  }
  0x90   :  { %v6373_v59 = vpop.permute.xlu0 %224 }
  0x91   :  { %10512 = vst [vmem:[#allocation14_spill] sm:$0xff] %v6373_v59  ;;  %2233 = vperm.xlu0 %5633, %v2167_v57   ;;  %5607 = vmatmul.mubr.msk.bf16.gmra.mxu1 %vm684_vm0, %v6360_v55  ;;  %v2176_v57 = vld [vmem:[%s10255_s4 + $0x88] sm:$0xff] }
  0x92   :  { %v6380_v61 = vpop.permute.xlu1 %229  ;;  %5610 = vmatprep.mubr.msk.bf16.mxu1 %vm684_vm0, %v6371_v58 }
  0x93   :  { %10513 = vst [vmem:[#allocation15_spill] sm:$0xff] %v6380_v61  ;;  %2238 = vperm.xlu1 %5634, %v2168_v60  }
  0x94   :  { %v6387_v63 = vpop.permute.xlu0 %384 }
  0x95   :  { %10514 = vst [vmem:[#allocation16_spill] sm:$0xff] %v6387_v63  ;;  %5022 = vmatmul.mubr.msk.bf16.gmra.mxu0 %vm684_vm0, %v6262_v28  ;;  %2223 = vperm.xlu0 %5633, %v2165_v62   ;;  %v2186_v28 = vld [vmem:[%s10255_s4 + $0xd8] sm:$0xff] }
  0x96   :  { %v6399_v2 = vpop.permute.xlu1 %389  ;;  %993 = vmatprep.mubr.bf16.mxu0 %v5861_v3 }
  0x97   :  { %10515 = vst [vmem:[#allocation17_spill] sm:$0xff] %v6399_v2  ;;  %2228 = vperm.xlu1 %5634, %v2166_v0   ;;  %v3762_v0 = vld [vmem:[%s10257_s6 + $0x78] sm:$0xff] }
  0x98   :  { %v6410_v6 = vpop.permute.xlu0 %214 }
  0x99   :  { %10516 = vst [vmem:[#allocation18_spill] sm:$0xff] %v6410_v6  ;;  %2213 = vperm.xlu0 %5633, %v2163_v4   ;;  %5611 = vmatmul.mubr.msk.bf16.gmra.mxu1 %vm684_vm0, %v6397_v1 }
  0x9a   :  { %v6417_v8 = vpop.permute.xlu1 %219  ;;  %5614 = vmatprep.mubr.msk.bf16.mxu1 %vm684_vm0, %v6408_v5 }
  0x9b   :  { %10517 = vst [vmem:[#allocation19_spill] sm:$0xff] %v6417_v8  ;;  %2218 = vperm.xlu1 %5634, %v2164_v7   ;;  %v3759_v7 = vld [vmem:[%s10257_s6 + $0x60] sm:$0xff] }
  0x9c   :  { %v6424_v10 = vpop.permute.xlu0 %374 }
  0x9d   :  { %10518 = vst [vmem:[#allocation20_spill] sm:$0xff] %v6424_v10  ;;  %5023 = vmatmul.mubr.msk.bf16.gmra.mxu0 %vm684_vm0, %v6271_v30  ;;  %2203 = vperm.xlu0 %5633, %v2161_v9   ;;  %v2184_v30 = vld [vmem:[%s10255_s4 + $0xc8] sm:$0xff] }
  0x9e   :  { %v6431_v12 = vpop.permute.xlu1 %379  ;;  %1003 = vmatprep.mubr.bf16.mxu0 %v5861_v3 }
  0x9f   :  { %10519 = vst [vmem:[#allocation21_spill] sm:$0xff] %v6431_v12  ;;  %2208 = vperm.xlu1 %5634, %v2162_v11   ;;  %v3760_v11 = vld [vmem:[%s10257_s6 + $0x68] sm:$0xff]  ;;  %v3747_v12 = vld [vmem:[%s10257_s6] sm:$0xff] }
  0xa0   :  { %v6437_v15 = vpop.permute.xlu0 %204 }
  0xa1   :  { %2193 = vperm.xlu0 %5633, %v2159_v14   ;;  %5615 = vmatmul.mubr.msk.bf16.gmra.mxu1 %vm684_vm0, %v5961_v13 }
  0xa2   :  { %v6444_v17 = vpop.permute.xlu1 %209  ;;  %5618 = vmatprep.mubr.msk.bf16.mxu1 %vm684_vm0, %v5989_v19 }
  0xa3   :  { %2198 = vperm.xlu1 %5634, %v2160_v16  }
  0xa4   :  { %v6451_v20 = vpop.permute.xlu0 %364 }
  0xa5   :  { %10520 = vst [vmem:[#allocation22_spill] sm:$0xff] %v6451_v20  ;;  %5024 = vmatmul.mubr.msk.bf16.gmra.mxu0 %vm684_vm0, %v6290_v35  ;;  %2343 = vperm.xlu0 %5633, %v2189_v18   ;;  %v2182_v35 = vld [vmem:[%s10255_s4 + $0xb8] sm:$0xff] }
  0xa6   :  { %v6458_v13 = vpop.permute.xlu1 %369  ;;  %1013 = vmatprep.mubr.bf16.mxu0 %v5861_v3  ;;  %v3758_v18 = vld [vmem:[%s10257_s6 + $0x58] sm:$0xff] }
  0xa7   :  { %10521 = vst [vmem:[#allocation23_spill] sm:$0xff] %v6458_v13  ;;  %2348 = vperm.xlu1 %5634, %v2190_v21  }
  0xa8   :  { %v6464_v19 = vpop.permute.xlu0 %194 }
  0xa9   :  { %2333 = vperm.xlu0 %5633, %v2187_v22   ;;  %5619 = vmatmul.mubr.msk.bf16.gmra.mxu1 %vm684_vm0, %v6023_v27 }
  0xaa   :  { %v6471_v24 = vpop.permute.xlu1 %199  ;;  %5622 = vmatprep.mubr.msk.bf16.mxu1 %vm684_vm0, %v6048_v33 }
  0xab   :  { %10522 = vst [vmem:[#allocation24_spill] sm:$0xff] %v6471_v24  ;;  %2338 = vperm.xlu1 %5634, %v2188_v23  }
  0xac   :  { %v6478_v26 = vpop.permute.xlu0 %354 }
  0xad   :  { %10523 = vst [vmem:[#allocation25_spill] sm:$0xff] %v6478_v26  ;;  %5025 = vmatmul.mubr.msk.bf16.gmra.mxu0 %vm684_vm0, %v6299_v37  ;;  %2323 = vperm.xlu0 %5633, %v2185_v25   ;;  %v3755_v25 = vld [vmem:[%s10257_s6 + $0x40] sm:$0xff] }
  0xae   :  { %v6485_v27 = vpop.permute.xlu1 %359  ;;  %1023 = vmatprep.mubr.bf16.mxu0 %v5861_v3 }
  0xaf   :  { %10524 = vst [vmem:[#allocation26_spill] sm:$0xff] %v6485_v27  ;;  %2328 = vperm.xlu1 %5634, %v2186_v28  }
  0xb0   :  { %v6491_v33 = vpop.permute.xlu0 %184 }
  0xb1   :  { %2313 = vperm.xlu0 %5633, %v2183_v29   ;;  %5623 = vmatmul.mubr.msk.bf16.gmra.mxu1 %vm684_vm0, %v6073_v39  ;;  %v2179_v39 = vld [vmem:[%s10255_s4 + $0xa0] sm:$0xff] }
  0xb2   :  { %v6498_v31 = vpop.permute.xlu1 %189 }
  0xb3   :  { %2318 = vperm.xlu1 %5634, %v2184_v30  }
  0xb4   :  { %v6503_v34 = vpop.permute.xlu0 %344 }
  0xb5   :  { %10525 = vst [vmem:[#allocation27_spill] sm:$0xff] %v6503_v34  ;;  %5026 = vmatmul.mubr.msk.bf16.gmra.mxu0 %vm684_vm0, %v6324_v45  ;;  %2303 = vperm.xlu0 %5633, %v2181_v32  }
  0xb6   :  { %v6510_v36 = vpop.permute.xlu1 %349  ;;  %1033 = vmatprep.mubr.bf16.mxu0 %v5861_v3 }
  0xb7   :  { %10526 = vst [vmem:[#allocation28_spill] sm:$0xff] %v6510_v36  ;;  %2308 = vperm.xlu1 %5634, %v2182_v35  }
  0xb8   :  { %v6516_v37 = vpop.permute.xlu0 %174 }
  0xb9   :  { %2293 = vperm.xlu0 %5633, %v2179_v39  }
  0xba   :  { %v6521_v42 = vpop.permute.xlu1 %179 }
  0xbb   :  { %10527 = vst [vmem:[#allocation29_spill] sm:$0xff] %v6521_v42  ;;  %2298 = vperm.xlu1 %5634, %v2180_v40  }
  0xbc   :  { %v6526_v45 = vpop.permute.xlu0 %334 }
  0xbd   :  { %10528 = vst [vmem:[#allocation30_spill] sm:$0xff] %v6526_v45  ;;  %5027 = vmatmul.mubr.msk.bf16.gmra.mxu0 %vm684_vm0, %v6335_v48  ;;  %2283 = vperm.xlu0 %5633, %v2177_v44   ;;  %v3761_v48 = vld [vmem:[%s10257_s6 + $0x70] sm:$0xff] }
  0xbe   :  { %v6533_v50 = vpop.permute.xlu1 %339  ;;  %1043 = vmatprep.mubr.bf16.mxu0 %v5861_v3  ;;  %v3753_v44 = vld [vmem:[%s10257_s6 + $0x30] sm:$0xff] }
  0xbf   :  { %10529 = vst [vmem:[#allocation31_spill] sm:$0xff] %v6533_v50  ;;  %2288 = vperm.xlu1 %5634, %v2178_v47  }
  0xc0   :  { %v6539_v54 = vpop.permute.xlu0 %324 }
  0xc1   :  { %10530 = vst [vmem:[#allocation32_spill] sm:$0xff] %v6539_v54  ;;  %2273 = vperm.xlu0 %5633, %v2175_v52  }
  0xc2   :  { %v6544_v60 = vpop.permute.xlu1 %329 }
  0xc3   :  { %10531 = vst [vmem:[#allocation33_spill] sm:$0xff] %v6544_v60  ;;  %2278 = vperm.xlu1 %5634, %v2176_v57  }
  0xc4   :  { %v6549_v62 = vpop.permute.xlu0 %484 }
  0xc5   :  { %10532 = vst [vmem:[#allocation34_spill] sm:$0xff] %v6549_v62  ;;  %5028 = vmatmul.mubr.msk.bf16.gmra.mxu0 %vm684_vm0, %v6360_v55  ;;  %3851 = vperm.xlu0 %5633, %v3761_v48   ;;  %v3757_v55 = vld [vmem:[%s10257_s6 + $0x50] sm:$0xff] }
  0xc6   :  { %v6556_v4 = vpop.permute.xlu1 %489  ;;  %1053 = vmatprep.mubr.bf16.mxu0 %v5861_v3 }
  0xc7   :  { %10533 = vst [vmem:[#allocation35_spill] sm:$0xff] %v6556_v4  ;;  %3856 = vperm.xlu1 %5634, %v3762_v0   ;;  %v3754_v0 = vld [vmem:[%s10257_s6 + $0x38] sm:$0xff] }
  0xc8   :  { %v6562_v9 = vpop.permute.xlu0 %314 }
  0xc9   :  { %10534 = vst [vmem:[#allocation36_spill] sm:$0xff] %v6562_v9  ;;  %3841 = vperm.xlu0 %5633, %v3759_v7  }
  0xca   :  { %v6567_v14 = vpop.permute.xlu1 %319 }
  0xcb   :  { %10535 = vst [vmem:[#allocation37_spill] sm:$0xff] %v6567_v14  ;;  %3846 = vperm.xlu1 %5634, %v3760_v11  }
  0xcc   :  { %v6572_v16 = vpop.permute.xlu0 %474 }
  0xcd   :  { %10536 = vst [vmem:[#allocation38_spill] sm:$0xff] %v6572_v16  ;;  %v815_v21 = vpop.f32.mrf.mxu0  ;;  %5029 = vmatmul.mubr.msk.bf16.gmra.mxu0 %vm684_vm0, %v6371_v58  ;;  %3831 = vperm.xlu0 %5633, %v3757_v55   ;;  %v3756_v58 = vld [vmem:[%s10257_s6 + $0x48] sm:$0xff] }
  0xce   :  { %v816_v22 = vadd.f32 %v815_v21, %v6516_v37  ;;  %v6580_v23 = vpop.permute.xlu1 %479  ;;  %1063 = vmatprep.mubr.bf16.mxu0 %v5861_v3 }
  0xcf   :  { %10537 = vst [vmem:[#allocation39_spill] sm:$0xff] %v6580_v23  ;;  %v6586_v28 = vpop.f32.mrf.mxu0  ;;  %3836 = vperm.xlu1 %5634, %v3758_v18  }
  0xd0   :  { %v6588_v29 = vpop.permute.xlu0 %304  ;;  %v1615_v35 = vmul.f32 0.2, %v816_v22  ;;  %vm1423_vm1 = vcmp.gt.f32.partialorder %v816_v22, 0.0 }
  0xd1   :  { %10538 = vst [vmem:[#allocation40_spill] sm:$0xff] %v6588_v29  ;;  %v819_v30 = vpop.f32.mrf.mxu0  ;;  %3821 = vperm.xlu0 %5633, %v3755_v25   ;;  %v6593_v32 = vpop.f32.mrf.mxu1 }
  0xd2   :  { %10539 = vst [vmem:[#allocation41_spill] sm:$0xff] %v6593_v32  ;;  %v820_v39 = vadd.f32 %v819_v30, %v6521_v42  ;;  %v6596_v40 = vpop.permute.xlu1 %309  ;;  %v6614_v55 = vsel %vm1423_vm1, %v816_v22, %v1615_v35 }
  0xd3   :  { %10540 = vst [vmem:[#allocation42_spill] sm:$0xff] %v6596_v40  ;;  %v6601_v47 = vpop.f32.mrf.mxu0  ;;  %3826 = vperm.xlu1 %5634, %v3756_v58   ;;  %v6603_v52 = vpop.f32.mrf.mxu1  ;;  %10544 = vst [vmem:[#allocation46_spill] sm:$0xff] %v6614_v55  ;;  %v3751_v58 = vld [vmem:[%s10257_s6 + $0x20] sm:$0xff] }
  0xd4   :  { %10541 = vst [vmem:[#allocation43_spill] sm:$0xff] %v6603_v52  ;;  %vm1426_vm2 = vcmp.gt.f32.partialorder %v820_v39, 0.0  ;;  %v1618_v57 = vmul.f32 0.2, %v820_v39  ;;  %v6605_v48 = vpop.permute.xlu0 %464 }
  0xd5   :  { %10542 = vst [vmem:[#allocation44_spill] sm:$0xff] %v6605_v48  ;;  %v825_v7 = vpop.f32.mrf.mxu0  ;;  %5030 = vmatmul.mubr.msk.bf16.gmra.mxu0 %vm684_vm0, %v6397_v1  ;;  %3811 = vperm.xlu0 %5633, %v3753_v44   ;;  %v6612_v11 = vpop.f32.mrf.mxu1 }
  0xd6   :  { %10543 = vst [vmem:[#allocation45_spill] sm:$0xff] %v6612_v11  ;;  %v6616_v18 = vsel %vm1426_vm2, %v820_v39, %v1618_v57  ;;  %v826_v21 = vadd.f32 %v825_v7, %v6491_v33  ;;  %v6619_v25 = vpop.permute.xlu1 %469  ;;  %1073 = vmatprep.mubr.bf16.mxu0 %v5861_v3  ;;  %v3752_v39 = vld [vmem:[%s10257_s6 + $0x28] sm:$0xff] }
  0xd7   :  { %10545 = vst [vmem:[#allocation47_spill] sm:$0xff] %v6619_v25  ;;  %v6627_v30 = vpop.f32.mrf.mxu0  ;;  %3816 = vperm.xlu1 %5634, %v3754_v0   ;;  %v6629_v22 = vpop.f32.mrf.mxu1  ;;  %v3749_v0 = vld [vmem:[%s10257_s6 + $0x10] sm:$0xff] }
  0xd8   :  { %10546 = vst [vmem:[#allocation48_spill] sm:$0xff] %v6629_v22  ;;  %v6631_v35 = vpop.permute.xlu0 %294  ;;  %v1621_v7 = vmul.f32 0.2, %v826_v21  ;;  %vm1429_vm3 = vcmp.gt.f32.partialorder %v826_v21, 0.0 }
  0xd9   :  { %10547 = vst [vmem:[#allocation49_spill] sm:$0xff] %v6631_v35  ;;  %v829_v44 = vpop.f32.mrf.mxu0  ;;  %3801 = vperm.xlu0 %5633, %v3751_v58   ;;  %v1095_v57 = vpop.f32.mrf.mxu1  ;;  %v3750_v58 = vld [vmem:[%s10257_s6 + $0x18] sm:$0xff] }
  0xda   :  { %v830_v3 = vadd.f32 %v829_v44, %v6498_v31  ;;  %v6637_v52 = vpop.permute.xlu1 %299  ;;  %v6654_v53 = vsel %vm1429_vm3, %v826_v21, %v1621_v7 }
  0xdb   :  { %10548 = vst [vmem:[#allocation50_spill] sm:$0xff] %v6637_v52  ;;  %v6642_v1 = vpop.f32.mrf.mxu0  ;;  %3806 = vperm.xlu1 %5634, %v3752_v39   ;;  %v6644_v22 = vpop.f32.mrf.mxu1 }
  0xdc   :  { %10549 = vst [vmem:[#allocation51_spill] sm:$0xff] %v6644_v22  ;;  %vm1432_vm4 = vcmp.gt.f32.partialorder %v830_v3, 0.0  ;;  %v1624_v56 = vmul.f32 0.2, %v830_v3  ;;  %v6646_v2 = vpop.permute.xlu0 %454 }
  0xdd   :  { %10550 = vst [vmem:[#allocation52_spill] sm:$0xff] %v6646_v2  ;;  %v835_v44 = vpop.f32.mrf.mxu0  ;;  %5031 = vmatmul.mubr.msk.bf16.gmra.mxu0 %vm684_vm0, %v6408_v5  ;;  %3791 = vperm.xlu0 %5633, %v3749_v0   ;;  %v1096_v46 = vadd.f32 %v1095_v57, %v6646_v2  ;;  %v1099_v41 = vpop.f32.mrf.mxu1 }
  0xde   :  { %v6656_v39 = vsel %vm1432_vm4, %v830_v3, %v1624_v56  ;;  %v836_v22 = vadd.f32 %v835_v44, %v6464_v19  ;;  %v6668_v57 = vpop.permute.xlu1 %459  ;;  %v3748_v56 = vld [vmem:[%s10257_s6 + $0x8] sm:$0xff] }
  0xdf   :  { %v6664_v63 = vpop.f32.mrf.mxu0  ;;  %3796 = vperm.xlu1 %5634, %v3750_v58   ;;  %v6666_v5 = vpop.f32.mrf.mxu1  ;;  %10552 = vst [vmem:[#allocation54_spill] sm:$0xff] %v6668_v57  ;;  %v1783_v7 = vmul.f32 0.2, %v1096_v46  ;;  %v1100_v3 = vadd.f32 %v1099_v41, %v6668_v57  ;;  %vm1591_vm5 = vcmp.gt.f32.partialorder %v1096_v46, 0.0  ;;  %v3777_v58 = vld [vmem:[%s10257_s6 + $0xf0] sm:$0xff]  ;;  %v3778_v41 = vld [vmem:[%s10257_s6 + $0xf8] sm:$0xff] }
  0xe0   :  { %10551 = vst [vmem:[#allocation53_spill] sm:$0xff] %v6666_v5  ;;  %v1627_v44 = vmul.f32 0.2, %v836_v22  ;;  %vm1435_vm6 = vcmp.gt.f32.partialorder %v836_v22, 0.0 }
  0xe1   :  { %v839_v21 = vpop.f32.mrf.mxu0  ;;  %3781 = vperm.xlu0 %5633, %v3747_v12   ;;  %v1105_v0 = vpop.f32.mrf.mxu1  ;;  %vm1594_vm7 = vcmp.gt.f32.partialorder %v1100_v3, 0.0  ;;  %v1786_v2 = vmul.f32 0.2, %v1100_v3 }
  0xe2   :  { %v840_v10 = vadd.f32 %v839_v21, %v6471_v24  ;;  %v6685_v21 = vsel %vm1591_vm5, %v1096_v46, %v1783_v7  ;;  %v6691_v50 = vsel %vm1435_vm6, %v836_v22, %v1627_v44  ;;  %v1106_v22 = vadd.f32 %v1105_v0, %v6605_v48  ;;  %v6712_v44 = vpop.permute.xlu0 %284 }
  0xe3   :  { %v6678_v5 = vpop.f32.mrf.mxu0  ;;  %3786 = vperm.xlu1 %5634, %v3748_v56   ;;  %v6680_v27 = vpop.f32.mrf.mxu1  ;;  %10554 = vst [vmem:[#allocation56_spill] sm:$0xff] %v6685_v21  ;;  %v6689_v26 = vsel %vm1594_vm7, %v1100_v3, %v1786_v2  ;;  %v3775_v56 = vld [vmem:[%s10257_s6 + $0xe0] sm:$0xff]  ;;  %10557 = vst [vmem:[#allocation59_spill] sm:$0xff] %v6712_v44  ;;  %v3774_v2 = vld [vmem:[%s10257_s6 + $0xd8] sm:$0xff] }
  0xe4   :  { %10553 = vst [vmem:[#allocation55_spill] sm:$0xff] %v6680_v27  ;;  %vm1438_vm8 = vcmp.gt.f32.partialorder %v840_v10, 0.0  ;;  %v1630_v12 = vmul.f32 0.2, %v840_v10  ;;  %10555 = vst [vmem:[#allocation57_spill] sm:$0xff] %v6689_v26  ;;  %vm1597_vm9 = vcmp.gt.f32.partialorder %v1106_v22, 0.0  ;;  %v6727_v26 = vpop.permute.xlu1 %289 }
  0xe5   :  { %v6687_v57 = vpop.f32.mrf.mxu0  ;;  %3931 = vperm.xlu0 %5633, %v3777_v58   ;;  %v1109_v11 = vpop.f32.mrf.mxu1  ;;  %v3773_v58 = vld [vmem:[%s10257_s6 + $0xd0] sm:$0xff]  ;;  %v1789_v0 = vmul.f32 0.2, %v1106_v22  ;;  %10559 = vst [vmem:[#allocation61_spill] sm:$0xff] %v6727_v26 }
  0xe6   :  { %v6693_v45 = vsel %vm1438_vm8, %v840_v10, %v1630_v12  ;;  %v3776_v10 = vld [vmem:[%s10257_s6 + $0xe8] sm:$0xff]  ;;  %v6738_v60 = vpop.permute.xlu0 %444 }
  0xe7   :  { %v6700_v54 = vpop.f32.mrf.mxu0  ;;  %3936 = vperm.xlu1 %5634, %v3778_v41   ;;  %v6702_v46 = vpop.f32.mrf.mxu1  ;;  %10562 = vst [vmem:[#allocation64_spill] sm:$0xff] %v6738_v60 }
  0xe8   :  { %10556 = vst [vmem:[#allocation58_spill] sm:$0xff] %v6702_v46  ;;  %v6732_v46 = vsel %vm1597_vm9, %v1106_v22, %v1789_v0  ;;  %v6757_v29 = vpop.permute.xlu1 %449 }
  0xe9   :  { %v6710_v7 = vpop.f32.mrf.mxu0  ;;  %3921 = vperm.xlu0 %5633, %v3775_v56   ;;  %v1115_v3 = vpop.f32.mrf.mxu1  ;;  %v1110_v56 = vadd.f32 %v1109_v11, %v6619_v25  ;;  %10560 = vst [vmem:[#allocation62_spill] sm:$0xff] %v6732_v46  ;;  %10565 = vst [vmem:[#allocation67_spill] sm:$0xff] %v6757_v29 }
  0xea   :  { %v1116_v11 = vadd.f32 %v1115_v3, %v6572_v16  ;;  %v6765_v46 = vpop.permute.xlu0 %274 }
  0xeb   :  { %v6717_v12 = vpop.f32.mrf.mxu0  ;;  %3926 = vperm.xlu1 %5634, %v3776_v10   ;;  %v6719_v41 = vpop.f32.mrf.mxu1  ;;  %v3771_v10 = vld [vmem:[%s10257_s6 + $0xc0] sm:$0xff]  ;;  %vm1600_vm10 = vcmp.gt.f32.partialorder %v1110_v56, 0.0 }
  0xec   :  { %10558 = vst [vmem:[#allocation60_spill] sm:$0xff] %v6719_v41  ;;  %v1792_v41 = vmul.f32 0.2, %v1110_v56  ;;  %v1795_v3 = vmul.f32 0.2, %v1116_v11  ;;  %vm1603_vm11 = vcmp.gt.f32.partialorder %v1116_v11, 0.0 }
  0xed   :  { %v6724_v27 = vpop.f32.mrf.mxu0  ;;  %3911 = vperm.xlu0 %5633, %v3773_v58   ;;  %v1119_v21 = vpop.f32.mrf.mxu1  ;;  %v3772_v58 = vld [vmem:[%s10257_s6 + $0xc8] sm:$0xff] }
  0xee   :  { %v6744_v25 = vsel %vm1600_vm10, %v1110_v56, %v1792_v41  ;;  %v3770_v41 = vld [vmem:[%s10257_s6 + $0xb8] sm:$0xff] }
  0xef   :  { %v6734_v48 = vpop.f32.mrf.mxu0  ;;  %3916 = vperm.xlu1 %5634, %v3774_v2   ;;  %v6736_v14 = vpop.f32.mrf.mxu1  ;;  %10563 = vst [vmem:[#allocation65_spill] sm:$0xff] %v6744_v25  ;;  %v3769_v2 = vld [vmem:[%s10257_s6 + $0xb0] sm:$0xff]  ;;  %v6770_v25 = vsel %vm1603_vm11, %v1116_v11, %v1795_v3  ;;  %v3766_v3 = vld [vmem:[%s10257_s6 + $0x98] sm:$0xff] }
  0xf0   :  { %10561 = vst [vmem:[#allocation63_spill] sm:$0xff] %v6736_v14  ;;  %10566 = vst [vmem:[#allocation68_spill] sm:$0xff] %v6770_v25  ;;  %v6782_v11 = vpop.permute.xlu1 %279 }
  0xf1   :  { %v6746_v9 = vpop.f32.mrf.mxu0  ;;  %3901 = vperm.xlu0 %5633, %v3771_v10   ;;  %v1125_v22 = vpop.f32.mrf.mxu1  ;;  %v1120_v10 = vadd.f32 %v1119_v21, %v6580_v23  ;;  %v3768_v21 = vld [vmem:[%s10257_s6 + $0xa8] sm:$0xff] }
  0xf2   :  { %v1126_v52 = vadd.f32 %v1125_v22, %v6549_v62  ;;  %v3765_v22 = vld [vmem:[%s10257_s6 + $0x90] sm:$0xff] }
  0xf3   :  { %v6753_v14 = vpop.f32.mrf.mxu0  ;;  %3906 = vperm.xlu1 %5634, %v3772_v58   ;;  %v6755_v16 = vpop.f32.mrf.mxu1  ;;  %v3767_v58 = vld [vmem:[%s10257_s6 + $0xa0] sm:$0xff]  ;;  %vm1606_vm12 = vcmp.gt.f32.partialorder %v1120_v10, 0.0  ;;  %v1798_v29 = vmul.f32 0.2, %v1120_v10 }
  0xf4   :  { %10564 = vst [vmem:[#allocation66_spill] sm:$0xff] %v6755_v16  ;;  %vm1609_vm13 = vcmp.gt.f32.partialorder %v1126_v52, 0.0 }
  0xf5   :  { %v6762_v56 = vpop.f32.mrf.mxu0  ;;  %3891 = vperm.xlu0 %5633, %v3769_v2   ;;  %v1129_v0 = vpop.f32.mrf.mxu1  ;;  %v6780_v2 = vsel %vm1606_vm12, %v1120_v10, %v1798_v29  ;;  %v5677_v29 = vld [vmem:[%s10254_s3 + $0x4] ss:$16 sps:$4 sm:$0xff]  }
  0xf6   :  { %10568 = vst [vmem:[#allocation70_spill] sm:$0xff] %v6780_v2  ;;  %v6794_v10 = vpop.permute.xlu0 %434  ;;  %2703 = vmatprep.mubr.bf16.mxu1 %v5677_v29 }
  0xf7   :  { %v6772_v16 = vpop.f32.mrf.mxu0  ;;  %3896 = vperm.xlu1 %5634, %v3770_v41   ;;  %v6775_v13 = vpop.f32.mrf.mxu1  ;;  %10570 = vst [vmem:[#allocation72_spill] sm:$0xff] %v6794_v10 }
  0xf8   :  { %10567 = vst [vmem:[#allocation69_spill] sm:$0xff] %v6775_v13  ;;  %v1801_v13 = vmul.f32 0.2, %v1126_v52 }
  0xf9   :  { %v869_v23 = vpop.f32.mrf.mxu0  ;;  %3881 = vperm.xlu0 %5633, %v3767_v58   ;;  %v5564_v20 = vpop.f32.mrf.mxu1  ;;  %v1130_v58 = vadd.f32 %v1129_v0, %v6556_v4 }
  0xfa   :  { %v1177_v26 = vadd.f32 %v5564_v20, %v6491_v33  ;;  %v6808_v4 = vpop.permute.xlu1 %439  ;;  %v4790_v20 = vld [vmem:[#allocation2] sm:$0x1] }
  0xfb   :  { %v871_v41 = vpop.f32.mrf.mxu0  ;;  %3886 = vperm.xlu1 %5634, %v3768_v21   ;;  %v6789_v62 = vpop.f32.mrf.mxu1  ;;  %vm1612_vm14 = vcmp.gt.f32.partialorder %v1130_v58, 0.0  ;;  %v3763_v21 = vld [vmem:[%s10257_s6 + $0x80] sm:$0xff]  ;;  %v1804_v10 = vmul.f32 0.2, %v1130_v58  ;;  %10573 = vst [vmem:[#allocation75_spill] sm:$0xff] %v6808_v4 }
  0xfc   :  { %10569 = vst [vmem:[#allocation71_spill] sm:$0xff] %v6789_v62  ;;  %v6803_v62 = vsel %vm1609_vm13, %v1126_v52, %v1801_v13  ;;  %v6815_v13 = vpop.permute.xlu0 %264  ;;  %v1623_v60 = vmul.f32 0.2, %v1177_v26  ;;  %vm1431_vm15 = vcmp.gt.f32.partialorder %v1177_v26, 0.0  ;;  %v6836_v52 = vadd.f32 %v6678_v5, %v6471_v24 }
  0xfd   :  { %v875_v25 = vpop.f32.mrf.mxu0  ;;  %3871 = vperm.xlu0 %5633, %v3765_v22   ;;  %v5565_v2 = vpop.f32.mrf.mxu1  ;;  %10571 = vst [vmem:[#allocation73_spill] sm:$0xff] %v6803_v62  ;;  %v3764_v22 = vld [vmem:[%s10257_s6 + $0x88] sm:$0xff]  ;;  %v6813_v29 = vsel %vm1612_vm14, %v1130_v58, %v1804_v10  ;;  %v6824_v10 = vadd.f32 %v6601_v47, %v6521_v42  ;;  %v6828_v58 = vadd.f32 %v6627_v30, %v6491_v33 }
  0xfe   :  { %10574 = vst [vmem:[#allocation76_spill] sm:$0xff] %v6813_v29  ;;  %v6840_v62 = vadd.f32 %v6700_v54, %v6437_v15  ;;  %v6842_v47 = vpop.permute.xlu1 %269  ;;  %v6854_v5 = vadd.f32 %v869_v23, %v6380_v61  ;;  %v6857_v54 = vsel %vm1431_vm15, %v1177_v26, %v1623_v60  ;;  %v6876_v26 = vadd.f32 %v871_v41, %v6380_v61 }
  0xff   :  { %v877_v40 = vpop.f32.mrf.mxu0  ;;  %3876 = vperm.xlu1 %5634, %v3766_v3   ;;  %v6806_v0 = vpop.f32.mrf.mxu1  ;;  %10576 = vst [vmem:[#allocation78_spill] sm:$0xff] %v6857_v54  ;;  %v6880_v60 = vadd.f32 %v6746_v9, %v6417_v8  ;;  %v6895_v41 = vadd.f32 %v6762_v56, %v6373_v59 }
 0x100   :  { %10572 = vst [vmem:[#allocation74_spill] sm:$0xff] %v6806_v0  ;;  %v1180_v0 = vadd.f32 %v5565_v2, %v6498_v31  ;;  %v6873_v23 = vpop.permute.xlu0 %424  ;;  %vm1457_vm14 = vcmp.gt.f32.partialorder %v6876_v26, 0.0  ;;  %vm1456_vm15 = vcmp.gt.f32.partialorder %v6854_v5, 0.0 }
 0x101   :  { %v879_v44 = vpop.f32.mrf.mxu0  ;;  %3861 = vperm.xlu0 %5633, %v3763_v21   ;;  %v5568_v32 = vpop.f32.mrf.mxu1  ;;  %v6832_v21 = vadd.f32 %v6642_v1, %v6498_v31  ;;  %v6847_v31 = vadd.f32 %v6710_v7, %v6444_v17  ;;  %v6851_v1 = vadd.f32 %v6772_v16, %v6373_v59  ;;  %v6867_v7 = vadd.f32 %v6724_v27, %v6410_v6 }
 0x102   :  { %vm1434_vm0 = vcmp.gt.f32.partialorder %v1180_v0, 0.0  ;;  %v1626_v33 = vmul.f32 0.2, %v1180_v0  ;;  %v1193_v30 = vadd.f32 %v5568_v32, %v6437_v15  ;;  %v6863_v32 = vadd.f32 %v6717_v12, %v6444_v17  ;;  %10578 = vst [vmem:[#allocation80_spill] sm:$0xff] %v6873_v23  ;;  %v6909_v56 = vpop.permute.xlu1 %429 }
 0x103   :  { %v881_v3 = vpop.f32.mrf.mxu0  ;;  %3866 = vperm.xlu1 %5634, %v3764_v22   ;;  %v6820_v4 = vpop.f32.mrf.mxu1  ;;  %v6871_v16 = vadd.f32 %v6734_v48, %v6410_v6  ;;  %v6883_v12 = vadd.f32 %v875_v25, %v6337_v49  ;;  %v6901_v61 = vmul.f32 0.2, %v6851_v1  ;;  %10582 = vst [vmem:[#allocation84_spill] sm:$0xff] %v6909_v56  ;;  %vm1454_vm5 = vcmp.gt.f32.partialorder %v6851_v1, 0.0 }
 0x104   :  { %10575 = vst [vmem:[#allocation77_spill] sm:$0xff] %v6820_v4  ;;  %v6889_v27 = vsel %vm1434_vm0, %v1180_v0, %v1626_v33  ;;  %v1635_v25 = vmul.f32 0.2, %v1193_v30  ;;  %vm1443_vm1 = vcmp.gt.f32.partialorder %v1193_v30, 0.0  ;;  %v6923_v56 = vpop.permute.xlu0 %254  ;;  %vm1453_vm0 = vcmp.gt.f32.partialorder %v6895_v41, 0.0 }
 0x105   :  { %v885_v2 = vpop.f32.mrf.mxu0  ;;  %4793 = vperm.xlu0 %5633, %v4790_v20   ;;  %v5569_v22 = vpop.f32.mrf.mxu1  ;;  %10579 = vst [vmem:[#allocation81_spill] sm:$0xff] %v6889_v27  ;;  %vm1459_vm2 = vcmp.gt.f32.partialorder %v6883_v12, 0.0  ;;  %10584 = vst [vmem:[#allocation86_spill] sm:$0xff] %v6923_v56 }
 0x106   :  { %v886_v9 = vadd.f32 %v885_v2, %v6301_v38  ;;  %v1196_v27 = vadd.f32 %v5569_v22, %v6444_v17  ;;  %v6926_v2 = vsel %vm1443_vm1, %v1193_v30, %v1635_v25  ;;  %v6939_v42 = vpop.permute.xlu1 %259  ;;  %vm1450_vm1 = vcmp.gt.f32.partialorder %v6880_v60, 0.0 }
 0x107   :  { %v887_v20 = vpop.f32.mrf.mxu0  ;;  %v6859_v29 = vpop.f32.mrf.mxu1  ;;  %10585 = vst [vmem:[#allocation87_spill] sm:$0xff] %v6926_v2 }
 0x108   :  { %10577 = vst [vmem:[#allocation79_spill] sm:$0xff] %v6859_v29  ;;  %v6886_v29 = vadd.f32 %v877_v40, %v6337_v49  ;;  %v888_v23 = vadd.f32 %v887_v20, %v6301_v38  ;;  %v6904_v40 = vmul.f32 0.2, %v6854_v5  ;;  %v6912_v20 = vmul.f32 0.2, %v6876_v26 }
 0x109   :  { %v889_v48 = vpop.f32.mrf.mxu0  ;;  %v6891_v6 = vpop.f32.mrf.mxu1  ;;  %vm1446_vm4 = vcmp.gt.f32.partialorder %v1196_v27, 0.0  ;;  %vm1465_vm10 = vcmp.gt.f32.partialorder %v886_v9, 0.0 }
 0x10a   :  { %10580 = vst [vmem:[#allocation82_spill] sm:$0xff] %v6891_v6  ;;  %v890_v0 = vadd.f32 %v889_v48, %v6315_v43  ;;  %vm1460_vm3 = vcmp.gt.f32.partialorder %v6886_v29, 0.0  ;;  %v880_v48 = vadd.f32 %v879_v44, %v6344_v51  ;;  %v882_v6 = vadd.f32 %v881_v3, %v6344_v51 }
 0x10b   :  { %v891_v33 = vpop.f32.mrf.mxu0  ;;  %v6907_v49 = vpop.f32.mrf.mxu1  ;;  %v1658_v24 = vmul.f32 0.2, %v888_v23  ;;  %v1638_v3 = vmul.f32 0.2, %v1196_v27  ;;  %v1652_v51 = vmul.f32 0.2, %v6886_v29 }
 0x10c   :  { %10581 = vst [vmem:[#allocation83_spill] sm:$0xff] %v6907_v49  ;;  %v892_v54 = vadd.f32 %v891_v33, %v6315_v43  ;;  %v1660_v4 = vmul.f32 0.2, %v890_v0  ;;  %vm1468_vm6 = vcmp.gt.f32.partialorder %v890_v0, 0.0  ;;  %v1657_v43 = vmul.f32 0.2, %v886_v9 }
 0x10d   :  { %v895_v49 = vpop.f32.mrf.mxu0  ;;  %v6921_v59 = vpop.f32.mrf.mxu1  ;;  %vm1466_vm7 = vcmp.gt.f32.partialorder %v888_v23, 0.0  ;;  %vm1462_vm9 = vcmp.gt.f32.partialorder %v880_v48, 0.0  ;;  %v1655_v30 = vmul.f32 0.2, %v882_v6  ;;  %v6935_v25 = vsel %vm1446_vm4, %v1196_v27, %v1638_v3 }
 0x10e   :  { %10583 = vst [vmem:[#allocation85_spill] sm:$0xff] %v6921_v59  ;;  %v1661_v17 = vmul.f32 0.2, %v892_v54  ;;  %v896_v22 = vadd.f32 %v895_v49, %v6923_v56  ;;  %vm1469_vm8 = vcmp.gt.f32.partialorder %v892_v54, 0.0  ;;  %10588 = vst [vmem:[#allocation90_spill] sm:$0xff] %v6935_v25  ;;  %vm1463_vm11 = vcmp.gt.f32.partialorder %v882_v6, 0.0 }
 0x10f   :  { %v6930_v44 = vpop.f32.mrf.mxu0  ;;  %v6932_v33 = vpop.f32.mrf.mxu1  ;;  %v1654_v49 = vmul.f32 0.2, %v880_v48  ;;  %v1850_v27 = vsel %vm1466_vm7, %v888_v23, %v1658_v24  ;;  %v1849_v55 = vsel %vm1465_vm10, %v886_v9, %v1657_v43  ;;  %v1844_v43 = vsel %vm1460_vm3, %v6886_v29, %v1652_v51 }
 0x110   :  { %10586 = vst [vmem:[#allocation88_spill] sm:$0xff] %v6930_v44  ;;  %10587 = vst [vmem:[#allocation89_spill] sm:$0xff] %v6932_v33  ;;  %v1852_v44 = vsel %vm1468_vm6, %v890_v0, %v1660_v4  ;;  %v1663_v56 = vmul.f32 0.2, %v896_v22  ;;  %v1853_v3 = vsel %vm1469_vm8, %v892_v54, %v1661_v17  ;;  %vm1471_vm12 = vcmp.gt.f32.partialorder %v896_v22, 0.0 }
 0x111   :  { %v899_v59 = vpop.f32.mrf.mxu0  ;;  %v6937_v38 = vpop.f32.mrf.mxu1  ;;  %v2021_v4 = vpack.c.bf16 %v1853_v3, %v1850_v27  ;;  %v2020_v0 = vpack.c.bf16 %v1852_v44, %v1849_v55  ;;  %v1846_v24 = vsel %vm1462_vm9, %v880_v48, %v1654_v49  ;;  %v862_v48 = vadd.f32 %v6753_v14, %v6417_v8 }
 0x112   :  { %10589 = vst [vmem:[#allocation91_spill] sm:$0xff] %v6937_v38  ;;  %v900_v35 = vadd.f32 %v899_v59, %v6939_v42  ;;  %v1651_v38 = vmul.f32 0.2, %v6883_v12  ;;  %v1847_v59 = vsel %vm1463_vm11, %v882_v6, %v1655_v30  ;;  %v6963_v55 = vsel %vm1471_vm12, %v896_v22, %v1663_v56 }
 0x113   :  { %v6945_v36 = vpop.f32.mrf.mxu0  ;;  %v6949_v34 = vpop.f32.mrf.mxu1  ;;  %2671 = vmatprep.subr.bf16.mxu1 %v2021_v4  ;;  %10592 = vst [vmem:[#allocation94_spill] sm:$0xff] %v6963_v55  ;;  %v2018_v6 = vpack.c.bf16 %v1847_v59, %v1844_v43  ;;  %v1841_v14 = vsel %vm1457_vm14, %v6876_v26, %v6912_v20  ;;  %v1838_v30 = vsel %vm1454_vm5, %v6851_v1, %v6901_v61  ;;  %v1642_v49 = vmul.f32 0.2, %v6880_v60  ;;  %v10631_v55 = vld [vmem:[#allocation23_spill] sm:$0xff] }
 0x114   :  { %10590 = vst [vmem:[#allocation92_spill] sm:$0xff] %v6949_v34  ;;  %vm1474_vm13 = vcmp.gt.f32.partialorder %v900_v35, 0.0  ;;  %v1666_v33 = vmul.f32 0.2, %v900_v35  ;;  %2672 = vmatpush1.bf16.msra.mxu1 %v2020_v0  ;;  %v1843_v51 = vsel %vm1459_vm2, %v6883_v12, %v1651_v38  ;;  %v1840_v38 = vsel %vm1456_vm15, %v6854_v5, %v6904_v40 }
 0x115   :  { %v905_v2 = vpop.f32.mrf.mxu0  ;;  %v6954_v25 = vpop.f32.mrf.mxu1  ;;  %v2017_v56 = vpack.c.bf16 %v1846_v24, %v1843_v51  ;;  %2673 = vmatprep.subr.bf16.mxu1 %v2018_v6  ;;  %v2015_v26 = vpack.c.bf16 %v1841_v14, %v1838_v30  ;;  %v1643_v5 = vmul.f32 0.2, %v862_v48  ;;  %v1639_v61 = vmul.f32 0.2, %v6867_v7 }
 0x116   :  { %10591 = vst [vmem:[#allocation93_spill] sm:$0xff] %v6954_v25  ;;  %v906_v54 = vadd.f32 %v905_v2, %v6815_v13  ;;  %v6965_v23 = vsel %vm1474_vm13, %v900_v35, %v1666_v33  ;;  %v1645_v2 = vmul.f32 0.2, %v6895_v41  ;;  %v1640_v35 = vmul.f32 0.2, %v6871_v16 }
 0x117   :  { %10593 = vst [vmem:[#allocation95_spill] sm:$0xff] %v6965_v23  ;;  %v6967_v9 = vpop.f32.mrf.mxu0  ;;  %v6969_v17 = vpop.f32.mrf.mxu1  ;;  %vm1448_vm4 = vcmp.gt.f32.partialorder %v6871_v16, 0.0  ;;  %vm1451_vm5 = vcmp.gt.f32.partialorder %v862_v48, 0.0  ;;  %v846_v59 = vadd.f32 %v6687_v57, %v6437_v15  ;;  %vm1447_vm6 = vcmp.gt.f32.partialorder %v6867_v7, 0.0 }
 0x118   :  { %10594 = vst [vmem:[#allocation96_spill] sm:$0xff] %v6969_v17  ;;  %v1669_v12 = vmul.f32 0.2, %v906_v54  ;;  %vm1477_vm2 = vcmp.gt.f32.partialorder %v906_v54, 0.0  ;;  %2674 = vmatpush1.bf16.msra.mxu1 %v2017_v56  ;;  %v1837_v40 = vsel %vm1453_vm0, %v6895_v41, %v1645_v2  ;;  %v1634_v43 = vmul.f32 0.2, %v6840_v62 }
 0x119   :  { %v909_v22 = vpop.f32.mrf.mxu0  ;;  %v6985_v44 = vpop.f32.mrf.mxu1  ;;  %v2014_v1 = vpack.c.bf16 %v1840_v38, %v1837_v40  ;;  %2675 = vmatprep.subr.bf16.mxu1 %v2015_v26  ;;  %v1834_v6 = vsel %vm1450_vm1, %v6880_v60, %v1642_v49  ;;  %v1637_v56 = vmul.f32 0.2, %v6863_v32  ;;  %v1835_v60 = vsel %vm1451_vm5, %v862_v48, %v1643_v5  ;;  %v10620_v2 = vld [vmem:[#allocation28_spill] sm:$0xff] }
 0x11a   :  { %10595 = vst [vmem:[#allocation97_spill] sm:$0xff] %v6985_v44  ;;  %v910_v33 = vadd.f32 %v909_v22, %v6842_v47  ;;  %v7013_v24 = vsel %vm1477_vm2, %v906_v54, %v1669_v12  ;;  %v1636_v54 = vmul.f32 0.2, %v6847_v31  ;;  %v1832_v22 = vsel %vm1448_vm4, %v6871_v16, %v1640_v35  ;;  %v10625_v44 = vld [vmem:[#allocation41_spill] sm:$0xff] }
 0x11b   :  { %v6998_v20 = vpop.f32.mrf.mxu0  ;;  %v7000_v27 = vpop.f32.mrf.mxu1  ;;  %10598 = vst [vmem:[#allocation100_spill] sm:$0xff] %v7013_v24  ;;  %vm1444_vm7 = vcmp.gt.f32.partialorder %v6847_v31, 0.0  ;;  %vm1445_vm8 = vcmp.gt.f32.partialorder %v6863_v32, 0.0  ;;  %v1831_v14 = vsel %vm1447_vm6, %v6867_v7, %v1639_v61  ;;  %v2012_v38 = vpack.c.bf16 %v1835_v60, %v1832_v22 }
 0x11c   :  { %10596 = vst [vmem:[#allocation98_spill] sm:$0xff] %v7000_v27  ;;  %vm1480_vm3 = vcmp.gt.f32.partialorder %v910_v33, 0.0  ;;  %v1672_v3 = vmul.f32 0.2, %v910_v33  ;;  %2676 = vmatpush1.bf16.msra.mxu1 %v2014_v1  ;;  %v838_v30 = vadd.f32 %v6664_v63, %v6464_v19  ;;  %v1633_v49 = vmul.f32 0.2, %v846_v59 }
 0x11d   :  { %v915_v4 = vpop.f32.mrf.mxu0  ;;  %v7007_v0 = vpop.f32.mrf.mxu1  ;;  %vm1442_vm9 = vcmp.gt.f32.partialorder %v6840_v62, 0.0  ;;  %v2011_v16 = vpack.c.bf16 %v1834_v6, %v1831_v14  ;;  %vm1433_vm10 = vcmp.gt.f32.partialorder %v6832_v21, 0.0  ;;  %vm1441_vm11 = vcmp.gt.f32.partialorder %v846_v59, 0.0  ;;  %2677 = vmatprep.subr.bf16.mxu1 %v2012_v38 }
 0x11e   :  { %10597 = vst [vmem:[#allocation99_spill] sm:$0xff] %v7007_v0  ;;  %v7015_v41 = vsel %vm1480_vm3, %v910_v33, %v1672_v3  ;;  %v916_v51 = vadd.f32 %v915_v4, %v6765_v46  ;;  %v1625_v5 = vmul.f32 0.2, %v6832_v21  ;;  %v1828_v63 = vsel %vm1444_vm7, %v6847_v31, %v1636_v54 }
 0x11f   :  { %10599 = vst [vmem:[#allocation101_spill] sm:$0xff] %v7015_v41  ;;  %v7024_v15 = vpop.f32.mrf.mxu0  ;;  %v7026_v57 = vpop.f32.mrf.mxu1  ;;  %v1829_v40 = vsel %vm1445_vm8, %v6863_v32, %v1637_v56  ;;  %v1631_v3 = vmul.f32 0.2, %v6836_v52  ;;  %v1826_v1 = vsel %vm1442_vm9, %v6840_v62, %v1634_v43  ;;  %v1628_v22 = vmul.f32 0.2, %v838_v30 }
 0x120   :  { %10600 = vst [vmem:[#allocation102_spill] sm:$0xff] %v7026_v57  ;;  %v1675_v48 = vmul.f32 0.2, %v916_v51  ;;  %vm1483_vm12 = vcmp.gt.f32.partialorder %v916_v51, 0.0  ;;  %2678 = vmatpush1.bf16.msra.mxu1 %v2011_v16  ;;  %vm1439_vm14 = vcmp.gt.f32.partialorder %v6836_v52, 0.0  ;;  %v1825_v31 = vsel %vm1441_vm11, %v846_v59, %v1633_v49 }
 0x121   :  { %v919_v12 = vpop.f32.mrf.mxu0  ;;  %v7039_v33 = vpop.f32.mrf.mxu1  ;;  %v2009_v54 = vpack.c.bf16 %v1829_v40, %v1826_v1  ;;  %vm1436_vm15 = vcmp.gt.f32.partialorder %v838_v30, 0.0  ;;  %v2008_v32 = vpack.c.bf16 %v1828_v63, %v1825_v31  ;;  %v818_v62 = vadd.f32 %v6586_v28, %v6516_v37 }
 0x122   :  { %10601 = vst [vmem:[#allocation103_spill] sm:$0xff] %v7039_v33  ;;  %v920_v35 = vadd.f32 %v919_v12, %v6782_v11  ;;  %v7067_v56 = vsel %vm1483_vm12, %v916_v51, %v1675_v48  ;;  %v1622_v43 = vmul.f32 0.2, %v6828_v58  ;;  %vm1430_vm0 = vcmp.gt.f32.partialorder %v6828_v58, 0.0 }
 0x123   :  { %v7046_v26 = vpop.f32.mrf.mxu0  ;;  %v7048_v7 = vpop.f32.mrf.mxu1  ;;  %2679 = vmatprep.subr.bf16.mxu1 %v2009_v54  ;;  %v1823_v59 = vsel %vm1439_vm14, %v6836_v52, %v1631_v3  ;;  %v1619_v16 = vmul.f32 0.2, %v6824_v10  ;;  %v1820_v48 = vsel %vm1436_vm15, %v838_v30, %v1628_v22  ;;  %v1817_v28 = vsel %vm1433_vm10, %v6832_v21, %v1625_v5 }
 0x124   :  { %10602 = vst [vmem:[#allocation104_spill] sm:$0xff] %v7048_v7  ;;  %vm1486_vm13 = vcmp.gt.f32.partialorder %v920_v35, 0.0  ;;  %v1678_v61 = vmul.f32 0.2, %v920_v35  ;;  %2680 = vmatpush1.bf16.msra.mxu1 %v2008_v32  ;;  %vm1427_vm1 = vcmp.gt.f32.partialorder %v6824_v10, 0.0  ;;  %v1814_v52 = vsel %vm1430_vm0, %v6828_v58, %v1622_v43 }
 0x125   :  { %v7061_v4 = vpop.f32.mrf.mxu0  ;;  %v7063_v6 = vpop.f32.mrf.mxu1  ;;  %vm1424_vm2 = vcmp.gt.f32.partialorder %v818_v62, 0.0  ;;  %v2003_v3 = vpack.c.bf16 %v1817_v28, %v1814_v52  ;;  %v10608_v30 = vpack.c.bf16 %v6693_v45, %v6691_v50  ;;  %v1811_v21 = vsel %vm1427_vm1, %v6824_v10, %v1619_v16  ;;  %v10614_v10 = vld [vmem:[#allocation46_spill] sm:$0xff] }
 0x126   :  { %10603 = vst [vmem:[#allocation105_spill] sm:$0xff] %v7063_v6  ;;  %v7069_v60 = vsel %vm1486_vm13, %v920_v35, %v1678_v61  ;;  %v2006_v35 = vpack.c.bf16 %v1823_v59, %v1820_v48  ;;  %v1616_v61 = vmul.f32 0.2, %v818_v62  ;;  %v10611_v43 = vpack.c.bf16 %v6656_v39, %v6654_v53  ;;  %v10626_v6 = vld [vmem:[#allocation59_spill] sm:$0xff] }
 0x127   :  { %v7071_v14 = vpop.f32.mrf.mxu0  ;;  %v7073_v38 = vpop.f32.mrf.mxu1  ;;  %v10615_v16 = vpack.c.bf16 %v6616_v18, %v10614_v10 }
 0x128   :  { %10604 = vst [vmem:[#allocation106_spill] sm:$0xff] %v7073_v38  ;;  %2681 = vmatprep.subr.bf16.mxu1 %v2006_v35  ;;  %v1808_v54 = vsel %vm1424_vm2, %v818_v62, %v1616_v61  ;;  %v10621_v38 = vld [vmem:[#allocation49_spill] sm:$0xff]  ;;  %v7137_v33 = vadd.f32 %v7071_v14, %v10626_v6 }
 0x129   :  { %v929_v51 = vpop.f32.mrf.mxu0  ;;  %v7082_v49 = vpop.f32.mrf.mxu1  ;;  %2682 = vmatpush1.bf16.msra.mxu1 %v10608_v30  ;;  %v2000_v32 = vpack.c.bf16 %v1811_v21, %v1808_v54 }
 0x12a   :  { %10605 = vst [vmem:[#allocation107_spill] sm:$0xff] %v7082_v49  ;;  %2683 = vmatprep.subr.bf16.mxu1 %v2003_v3 }
 0x12b   :  { %v931_v63 = vpop.f32.mrf.mxu0  ;;  %v7090_v40 = vpop.f32.mrf.mxu1 }
 0x12c   :  { %10606 = vst [vmem:[#allocation108_spill] sm:$0xff] %v7090_v40 }
 0x12d   :  { %v935_v1 = vpop.f32.mrf.mxu0  ;;  %v7093_v31 = vpop.f32.mrf.mxu1  ;;  %2684 = vmatpush1.bf16.msra.mxu1 %v10611_v43  ;;  %v10619_v43 = vld [vmem:[#allocation27_spill] sm:$0xff] }
 0x12e   :  { %10607 = vst [vmem:[#allocation109_spill] sm:$0xff] %v7093_v31  ;;  %2685 = vmatprep.subr.bf16.mxu1 %v2000_v32  ;;  %v7122_v7 = vadd.f32 %v935_v1, %v10621_v38  ;;  %v10633_v31 = vld [vmem:[#allocation40_spill] sm:$0xff] }
 0x12f   :  { %v937_v5 = vpop.f32.mrf.mxu0  ;;  %v7099_v22 = vpop.f32.mrf.mxu1 }
 0x130   :  { %10609 = vst [vmem:[#allocation110_spill] sm:$0xff] %v7099_v22 }
 0x131   :  { %v939_v59 = vpop.f32.mrf.mxu0  ;;  %v7101_v58 = vpop.f32.mrf.mxu1  ;;  %2686 = vmatpush1.bf16.msra.mxu1 %v10615_v16 }
 0x132   :  { %10610 = vst [vmem:[#allocation111_spill] sm:$0xff] %v7101_v58 }
 0x133   :  { %v941_v48 = vpop.f32.mrf.mxu0  ;;  %v7106_v28 = vpop.f32.mrf.mxu1 }
 0x134   :  { %10612 = vst [vmem:[#allocation112_spill] sm:$0xff] %v7106_v28  ;;  %v10639_v28 = vld [vmem:[#allocation30_spill] sm:$0xff] }
 0x135   :  { %v945_v45 = vpop.f32.mrf.mxu0  ;;  %v7108_v50 = vpop.f32.mrf.mxu1 }
 0x136   :  { %10613 = vst [vmem:[#allocation113_spill] sm:$0xff] %v7108_v50 }
 0x137   :  { %v947_v62 = vpop.f32.mrf.mxu0  ;;  %v7113_v35 = vpop.f32.mrf.mxu1 }
 0x138   :  { %10616 = vst [vmem:[#allocation46_spill] sm:$0xff] %v7113_v35  ;;  %v7171_v49 = vadd.f32 %v947_v62, %v10633_v31  ;;  %v10635_v35 = vld [vmem:[#allocation33_spill] sm:$0xff] }
 0x139   :  { %v949_v61 = vpop.f32.mrf.mxu0  ;;  %v5596_v52 = vpop.f32.mrf.mxu1 }
 0x13a   :  { %v1305_v29 = vadd.f32 %v5596_v52, %v10619_v43  ;;  %v10624_v52 = vld [vmem:[#allocation64_spill] sm:$0xff] }
 0x13b   :  { %v951_v3 = vpop.f32.mrf.mxu0  ;;  %v7115_v30 = vpop.f32.mrf.mxu1 }
 0x13c   :  { %10617 = vst [vmem:[#allocation114_spill] sm:$0xff] %v7115_v30  ;;  %vm1527_vm3 = vcmp.gt.f32.partialorder %v1305_v29, 0.0  ;;  %v1719_v16 = vmul.f32 0.2, %v1305_v29  ;;  %v7127_v30 = vadd.f32 %v937_v5, %v10621_v38  ;;  %v10629_v5 = vld [vmem:[#allocation42_spill] sm:$0xff] }
 0x13d   :  { %v955_v53 = vpop.f32.mrf.mxu0  ;;  %v5597_v39 = vpop.f32.mrf.mxu1  ;;  %v7153_v38 = vmul.f32 0.2, %v7122_v7 }
 0x13e   :  { %v1308_v12 = vadd.f32 %v5597_v39, %v10620_v2  ;;  %v7129_v0 = vsel %vm1527_vm3, %v1305_v29, %v1719_v16  ;;  %v7133_v39 = vadd.f32 %v10625_v44, %v10624_v52  ;;  %v7148_v16 = vadd.f32 %v949_v61, %v10629_v5 }
 0x13f   :  { %v957_v21 = vpop.f32.mrf.mxu0  ;;  %v7117_v54 = vpop.f32.mrf.mxu1  ;;  %10623 = vst [vmem:[#allocation116_spill] sm:$0xff] %v7129_v0  ;;  %v7156_v14 = vmul.f32 0.2, %v7127_v30  ;;  %v7167_v44 = vadd.f32 %v945_v45, %v10633_v31  ;;  %v10634_v0 = vld [vmem:[#allocation36_spill] sm:$0xff]  ;;  %vm1502_vm3 = vcmp.gt.f32.partialorder %v7171_v49, 0.0 }
 0x140   :  { %10618 = vst [vmem:[#allocation115_spill] sm:$0xff] %v7117_v54  ;;  %vm1530_vm4 = vcmp.gt.f32.partialorder %v1308_v12, 0.0  ;;  %v1722_v27 = vmul.f32 0.2, %v1308_v12  ;;  %v956_v41 = vadd.f32 %v955_v53, %v10634_v0  ;;  %vm1504_vm2 = vcmp.gt.f32.partialorder %v7148_v16, 0.0 }
 0x141   :  { %v959_v32 = vpop.f32.mrf.mxu0  ;;  %v5600_v18 = vpop.f32.mrf.mxu1 }
 0x142   :  { %v7139_v22 = vsel %vm1530_vm4, %v1308_v12, %v1722_v27  ;;  %v10630_v12 = vld [vmem:[#allocation22_spill] sm:$0xff]  ;;  %vm1507_vm1 = vcmp.gt.f32.partialorder %v956_v41, 0.0 }
 0x143   :  { %v961_v10 = vpop.f32.mrf.mxu0  ;;  %v7124_v57 = vpop.f32.mrf.mxu1  ;;  %10627 = vst [vmem:[#allocation41_spill] sm:$0xff] %v7139_v22  ;;  %v958_v22 = vadd.f32 %v957_v21, %v10634_v0 }
 0x144   :  { %10622 = vst [vmem:[#allocation27_spill] sm:$0xff] %v7124_v57  ;;  %v10628_v57 = vld [vmem:[#allocation61_spill] sm:$0xff] }
 0x145   :  { %v965_v54 = vpop.f32.mrf.mxu0  ;;  %v7142_v40 = vadd.f32 %v929_v51, %v10628_v57  ;;  %v7145_v29 = vadd.f32 %v931_v63, %v10628_v57  ;;  %v5601_v52 = vpop.f32.mrf.mxu1  ;;  %v1321_v51 = vadd.f32 %v5600_v18, %v10630_v12  ;;  %v10632_v63 = vld [vmem:[#allocation50_spill] sm:$0xff]  ;;  %vm1508_vm7 = vcmp.gt.f32.partialorder %v958_v22, 0.0 }
 0x146   :  { %v1324_v23 = vadd.f32 %v5601_v52, %v10631_v55  ;;  %v7161_v57 = vadd.f32 %v939_v59, %v10632_v63  ;;  %v7164_v61 = vadd.f32 %v941_v48, %v10632_v63  ;;  %v7175_v52 = vmul.f32 0.2, %v7148_v16  ;;  %v10636_v59 = vld [vmem:[#allocation37_spill] sm:$0xff]  ;;  %v10637_v48 = vld [vmem:[#allocation32_spill] sm:$0xff] }
 0x147   :  { %v967_v1 = vpop.f32.mrf.mxu0  ;;  %vm1539_vm5 = vcmp.gt.f32.partialorder %v1321_v51, 0.0  ;;  %v1731_v18 = vmul.f32 0.2, %v1321_v51  ;;  %v960_v55 = vadd.f32 %v959_v32, %v10636_v59  ;;  %v966_v63 = vadd.f32 %v965_v54, %v10637_v48 }
 0x148   :  { %v968_v12 = vadd.f32 %v967_v1, %v10637_v48  ;;  %vm1542_vm6 = vcmp.gt.f32.partialorder %v1324_v23, 0.0  ;;  %v1734_v31 = vmul.f32 0.2, %v1324_v23  ;;  %v962_v32 = vadd.f32 %v961_v10, %v10636_v59 }
 0x149   :  { %v969_v27 = vpop.f32.mrf.mxu0  ;;  %v7181_v21 = vsel %vm1539_vm5, %v1321_v51, %v1731_v18  ;;  %v1700_v18 = vmul.f32 0.2, %v958_v22  ;;  %vm1510_vm10 = vcmp.gt.f32.partialorder %v960_v55, 0.0  ;;  %v1705_v53 = vmul.f32 0.2, %v966_v63 }
 0x14a   :  { %v970_v8 = vadd.f32 %v969_v27, %v10635_v35  ;;  %10638 = vst [vmem:[#allocation59_spill] sm:$0xff] %v7181_v21  ;;  %v7184_v27 = vadd.f32 %v951_v3, %v10629_v5  ;;  %v7191_v54 = vsel %vm1542_vm6, %v1324_v23, %v1734_v31  ;;  %v1706_v51 = vmul.f32 0.2, %v968_v12 }
 0x14b   :  { %v971_v24 = vpop.f32.mrf.mxu0  ;;  %10641 = vst [vmem:[#allocation118_spill] sm:$0xff] %v7191_v54  ;;  %vm1514_vm11 = vcmp.gt.f32.partialorder %v968_v12, 0.0  ;;  %vm1513_vm12 = vcmp.gt.f32.partialorder %v966_v63, 0.0  ;;  %v1703_v0 = vmul.f32 0.2, %v962_v32  ;;  %vm1498_vm14 = vcmp.gt.f32.partialorder %v7161_v57, 0.0 }
 0x14c   :  { %v972_v45 = vadd.f32 %v971_v24, %v10635_v35  ;;  %v1708_v1 = vmul.f32 0.2, %v970_v8  ;;  %vm1516_vm8 = vcmp.gt.f32.partialorder %v970_v8, 0.0  ;;  %vm1511_vm15 = vcmp.gt.f32.partialorder %v962_v32, 0.0 }
 0x14d   :  { %v975_v62 = vpop.f32.mrf.mxu0  ;;  %v1898_v21 = vsel %vm1514_vm11, %v968_v12, %v1706_v51  ;;  %v1699_v54 = vmul.f32 0.2, %v956_v41  ;;  %v1897_v35 = vsel %vm1513_vm12, %v966_v63, %v1705_v53  ;;  %v1892_v63 = vsel %vm1508_vm7, %v958_v22, %v1700_v18 }
 0x14e   :  { %v976_v17 = vadd.f32 %v975_v62, %v10639_v28  ;;  %v1709_v50 = vmul.f32 0.2, %v972_v45  ;;  %vm1517_vm9 = vcmp.gt.f32.partialorder %v972_v45, 0.0  ;;  %v1702_v62 = vmul.f32 0.2, %v960_v55  ;;  %v10642_v28 = vld [vmem:[#allocation31_spill] sm:$0xff] }
 0x14f   :  { %v7189_v24 = vpop.f32.mrf.mxu0  ;;  %vm1505_vm4 = vcmp.gt.f32.partialorder %v7184_v27, 0.0  ;;  %v1891_v22 = vsel %vm1507_vm1, %v956_v41, %v1699_v54  ;;  %vm1501_vm5 = vcmp.gt.f32.partialorder %v7167_v44, 0.0  ;;  %v1888_v51 = vsel %vm1504_vm2, %v7148_v16, %v7175_v52 }
 0x150   :  { %10640 = vst [vmem:[#allocation117_spill] sm:$0xff] %v7189_v24  ;;  %v1711_v10 = vmul.f32 0.2, %v976_v17  ;;  %v1900_v24 = vsel %vm1516_vm8, %v970_v8, %v1708_v1  ;;  %vm1519_vm13 = vcmp.gt.f32.partialorder %v976_v17, 0.0  ;;  %v1901_v31 = vsel %vm1517_vm9, %v972_v45, %v1709_v50  ;;  %v5716_v50 = vld [vmem:[%s10254_s3 + $0xc] ss:$16 sps:$4 sm:$0xff]  }
 0x151   :  { %v979_v5 = vpop.f32.mrf.mxu0  ;;  %v2045_v58 = vpack.c.bf16 %v1901_v31, %v1898_v21  ;;  %v2044_v34 = vpack.c.bf16 %v1900_v24, %v1897_v35  ;;  %v1894_v45 = vsel %vm1510_vm10, %v960_v55, %v1702_v62  ;;  %v1895_v35 = vsel %vm1511_vm15, %v962_v32, %v1703_v0  ;;  %2896 = vmatprep.mubr.bf16.mxu0 %v5716_v50  ;;  %v10650_v31 = vld [vmem:[#allocation67_spill] sm:$0xff] }
 0x152   :  { %v980_v59 = vadd.f32 %v979_v5, %v10642_v28  ;;  %v7199_v25 = vsel %vm1519_vm13, %v976_v17, %v1711_v10  ;;  %v2042_v21 = vpack.c.bf16 %v1895_v35, %v1892_v63  ;;  %v1693_v55 = vmul.f32 0.2, %v7167_v44 }
 0x153   :  { %v7196_v23 = vpop.f32.mrf.mxu0  ;;  %10644 = vst [vmem:[#allocation120_spill] sm:$0xff] %v7199_v25  ;;  %2687 = vmatprep.subr.bf16.mxu1 %v2045_v58  ;;  %v2041_v58 = vpack.c.bf16 %v1894_v45, %v1891_v22  ;;  %v1691_v24 = vmul.f32 0.2, %v7164_v61  ;;  %vm1496_vm8 = vcmp.gt.f32.partialorder %v7127_v30, 0.0  ;;  %vm1499_vm9 = vcmp.gt.f32.partialorder %v7164_v61, 0.0 }
 0x154   :  { %10643 = vst [vmem:[#allocation119_spill] sm:$0xff] %v7196_v23  ;;  %vm1522_vm0 = vcmp.gt.f32.partialorder %v980_v59, 0.0  ;;  %v1714_v3 = vmul.f32 0.2, %v980_v59  ;;  %2688 = vmatpush2.bf16.msra.mxu1 %v2044_v34  ;;  %v1690_v34 = vmul.f32 0.2, %v7161_v57  ;;  %v1885_v16 = vsel %vm1501_vm5, %v7167_v44, %v1693_v55 }
 0x155   :  { %v985_v48 = vpop.f32.mrf.mxu0  ;;  %2689 = vmatprep.subr.bf16.mxu1 %v2042_v21  ;;  %vm1495_vm10 = vcmp.gt.f32.partialorder %v7122_v7, 0.0  ;;  %v2038_v62 = vpack.c.bf16 %v1888_v51, %v1885_v16  ;;  %v926_v45 = vadd.f32 %v7061_v4, %v10626_v6  ;;  %v1880_v4 = vsel %vm1496_vm8, %v7127_v30, %v7156_v14  ;;  %v10702_v23 = vld [vmem:[#allocation94_spill] sm:$0xff] }
 0x156   :  { %v7201_v5 = vsel %vm1522_vm0, %v980_v59, %v1714_v3  ;;  %v986_v8 = vadd.f32 %v985_v48, %v10619_v43  ;;  %v1694_v59 = vmul.f32 0.2, %v7171_v49  ;;  %v1697_v48 = vmul.f32 0.2, %v7184_v27 }
 0x157   :  { %10645 = vst [vmem:[#allocation121_spill] sm:$0xff] %v7201_v5  ;;  %v7212_v17 = vpop.f32.mrf.mxu0  ;;  %v1882_v44 = vsel %vm1498_vm14, %v7161_v57, %v1690_v34  ;;  %v1883_v57 = vsel %vm1499_vm9, %v7164_v61, %v1691_v24  ;;  %v1685_v21 = vmul.f32 0.2, %v7145_v29  ;;  %v1682_v22 = vmul.f32 0.2, %v7137_v33 }
 0x158   :  { %v1717_v32 = vmul.f32 0.2, %v986_v8  ;;  %vm1525_vm6 = vcmp.gt.f32.partialorder %v986_v8, 0.0  ;;  %2690 = vmatpush2.bf16.msra.mxu1 %v2041_v58  ;;  %v1886_v54 = vsel %vm1502_vm3, %v7171_v49, %v1694_v59  ;;  %v1889_v18 = vsel %vm1505_vm4, %v7184_v27, %v1697_v48  ;;  %v10651_v27 = vld [vmem:[#allocation45_spill] sm:$0xff] }
 0x159   :  { %v989_v0 = vpop.f32.mrf.mxu0  ;;  %v2039_v52 = vpack.c.bf16 %v1889_v18, %v1886_v54  ;;  %v7251_v50 = vadd.f32 %v10651_v27, %v10650_v31  ;;  %v922_v59 = vadd.f32 %v7046_v26, %v6782_v11  ;;  %v1684_v48 = vmul.f32 0.2, %v7142_v40  ;;  %v10654_v58 = vld [vmem:[#allocation29_spill] sm:$0xff] }
 0x15a   :  { %v990_v1 = vadd.f32 %v989_v0, %v10620_v2  ;;  %v7245_v10 = vsel %vm1525_vm6, %v986_v8, %v1717_v32  ;;  %v918_v8 = vadd.f32 %v7024_v15, %v6765_v46  ;;  %v1879_v15 = vsel %vm1495_vm10, %v7122_v7, %v7153_v38  ;;  %v10653_v38 = vld [vmem:[#allocation71_spill] sm:$0xff]  ;;  %v10655_v32 = vld [vmem:[#allocation74_spill] sm:$0xff] }
 0x15b   :  { %v7229_v3 = vpop.f32.mrf.mxu0  ;;  %10648 = vst [vmem:[#allocation124_spill] sm:$0xff] %v7245_v10  ;;  %2691 = vmatprep.subr.bf16.mxu1 %v2039_v52  ;;  %v2036_v26 = vpack.c.bf16 %v1883_v57, %v1880_v4  ;;  %vm1492_vm11 = vcmp.gt.f32.partialorder %v7142_v40, 0.0  ;;  %vm1493_vm12 = vcmp.gt.f32.partialorder %v7145_v29, 0.0  ;;  %v2035_v30 = vpack.c.bf16 %v1882_v44, %v1879_v15  ;;  %v7308_v57 = vpop.f32.mrf.mxu1 }
 0x15c   :  { %10646 = vst [vmem:[#allocation122_spill] sm:$0xff] %v7229_v3  ;;  %vm1528_vm7 = vcmp.gt.f32.partialorder %v990_v1, 0.0  ;;  %v1720_v41 = vmul.f32 0.2, %v990_v1  ;;  %2692 = vmatpush2.bf16.msra.mxu1 %v2038_v62  ;;  %vm1585_vm13 = vcmp.gt.f32.partialorder %v7133_v39, 0.0  ;;  %vm1490_vm14 = vcmp.gt.f32.partialorder %v7137_v33, 0.0 }
 0x15d   :  { %v7242_v53 = vpop.f32.mrf.mxu0  ;;  %v1681_v14 = vmul.f32 0.2, %v926_v45  ;;  %2693 = vmatprep.subr.bf16.mxu1 %v2036_v26  ;;  %v1777_v7 = vmul.f32 0.2, %v7133_v39  ;;  %v1169_v0 = vadd.f32 %v10653_v38, %v6516_v37  ;;  %vm1489_vm15 = vcmp.gt.f32.partialorder %v926_v45, 0.0  ;;  %10657 = vst [vmem:[#allocation29_spill] sm:$0xff] %v7308_v57 }
 0x15e   :  { %10647 = vst [vmem:[#allocation123_spill] sm:$0xff] %v7242_v53  ;;  %v7247_v49 = vsel %vm1528_vm7, %v990_v1, %v1720_v41  ;;  %v1172_v1 = vadd.f32 %v10655_v32, %v10654_v58  ;;  %v912_v34 = vadd.f32 %v6998_v20, %v6842_v47  ;;  %v1679_v24 = vmul.f32 0.2, %v922_v59  ;;  %v10662_v58 = vld [vmem:[#allocation77_spill] sm:$0xff]  ;;  %v10664_v32 = vld [vmem:[#allocation79_spill] sm:$0xff] }
 0x15f   :  { %10649 = vst [vmem:[#allocation125_spill] sm:$0xff] %v7247_v49  ;;  %v7260_v35 = vpop.f32.mrf.mxu0  ;;  %v1876_v51 = vsel %vm1492_vm11, %v7142_v40, %v1684_v48  ;;  %v1877_v41 = vsel %vm1493_vm12, %v7145_v29, %v1685_v21  ;;  %vm1588_vm0 = vcmp.gt.f32.partialorder %v7251_v50, 0.0  ;;  %v1676_v18 = vmul.f32 0.2, %v918_v8  ;;  %v10689_v57 = vld [vmem:[#allocation101_spill] sm:$0xff] }
 0x160   :  { %2694 = vmatpush2.bf16.msra.mxu1 %v2035_v30  ;;  %vm1487_vm1 = vcmp.gt.f32.partialorder %v922_v59, 0.0  ;;  %v1874_v37 = vsel %vm1490_vm14, %v7137_v33, %v1682_v22  ;;  %v908_v16 = vadd.f32 %v6967_v9, %v6815_v13  ;;  %vm1484_vm2 = vcmp.gt.f32.partialorder %v918_v8, 0.0  ;;  %v10658_v9 = vld [vmem:[#allocation86_spill] sm:$0xff]  ;;  %v10694_v49 = vld [vmem:[#allocation37_spill] sm:$0xff] }
 0x161   :  { %v7279_v55 = vpop.f32.mrf.mxu0  ;;  %v1873_v20 = vsel %vm1489_vm15, %v926_v45, %v1681_v14  ;;  %v2033_v52 = vpack.c.bf16 %v1877_v41, %v1874_v37  ;;  %v1780_v40 = vmul.f32 0.2, %v7251_v50  ;;  %vm1425_vm3 = vcmp.gt.f32.partialorder %v1169_v0, 0.0  ;;  %v10659_v45 = vld [vmem:[#allocation88_spill] sm:$0xff]  ;;  %v10666_v41 = vld [vmem:[#allocation82_spill] sm:$0xff] }
 0x162   :  { %v1617_v29 = vmul.f32 0.2, %v1169_v0  ;;  %v2032_v27 = vpack.c.bf16 %v1876_v51, %v1873_v20  ;;  %vm1428_vm4 = vcmp.gt.f32.partialorder %v1172_v1, 0.0  ;;  %v1620_v44 = vmul.f32 0.2, %v1172_v1  ;;  %v10665_v51 = vld [vmem:[#allocation14_spill] sm:$0xff] }
 0x163   :  { %v7286_v61 = vpop.f32.mrf.mxu0  ;;  %v1673_v4 = vmul.f32 0.2, %v912_v34  ;;  %2695 = vmatprep.subr.bf16.mxu1 %v2033_v52  ;;  %v1871_v33 = vsel %vm1487_vm1, %v922_v59, %v1679_v24  ;;  %v898_v21 = vadd.f32 %v10659_v45, %v10658_v9  ;;  %v902_v15 = vadd.f32 %v6945_v36, %v6939_v42  ;;  %v10669_v52 = vld [vmem:[#allocation18_spill] sm:$0xff]  ;;  %v10674_v45 = vld [vmem:[#allocation15_spill] sm:$0xff] }
 0x164   :  { %10652 = vst [vmem:[#allocation45_spill] sm:$0xff] %v7286_v61  ;;  %vm1481_vm5 = vcmp.gt.f32.partialorder %v912_v34, 0.0  ;;  %2696 = vmatpush2.bf16.msra.mxu1 %v2032_v27  ;;  %v1868_v26 = vsel %vm1484_vm2, %v918_v8, %v1676_v18  ;;  %v7321_v22 = vsel %vm1585_vm13, %v7133_v39, %v1777_v7  ;;  %v1670_v30 = vmul.f32 0.2, %v908_v16  ;;  %v10663_v7 = vld [vmem:[#allocation24_spill] sm:$0xff]  ;;  %v10672_v27 = vld [vmem:[#allocation91_spill] sm:$0xff] }
 0x165   :  { %v7297_v54 = vpop.f32.mrf.mxu0  ;;  %10660 = vst [vmem:[#allocation74_spill] sm:$0xff] %v7321_v22  ;;  %v2030_v14 = vpack.c.bf16 %v1871_v33, %v1868_v26  ;;  %v7328_v38 = vsel %vm1588_vm0, %v7251_v50, %v1780_v40  ;;  %v7331_v36 = vsel %vm1425_vm3, %v1169_v0, %v1617_v29  ;;  %v7335_v8 = vadd.f32 %v10662_v58, %v6464_v19  ;;  %v7348_v50 = vpop.f32.mrf.mxu1  ;;  %v10671_v29 = vld [vmem:[#allocation6_spill] sm:$0xff]  ;;  %v10675_v26 = vld [vmem:[#allocation85_spill] sm:$0xff]  ;;  %v10701_v22 = vld [vmem:[#allocation95_spill] sm:$0xff] }
 0x166   :  { %10656 = vst [vmem:[#allocation71_spill] sm:$0xff] %v7297_v54  ;;  %10661 = vst [vmem:[#allocation86_spill] sm:$0xff] %v7328_v38  ;;  %vm1478_vm6 = vcmp.gt.f32.partialorder %v908_v16, 0.0  ;;  %v7338_v39 = vsel %vm1428_vm4, %v1172_v1, %v1620_v44  ;;  %v7342_v24 = vadd.f32 %v10664_v32, %v10663_v7  ;;  %v7346_v18 = vadd.f32 %v10666_v41, %v10665_v51  ;;  %v10670_v1 = vld [vmem:[#allocation83_spill] sm:$0xff]  ;;  %v10678_v41 = vld [vmem:[#allocation10_spill] sm:$0xff] }
 0x167   :  { %v7305_v62 = vpop.f32.mrf.mxu0  ;;  %10667 = vst [vmem:[#allocation88_spill] sm:$0xff] %v7348_v50  ;;  %2697 = vmatprep.subr.bf16.mxu1 %v2030_v14  ;;  %v1865_v0 = vsel %vm1481_vm5, %v912_v34, %v1673_v4  ;;  %v1664_v19 = vmul.f32 0.2, %v898_v21  ;;  %v1667_v20 = vmul.f32 0.2, %v902_v15  ;;  %v7355_v40 = vadd.f32 %v10670_v1, %v10669_v52  ;;  %v10676_v34 = vld [vmem:[#allocation8_spill] sm:$0xff] }
 0x168   :  { %v1225_v44 = vadd.f32 %v10672_v27, %v10671_v29  ;;  %v10673_v33 = vpack.c.bf16 %v7069_v60, %v7067_v56  ;;  %vm1475_vm7 = vcmp.gt.f32.partialorder %v902_v15, 0.0  ;;  %v7364_v14 = vadd.f32 %v10675_v26, %v10674_v45  ;;  %v10677_v4 = vld [vmem:[#allocation93_spill] sm:$0xff]  ;;  %v10679_v52 = vld [vmem:[#allocation92_spill] sm:$0xff]  ;;  %v10695_v38 = vld [vmem:[#allocation46_spill] sm:$0xff] }
 0x169   :  { %v7311_v48 = vpop.f32.mrf.mxu0  ;;  %v1228_v58 = vadd.f32 %v10677_v4, %v10676_v34  ;;  %v1862_v7 = vsel %vm1478_vm6, %v908_v16, %v1670_v30  ;;  %v7372_v51 = vmul.f32 0.2, %v7335_v8  ;;  %vm1472_vm8 = vcmp.gt.f32.partialorder %v898_v21, 0.0  ;;  %v10680_v27 = vld [vmem:[#allocation32_spill] sm:$0xff]  ;;  %v10682_v16 = vld [vmem:[#allocation33_spill] sm:$0xff]  ;;  %v7386_v34 = vpop.f32.mrf.mxu1 }
 0x16a   :  { %2698 = vmatpush2.bf16.msra.mxu1 %v10673_v33  ;;  %v1217_v56 = vadd.f32 %v10679_v52, %v10678_v41  ;;  %v2027_v60 = vpack.c.bf16 %v1865_v0, %v1862_v7  ;;  %v7377_v1 = vmul.f32 0.2, %v7342_v24  ;;  %v7380_v29 = vmul.f32 0.2, %v7346_v18  ;;  %v10681_v33 = vld [vmem:[#allocation111_spill] sm:$0xff]  ;;  %v10683_v30 = vld [vmem:[#allocation113_spill] sm:$0xff] }
 0x16b   :  { %v7323_v59 = vpop.f32.mrf.mxu0  ;;  %v1289_v45 = vadd.f32 %v10681_v33, %v10680_v27  ;;  %v1292_v26 = vadd.f32 %v10683_v30, %v10682_v16  ;;  %10684 = vst [vmem:[#allocation24_spill] sm:$0xff] %v7386_v34  ;;  %vm1437_vm9 = vcmp.gt.f32.partialorder %v7335_v8, 0.0  ;;  %vm1440_vm10 = vcmp.gt.f32.partialorder %v7342_v24, 0.0  ;;  %v10685_v41 = vld [vmem:[#allocation11_spill] sm:$0xff]  ;;  %v10686_v52 = vld [vmem:[#allocation96_spill] sm:$0xff] }
 0x16c   :  { %v7393_v0 = vmul.f32 0.2, %v7355_v40  ;;  %v1659_v7 = vmul.f32 0.2, %v1225_v44  ;;  %v1220_v12 = vadd.f32 %v10686_v52, %v10685_v41  ;;  %2699 = vmatprep.subr.bf16.mxu1 %v2027_v60  ;;  %v1859_v27 = vsel %vm1475_vm7, %v902_v15, %v1667_v20  ;;  %v10687_v16 = vld [vmem:[#allocation36_spill] sm:$0xff]  ;;  %v10692_v15 = vld [vmem:[#allocation19_spill] sm:$0xff] }
 0x16d   :  { %v7351_v37 = vpop.f32.mrf.mxu0  ;;  %vm1455_vm11 = vcmp.gt.f32.partialorder %v7346_v18, 0.0  ;;  %vm1449_vm12 = vcmp.gt.f32.partialorder %v7355_v40, 0.0  ;;  %vm1458_vm13 = vcmp.gt.f32.partialorder %v7364_v14, 0.0  ;;  %vm1467_vm14 = vcmp.gt.f32.partialorder %v1225_v44, 0.0  ;;  %v10688_v30 = vld [vmem:[#allocation112_spill] sm:$0xff]  ;;  %v10693_v20 = vld [vmem:[#allocation89_spill] sm:$0xff] }
 0x16e   :  { %10668 = vst [vmem:[#allocation77_spill] sm:$0xff] %v7351_v37  ;;  %v1662_v33 = vmul.f32 0.2, %v1228_v58  ;;  %v1281_v63 = vadd.f32 %v10688_v30, %v10687_v16  ;;  %v10690_v34 = vld [vmem:[#allocation100_spill] sm:$0xff]  ;;  %v1856_v41 = vsel %vm1472_vm8, %v898_v21, %v1664_v19  ;;  %v1204_v52 = vadd.f32 %v10693_v20, %v10692_v15  ;;  %v7413_v30 = vpop.f32.mrf.mxu1  ;;  %v5675_v19 = vld [vmem:[%s10254_s3] ss:$16 sps:$4 sm:$0xff]  }
 0x16f   :  { %v7369_v32 = vpop.f32.mrf.mxu0  ;;  %v10691_v50 = vpack.c.bf16 %v10689_v57, %v10690_v34  ;;  %vm1461_vm15 = vcmp.gt.f32.partialorder %v1217_v56, 0.0  ;;  %vm1470_vm0 = vcmp.gt.f32.partialorder %v1228_v58, 0.0  ;;  %v2024_v31 = vpack.c.bf16 %v1859_v27, %v1856_v41  ;;  %10696 = vst [vmem:[#allocation79_spill] sm:$0xff] %v7413_v30  ;;  %v10697_v27 = vld [vmem:[#allocation40_spill] sm:$0xff]  ;;  %v10698_v41 = vld [vmem:[#allocation107_spill] sm:$0xff]  ;;  %v10699_v20 = vld [vmem:[#allocation42_spill] sm:$0xff] }
 0x170   :  { %v1653_v25 = vmul.f32 0.2, %v1217_v56  ;;  %v1707_v5 = vmul.f32 0.2, %v1289_v45  ;;  %v1710_v10 = vmul.f32 0.2, %v1292_v26  ;;  %v1284_v16 = vadd.f32 %v10695_v38, %v10694_v49 }
 0x171   :  { %v7388_v4 = vpop.f32.mrf.mxu0  ;;  %2700 = vmatpush2.bf16.msra.mxu1 %v10691_v50  ;;  %v1851_v21 = vsel %vm1467_vm14, %v1225_v44, %v1659_v7  ;;  %v1656_v50 = vmul.f32 0.2, %v1220_v12  ;;  %vm1515_vm1 = vcmp.gt.f32.partialorder %v1289_v45, 0.0  ;;  %vm1518_vm2 = vcmp.gt.f32.partialorder %v1292_v26, 0.0  ;;  %v10700_v49 = vld [vmem:[#allocation109_spill] sm:$0xff] }
 0x172   :  { %2701 = vmatprep.subr.bf16.mxu1 %v2024_v31  ;;  %v1854_v34 = vsel %vm1470_vm0, %v1228_v58, %v1662_v33  ;;  %v1273_v15 = vadd.f32 %v10698_v41, %v10697_v27  ;;  %v1276_v38 = vadd.f32 %v10700_v49, %v10699_v20  ;;  %v1701_v30 = vmul.f32 0.2, %v1281_v63  ;;  %v5678_v31 = vld [vmem:[%s10254_s3 + $0x24] ss:$16 sps:$4 sm:$0xff]   ;;  %v7434_v27 = vpop.f32.mrf.mxu1 }
 0x173   :  { %v7407_v60 = vpop.f32.mrf.mxu0  ;;  %v10703_v28 = vpack.c.bf16 %v10701_v22, %v10702_v23  ;;  %v1650_v7 = vmul.f32 0.2, %v7364_v14  ;;  %vm1452_vm3 = vcmp.gt.f32.partialorder %v1204_v52, 0.0  ;;  %vm1464_vm4 = vcmp.gt.f32.partialorder %v1220_v12, 0.0  ;;  %10704 = vst [vmem:[#allocation14_spill] sm:$0xff] %v7434_v27  ;;  %v10705_v27 = vld [vmem:[#allocation49_spill] sm:$0xff] }
 0x174   :  { %vm1509_vm5 = vcmp.gt.f32.partialorder %v1281_v63, 0.0  ;;  %v1644_v58 = vmul.f32 0.2, %v1204_v52  ;;  %v1704_v33 = vmul.f32 0.2, %v1284_v16  ;;  %v1899_v41 = vsel %vm1515_vm1, %v1289_v45, %v1707_v5  ;;  %v10706_v5 = vld [vmem:[#allocation108_spill] sm:$0xff] }
 0x175   :  { %v7415_v57 = vpop.f32.mrf.mxu0  ;;  %2702 = vmatpush2.bf16.msra.mxu1 %v10703_v28  ;;  %v1902_v23 = vsel %vm1518_vm2, %v1292_v26, %v1710_v10  ;;  %v1845_v22 = vsel %vm1461_vm15, %v1217_v56, %v1653_v25  ;;  %v2022_v20 = vpack.c.bf16 %v1854_v34, %v1851_v21  ;;  %vm1512_vm6 = vcmp.gt.f32.partialorder %v1284_v16, 0.0  ;;  %v10707_v10 = vld [vmem:[#allocation50_spill] sm:$0xff]  ;;  %v7461_v56 = vpop.f32.mrf.mxu1 }
 0x176   :  { %v2046_v49 = vpack.c.bf16 %v1902_v23, %v1899_v41  ;;  %v1848_v53 = vsel %vm1464_vm4, %v1220_v12, %v1656_v50  ;;  %v1695_v3 = vmul.f32 0.2, %v1273_v15  ;;  %v1698_v2 = vmul.f32 0.2, %v1276_v38  ;;  %v10708_v26 = vld [vmem:[#allocation110_spill] sm:$0xff]  ;;  %v10714_v41 = vld [vmem:[#allocation99_spill] sm:$0xff] }
 0x177   :  { %v7428_v44 = vpop.f32.mrf.mxu0  ;;  %v1893_v54 = vsel %vm1509_vm5, %v1281_v63, %v1701_v30  ;;  %vm1503_vm7 = vcmp.gt.f32.partialorder %v1273_v15, 0.0  ;;  %v1265_v45 = vadd.f32 %v10706_v5, %v10705_v27  ;;  %vm1506_vm8 = vcmp.gt.f32.partialorder %v1276_v38, 0.0  ;;  %v10716_v5 = vld [vmem:[#allocation104_spill] sm:$0xff] }
 0x178   :  { %2704 = vmatmul.mubr.bf16.vlgmr.msra.gmra.mxu1 %v5675_v19  ;;  %v1268_v37 = vadd.f32 %v10708_v26, %v10707_v10  ;;  %5200 = vmatprep.subr.bf16.mxu1 %v2046_v49  ;;  %v7453_v12 = vsel %vm1437_vm9, %v7335_v8, %v7372_v51  ;;  %v7459_v63 = vsel %vm1440_vm10, %v7342_v24, %v7377_v1  ;;  %v5680_v1 = vld [vmem:[%s10254_s3 + $0x20] ss:$16 sps:$4 sm:$0xff]   ;;  %v10717_v26 = vld [vmem:[#allocation106_spill] sm:$0xff] }
 0x179   :  { %v7438_v28 = vpop.f32.mrf.mxu0  ;;  %2713 = vmatprep.mubr.bf16.mxu1 %v5678_v31  ;;  %5201 = vmatpush3.bf16.msra.mxu1 %v2022_v20  ;;  %v1896_v30 = vsel %vm1512_vm6, %v1284_v16, %v1704_v33  ;;  %v1839_v50 = vsel %vm1455_vm11, %v7346_v18, %v7380_v29  ;;  %v7474_v8 = vsel %vm1449_vm12, %v7355_v40, %v7393_v0  ;;  %v5681_v40 = vld [vmem:[%s10254_s3 + $0x44] ss:$16 sps:$4 sm:$0xff]   ;;  %v1689_v33 = vmul.f32 0.2, %v1265_v45 }
 0x17a   :  { %v1842_v24 = vsel %vm1458_vm13, %v7364_v14, %v1650_v7  ;;  %v2043_v51 = vpack.c.bf16 %v1896_v30, %v1893_v54  ;;  %v7483_v16 = vsel %vm1452_vm3, %v1204_v52, %v1644_v58  ;;  %v2019_v19 = vpack.c.bf16 %v1848_v53, %v1845_v22  ;;  %v10709_v54 = vld [vmem:[#allocation103_spill] sm:$0xff]  ;;  %v10710_v0 = vld [vmem:[#allocation61_spill] sm:$0xff]  ;;  %v10713_v58 = vld [vmem:[#allocation98_spill] sm:$0xff] }
 0x17b   :  { %v7441_v61 = vpop.f32.mrf.mxu0  ;;  %v1887_v18 = vsel %vm1503_vm7, %v1273_v15, %v1695_v3  ;;  %v1890_v29 = vsel %vm1506_vm8, %v1276_v38, %v1698_v2  ;;  %v1257_v14 = vadd.f32 %v10709_v54, %v10626_v6  ;;  %v10711_v31 = vld [vmem:[#allocation105_spill] sm:$0xff]  ;;  %v1692_v52 = vmul.f32 0.2, %v1268_v37  ;;  %v7502_v15 = vpop.f32.mrf.mxu1  ;;  %v10715_v20 = vld [vmem:[#allocation102_spill] sm:$0xff] }
 0x17c   :  { %v1260_v7 = vadd.f32 %v10711_v31, %v10710_v0  ;;  %5202 = vmatprep.subr.bf16.mxu1 %v2043_v51  ;;  %v10712_v2 = vld [vmem:[#allocation97_spill] sm:$0xff]  ;;  %vm1497_vm9 = vcmp.gt.f32.partialorder %v1265_v45, 0.0  ;;  %vm1500_vm10 = vcmp.gt.f32.partialorder %v1268_v37, 0.0  ;;  %v2016_v6 = vpack.c.bf16 %v1842_v24, %v1839_v50 }
 0x17d   :  { %v7464_v21 = vpop.f32.mrf.mxu0  ;;  %v7500_v53 = vadd.f32 %v10712_v2, %v6815_v13  ;;  %5203 = vmatpush3.bf16.msra.mxu1 %v2019_v19  ;;  %v7508_v27 = vadd.f32 %v10713_v58, %v10658_v9  ;;  %v7512_v23 = vadd.f32 %v10714_v41, %v6842_v47  ;;  %v2040_v22 = vpack.c.bf16 %v1890_v29, %v1887_v18  ;;  %v10719_v2 = vld [vmem:[#allocation26_spill] sm:$0xff] }
 0x17e   :  { %v2013_v13 = vpack.c.bf16 %v7483_v16, %v7474_v8  ;;  %v7518_v49 = vadd.f32 %v10715_v20, %v6939_v42  ;;  %v1249_v10 = vadd.f32 %v10716_v5, %v6765_v46  ;;  %v1252_v9 = vadd.f32 %v10717_v26, %v6782_v11  ;;  %v5683_v42 = vld [vmem:[%s10254_s3 + $0x40] ss:$16 sps:$4 sm:$0xff]   ;;  %v7531_v11 = vpop.f32.mrf.mxu1  ;;  %v10720_v41 = vld [vmem:[#allocation22_spill] sm:$0xff]  ;;  %v10723_v20 = vld [vmem:[#allocation20_spill] sm:$0xff] }
 0x17f   :  { %v7487_v34 = vpop.f32.mrf.mxu0  ;;  %v1683_v50 = vmul.f32 0.2, %v1257_v14  ;;  %v1686_v47 = vmul.f32 0.2, %v1260_v7  ;;  %5204 = vmatprep.subr.bf16.mxu1 %v2040_v22  ;;  %v1881_v24 = vsel %vm1497_vm9, %v1265_v45, %v1689_v33  ;;  %v1884_v51 = vsel %vm1500_vm10, %v1268_v37, %v1692_v52  ;;  %v5684_v45 = vld [vmem:[%s10254_s3 + $0x64] ss:$16 sps:$4 sm:$0xff]  }
 0x180   :  { %2714 = vmatmul.mubr.bf16.gmra.mxu1 %v5680_v1  ;;  %vm1479_vm11 = vcmp.gt.f32.partialorder %v7500_v53, 0.0  ;;  %v1671_v46 = vmul.f32 0.2, %v7500_v53  ;;  %vm1491_vm12 = vcmp.gt.f32.partialorder %v1257_v14, 0.0  ;;  %vm1494_vm13 = vcmp.gt.f32.partialorder %v1260_v7, 0.0  ;;  %v10718_v33 = vld [vmem:[#allocation25_spill] sm:$0xff]  ;;  %v7560_v58 = vpop.f32.mrf.mxu1 }
 0x181   :  { %v7504_v38 = vpop.f32.mrf.mxu0  ;;  %2723 = vmatprep.mubr.bf16.mxu1 %v5681_v40  ;;  %5205 = vmatpush3.bf16.msra.mxu1 %v2016_v6  ;;  %v7537_v37 = vmul.f32 0.2, %v7508_v27  ;;  %vm1482_vm14 = vcmp.gt.f32.partialorder %v7512_v23, 0.0  ;;  %v1674_v1 = vmul.f32 0.2, %v7512_v23  ;;  %v2037_v16 = vpack.c.bf16 %v1884_v51, %v1881_v24  ;;  %v10724_v5 = vld [vmem:[#allocation21_spill] sm:$0xff] }
 0x182   :  { %vm1473_vm15 = vcmp.gt.f32.partialorder %v7508_v27, 0.0  ;;  %vm1476_vm0 = vcmp.gt.f32.partialorder %v7518_v49, 0.0  ;;  %v7544_v19 = vmul.f32 0.2, %v7518_v49  ;;  %vm1485_vm1 = vcmp.gt.f32.partialorder %v1249_v10, 0.0  ;;  %v7599_v25 = vpop.f32.mrf.mxu1 }
 0x183   :  { %v1041_v30 = vpop.f32.mrf.mxu0  ;;  %v1677_v18 = vmul.f32 0.2, %v1249_v10  ;;  %vm1488_vm2 = vcmp.gt.f32.partialorder %v1252_v9, 0.0  ;;  %v1680_v40 = vmul.f32 0.2, %v1252_v9  ;;  %v7548_v54 = vadd.f32 %v7212_v17, %v10619_v43  ;;  %5206 = vmatprep.subr.bf16.mxu1 %v2037_v16  ;;  %v10721_v43 = vld [vmem:[#allocation16_spill] sm:$0xff] }
 0x184   :  { %v1875_v0 = vsel %vm1491_vm12, %v1257_v14, %v1683_v50  ;;  %v1878_v31 = vsel %vm1494_vm13, %v1260_v7, %v1686_v47  ;;  %v7554_v52 = vadd.f32 %v7260_v35, %v10718_v33  ;;  %v7558_v6 = vadd.f32 %v7279_v55, %v10719_v2  ;;  %v10722_v7 = vld [vmem:[#allocation23_spill] sm:$0xff]  ;;  %10728 = vst [vmem:[#allocation82_spill] sm:$0xff] %v7599_v25 }
 0x185   :  { %v1045_v8 = vpop.f32.mrf.mxu0  ;;  %v7564_v22 = vadd.f32 %v7305_v62, %v10720_v41  ;;  %v7568_v17 = vadd.f32 %v7428_v44, %v10721_v43  ;;  %5207 = vmatpush3.bf16.msra.mxu1 %v2013_v13  ;;  %v7572_v35 = vadd.f32 %v7311_v48, %v10722_v7  ;;  %v7576_v55 = vadd.f32 %v7369_v32, %v10723_v20  ;;  %v10725_v62 = vld [vmem:[#allocation12_spill] sm:$0xff]  ;;  %v10726_v32 = vld [vmem:[#allocation7_spill] sm:$0xff] }
 0x186   :  { %v7580_v26 = vadd.f32 %v7388_v4, %v10724_v5  ;;  %v7584_v50 = vadd.f32 %v7487_v34, %v10725_v62  ;;  %v7588_v44 = vadd.f32 %v7407_v60, %v10724_v5  ;;  %v7592_v48 = vadd.f32 %v7415_v57, %v10721_v43  ;;  %v10729_v57 = vld [vmem:[#allocation17_spill] sm:$0xff] }
 0x187   :  { %v1047_v29 = vpop.f32.mrf.mxu0  ;;  %v2034_v13 = vpack.c.bf16 %v1878_v31, %v1875_v0  ;;  %v1046_v47 = vadd.f32 %v1045_v8, %v10726_v32  ;;  %v1869_v51 = vsel %vm1485_vm1, %v1249_v10, %v1677_v18  ;;  %v1872_v34 = vsel %vm1488_vm2, %v1252_v9, %v1680_v40  ;;  %v10730_v18 = vld [vmem:[#allocation13_spill] sm:$0xff]  ;;  %v10732_v31 = vld [vmem:[#allocation87_spill] sm:$0xff] }
 0x188   :  { %2724 = vmatmul.mubr.bf16.gmra.mxu1 %v5683_v42  ;;  %v1048_v4 = vadd.f32 %v1047_v29, %v10726_v32  ;;  %v10727_v42 = vld [vmem:[#allocation9_spill] sm:$0xff]  ;;  %v7602_v60 = vmul.f32 0.2, %v7568_v17  ;;  %v7606_v0 = vadd.f32 %v7438_v28, %v10729_v57  ;;  %v7610_v8 = vadd.f32 %v7441_v61, %v10729_v57  ;;  %v10731_v28 = vld [vmem:[#allocation90_spill] sm:$0xff] }
 0x189   :  { %v1049_v14 = vpop.f32.mrf.mxu0  ;;  %2733 = vmatprep.mubr.bf16.mxu1 %v5684_v45  ;;  %v7614_v10 = vadd.f32 %v7464_v21, %v10725_v62  ;;  %5208 = vmatprep.subr.bf16.mxu1 %v2034_v13  ;;  %v1748_v45 = vmul.f32 0.2, %v7584_v50  ;;  %v1040_v29 = vadd.f32 %v7504_v38, %v10730_v18  ;;  %v1042_v40 = vadd.f32 %v1041_v30, %v10730_v18  ;;  %v7635_v38 = vld [vmem:[%s10254_s3 + $0x60] ss:$16 sps:$4 sm:$0xff]   ;;  %v7640_v30 = vld [vmem:[%s10254_s3 + $0x84] ss:$16 sps:$4 sm:$0xff]  }
 0x18a   :  { %v1050_v16 = vadd.f32 %v1049_v14, %v10727_v42  ;;  %v10733_v14 = vpack.c.bf16 %v10731_v28, %v10732_v31  ;;  %v2031_v61 = vpack.c.bf16 %v1872_v34, %v1869_v51  ;;  %v1863_v21 = vsel %vm1479_vm11, %v7500_v53, %v1671_v46  ;;  %10734 = vst [vmem:[#allocation18_spill] sm:$0xff] %v7635_v38  ;;  %v7643_v46 = vpop.f32.mrf.mxu1 }
 0x18b   :  { %v1051_v24 = vpop.f32.mrf.mxu0  ;;  %v1866_v13 = vsel %vm1482_vm14, %v7512_v23, %v1674_v1  ;;  %10735 = vst [vmem:[#allocation83_spill] sm:$0xff] %v7640_v30  ;;  %vm1556_vm3 = vcmp.gt.f32.partialorder %v7584_v50, 0.0  ;;  %v1753_v51 = vmul.f32 0.2, %v1046_v47  ;;  %v1754_v53 = vmul.f32 0.2, %v1048_v4 }
 0x18c   :  { %5209 = vmatpush3.bf16.msra.mxu1 %v10733_v14  ;;  %v1756_v3 = vmul.f32 0.2, %v1050_v16  ;;  %v1052_v25 = vadd.f32 %v1051_v24, %v10727_v42  ;;  %vm1564_vm4 = vcmp.gt.f32.partialorder %v1050_v16, 0.0  ;;  %10736 = vst [vmem:[#allocation6_spill] sm:$0xff] %v7643_v46  ;;  %vm1562_vm5 = vcmp.gt.f32.partialorder %v1048_v4, 0.0  ;;  %v10784_v46 = vld [vmem:[#allocation54_spill] sm:$0xff] }
 0x18d   :  { %v7616_v9 = vpop.f32.mrf.mxu0  ;;  %5210 = vmatprep.subr.bf16.mxu1 %v2031_v61  ;;  %v2028_v23 = vpack.c.bf16 %v1866_v13, %v1863_v21  ;;  %v1751_v34 = vmul.f32 0.2, %v1042_v40  ;;  %vm1561_vm7 = vcmp.gt.f32.partialorder %v1046_v47, 0.0  ;;  %v10737_v28 = vpack.c.bf16 %v7459_v63, %v7453_v12 }
 0x18e   :  { %vm1565_vm6 = vcmp.gt.f32.partialorder %v1052_v25, 0.0  ;;  %v1757_v1 = vmul.f32 0.2, %v1052_v25  ;;  %v1857_v31 = vsel %vm1473_vm15, %v7508_v27, %v7537_v37  ;;  %v1860_v14 = vsel %vm1476_vm0, %v7518_v49, %v7544_v19  ;;  %v7663_v27 = vpop.f32.mrf.mxu1 }
 0x18f   :  { %v7645_v24 = vpop.f32.mrf.mxu0  ;;  %v1750_v61 = vmul.f32 0.2, %v1040_v29  ;;  %vm1559_vm8 = vcmp.gt.f32.partialorder %v1042_v40, 0.0  ;;  %v1948_v21 = vsel %vm1564_vm4, %v1050_v16, %v1756_v3  ;;  %vm1553_vm9 = vcmp.gt.f32.partialorder %v7610_v8, 0.0  ;;  %10738 = vst [vmem:[#allocation91_spill] sm:$0xff] %v7663_v27  ;;  %v10789_v27 = vld [vmem:[#allocation64_spill] sm:$0xff] }
 0x190   :  { %5211 = vmatpush3.bf16.msra.mxu1 %v10737_v28  ;;  %v1949_v13 = vsel %vm1565_vm6, %v1052_v25, %v1757_v1  ;;  %v1745_v12 = vmul.f32 0.2, %v7610_v8  ;;  %vm1558_vm10 = vcmp.gt.f32.partialorder %v1040_v29, 0.0  ;;  %v1946_v63 = vsel %vm1562_vm5, %v1048_v4, %v1754_v53  ;;  %v10740_v1 = vld [vmem:[#allocation78_spill] sm:$0xff] }
 0x191   :  { %5212 = vmatprep.subr.bf16.mxu1 %v2028_v23  ;;  %2734 = vmatmul.mubr.bf16.gmra.mxu1 %v7635_v38  ;;  %v1747_v49 = vmul.f32 0.2, %v7614_v10  ;;  %v1945_v37 = vsel %vm1561_vm7, %v1046_v47, %v1753_v51  ;;  %v2025_v3 = vpack.c.bf16 %v1860_v14, %v1857_v31  ;;  %v7667_v19 = vpop.f32.mrf.mxu0  ;;  %v2069_v16 = vpack.c.bf16 %v1949_v13, %v1946_v63  ;;  %v10739_v23 = vld [vmem:[#allocation81_spill] sm:$0xff] }
 0x192   :  { %2743 = vmatprep.mubr.bf16.mxu1 %v7640_v30  ;;  %vm1555_vm11 = vcmp.gt.f32.partialorder %v7614_v10, 0.0  ;;  %v2068_v25 = vpack.c.bf16 %v1948_v21, %v1945_v37  ;;  %v10741_v28 = vpack.c.bf16 %v10739_v23, %v10740_v1  ;;  %v1940_v4 = vsel %vm1556_vm3, %v7584_v50, %v1748_v45  ;;  %v7683_v31 = vld [vmem:[%s10254_s3 + $0x80] ss:$16 sps:$4 sm:$0xff]  }
 0x193   :  { %v1943_v53 = vsel %vm1559_vm8, %v1042_v40, %v1751_v34  ;;  %vm1550_vm12 = vcmp.gt.f32.partialorder %v7568_v17, 0.0  ;;  %v1744_v47 = vmul.f32 0.2, %v7606_v0  ;;  %v1942_v51 = vsel %vm1558_vm10, %v1040_v29, %v1750_v61  ;;  %10742 = vst [vmem:[#allocation15_spill] sm:$0xff] %v7683_v31  ;;  %2864 = vmatprep.subr.bf16.mxu0 %v2069_v16  ;;  %v10743_v50 = vld [vmem:[#allocation77_spill] sm:$0xff]  ;;  %v7696_v34 = vpop.f32.mrf.mxu1 }
 0x194   :  { %5213 = vmatpush3.bf16.msra.mxu1 %v10741_v28  ;;  %v2066_v14 = vpack.c.bf16 %v1943_v53, %v1940_v4  ;;  %v1012_v21 = vadd.f32 %v7323_v59, %v10722_v7  ;;  %v1016_v45 = vadd.f32 %v10743_v50, %v10723_v20  ;;  %v1739_v40 = vmul.f32 0.2, %v7588_v44  ;;  %2865 = vmatpush1.bf16.msra.mxu0 %v2068_v25  ;;  %v7694_v29 = vld [vmem:[%s10254_s3 + $0xa4] ss:$16 sps:$4 sm:$0xff]   ;;  %v7703_v7 = vpop.f32.mrf.mxu0 }
 0x195   :  { %5214 = vmatprep.subr.bf16.mxu1 %v2025_v3  ;;  %vm1552_vm13 = vcmp.gt.f32.partialorder %v7606_v0, 0.0  ;;  %10744 = vst [vmem:[#allocation85_spill] sm:$0xff] %v7694_v29  ;;  %10745 = vst [vmem:[#allocation8_spill] sm:$0xff] %v7696_v34  ;;  %vm1547_vm14 = vcmp.gt.f32.partialorder %v7588_v44, 0.0  ;;  %v1741_v61 = vmul.f32 0.2, %v7592_v48  ;;  %v1939_v59 = vsel %vm1555_vm11, %v7614_v10, %v1747_v49 }
 0x196   :  { %2866 = vmatprep.subr.bf16.mxu0 %v2066_v14  ;;  %v1937_v13 = vsel %vm1553_vm9, %v7610_v8, %v1745_v12  ;;  %v1736_v63 = vmul.f32 0.2, %v7576_v55  ;;  %vm1549_vm15 = vcmp.gt.f32.partialorder %v7592_v48, 0.0  ;;  %v2065_v37 = vpack.c.bf16 %v1942_v51, %v1939_v59  ;;  %v10747_v16 = vld [vmem:[#allocation45_spill] sm:$0xff]  ;;  %v7737_v28 = vpop.f32.mrf.mxu0  ;;  %v10751_v14 = vld [vmem:[#allocation28_spill] sm:$0xff]  ;;  %v10752_v50 = vld [vmem:[#allocation122_spill] sm:$0xff] }
 0x197   :  { %v10746_v3 = vpack.c.bf16 %v7338_v39, %v7331_v36  ;;  %v1934_v10 = vsel %vm1550_vm12, %v7568_v17, %v7602_v60  ;;  %vm1544_vm0 = vcmp.gt.f32.partialorder %v7576_v55, 0.0  ;;  %v1738_v49 = vmul.f32 0.2, %v7580_v26  ;;  %v10748_v60 = vld [vmem:[#allocation71_spill] sm:$0xff] }
 0x198   :  { %v1936_v8 = vsel %vm1552_vm13, %v7606_v0, %v1744_v47  ;;  %v2063_v12 = vpack.c.bf16 %v1937_v13, %v1934_v10  ;;  %v1002_v36 = vadd.f32 %v10747_v16, %v10719_v2  ;;  %v1733_v39 = vmul.f32 0.2, %v1012_v21  ;;  %2867 = vmatpush1.bf16.msra.mxu0 %v2065_v37  ;;  %v7732_v0 = vpop.f32.mrf.mxu1  ;;  %v7760_v59 = vld [vmem:[%s10254_s3 + $0xc4] ss:$16 sps:$4 sm:$0xff]   ;;  %v7767_v10 = vpop.f32.mrf.mxu0 }
 0x199   :  { %5215 = vmatpush3.bf16.msra.mxu1 %v10746_v3  ;;  %vm1546_vm1 = vcmp.gt.f32.partialorder %v7580_v26, 0.0  ;;  %v1931_v17 = vsel %vm1547_vm14, %v7588_v44, %v1739_v40  ;;  %v1006_v25 = vadd.f32 %v10748_v60, %v10720_v41  ;;  %vm1541_vm2 = vcmp.gt.f32.partialorder %v1012_v21, 0.0  ;;  %10749 = vst [vmem:[#allocation93_spill] sm:$0xff] %v7732_v0  ;;  %10753 = vst [vmem:[#allocation92_spill] sm:$0xff] %v7760_v59 }
 0x19a   :  { %2744 = vmatmul.mubr.bf16.gmra.mxu1 %v7683_v31  ;;  %v1735_v23 = vmul.f32 0.2, %v1016_v45  ;;  %v1933_v1 = vsel %vm1549_vm15, %v7592_v48, %v1741_v61  ;;  %2868 = vmatprep.subr.bf16.mxu0 %v2063_v12  ;;  %v1730_v4 = vmul.f32 0.2, %v7564_v22  ;;  %vm1543_vm3 = vcmp.gt.f32.partialorder %v1016_v45, 0.0  ;;  %v7765_v3 = vpop.f32.mrf.mxu1  ;;  %v10779_v31 = vld [vmem:[#allocation124_spill] sm:$0xff] }
 0x19b   :  { %2753 = vmatprep.mubr.bf16.mxu1 %v7694_v29  ;;  %v2062_v53 = vpack.c.bf16 %v1936_v8, %v1933_v1  ;;  %v1928_v44 = vsel %vm1544_vm0, %v7576_v55, %v1736_v63  ;;  %vm1538_vm4 = vcmp.gt.f32.partialorder %v7564_v22, 0.0  ;;  %v1732_v41 = vmul.f32 0.2, %v7572_v35  ;;  %v7751_v48 = vld [vmem:[%s10254_s3 + $0xa0] ss:$16 sps:$4 sm:$0xff]   ;;  %10755 = vst [vmem:[#allocation32_spill] sm:$0xff] %v7765_v3 }
 0x19c   :  { %v1930_v47 = vsel %vm1546_vm1, %v7580_v26, %v1738_v49  ;;  %10750 = vst [vmem:[#allocation10_spill] sm:$0xff] %v7751_v48  ;;  %v2060_v51 = vpack.c.bf16 %v1931_v17, %v1928_v44  ;;  %v992_v40 = vadd.f32 %v10752_v50, %v10751_v14  ;;  %v1727_v61 = vmul.f32 0.2, %v1002_v36  ;;  %v10754_v26 = vld [vmem:[#allocation123_spill] sm:$0xff]  ;;  %v10758_v1 = vld [vmem:[#allocation30_spill] sm:$0xff]  ;;  %v10778_v29 = vld [vmem:[#allocation125_spill] sm:$0xff] }
 0x19d   :  { %vm1540_vm5 = vcmp.gt.f32.partialorder %v7572_v35, 0.0  ;;  %2869 = vmatpush1.bf16.msra.mxu0 %v2062_v53  ;;  %v1925_v55 = vsel %vm1541_vm2, %v1012_v21, %v1733_v39  ;;  %v996_v13 = vadd.f32 %v10754_v26, %v10718_v33  ;;  %vm1535_vm6 = vcmp.gt.f32.partialorder %v1002_v36, 0.0  ;;  %v10756_v39 = vld [vmem:[#allocation31_spill] sm:$0xff]  ;;  %v10762_v26 = vld [vmem:[#allocation86_spill] sm:$0xff] }
 0x19e   :  { %v1729_v63 = vmul.f32 0.2, %v1006_v25  ;;  %v1927_v37 = vsel %vm1543_vm3, %v1016_v45, %v1735_v23  ;;  %2870 = vmatprep.subr.bf16.mxu0 %v2060_v51  ;;  %v1724_v49 = vmul.f32 0.2, %v7554_v52  ;;  %vm1537_vm7 = vcmp.gt.f32.partialorder %v1006_v25, 0.0  ;;  %v10757_v17 = vld [vmem:[#allocation119_spill] sm:$0xff] }
 0x19f   :  { %v2059_v21 = vpack.c.bf16 %v1930_v47, %v1927_v37  ;;  %v1922_v8 = vsel %vm1538_vm4, %v7564_v22, %v1730_v4  ;;  %vm1532_vm8 = vcmp.gt.f32.partialorder %v7554_v52, 0.0  ;;  %v1726_v12 = vmul.f32 0.2, %v7558_v6  ;;  %v10759_v4 = vld [vmem:[#allocation117_spill] sm:$0xff]  ;;  %v7789_v47 = vpop.f32.mrf.mxu0  ;;  %v10763_v37 = vld [vmem:[#allocation34_spill] sm:$0xff] }
 0x1a0   :  { %v1924_v45 = vsel %vm1540_vm5, %v7572_v35, %v1732_v41  ;;  %v2057_v16 = vpack.c.bf16 %v1925_v55, %v1922_v8  ;;  %v982_v60 = vadd.f32 %v10757_v17, %v10756_v39  ;;  %v1721_v23 = vmul.f32 0.2, %v992_v40  ;;  %v7787_v41 = vpop.f32.mrf.mxu1  ;;  %v10761_v55 = vld [vmem:[#allocation74_spill] sm:$0xff]  ;;  %v10785_v39 = vld [vmem:[#allocation53_spill] sm:$0xff] }
 0x1a1   :  { %vm1534_vm9 = vcmp.gt.f32.partialorder %v7558_v6, 0.0  ;;  %2871 = vmatpush1.bf16.msra.mxu0 %v2059_v21  ;;  %v1919_v22 = vsel %vm1535_vm6, %v1002_v36, %v1727_v61  ;;  %v978_v53 = vadd.f32 %v10759_v4, %v10758_v1  ;;  %vm1529_vm10 = vcmp.gt.f32.partialorder %v992_v40, 0.0  ;;  %v10764_v21 = vld [vmem:[#allocation66_spill] sm:$0xff]  ;;  %v7818_v4 = vpop.f32.mrf.mxu0 }
 0x1a2   :  { %2754 = vmatmul.mubr.bf16.gmra.mxu1 %v7751_v48  ;;  %v1723_v44 = vmul.f32 0.2, %v996_v13  ;;  %v1921_v35 = vsel %vm1537_vm7, %v1006_v25, %v1729_v63  ;;  %2872 = vmatprep.subr.bf16.mxu0 %v2057_v16  ;;  %v1718_v51 = vmul.f32 0.2, %v7548_v54  ;;  %vm1531_vm11 = vcmp.gt.f32.partialorder %v996_v13, 0.0  ;;  %v10771_v63 = vld [vmem:[#allocation39_spill] sm:$0xff] }
 0x1a3   :  { %2763 = vmatprep.mubr.bf16.mxu1 %v7760_v59  ;;  %v2056_v14 = vpack.c.bf16 %v1924_v45, %v1921_v35  ;;  %v1916_v36 = vsel %vm1532_vm8, %v7554_v52, %v1724_v49  ;;  %vm1526_vm12 = vcmp.gt.f32.partialorder %v7548_v54, 0.0  ;;  %v1918_v50 = vsel %vm1534_vm9, %v7558_v6, %v1726_v12  ;;  %v7802_v25 = vld [vmem:[%s10254_s3 + $0xc0] ss:$16 sps:$4 sm:$0xff]   ;;  %v7814_v6 = vld [vmem:[%s10254_s3 + $0xe4] ss:$16 sps:$4 sm:$0xff]  }
 0x1a4   :  { %10760 = vst [vmem:[#allocation111_spill] sm:$0xff] %v7802_v25  ;;  %v2054_v61 = vpack.c.bf16 %v1919_v22, %v1916_v36  ;;  %v1128_v8 = vadd.f32 %v10764_v21, %v10763_v37  ;;  %v10765_v45 = vld [vmem:[#allocation35_spill] sm:$0xff]  ;;  %v10766_v52 = vld [vmem:[#allocation69_spill] sm:$0xff]  ;;  %v1715_v16 = vmul.f32 0.2, %v982_v60  ;;  %v1913_v17 = vsel %vm1529_vm10, %v992_v40, %v1721_v23  ;;  %10767 = vst [vmem:[#allocation33_spill] sm:$0xff] %v7814_v6  ;;  %v7816_v22 = vpop.f32.mrf.mxu1 }
 0x1a5   :  { %v1132_v49 = vadd.f32 %v10766_v52, %v10765_v45  ;;  %2873 = vmatpush1.bf16.msra.mxu0 %v2056_v14  ;;  %vm1523_vm13 = vcmp.gt.f32.partialorder %v982_v60, 0.0  ;;  %v1915_v12 = vsel %vm1531_vm11, %v996_v13, %v1723_v44  ;;  %10768 = vst [vmem:[#allocation113_spill] sm:$0xff] %v7816_v22  ;;  %v1712_v35 = vmul.f32 0.2, %v978_v53  ;;  %v10769_v21 = vld [vmem:[#allocation38_spill] sm:$0xff]  ;;  %v10770_v40 = vld [vmem:[#allocation60_spill] sm:$0xff] }
 0x1a6   :  { %2874 = vmatprep.subr.bf16.mxu0 %v2054_v61  ;;  %v2053_v36 = vpack.c.bf16 %v1918_v50, %v1915_v12  ;;  %v1910_v14 = vsel %vm1526_vm12, %v7548_v54, %v1718_v51  ;;  %v1118_v23 = vadd.f32 %v10770_v40, %v10769_v21  ;;  %vm1520_vm14 = vcmp.gt.f32.partialorder %v978_v53, 0.0  ;;  %v10772_v13 = vld [vmem:[#allocation63_spill] sm:$0xff]  ;;  %v7830_v54 = vpop.f32.mrf.mxu1  ;;  %v7832_v51 = vpop.f32.mrf.mxu0  ;;  %v10773_v12 = vld [vmem:[#allocation44_spill] sm:$0xff] }
 0x1a7   :  { %v2051_v52 = vpack.c.bf16 %v1913_v17, %v1910_v14  ;;  %v1122_v44 = vadd.f32 %v10772_v13, %v10771_v63  ;;  %v1802_v59 = vmul.f32 0.2, %v1128_v8  ;;  %v1805_v48 = vmul.f32 0.2, %v1132_v49  ;;  %v10774_v17 = vld [vmem:[#allocation55_spill] sm:$0xff]  ;;  %v10776_v13 = vld [vmem:[#allocation58_spill] sm:$0xff] }
 0x1a8   :  { %v1907_v50 = vsel %vm1523_vm13, %v982_v60, %v1715_v16  ;;  %vm1610_vm15 = vcmp.gt.f32.partialorder %v1128_v8, 0.0  ;;  %vm1613_vm0 = vcmp.gt.f32.partialorder %v1132_v49, 0.0  ;;  %v1904_v61 = vsel %vm1520_vm14, %v978_v53, %v1712_v35  ;;  %v10775_v40 = vld [vmem:[#allocation47_spill] sm:$0xff] }
 0x1a9   :  { %2875 = vmatpush1.bf16.msra.mxu0 %v2053_v36  ;;  %v1108_v14 = vadd.f32 %v10774_v17, %v10773_v12  ;;  %v7841_v36 = vld [vmem:[%s10254_s3 + $0xe0] ss:$16 sps:$4 sm:$0xff]   ;;  %v2048_v60 = vpack.c.bf16 %v1907_v50, %v1904_v61  ;;  %v1796_v16 = vmul.f32 0.2, %v1118_v23  ;;  %v10780_v30 = vpack.c.bf16 %v10778_v29, %v10779_v31  ;;  %v7849_v35 = vld [vmem:[%s10254_s3 + $0x104] ss:$16 sps:$4 sm:$0xff]   ;;  %v7851_v17 = vpop.f32.mrf.mxu1 }
 0x1aa   :  { %2764 = vmatmul.mubr.bf16.gmra.mxu1 %v7802_v25  ;;  %2876 = vmatprep.subr.bf16.mxu0 %v2051_v52  ;;  %v1112_v25 = vadd.f32 %v10776_v13, %v10775_v40  ;;  %10777 = vst [vmem:[#allocation11_spill] sm:$0xff] %v7841_v36  ;;  %v1994_v52 = vsel %vm1610_vm15, %v1128_v8, %v1802_v59  ;;  %10781 = vst [vmem:[#allocation96_spill] sm:$0xff] %v7849_v35  ;;  %vm1604_vm1 = vcmp.gt.f32.partialorder %v1118_v23, 0.0  ;;  %v1077_v13 = vpop.f32.mrf.mxu0  ;;  %v10782_v50 = vld [vmem:[#allocation52_spill] sm:$0xff]  ;;  %v10783_v61 = vld [vmem:[#allocation51_spill] sm:$0xff] }
 0x1ab   :  { %2773 = vmatprep.mubr.bf16.mxu1 %v7814_v6  ;;  %v1799_v6 = vmul.f32 0.2, %v1122_v44  ;;  %v1997_v53 = vsel %vm1613_vm0, %v1132_v49, %v1805_v48  ;;  %vm1607_vm2 = vcmp.gt.f32.partialorder %v1122_v44, 0.0  ;;  %v1098_v38 = vadd.f32 %v10783_v61, %v10782_v50  ;;  %v10786_v59 = vld [vmem:[#allocation121_spill] sm:$0xff]  ;;  %v10787_v8 = vld [vmem:[#allocation120_spill] sm:$0xff] }
 0x1ac   :  { %v1102_v31 = vadd.f32 %v10785_v39, %v10784_v46  ;;  %v1790_v29 = vmul.f32 0.2, %v1108_v14  ;;  %v1793_v48 = vmul.f32 0.2, %v1112_v25  ;;  %v10788_v49 = vpack.c.bf16 %v10786_v59, %v10787_v8  ;;  %v1079_v61 = vpop.f32.mrf.mxu0 }
 0x1ad   :  { %2877 = vmatpush1.bf16.msra.mxu0 %v10780_v30  ;;  %v2093_v30 = vpack.c.bf16 %v1997_v53, %v1994_v52  ;;  %v1988_v1 = vsel %vm1604_vm1, %v1118_v23, %v1796_v16  ;;  %v1991_v34 = vsel %vm1607_vm2, %v1122_v44, %v1799_v6  ;;  %vm1598_vm3 = vcmp.gt.f32.partialorder %v1108_v14, 0.0  ;;  %v7869_v53 = vld [vmem:[%s10254_s3 + $0x100] ss:$16 sps:$4 sm:$0xff]   ;;  %v10793_v23 = vld [vmem:[#allocation48_spill] sm:$0xff] }
 0x1ae   :  { %2878 = vmatprep.subr.bf16.mxu0 %v2048_v60  ;;  %vm1601_vm4 = vcmp.gt.f32.partialorder %v1112_v25, 0.0  ;;  %v7862_v60 = vpop.f32.mrf.mxu1  ;;  %v1784_v39 = vmul.f32 0.2, %v1098_v38  ;;  %10791 = vst [vmem:[#allocation36_spill] sm:$0xff] %v7869_v53  ;;  %v2090_v59 = vpack.c.bf16 %v1991_v34, %v1988_v1  ;;  %v1787_v8 = vmul.f32 0.2, %v1102_v31  ;;  %v1081_v34 = vpop.f32.mrf.mxu0 }
 0x1af   :  { %v10794_v44 = vld [vmem:[#allocation76_spill] sm:$0xff]  ;;  %v10795_v16 = vld [vmem:[#allocation73_spill] sm:$0xff]  ;;  %v1982_v2 = vsel %vm1598_vm3, %v1108_v14, %v1790_v29  ;;  %vm1592_vm5 = vcmp.gt.f32.partialorder %v1098_v38, 0.0  ;;  %vm1595_vm6 = vcmp.gt.f32.partialorder %v1102_v31, 0.0 }
 0x1b0   :  { %v7881_v3 = vpop.f32.mrf.mxu1  ;;  %v1976_v22 = vsel %vm1592_vm5, %v1098_v38, %v1784_v39  ;;  %v1979_v0 = vsel %vm1595_vm6, %v1102_v31, %v1787_v8  ;;  %v7909_v31 = vld [vmem:[%s10254_s3 + $0x120] ss:$16 sps:$4 sm:$0xff]   ;;  %v10806_v8 = vld [vmem:[#allocation84_spill] sm:$0xff] }
 0x1b1   :  { %2879 = vmatpush1.bf16.msra.mxu0 %v10788_v49  ;;  %v10792_v49 = vld [vmem:[#allocation67_spill] sm:$0xff]  ;;  %10805 = vst [vmem:[#allocation101_spill] sm:$0xff] %v7909_v31  ;;  %v2084_v39 = vpack.c.bf16 %v1979_v0, %v1976_v22  ;;  %v7927_v0 = vadd.f32 %v7461_v56, %v10726_v32  ;;  %v1070_v56 = vadd.f32 %v7789_v47, %v10806_v8 }
 0x1b2   :  { %2774 = vmatmul.mubr.bf16.gmra.mxu1 %v7841_v36  ;;  %2880 = vmatprep.subr.bf16.mxu0 %v2093_v30  ;;  %v10790_v36 = vld [vmem:[#allocation43_spill] sm:$0xff]  ;;  %v1092_v6 = vadd.f32 %v10793_v23, %v10792_v49  ;;  %v1985_v30 = vsel %vm1601_vm4, %v1112_v25, %v1793_v48  ;;  %v10798_v23 = vld [vmem:[#allocation88_spill] sm:$0xff]  ;;  %v10800_v48 = vld [vmem:[#allocation70_spill] sm:$0xff] }
 0x1b3   :  { %2783 = vmatprep.mubr.bf16.mxu1 %v7849_v35  ;;  %v1088_v52 = vadd.f32 %v10790_v36, %v10789_v27  ;;  %v10796_v35 = vpack.c.bf16 %v10794_v44, %v10795_v16  ;;  %v7879_v36 = vld [vmem:[%s10254_s3 + $0x124] ss:$16 sps:$4 sm:$0xff]   ;;  %v7885_v33 = vadd.f32 %v10798_v23, %v10721_v43  ;;  %v2087_v14 = vpack.c.bf16 %v1985_v30, %v1982_v2 }
 0x1b4   :  { %10797 = vst [vmem:[#allocation112_spill] sm:$0xff] %v7879_v36  ;;  %v1781_v25 = vmul.f32 0.2, %v1092_v6  ;;  %v10801_v44 = vld [vmem:[#allocation68_spill] sm:$0xff]  ;;  %vm1589_vm8 = vcmp.gt.f32.partialorder %v1092_v6, 0.0  ;;  %v7895_v43 = vadd.f32 %v7531_v11, %v10727_v42  ;;  %v10804_v23 = vld [vmem:[#allocation79_spill] sm:$0xff]  ;;  %v1072_v11 = vadd.f32 %v7818_v4, %v10806_v8 }
 0x1b5   :  { %2881 = vmatpush2.bf16.msra.mxu0 %v10796_v35  ;;  %v1778_v1 = vmul.f32 0.2, %v1088_v52  ;;  %v10799_v35 = vld [vmem:[#allocation75_spill] sm:$0xff]  ;;  %v10802_v16 = vpack.c.bf16 %v10800_v48, %v10801_v44  ;;  %vm1586_vm7 = vcmp.gt.f32.partialorder %v1088_v52, 0.0  ;;  %v10803_v2 = vld [vmem:[#allocation72_spill] sm:$0xff]  ;;  %v7903_v48 = vadd.f32 %v10804_v23, %v10729_v57 }
 0x1b6   :  { %2882 = vmatprep.subr.bf16.mxu0 %v2090_v59  ;;  %v1082_v29 = vadd.f32 %v1081_v34, %v10799_v35  ;;  %v5624_v59 = vpop.f32.mrf.mxu1  ;;  %v1078_v30 = vadd.f32 %v1077_v13, %v10803_v2  ;;  %v7899_v34 = vmul.f32 0.2, %v7885_v33  ;;  %v1080_v38 = vadd.f32 %v1079_v61, %v10799_v35  ;;  %v10807_v13 = vld [vmem:[#allocation65_spill] sm:$0xff]  ;;  %v10810_v61 = vld [vmem:[#allocation14_spill] sm:$0xff] }
 0x1b7   :  { %v7919_v57 = vld [vmem:[%s10254_s3 + $0x144] ss:$16 sps:$4 sm:$0xff]   ;;  %v7923_v23 = vadd.f32 %v10810_v61, %v10724_v5  ;;  %v1076_v4 = vadd.f32 %v7832_v51, %v10803_v2  ;;  %vm1577_vm12 = vcmp.gt.f32.partialorder %v1072_v11, 0.0  ;;  %vm1576_vm15 = vcmp.gt.f32.partialorder %v1070_v56, 0.0 }
 0x1b8   :  { %v1775_v42 = vmul.f32 0.2, %v1082_v29  ;;  %v7929_v22 = vpop.f32.mrf.mxu1  ;;  %vm1583_vm9 = vcmp.gt.f32.partialorder %v1082_v29, 0.0  ;;  %vm1580_vm10 = vcmp.gt.f32.partialorder %v1078_v30, 0.0  ;;  %v1774_v32 = vmul.f32 0.2, %v1080_v38 }
 0x1b9   :  { %2883 = vmatpush2.bf16.msra.mxu0 %v10802_v16  ;;  %v1970_v16 = vsel %vm1586_vm7, %v1088_v52, %v1778_v1  ;;  %v7934_v52 = vmul.f32 0.2, %v7895_v43  ;;  %v10811_v1 = vld [vmem:[#allocation80_spill] sm:$0xff]  ;;  %vm1582_vm11 = vcmp.gt.f32.partialorder %v1080_v38, 0.0  ;;  %vm1579_vm13 = vcmp.gt.f32.partialorder %v1076_v4, 0.0 }
 0x1ba   :  { %2784 = vmatmul.mubr.bf16.gmra.mxu1 %v7869_v53  ;;  %2884 = vmatprep.subr.bf16.mxu0 %v2087_v14  ;;  %v10808_v14 = vld [vmem:[#allocation62_spill] sm:$0xff]  ;;  %v1068_v5 = vadd.f32 %v7767_v10, %v10811_v1  ;;  %v10813_v10 = vld [vmem:[#allocation56_spill] sm:$0xff]  ;;  %v1967_v47 = vsel %vm1583_vm9, %v1082_v29, %v1775_v42  ;;  %v5625_v61 = vpop.f32.mrf.mxu1  ;;  %v1966_v29 = vsel %vm1582_vm11, %v1080_v38, %v1774_v32  ;;  %vm1563_vm1 = vcmp.gt.f32.partialorder %v7927_v0, 0.0 }
 0x1bb   :  { %2793 = vmatprep.mubr.bf16.mxu1 %v7879_v36  ;;  %v10809_v44 = vpack.c.bf16 %v10807_v13, %v10808_v14  ;;  %v1973_v36 = vsel %vm1589_vm8, %v1092_v6, %v1781_v25  ;;  %v7937_v6 = vadd.f32 %v5624_v59, %v10763_v37  ;;  %v1772_v25 = vmul.f32 0.2, %v1078_v30  ;;  %v7941_v13 = vpop.permute.xlu1 %419  ;;  %v10812_v14 = vld [vmem:[#allocation57_spill] sm:$0xff] }
 0x1bc   :  { %v2081_v51 = vpack.c.bf16 %v1973_v36, %v1970_v16  ;;  %v1062_v37 = vadd.f32 %v7703_v7, %v7941_v13  ;;  %v1769_v59 = vmul.f32 0.2, %v1072_v11  ;;  %v1066_v36 = vadd.f32 %v7737_v28, %v10811_v1  ;;  %v7976_v38 = vld [vmem:[%s10254_s3 + $0x164] ss:$16 sps:$4 sm:$0xff]  }
 0x1bd   :  { %2885 = vmatpush2.bf16.msra.mxu0 %v10809_v44  ;;  %v10814_v44 = vpack.c.bf16 %v10812_v14, %v10813_v10  ;;  %v1771_v16 = vmul.f32 0.2, %v1076_v4  ;;  %v1060_v7 = vadd.f32 %v7667_v19, %v7941_v13  ;;  %v1766_v53 = vmul.f32 0.2, %v1068_v5 }
 0x1be   :  { %2886 = vmatprep.subr.bf16.mxu0 %v2084_v39  ;;  %v7946_v39 = vpop.permute.xlu0 %414  ;;  %v1964_v14 = vsel %vm1580_vm10, %v1078_v30, %v1772_v25  ;;  %vm1574_vm14 = vcmp.gt.f32.partialorder %v1068_v5, 0.0  ;;  %v1768_v10 = vmul.f32 0.2, %v1070_v56  ;;  %v1420_v42 = vadd.f32 %v5625_v61, %v10765_v45  ;;  %v1411_v25 = vpop.f32.mrf.mxu1 }
 0x1bf   :  { %v2078_v28 = vpack.c.bf16 %v1967_v47, %v1964_v14  ;;  %v10815_v19 = vpack.c.bf16 %v10762_v26, %v10761_v55  ;;  %v1961_v30 = vsel %vm1577_vm12, %v1072_v11, %v1769_v59  ;;  %v1056_v32 = vadd.f32 %v7616_v9, %v7946_v39 }
 0x1c0   :  { %vm1571_vm0 = vcmp.gt.f32.partialorder %v1062_v37, 0.0  ;;  %v1963_v45 = vsel %vm1579_vm13, %v1076_v4, %v1771_v16  ;;  %vm1573_vm2 = vcmp.gt.f32.partialorder %v1066_v36, 0.0  ;;  %v1958_v11 = vsel %vm1574_vm14, %v1068_v5, %v1766_v53 }
 0x1c1   :  { %2887 = vmatpush2.bf16.msra.mxu0 %v10814_v44  ;;  %v1765_v44 = vmul.f32 0.2, %v1066_v36  ;;  %v2077_v26 = vpack.c.bf16 %v1966_v29, %v1963_v45  ;;  %v1762_v59 = vmul.f32 0.2, %v1060_v7  ;;  %v1960_v47 = vsel %vm1576_vm15, %v1070_v56, %v1768_v10 }
 0x1c2   :  { %2794 = vmatmul.mubr.bf16.gmra.mxu1 %v7909_v31  ;;  %v1058_v31 = vadd.f32 %v7645_v24, %v7946_v39  ;;  %2888 = vmatprep.subr.bf16.mxu0 %v2081_v51  ;;  %v7966_v24 = vld [vmem:[%s10254_s3 + $0x140] ss:$16 sps:$4 sm:$0xff]   ;;  %v1763_v51 = vmul.f32 0.2, %v1062_v37  ;;  %v2075_v61 = vpack.c.bf16 %v1961_v30, %v1958_v11  ;;  %v1806_v9 = vmul.f32 0.2, %v1420_v42 }
 0x1c3   :  { %2803 = vmatprep.mubr.bf16.mxu1 %v7919_v57  ;;  %v1412_v14 = vadd.f32 %v1411_v25, %v10771_v63  ;;  %vm1570_vm4 = vcmp.gt.f32.partialorder %v1060_v7, 0.0  ;;  %v1803_v16 = vmul.f32 0.2, %v7937_v6  ;;  %vm1614_vm5 = vcmp.gt.f32.partialorder %v1420_v42, 0.0 }
 0x1c4   :  { %v1760_v55 = vmul.f32 0.2, %v1058_v31  ;;  %vm1568_vm3 = vcmp.gt.f32.partialorder %v1058_v31, 0.0  ;;  %v1955_v4 = vsel %vm1571_vm0, %v1062_v37, %v1763_v51  ;;  %v1759_v53 = vmul.f32 0.2, %v1056_v32 }
 0x1c5   :  { %2889 = vmatpush2.bf16.msra.mxu0 %v10815_v19  ;;  %v1957_v5 = vsel %vm1573_vm2, %v1066_v36, %v1765_v44  ;;  %vm1551_vm6 = vcmp.gt.f32.partialorder %v7885_v33, 0.0  ;;  %v1409_v56 = vadd.f32 %v7929_v22, %v10769_v21  ;;  %vm1567_vm7 = vcmp.gt.f32.partialorder %v1056_v32, 0.0  ;;  %v8001_v36 = vld [vmem:[%s10254_s3 + $0x160] ss:$16 sps:$4 sm:$0xff]  }
 0x1c6   :  { %2890 = vmatprep.subr.bf16.mxu0 %v2078_v28  ;;  %v2074_v63 = vpack.c.bf16 %v1960_v47, %v1957_v5  ;;  %v1952_v10 = vsel %vm1568_vm3, %v1058_v31, %v1760_v55  ;;  %v1348_v29 = vadd.f32 %v7560_v58, %v10730_v18  ;;  %vm1611_vm8 = vcmp.gt.f32.partialorder %v7937_v6, 0.0  ;;  %v8010_v58 = vld [vmem:[%s10254_s3 + $0x184] ss:$16 sps:$4 sm:$0xff]  }
 0x1c7   :  { %v1954_v37 = vsel %vm1570_vm4, %v1060_v7, %v1762_v59  ;;  %v2072_v28 = vpack.c.bf16 %v1955_v4, %v1952_v10  ;;  %vm1566_vm9 = vcmp.gt.f32.partialorder %v7895_v43, 0.0  ;;  %v1404_v21 = vadd.f32 %v7862_v60, %v10775_v40  ;;  %v8059_v47 = vld [vmem:[%s10254_s3 + $0x1a4] ss:$16 sps:$4 sm:$0xff]  }
 0x1c8   :  { %v1800_v22 = vmul.f32 0.2, %v1412_v14  ;;  %v1998_v31 = vsel %vm1614_vm5, %v1420_v42, %v1806_v9  ;;  %v1755_v18 = vmul.f32 0.2, %v7927_v0  ;;  %v1345_v7 = vadd.f32 %v7502_v15, %v10725_v62  ;;  %v8027_v62 = vld [vmem:[%s10254_s3 + $0x8] ss:$16 sps:$4 sm:$0xff]  }
 0x1c9   :  { %2891 = vmatpush2.bf16.msra.mxu0 %v2077_v26  ;;  %vm1608_vm10 = vcmp.gt.f32.partialorder %v1412_v14, 0.0  ;;  %v1951_v51 = vsel %vm1567_vm7, %v1056_v32, %v1759_v53  ;;  %v1401_v40 = vadd.f32 %v7830_v54, %v10773_v12  ;;  %v1797_v60 = vmul.f32 0.2, %v1409_v56  ;;  %v10816_v9 = vld [vmem:[#allocation24_spill] sm:$0xff]  ;;  %v10817_v4 = vld [vmem:[#allocation93_spill] sm:$0xff] }
 0x1ca   :  { %2804 = vmatmul.mubr.bf16.gmra.mxu1 %v7966_v24  ;;  %2892 = vmatprep.subr.bf16.mxu0 %v2075_v61  ;;  %v2071_v19 = vpack.c.bf16 %v1954_v37, %v1951_v51  ;;  %v1995_v42 = vsel %vm1611_vm8, %v7937_v6, %v1803_v16  ;;  %v1950_v30 = vsel %vm1566_vm9, %v7895_v43, %v7934_v52  ;;  %v1752_v25 = vmul.f32 0.2, %v1348_v29  ;;  %v8036_v52 = vld [vmem:[%s10254_s3 + $0x2c] ss:$16 sps:$4 sm:$0xff]  }
 0x1cb   :  { %2813 = vmatprep.mubr.bf16.mxu1 %v7976_v38  ;;  %vm1605_vm11 = vcmp.gt.f32.partialorder %v1409_v56, 0.0  ;;  %v2094_v15 = vpack.c.bf16 %v1998_v31, %v1995_v42  ;;  %vm1560_vm12 = vcmp.gt.f32.partialorder %v1348_v29, 0.0  ;;  %v1794_v54 = vmul.f32 0.2, %v1404_v21  ;;  %v10819_v37 = vld [vmem:[#allocation25_spill] sm:$0xff] }
 0x1cc   :  { %v1396_v12 = vadd.f32 %v7881_v3, %v10784_v46  ;;  %v1992_v43 = vsel %vm1608_vm10, %v1412_v14, %v1800_v22  ;;  %v1947_v6 = vsel %vm1563_vm1, %v7927_v0, %v1755_v18  ;;  %vm1557_vm13 = vcmp.gt.f32.partialorder %v1345_v7, 0.0  ;;  %v8049_v0 = vld [vmem:[%s10254_s3 + $0x180] ss:$16 sps:$4 sm:$0xff]  }
 0x1cd   :  { %2893 = vmatpush2.bf16.msra.mxu0 %v2074_v63  ;;  %v1749_v32 = vmul.f32 0.2, %v1345_v7  ;;  %vm1602_vm14 = vcmp.gt.f32.partialorder %v1404_v21, 0.0  ;;  %v2070_v44 = vpack.c.bf16 %v1950_v30, %v1947_v6  ;;  %v1791_v46 = vmul.f32 0.2, %v1401_v40  ;;  %v10818_v63 = vld [vmem:[#allocation113_spill] sm:$0xff] }
 0x1ce   :  { %2894 = vmatprep.subr.bf16.mxu0 %v2072_v28  ;;  %v1393_v3 = vadd.f32 %v7851_v17, %v10782_v50  ;;  %v1989_v45 = vsel %vm1605_vm11, %v1409_v56, %v1797_v60  ;;  %v1746_v55 = vmul.f32 0.2, %v7903_v48  ;;  %v1944_v26 = vsel %vm1560_vm12, %v1348_v29, %v1752_v25  ;;  %v8090_v29 = vld [vmem:[%s10254_s3 + $0x4c] ss:$16 sps:$4 sm:$0xff]   ;;  %v8105_v30 = vld [vmem:[%s10254_s3 + $0x1a0] ss:$16 sps:$4 sm:$0xff]  }
 0x1cf   :  { %vm1599_vm15 = vcmp.gt.f32.partialorder %v1401_v40, 0.0  ;;  %v2091_v11 = vpack.c.bf16 %v1992_v43, %v1989_v45  ;;  %vm1554_vm0 = vcmp.gt.f32.partialorder %v7903_v48, 0.0  ;;  %v1388_v17 = vadd.f32 %v7787_v41, %v10792_v49  ;;  %v10820_v28 = vld [vmem:[#allocation27_spill] sm:$0xff]  ;;  %v10823_v60 = vld [vmem:[#allocation29_spill] sm:$0xff] }
 0x1d0   :  { %v1788_v50 = vmul.f32 0.2, %v1396_v12  ;;  %v1986_v59 = vsel %vm1602_vm14, %v1404_v21, %v1794_v54  ;;  %v1935_v61 = vsel %vm1551_vm6, %v7885_v33, %v7899_v34  ;;  %v1329_v14 = vadd.f32 %v10816_v9, %v10723_v20  ;;  %v8080_v34 = vld [vmem:[%s10254_s3 + $0x28] ss:$16 sps:$4 sm:$0xff]   ;;  %v8113_v43 = vld [vmem:[%s10254_s3 + $0x1c4] ss:$16 sps:$4 sm:$0xff]  }
 0x1d1   :  { %2895 = vmatpush2.bf16.msra.mxu0 %v2071_v19  ;;  %v1941_v41 = vsel %vm1557_vm13, %v1345_v7, %v1749_v32  ;;  %vm1596_vm1 = vcmp.gt.f32.partialorder %v1396_v12, 0.0  ;;  %v1385_v16 = vadd.f32 %v10817_v4, %v10789_v27  ;;  %v1785_v53 = vmul.f32 0.2, %v1393_v3  ;;  %v10828_v9 = vld [vmem:[#allocation114_spill] sm:$0xff] }
 0x1d2   :  { %2814 = vmatmul.mubr.bf16.gmra.mxu1 %v8001_v36  ;;  %5312 = vmatprep.subr.bf16.mxu0 %v2094_v15  ;;  %v2067_v49 = vpack.c.bf16 %v1944_v26, %v1941_v41  ;;  %v1983_v5 = vsel %vm1599_vm15, %v1401_v40, %v1791_v46  ;;  %v1938_v56 = vsel %vm1554_vm0, %v7903_v48, %v1746_v55  ;;  %v1740_v33 = vmul.f32 0.2, %v7923_v23  ;;  %v10822_v40 = vld [vmem:[#allocation26_spill] sm:$0xff]  ;;  %v10829_v41 = vld [vmem:[#allocation31_spill] sm:$0xff] }
 0x1d3   :  { %2823 = vmatprep.mubr.bf16.mxu1 %v8010_v58  ;;  %vm1593_vm2 = vcmp.gt.f32.partialorder %v1393_v3, 0.0  ;;  %v2088_v20 = vpack.c.bf16 %v1986_v59, %v1983_v5  ;;  %vm1548_vm3 = vcmp.gt.f32.partialorder %v7923_v23, 0.0  ;;  %v1782_v27 = vmul.f32 0.2, %v1388_v17  ;;  %v8124_v26 = vld [vmem:[%s10254_s3 + $0x48] ss:$16 sps:$4 sm:$0xff]  }
 0x1d4   :  { %2897 = vmatmul.mubr.bf16.vlgmr.msra.gmra.mxu0 %v8027_v62  ;;  %v1380_v10 = vadd.f32 %v10818_v63, %v10799_v35  ;;  %v1980_v48 = vsel %vm1596_vm1, %v1396_v12, %v1788_v50  ;;  %v1313_v21 = vadd.f32 %v10820_v28, %v10819_v37  ;;  %vm1545_vm4 = vcmp.gt.f32.partialorder %v1329_v14, 0.0  ;;  %v10821_v35 = vld [vmem:[#allocation32_spill] sm:$0xff] }
 0x1d5   :  { %5313 = vmatpush3.bf16.msra.mxu0 %v2070_v44  ;;  %2906 = vmatprep.mubr.bf16.mxu0 %v8036_v52  ;;  %v1737_v22 = vmul.f32 0.2, %v1329_v14  ;;  %vm1590_vm5 = vcmp.gt.f32.partialorder %v1388_v17, 0.0  ;;  %v2064_v31 = vpack.c.bf16 %v1938_v56, %v1935_v61  ;;  %v1779_v18 = vmul.f32 0.2, %v1385_v16  ;;  %v10825_v44 = vld [vmem:[#allocation82_spill] sm:$0xff] }
 0x1d6   :  { %5314 = vmatprep.subr.bf16.mxu0 %v2091_v11  ;;  %v1377_v7 = vadd.f32 %v10821_v35, %v10803_v2  ;;  %v1977_v51 = vsel %vm1593_vm2, %v1393_v3, %v1785_v53  ;;  %v1316_v19 = vadd.f32 %v10823_v60, %v10822_v40  ;;  %v1932_v42 = vsel %vm1548_vm3, %v7923_v23, %v1740_v33  ;;  %v10824_v2 = vld [vmem:[#allocation91_spill] sm:$0xff]  ;;  %v10827_v61 = vld [vmem:[#allocation30_spill] sm:$0xff] }
 0x1d7   :  { %vm1587_vm6 = vcmp.gt.f32.partialorder %v1385_v16, 0.0  ;;  %v2085_v25 = vpack.c.bf16 %v1980_v48, %v1977_v51  ;;  %v1372_v15 = vadd.f32 %v10824_v2, %v10806_v8  ;;  %v1776_v54 = vmul.f32 0.2, %v1380_v10  ;;  %v8133_v59 = vld [vmem:[%s10254_s3 + $0x6c] ss:$16 sps:$4 sm:$0xff]  }
 0x1d8   :  { %v1974_v12 = vsel %vm1590_vm5, %v1388_v17, %v1782_v27  ;;  %v1725_v23 = vmul.f32 0.2, %v1313_v21  ;;  %v1929_v6 = vsel %vm1545_vm4, %v1329_v14, %v1737_v22  ;;  %vm1584_vm7 = vcmp.gt.f32.partialorder %v1380_v10, 0.0  ;;  %v10826_v17 = vld [vmem:[#allocation8_spill] sm:$0xff]  ;;  %v10833_v48 = vld [vmem:[#allocation59_spill] sm:$0xff] }
 0x1d9   :  { %5315 = vmatpush3.bf16.msra.mxu0 %v2067_v49  ;;  %v2061_v32 = vpack.c.bf16 %v1932_v42, %v1929_v6  ;;  %v1369_v46 = vadd.f32 %v10825_v44, %v10811_v1  ;;  %v1773_v8 = vmul.f32 0.2, %v1377_v7  ;;  %v1971_v3 = vsel %vm1587_vm6, %v1385_v16, %v1779_v18  ;;  %v10830_v49 = vld [vmem:[#allocation115_spill] sm:$0xff]  ;;  %v8162_v51 = vld [vmem:[%s10254_s3 + $0x68] ss:$16 sps:$4 sm:$0xff]  }
 0x1da   :  { %2824 = vmatmul.mubr.bf16.gmra.mxu1 %v8049_v0  ;;  %5316 = vmatprep.subr.bf16.mxu0 %v2088_v20  ;;  %vm1533_vm8 = vcmp.gt.f32.partialorder %v1313_v21, 0.0  ;;  %v1728_v45 = vmul.f32 0.2, %v1316_v19  ;;  %vm1581_vm9 = vcmp.gt.f32.partialorder %v1377_v7, 0.0  ;;  %v2082_v55 = vpack.c.bf16 %v1974_v12, %v1971_v3  ;;  %v8146_v20 = vld [vmem:[%s10254_s3 + $0x1c0] ss:$16 sps:$4 sm:$0xff]  }
 0x1db   :  { %2833 = vmatprep.mubr.bf16.mxu1 %v8059_v47  ;;  %vm1536_vm10 = vcmp.gt.f32.partialorder %v1316_v19, 0.0  ;;  %v1770_v11 = vmul.f32 0.2, %v1372_v15  ;;  %v1364_v50 = vadd.f32 %v10826_v17, %v7941_v13  ;;  %v1968_v1 = vsel %vm1584_vm7, %v1380_v10, %v1776_v54  ;;  %v10831_v13 = vld [vmem:[#allocation6_spill] sm:$0xff]  ;;  %v8173_v2 = vld [vmem:[%s10254_s3 + $0x1e0] ss:$16 sps:$4 sm:$0xff]  }
 0x1dc   :  { %2907 = vmatmul.mubr.bf16.gmra.mxu0 %v8080_v34  ;;  %v1297_v14 = vadd.f32 %v10828_v9, %v10827_v61  ;;  %vm1578_vm11 = vcmp.gt.f32.partialorder %v1372_v15, 0.0  ;;  %v1300_v4 = vadd.f32 %v10830_v49, %v10829_v41  ;;  %v1767_v16 = vmul.f32 0.2, %v1369_v46  ;;  %v10832_v10 = vld [vmem:[#allocation118_spill] sm:$0xff]  ;;  %v10835_v54 = vld [vmem:[#allocation41_spill] sm:$0xff]  ;;  %v10836_v12 = vld [vmem:[#allocation116_spill] sm:$0xff] }
 0x1dd   :  { %5317 = vmatpush3.bf16.msra.mxu0 %v2064_v31  ;;  %2916 = vmatprep.mubr.bf16.mxu0 %v8090_v29  ;;  %v1361_v53 = vadd.f32 %v10831_v13, %v7946_v39  ;;  %v1965_v5 = vsel %vm1581_vm9, %v1377_v7, %v1773_v8  ;;  %v1917_v56 = vsel %vm1533_vm8, %v1313_v21, %v1725_v23  ;;  %vm1575_vm12 = vcmp.gt.f32.partialorder %v1369_v46, 0.0  ;;  %v8155_v28 = vld [vmem:[%s10254_s3 + $0x1e4] ss:$16 sps:$4 sm:$0xff]   ;;  %v8168_v60 = vld [vmem:[%s10254_s3 + $0x8c] ss:$16 sps:$4 sm:$0xff]  }
 0x1de   :  { %5318 = vmatprep.subr.bf16.mxu0 %v2085_v25  ;;  %v1920_v33 = vsel %vm1536_vm10, %v1316_v19, %v1728_v45  ;;  %v2079_v27 = vpack.c.bf16 %v1968_v1, %v1965_v5  ;;  %v1764_v63 = vmul.f32 0.2, %v1364_v50  ;;  %v10834_v37 = vpack.c.bf16 %v10832_v10, %v10833_v48  ;;  %v5831_v44 = vld [vmem:[%s10254_s3 + $0x4] ss:$16 sps:$4 sm:$0xff]   ;;  %v5832_v8 = vld [vmem:[%s10254_s3] ss:$16 sps:$4 sm:$0xff]  }
 0x1df   :  { %v1962_v39 = vsel %vm1578_vm11, %v1372_v15, %v1770_v11  ;;  %vm1572_vm13 = vcmp.gt.f32.partialorder %v1364_v50, 0.0  ;;  %v1713_v21 = vmul.f32 0.2, %v1297_v14  ;;  %v2055_v22 = vpack.c.bf16 %v1920_v33, %v1917_v56  ;;  %v8202_v3 = vld [vmem:[%s10254_s3 + $0xa8] ss:$16 sps:$4 sm:$0xff]   ;;  %v10841_v56 = vld [vmem:[#allocation85_spill] sm:$0xff] }
 0x1e0   :  { %v1761_v31 = vmul.f32 0.2, %v1361_v53  ;;  %v1959_v18 = vsel %vm1575_vm12, %v1369_v46, %v1767_v16  ;;  %v1716_v35 = vmul.f32 0.2, %v1300_v4  ;;  %vm1569_vm14 = vcmp.gt.f32.partialorder %v1361_v53, 0.0  ;;  %v10838_v49 = vld [vmem:[#allocation18_spill] sm:$0xff] }
 0x1e1   :  { %5319 = vmatpush3.bf16.msra.mxu0 %v2061_v32  ;;  %v2076_v7 = vpack.c.bf16 %v1962_v39, %v1959_v18  ;;  %vm1521_vm15 = vcmp.gt.f32.partialorder %v1297_v14, 0.0  ;;  %vm1524_vm0 = vcmp.gt.f32.partialorder %v1300_v4, 0.0  ;;  %v1956_v40 = vsel %vm1572_vm13, %v1364_v50, %v1764_v63  ;;  %v8184_v32 = vld [vmem:[%s10254_s3 + $0x88] ss:$16 sps:$4 sm:$0xff]   ;;  %v8192_v46 = vld [vmem:[%s10254_s3 + $0xac] ss:$16 sps:$4 sm:$0xff]  }
 0x1e2   :  { %2834 = vmatmul.mubr.bf16.gmra.mxu1 %v8105_v30  ;;  %5320 = vmatprep.subr.bf16.mxu0 %v2082_v55  ;;  %v1953_v19 = vsel %vm1569_vm14, %v1361_v53, %v1761_v31  ;;  %v1905_v42 = vsel %vm1521_vm15, %v1297_v14, %v1713_v21  ;;  %v1908_v25 = vsel %vm1524_vm0, %v1300_v4, %v1716_v35  ;;  %v5833_v45 = vld [vmem:[%s10254_s3 + $0x24] ss:$16 sps:$4 sm:$0xff]   ;;  %v8210_v55 = vld [vmem:[%s10254_s3 + $0xcc] ss:$16 sps:$4 sm:$0xff]   ;;  %v5834_v11 = vld [vmem:[%s10254_s3 + $0x20] ss:$16 sps:$4 sm:$0xff]  }
 0x1e3   :  { %2843 = vmatprep.mubr.bf16.mxu1 %v8113_v43  ;;  %v2073_v15 = vpack.c.bf16 %v1956_v40, %v1953_v19  ;;  %v10837_v23 = vpack.c.bf16 %v10835_v54, %v10836_v12  ;;  %v2049_v6 = vpack.c.bf16 %v1908_v25, %v1905_v42  ;;  %v8220_v17 = vld [vmem:[%s10254_s3 + $0xc8] ss:$16 sps:$4 sm:$0xff]   ;;  %v5835_v50 = vld [vmem:[%s10254_s3 + $0x44] ss:$16 sps:$4 sm:$0xff]   ;;  %v8228_v1 = vld [vmem:[%s10254_s3 + $0xec] ss:$16 sps:$4 sm:$0xff]  }
 0x1e4   :  { %2917 = vmatmul.mubr.bf16.gmra.mxu0 %v8124_v26  ;;  %v5836_v61 = vld [vmem:[%s10254_s3 + $0x40] ss:$16 sps:$4 sm:$0xff]   ;;  %v8238_v9 = vld [vmem:[%s10254_s3 + $0xe8] ss:$16 sps:$4 sm:$0xff]   ;;  %v5837_v14 = vld [vmem:[%s10254_s3 + $0x64] ss:$16 sps:$4 sm:$0xff]  }
 0x1e5   :  { %5321 = vmatpush3.bf16.msra.mxu0 %v10834_v37  ;;  %2926 = vmatprep.mubr.bf16.mxu0 %v8133_v59  ;;  %v8246_v41 = vld [vmem:[%s10254_s3 + $0x10c] ss:$16 sps:$4 sm:$0xff]   ;;  %v8254_v4 = vld [vmem:[%s10254_s3 + $0x108] ss:$16 sps:$4 sm:$0xff]  }
 0x1e6   :  { %5322 = vmatprep.subr.bf16.mxu0 %v2079_v27  ;;  %v10839_v16 = vld [vmem:[#allocation83_spill] sm:$0xff]  ;;  %v8268_v5 = vld [vmem:[%s10254_s3 + $0x128] ss:$16 sps:$4 sm:$0xff]   ;;  %v10845_v21 = vld [vmem:[#allocation33_spill] sm:$0xff] }
 0x1e7   :  { %v8260_v13 = vld [vmem:[%s10254_s3 + $0x12c] ss:$16 sps:$4 sm:$0xff]   ;;  %v8282_v63 = vld [vmem:[%s10254_s3 + $0x148] ss:$16 sps:$4 sm:$0xff]  }
 0x1e8   :  { %v10840_v53 = vld [vmem:[#allocation15_spill] sm:$0xff]  ;;  %v10842_v27 = vld [vmem:[#allocation10_spill] sm:$0xff]  ;;  %v10843_v10 = vld [vmem:[#allocation92_spill] sm:$0xff] }
 0x1e9   :  { %5323 = vmatpush3.bf16.msra.mxu0 %v2055_v22  ;;  %v8274_v33 = vld [vmem:[%s10254_s3 + $0x14c] ss:$16 sps:$4 sm:$0xff]   ;;  %v8296_v39 = vld [vmem:[%s10254_s3 + $0x168] ss:$16 sps:$4 sm:$0xff]  }
 0x1ea   :  { %2844 = vmatmul.mubr.bf16.gmra.mxu1 %v8146_v20  ;;  %5324 = vmatprep.subr.bf16.mxu0 %v2076_v7  ;;  %v8288_v48 = vld [vmem:[%s10254_s3 + $0x16c] ss:$16 sps:$4 sm:$0xff]   ;;  %v8310_v18 = vld [vmem:[%s10254_s3 + $0x188] ss:$16 sps:$4 sm:$0xff]  }
 0x1eb   :  { %2853 = vmatprep.mubr.bf16.mxu1 %v8155_v28  ;;  %v10844_v37 = vld [vmem:[#allocation111_spill] sm:$0xff]  ;;  %v10847_v35 = vld [vmem:[#allocation96_spill] sm:$0xff] }
 0x1ec   :  { %2927 = vmatmul.mubr.bf16.gmra.mxu0 %v8162_v51  ;;  %v8302_v22 = vld [vmem:[%s10254_s3 + $0x18c] ss:$16 sps:$4 sm:$0xff]   ;;  %v8326_v42 = vld [vmem:[%s10254_s3 + $0x1a8] ss:$16 sps:$4 sm:$0xff]  }
 0x1ed   :  { %5325 = vmatpush3.bf16.msra.mxu0 %v10837_v23  ;;  %2936 = vmatprep.mubr.bf16.mxu0 %v8168_v60  ;;  %v10846_v31 = vld [vmem:[#allocation11_spill] sm:$0xff]  ;;  %v10848_v19 = vld [vmem:[#allocation36_spill] sm:$0xff] }
 0x1ee   :  { %5326 = vmatprep.subr.bf16.mxu0 %v2073_v15  ;;  %v8316_v7 = vld [vmem:[%s10254_s3 + $0x1ac] ss:$16 sps:$4 sm:$0xff]  }
 0x1ef   :  { %v10849_v15 = vld [vmem:[#allocation112_spill] sm:$0xff] }
 0x1f0   :  { %v8334_v54 = vld [vmem:[%s10254_s3 + $0x1cc] ss:$16 sps:$4 sm:$0xff]  }
 0x1f1   :  { %5327 = vmatpush3.bf16.msra.mxu0 %v2049_v6 }
 0x1f2   :  { %2854 = vmatmul.mubr.bf16.gmra.mxu1 %v8173_v2 }
 0x1f3   :  { %3089 = vmatprep.mubr.bf16.mxu1 %v5831_v44  ;;  %v10850_v44 = vld [vmem:[#allocation101_spill] sm:$0xff] }
 0x1f4   :  { %2937 = vmatmul.mubr.bf16.gmra.mxu0 %v8184_v32 }
 0x1f5   :  { %2946 = vmatprep.mubr.bf16.mxu0 %v8192_v46 }
 0x1fa   :  { %3090 = vmatmul.mubr.bf16.vlgmr.msra.gmra.mxu1 %v5832_v8  ;;  %v8348_v8 = vld [vmem:[%s10254_s3 + $0x1c8] ss:$16 sps:$4 sm:$0xff]  }
 0x1fb   :  { %3097 = vmatprep.mubr.bf16.mxu1 %v5833_v45 }
 0x1fc   :  { %2947 = vmatmul.mubr.bf16.gmra.mxu0 %v8202_v3 }
 0x1fd   :  { %2956 = vmatprep.mubr.bf16.mxu0 %v8210_v55 }
 0x202   :  { %3098 = vmatmul.mubr.bf16.gmra.mxu1 %v5834_v11  ;;  %v8356_v11 = vld [vmem:[%s10254_s3 + $0x1ec] ss:$16 sps:$4 sm:$0xff]  }
 0x203   :  { %3105 = vmatprep.mubr.bf16.mxu1 %v5835_v50 }
 0x204   :  { %2957 = vmatmul.mubr.bf16.gmra.mxu0 %v8220_v17 }
 0x205   :  { %2966 = vmatprep.mubr.bf16.mxu0 %v8228_v1 }
 0x20a   :  { %3106 = vmatmul.mubr.bf16.gmra.mxu1 %v5836_v61 }
 0x20b   :  { %3113 = vmatprep.mubr.bf16.mxu1 %v5837_v14 }
 0x20c   :  { %2967 = vmatmul.mubr.bf16.gmra.mxu0 %v8238_v9 }
 0x20d   :  { %2976 = vmatprep.mubr.bf16.mxu0 %v8246_v41 }
 0x212   :  { %3114 = vmatmul.mubr.bf16.gmra.mxu1 %v10838_v49 }
 0x213   :  { %3121 = vmatprep.mubr.bf16.mxu1 %v10839_v16 }
 0x214   :  { %2977 = vmatmul.mubr.bf16.gmra.mxu0 %v8254_v4 }
 0x215   :  { %2986 = vmatprep.mubr.bf16.mxu0 %v8260_v13 }
 0x21a   :  { %3122 = vmatmul.mubr.bf16.gmra.mxu1 %v10840_v53 }
 0x21b   :  { %3129 = vmatprep.mubr.bf16.mxu1 %v10841_v56  ;;  %v5838_v56 = vld [vmem:[%s10254_s3 + $0xc] ss:$16 sps:$4 sm:$0xff]  }
 0x21c   :  { %2987 = vmatmul.mubr.bf16.gmra.mxu0 %v8268_v5 }
 0x21d   :  { %2996 = vmatprep.mubr.bf16.mxu0 %v8274_v33 }
 0x222   :  { %3130 = vmatmul.mubr.bf16.gmra.mxu1 %v10842_v27 }
 0x223   :  { %3137 = vmatprep.mubr.bf16.mxu1 %v10843_v10 }
 0x224   :  { %2997 = vmatmul.mubr.bf16.gmra.mxu0 %v8282_v63 }
 0x225   :  { %3006 = vmatprep.mubr.bf16.mxu0 %v8288_v48 }
 0x22a   :  { %3138 = vmatmul.mubr.bf16.gmra.mxu1 %v10844_v37 }
 0x22b   :  { %3145 = vmatprep.mubr.bf16.mxu1 %v10845_v21 }
 0x22c   :  { %3007 = vmatmul.mubr.bf16.gmra.mxu0 %v8296_v39 }
 0x22d   :  { %3016 = vmatprep.mubr.bf16.mxu0 %v8302_v22 }
 0x232   :  { %3146 = vmatmul.mubr.bf16.gmra.mxu1 %v10846_v31  ;;  %v8430_v31 = vpop.permute.xlu1 %2268 }
 0x233   :  { %3153 = vmatprep.mubr.bf16.mxu1 %v10847_v35  ;;  %10854 = vst [vmem:[#allocation37_spill] sm:$0xff] %v8430_v31 }
 0x234   :  { %3017 = vmatmul.mubr.bf16.gmra.mxu0 %v8310_v18 }
 0x235   :  { %3026 = vmatprep.mubr.bf16.mxu0 %v8316_v7 }
 0x238   :  { %v8320_v40 = vpop.f32.mrf.mxu1 }
 0x23a   :  { %3154 = vmatmul.mubr.bf16.gmra.mxu1 %v10848_v19  ;;  %v8328_v25 = vpop.f32.mrf.mxu1 }
 0x23b   :  { %3161 = vmatprep.mubr.bf16.mxu1 %v10849_v15 }
 0x23c   :  { %v8336_v12 = vpop.f32.mrf.mxu1  ;;  %3027 = vmatmul.mubr.bf16.gmra.mxu0 %v8326_v42 }
 0x23d   :  { %3036 = vmatprep.mubr.bf16.mxu0 %v8334_v54 }
 0x23e   :  { %v8339_v23 = vpop.f32.mrf.mxu1 }
 0x240   :  { %v8342_v6 = vpop.f32.mrf.mxu1 }
 0x242   :  { %3162 = vmatmul.mubr.bf16.gmra.mxu1 %v10850_v44  ;;  %v8350_v45 = vpop.f32.mrf.mxu1 }
 0x243   :  { %3169 = vmatprep.mubr.bf16.mxu1 %v7919_v57  ;;  %v8370_v57 = vld [vmem:[%s10254_s3 + $0x1e8] ss:$16 sps:$4 sm:$0xff]  }
 0x244   :  { %v8358_v50 = vpop.f32.mrf.mxu1  ;;  %3037 = vmatmul.mubr.bf16.gmra.mxu0 %v8348_v8  ;;  %10851 = vst [vmem:[#allocation100_spill] sm:$0xff] %v8370_v57 }
 0x245   :  { %3046 = vmatprep.mubr.bf16.mxu0 %v8356_v11 }
 0x246   :  { %v8361_v61 = vpop.f32.mrf.mxu1 }
 0x248   :  { %v8364_v14 = vpop.f32.mrf.mxu1 }
 0x24a   :  { %3170 = vmatmul.mubr.bf16.gmra.mxu1 %v7966_v24  ;;  %v8372_v49 = vpop.f32.mrf.mxu1 }
 0x24b   :  { %3177 = vmatprep.mubr.bf16.mxu1 %v7976_v38 }
 0x24c   :  { %v8375_v16 = vpop.f32.mrf.mxu1  ;;  %3047 = vmatmul.mubr.bf16.gmra.mxu0 %v8370_v57 }
 0x24d   :  { %3250 = vmatprep.mubr.bf16.mxu0 %v5838_v56 }
 0x24e   :  { %v8378_v53 = vpop.f32.mrf.mxu1 }
 0x251   :  { %v8383_v24 = vpop.f32.mrf.mxu1 }
 0x252   :  { %3178 = vmatmul.mubr.bf16.gmra.mxu1 %v8001_v36 }
 0x253   :  { %3185 = vmatprep.mubr.bf16.mxu1 %v8010_v58  ;;  %v8387_v27 = vpop.f32.mrf.mxu1 }
 0x254   :  { %3251 = vmatmul.mubr.bf16.vlgmr.msra.gmra.mxu0 %v8027_v62 }
 0x255   :  { %v8389_v38 = vpop.f32.mrf.mxu1  ;;  %3258 = vmatprep.mubr.bf16.mxu0 %v8036_v52 }
 0x257   :  { %v8393_v10 = vpop.f32.mrf.mxu1 }
 0x25a   :  { %v8395_v37 = vpop.f32.mrf.mxu1  ;;  %3186 = vmatmul.mubr.bf16.gmra.mxu1 %v8049_v0 }
 0x25b   :  { %3193 = vmatprep.mubr.bf16.mxu1 %v8059_v47 }
 0x25c   :  { %v8399_v21 = vpop.f32.mrf.mxu1  ;;  %3259 = vmatmul.mubr.bf16.gmra.mxu0 %v8080_v34  ;;  %v8419_v34 = vpop.permute.xlu0 %2263 }
 0x25d   :  { %3266 = vmatprep.mubr.bf16.mxu0 %v8090_v29  ;;  %10852 = vst [vmem:[#allocation19_spill] sm:$0xff] %v8419_v34 }
 0x25e   :  { %v8401_v36 = vpop.f32.mrf.mxu1 }
 0x260   :  { %v8405_v58 = vpop.f32.mrf.mxu1 }
 0x262   :  { %v8407_v62 = vpop.f32.mrf.mxu1  ;;  %3194 = vmatmul.mubr.bf16.gmra.mxu1 %v8105_v30 }
 0x263   :  { %3201 = vmatprep.mubr.bf16.mxu1 %v8113_v43 }
 0x264   :  { %v8411_v52 = vpop.f32.mrf.mxu1  ;;  %3267 = vmatmul.mubr.bf16.gmra.mxu0 %v8124_v26  ;;  %v8433_v26 = vpop.permute.xlu0 %2253 }
 0x265   :  { %3274 = vmatprep.mubr.bf16.mxu0 %v8133_v59  ;;  %10855 = vst [vmem:[#allocation46_spill] sm:$0xff] %v8433_v26 }
 0x266   :  { %v8413_v0 = vpop.f32.mrf.mxu1 }
 0x268   :  { %v8417_v47 = vpop.f32.mrf.mxu1  ;;  %v8444_v19 = vpop.permute.xlu0 %2243 }
 0x269   :  { %10860 = vst [vmem:[#allocation95_spill] sm:$0xff] %v8444_v19 }
 0x26a   :  { %v8421_v29 = vpop.f32.mrf.mxu1  ;;  %3202 = vmatmul.mubr.bf16.gmra.mxu1 %v8146_v20 }
 0x26b   :  { %3209 = vmatprep.mubr.bf16.mxu1 %v8155_v28  ;;  %v8442_v28 = vpop.permute.xlu1 %2258 }
 0x26c   :  { %v8425_v30 = vpop.f32.mrf.mxu1  ;;  %3275 = vmatmul.mubr.bf16.gmra.mxu0 %v8162_v51  ;;  %10859 = vst [vmem:[#allocation109_spill] sm:$0xff] %v8442_v28  ;;  %v8456_v56 = vpop.permute.xlu0 %2233 }
 0x26d   :  { %3282 = vmatprep.mubr.bf16.mxu0 %v8168_v60  ;;  %10865 = vst [vmem:[#allocation110_spill] sm:$0xff] %v8456_v56 }
 0x26e   :  { %v8427_v43 = vpop.f32.mrf.mxu1 }
 0x26f   :  { %10853 = vst [vmem:[#allocation89_spill] sm:$0xff] %v8427_v43  ;;  %v8454_v44 = vpop.permute.xlu1 %2248 }
 0x270   :  { %v8435_v59 = vpop.f32.mrf.mxu1  ;;  %10864 = vst [vmem:[#allocation50_spill] sm:$0xff] %v8454_v44 }
 0x271   :  { %10856 = vst [vmem:[#allocation40_spill] sm:$0xff] %v8435_v59 }
 0x272   :  { %v8437_v35 = vpop.f32.mrf.mxu1  ;;  %3210 = vmatmul.mubr.bf16.gmra.mxu1 %v8173_v2 }
 0x273   :  { %10857 = vst [vmem:[#allocation107_spill] sm:$0xff] %v8437_v35 }
 0x274   :  { %v8440_v20 = vpop.f32.mrf.mxu1  ;;  %3283 = vmatmul.mubr.bf16.gmra.mxu0 %v8184_v32  ;;  %v8466_v32 = vpop.permute.xlu1 %2238 }
 0x275   :  { %10858 = vst [vmem:[#allocation42_spill] sm:$0xff] %v8440_v20  ;;  %3290 = vmatprep.mubr.bf16.mxu0 %v8192_v46  ;;  %10869 = vst [vmem:[#allocation97_spill] sm:$0xff] %v8466_v32  ;;  %v8468_v46 = vpop.permute.xlu0 %2223 }
 0x276   :  { %v8446_v15 = vpop.f32.mrf.mxu1  ;;  %10870 = vst [vmem:[#allocation98_spill] sm:$0xff] %v8468_v46 }
 0x277   :  { %10861 = vst [vmem:[#allocation94_spill] sm:$0xff] %v8446_v15 }
 0x278   :  { %v8450_v51 = vpop.f32.mrf.mxu1 }
 0x279   :  { %10862 = vst [vmem:[#allocation49_spill] sm:$0xff] %v8450_v51 }
 0x27a   :  { %v8452_v60 = vpop.f32.mrf.mxu1 }
 0x27b   :  { %10863 = vst [vmem:[#allocation108_spill] sm:$0xff] %v8452_v60 }
 0x27c   :  { %v8458_v2 = vpop.f32.mrf.mxu1  ;;  %3291 = vmatmul.mubr.bf16.gmra.mxu0 %v8202_v3  ;;  %v8480_v3 = vpop.permute.xlu0 %2213 }
 0x27d   :  { %10866 = vst [vmem:[#allocation103_spill] sm:$0xff] %v8458_v2  ;;  %3298 = vmatprep.mubr.bf16.mxu0 %v8210_v55  ;;  %v8477_v2 = vpop.permute.xlu1 %2228  ;;  %10875 = vst [vmem:[#allocation22_spill] sm:$0xff] %v8480_v3 }
 0x27e   :  { %v8460_v57 = vpop.f32.mrf.mxu1  ;;  %10874 = vst [vmem:[#allocation106_spill] sm:$0xff] %v8477_v2 }
 0x27f   :  { %10867 = vst [vmem:[#allocation61_spill] sm:$0xff] %v8460_v57 }
 0x280   :  { %v8464_v15 = vpop.f32.mrf.mxu1 }
 0x281   :  { %10868 = vst [vmem:[#allocation105_spill] sm:$0xff] %v8464_v15  ;;  %v8488_v20 = vpop.permute.xlu1 %2218 }
 0x282   :  { %v8470_v51 = vpop.f32.mrf.mxu1  ;;  %10879 = vst [vmem:[#allocation21_spill] sm:$0xff] %v8488_v20 }
 0x283   :  { %10871 = vst [vmem:[#allocation99_spill] sm:$0xff] %v8470_v51  ;;  %v8490_v51 = vpop.permute.xlu0 %2203 }
 0x284   :  { %v8472_v60 = vpop.f32.mrf.mxu1  ;;  %3299 = vmatmul.mubr.bf16.gmra.mxu0 %v8220_v17  ;;  %10880 = vst [vmem:[#allocation12_spill] sm:$0xff] %v8490_v51 }
 0x285   :  { %10872 = vst [vmem:[#allocation102_spill] sm:$0xff] %v8472_v60  ;;  %3306 = vmatprep.mubr.bf16.mxu0 %v8228_v1 }
 0x286   :  { %v8474_v31 = vpop.f32.mrf.mxu1 }
 0x287   :  { %10873 = vst [vmem:[#allocation104_spill] sm:$0xff] %v8474_v31  ;;  %v8500_v31 = vpop.permute.xlu1 %2208 }
 0x288   :  { %v8482_v55 = vpop.f32.mrf.mxu1  ;;  %10884 = vst [vmem:[#allocation13_spill] sm:$0xff] %v8500_v31 }
 0x289   :  { %10876 = vst [vmem:[#allocation16_spill] sm:$0xff] %v8482_v55  ;;  %v8502_v55 = vpop.permute.xlu0 %2193 }
 0x28a   :  { %v8484_v15 = vpop.f32.mrf.mxu1  ;;  %10885 = vst [vmem:[#allocation90_spill] sm:$0xff] %v8502_v55 }
 0x28b   :  { %10877 = vst [vmem:[#allocation23_spill] sm:$0xff] %v8484_v15  ;;  %v8516_v34 = vpop.permute.xlu1 %2198 }
 0x28c   :  { %v8486_v57 = vpop.f32.mrf.mxu1  ;;  %3307 = vmatmul.mubr.bf16.gmra.mxu0 %v8238_v9  ;;  %v2708_v9 = vadd.f32 %v8328_v25, %v8502_v55  ;;  %10889 = vst [vmem:[#allocation77_spill] sm:$0xff] %v8516_v34 }
 0x28d   :  { %10878 = vst [vmem:[#allocation20_spill] sm:$0xff] %v8486_v57  ;;  %3314 = vmatprep.mubr.bf16.mxu0 %v8246_v41  ;;  %v2706_v57 = vadd.f32 %v8320_v40, %v8502_v55  ;;  %v2710_v40 = vadd.f32 %v8336_v12, %v8516_v34 }
 0x28e   :  { %v8492_v60 = vpop.f32.mrf.mxu1 }
 0x28f   :  { %10881 = vst [vmem:[#allocation7_spill] sm:$0xff] %v8492_v60 }
 0x290   :  { %v8496_v17 = vpop.f32.mrf.mxu1 }
 0x291   :  { %10882 = vst [vmem:[#allocation9_spill] sm:$0xff] %v8496_v17 }
 0x292   :  { %v8498_v1 = vpop.f32.mrf.mxu1 }
 0x293   :  { %10883 = vst [vmem:[#allocation17_spill] sm:$0xff] %v8498_v1 }
 0x294   :  { %v8504_v15 = vpop.f32.mrf.mxu1  ;;  %v2898_v60 = vpop.f32.mrf.mxu0  ;;  %3315 = vmatmul.mubr.bf16.gmra.mxu0 %v8254_v4  ;;  %v2712_v4 = vadd.f32 %v8339_v23, %v8516_v34 }
 0x295   :  { %10886 = vst [vmem:[#allocation87_spill] sm:$0xff] %v8504_v15  ;;  %v2899_v41 = vadd.f32 %v2898_v60, %v2706_v57  ;;  %3322 = vmatprep.mubr.bf16.mxu0 %v8260_v13  ;;  %v2716_v60 = vadd.f32 %v8342_v6, %v8490_v51 }
 0x296   :  { %v8508_v35 = vpop.f32.mrf.mxu1  ;;  %v2900_v17 = vpop.f32.mrf.mxu0 }
 0x297   :  { %10887 = vst [vmem:[#allocation81_spill] sm:$0xff] %v8508_v35  ;;  %v2901_v15 = vadd.f32 %v2900_v17, %v2708_v9  ;;  %v3475_v43 = vmul.f32 0.2, %v2899_v41  ;;  %vm3379_vm1 = vcmp.gt.f32.partialorder %v2899_v41, 0.0 }
 0x298   :  { %v8514_v1 = vpop.f32.mrf.mxu1  ;;  %v2902_v35 = vpop.f32.mrf.mxu0 }
 0x299   :  { %10888 = vst [vmem:[#allocation78_spill] sm:$0xff] %v8514_v1  ;;  %v2903_v57 = vadd.f32 %v2902_v35, %v2710_v40  ;;  %v3476_v17 = vmul.f32 0.2, %v2901_v15  ;;  %vm3380_vm3 = vcmp.gt.f32.partialorder %v2901_v15, 0.0  ;;  %v2718_v35 = vadd.f32 %v8350_v45, %v8490_v51  ;;  %v10940_v1 = vld [vmem:[#allocation108_spill] sm:$0xff] }
 0x29a   :  { %v8520_v59 = vpop.f32.mrf.mxu1  ;;  %v2904_v13 = vpop.f32.mrf.mxu0  ;;  %v8534_v6 = vsel %vm3379_vm1, %v2899_v41, %v3475_v43 }
 0x29b   :  { %10890 = vst [vmem:[#allocation45_spill] sm:$0xff] %v8520_v59  ;;  %v2905_v55 = vadd.f32 %v2904_v13, %v2712_v4  ;;  %vm3382_vm2 = vcmp.gt.f32.partialorder %v2903_v57, 0.0  ;;  %v3478_v12 = vmul.f32 0.2, %v2903_v57  ;;  %10893 = vst [vmem:[#allocation122_spill] sm:$0xff] %v8534_v6  ;;  %v8550_v43 = vpop.permute.xlu0 %2343  ;;  %v8552_v41 = vpop.permute.xlu1 %2348 }
 0x29c   :  { %v8524_v25 = vpop.f32.mrf.mxu1  ;;  %v2908_v59 = vpop.f32.mrf.mxu0  ;;  %3323 = vmatmul.mubr.bf16.gmra.mxu0 %v8268_v5  ;;  %10898 = vst [vmem:[#allocation86_spill] sm:$0xff] %v8550_v43  ;;  %10899 = vst [vmem:[#allocation34_spill] sm:$0xff] %v8552_v41 }
 0x29d   :  { %10891 = vst [vmem:[#allocation71_spill] sm:$0xff] %v8524_v25  ;;  %vm3383_vm4 = vcmp.gt.f32.partialorder %v2905_v55, 0.0  ;;  %v3479_v23 = vmul.f32 0.2, %v2905_v55  ;;  %v2909_v34 = vadd.f32 %v2908_v59, %v2716_v60  ;;  %3330 = vmatprep.mubr.bf16.mxu0 %v8274_v33  ;;  %v8536_v40 = vsel %vm3382_vm2, %v2903_v57, %v3478_v12 }
 0x29e   :  { %v8528_v9 = vpop.f32.mrf.mxu1  ;;  %10894 = vst [vmem:[#allocation123_spill] sm:$0xff] %v8536_v40  ;;  %v2910_v13 = vpop.f32.mrf.mxu0  ;;  %v8546_v60 = vsel %vm3380_vm3, %v2901_v15, %v3476_v17  ;;  %v2722_v57 = vadd.f32 %v8361_v61, %v8500_v31 }
 0x29f   :  { %10892 = vst [vmem:[#allocation28_spill] sm:$0xff] %v8528_v9  ;;  %v2720_v9 = vadd.f32 %v8358_v50, %v8500_v31  ;;  %v2911_v59 = vadd.f32 %v2910_v13, %v2718_v35  ;;  %10897 = vst [vmem:[#allocation74_spill] sm:$0xff] %v8546_v60  ;;  %v8548_v45 = vsel %vm3383_vm4, %v2905_v55, %v3479_v23  ;;  %v3481_v12 = vmul.f32 0.2, %v2909_v34  ;;  %v8578_v41 = vpop.permute.xlu1 %2338 }
 0x2a0   :  { %v8538_v4 = vpop.f32.mrf.mxu1  ;;  %v2912_v33 = vpop.f32.mrf.mxu0  ;;  %vm3385_vm5 = vcmp.gt.f32.partialorder %v2909_v34, 0.0  ;;  %v2726_v23 = vadd.f32 %v8364_v14, %v8480_v3  ;;  %v2728_v13 = vadd.f32 %v8372_v49, %v8480_v3  ;;  %10904 = vst [vmem:[#allocation60_spill] sm:$0xff] %v8578_v41 }
 0x2a1   :  { %10895 = vst [vmem:[#allocation119_spill] sm:$0xff] %v8538_v4  ;;  %v2913_v50 = vadd.f32 %v2912_v33, %v2720_v9  ;;  %v3482_v15 = vmul.f32 0.2, %v2911_v59  ;;  %vm3386_vm7 = vcmp.gt.f32.partialorder %v2911_v59, 0.0  ;;  %v8567_v33 = vsel %vm3385_vm5, %v2909_v34, %v3481_v12  ;;  %v8576_v3 = vpop.permute.xlu0 %2333 }
 0x2a2   :  { %v8544_v25 = vpop.f32.mrf.mxu1  ;;  %v2914_v35 = vpop.f32.mrf.mxu0  ;;  %10903 = vst [vmem:[#allocation38_spill] sm:$0xff] %v8576_v3 }
 0x2a3   :  { %10896 = vst [vmem:[#allocation117_spill] sm:$0xff] %v8544_v25  ;;  %vm3388_vm6 = vcmp.gt.f32.partialorder %v2913_v50, 0.0  ;;  %v3484_v55 = vmul.f32 0.2, %v2913_v50  ;;  %v2915_v17 = vadd.f32 %v2914_v35, %v2722_v57  ;;  %v8583_v12 = vsel %vm3386_vm7, %v2911_v59, %v3482_v15  ;;  %v10931_v25 = vld [vmem:[#allocation19_spill] sm:$0xff] }
 0x2a4   :  { %v8558_v51 = vpop.f32.mrf.mxu1  ;;  %v2918_v9 = vpop.f32.mrf.mxu0  ;;  %3331 = vmatmul.mubr.bf16.gmra.mxu0 %v8282_v63  ;;  %v2730_v63 = vadd.f32 %v8375_v16, %v8488_v20  ;;  %v2736_v15 = vadd.f32 %v8383_v24, %v8468_v46  ;;  %v2742_v24 = vadd.f32 %v8393_v10, %v8477_v2 }
 0x2a5   :  { %10900 = vst [vmem:[#allocation66_spill] sm:$0xff] %v8558_v51  ;;  %v8569_v5 = vsel %vm3388_vm6, %v2913_v50, %v3484_v55  ;;  %vm3389_vm8 = vcmp.gt.f32.partialorder %v2915_v17, 0.0  ;;  %v3485_v31 = vmul.f32 0.2, %v2915_v17  ;;  %3338 = vmatprep.mubr.bf16.mxu0 %v8288_v48  ;;  %v2919_v49 = vadd.f32 %v2918_v9, %v2726_v23 }
 0x2a6   :  { %v8564_v61 = vpop.f32.mrf.mxu1  ;;  %v2920_v35 = vpop.f32.mrf.mxu0  ;;  %v2732_v9 = vadd.f32 %v8378_v53, %v8488_v20 }
 0x2a7   :  { %10901 = vst [vmem:[#allocation35_spill] sm:$0xff] %v8564_v61  ;;  %v2921_v34 = vadd.f32 %v2920_v35, %v2728_v13  ;;  %v8585_v50 = vsel %vm3389_vm8, %v2915_v17, %v3485_v31  ;;  %v3487_v14 = vmul.f32 0.2, %v2919_v49  ;;  %vm3391_vm9 = vcmp.gt.f32.partialorder %v2919_v49, 0.0 }
 0x2a8   :  { %v8574_v57 = vpop.f32.mrf.mxu1  ;;  %v2922_v55 = vpop.f32.mrf.mxu0  ;;  %v2738_v17 = vadd.f32 %v8387_v27, %v8468_v46 }
 0x2a9   :  { %10902 = vst [vmem:[#allocation69_spill] sm:$0xff] %v8574_v57  ;;  %v2923_v43 = vadd.f32 %v2922_v55, %v2730_v63  ;;  %v3488_v13 = vmul.f32 0.2, %v2921_v34  ;;  %vm3392_vm11 = vcmp.gt.f32.partialorder %v2921_v34, 0.0  ;;  %v8602_v63 = vpop.permute.xlu0 %2323  ;;  %v8604_v55 = vpop.permute.xlu1 %2328  ;;  %v8606_v23 = vsel %vm3391_vm9, %v2919_v49, %v3487_v14 }
 0x2aa   :  { %v8587_v48 = vpop.f32.mrf.mxu1  ;;  %v2924_v16 = vpop.f32.mrf.mxu0  ;;  %10908 = vst [vmem:[#allocation55_spill] sm:$0xff] %v8602_v63  ;;  %10909 = vst [vmem:[#allocation47_spill] sm:$0xff] %v8604_v55  ;;  %v2746_v55 = vadd.f32 %v8395_v37, %v8456_v56  ;;  %v2760_v37 = vadd.f32 %v8413_v0, %v8454_v44 }
 0x2ab   :  { %10905 = vst [vmem:[#allocation39_spill] sm:$0xff] %v8587_v48  ;;  %vm3394_vm10 = vcmp.gt.f32.partialorder %v2923_v43, 0.0  ;;  %v3490_v59 = vmul.f32 0.2, %v2923_v43  ;;  %v2925_v31 = vadd.f32 %v2924_v16, %v2732_v9  ;;  %v8618_v14 = vsel %vm3392_vm11, %v2921_v34, %v3488_v13 }
 0x2ac   :  { %v8593_v41 = vpop.f32.mrf.mxu1  ;;  %v2928_v53 = vpop.f32.mrf.mxu0  ;;  %3339 = vmatmul.mubr.bf16.gmra.mxu0 %v8296_v39  ;;  %v2740_v39 = vadd.f32 %v8389_v38, %v8477_v2 }
 0x2ad   :  { %10906 = vst [vmem:[#allocation63_spill] sm:$0xff] %v8593_v41  ;;  %v8608_v20 = vsel %vm3394_vm10, %v2923_v43, %v3490_v59  ;;  %vm3395_vm12 = vcmp.gt.f32.partialorder %v2925_v31, 0.0  ;;  %v3491_v9 = vmul.f32 0.2, %v2925_v31  ;;  %3346 = vmatprep.mubr.bf16.mxu0 %v8302_v22  ;;  %v2929_v16 = vadd.f32 %v2928_v53, %v2736_v15  ;;  %v8632_v34 = vpop.permute.xlu1 %2318 }
 0x2ae   :  { %v8599_v35 = vpop.f32.mrf.mxu1  ;;  %v2930_v46 = vpop.f32.mrf.mxu0  ;;  %10914 = vst [vmem:[#allocation51_spill] sm:$0xff] %v8632_v34 }
 0x2af   :  { %10907 = vst [vmem:[#allocation44_spill] sm:$0xff] %v8599_v35  ;;  %v2931_v35 = vadd.f32 %v2930_v46, %v2738_v17  ;;  %v8620_v43 = vsel %vm3395_vm12, %v2925_v31, %v3491_v9  ;;  %v3493_v15 = vmul.f32 0.2, %v2929_v16  ;;  %vm3397_vm13 = vcmp.gt.f32.partialorder %v2929_v16, 0.0  ;;  %v8630_v46 = vpop.permute.xlu0 %2313 }
 0x2b0   :  { %v8613_v27 = vpop.f32.mrf.mxu1  ;;  %v2932_v59 = vpop.f32.mrf.mxu0  ;;  %10913 = vst [vmem:[#allocation52_spill] sm:$0xff] %v8630_v46 }
 0x2b1   :  { %10910 = vst [vmem:[#allocation58_spill] sm:$0xff] %v8613_v27  ;;  %v2933_v53 = vadd.f32 %v2932_v59, %v2740_v39  ;;  %v3494_v13 = vmul.f32 0.2, %v2931_v35  ;;  %vm3398_vm15 = vcmp.gt.f32.partialorder %v2931_v35, 0.0  ;;  %v8639_v10 = vsel %vm3397_vm13, %v2929_v16, %v3493_v15 }
 0x2b2   :  { %v8622_v49 = vpop.f32.mrf.mxu1  ;;  %v2934_v38 = vpop.f32.mrf.mxu0 }
 0x2b3   :  { %10911 = vst [vmem:[#allocation125_spill] sm:$0xff] %v8622_v49  ;;  %vm3400_vm14 = vcmp.gt.f32.partialorder %v2933_v53, 0.0  ;;  %v3496_v31 = vmul.f32 0.2, %v2933_v53  ;;  %v2935_v17 = vadd.f32 %v2934_v38, %v2742_v24  ;;  %v8648_v38 = vsel %vm3398_vm15, %v2931_v35, %v3494_v13  ;;  %v8654_v15 = vpop.permute.xlu0 %2303 }
 0x2b4   :  { %v8628_v27 = vpop.f32.mrf.mxu1  ;;  %v8636_v22 = vpop.f32.mrf.mxu0  ;;  %3347 = vmatmul.mubr.bf16.gmra.mxu0 %v8310_v18  ;;  %10917 = vst [vmem:[#allocation121_spill] sm:$0xff] %v8654_v15 }
 0x2b5   :  { %10912 = vst [vmem:[#allocation124_spill] sm:$0xff] %v8628_v27  ;;  %v8641_v39 = vsel %vm3400_vm14, %v2933_v53, %v3496_v31  ;;  %vm3401_vm0 = vcmp.gt.f32.partialorder %v2935_v17, 0.0  ;;  %v3497_v59 = vmul.f32 0.2, %v2935_v17  ;;  %3354 = vmatprep.mubr.bf16.mxu0 %v8316_v7  ;;  %v8656_v53 = vpop.permute.xlu1 %2308 }
 0x2b6   :  { %v8634_v9 = vpop.f32.mrf.mxu1  ;;  %v2940_v24 = vpop.f32.mrf.mxu0  ;;  %10918 = vst [vmem:[#allocation120_spill] sm:$0xff] %v8656_v53 }
 0x2b7   :  { %10915 = vst [vmem:[#allocation54_spill] sm:$0xff] %v8634_v9  ;;  %v8650_v9 = vsel %vm3401_vm0, %v2935_v17, %v3497_v59  ;;  %v5773_v17 = vld [vmem:[%s10256_s5 + $0x4] ss:$8 sps:$4 sm:$0xff]   ;;  %v8671_v59 = vpop.permute.xlu0 %2293 }
 0x2b8   :  { %v8646_v27 = vpop.f32.mrf.mxu1  ;;  %v2942_v18 = vpop.f32.mrf.mxu0  ;;  %10922 = vst [vmem:[#allocation48_spill] sm:$0xff] %v8671_v59  ;;  %4131 = vmatprep.mubr.bf16.mxu1 %v5773_v17 }
 0x2b9   :  { %10916 = vst [vmem:[#allocation53_spill] sm:$0xff] %v8646_v27  ;;  %v8673_v16 = vpop.permute.xlu1 %2298 }
 0x2ba   :  { %v5216_v49 = vpop.f32.mrf.mxu1  ;;  %v2944_v31 = vpop.f32.mrf.mxu0  ;;  %10923 = vst [vmem:[#allocation76_spill] sm:$0xff] %v8673_v16 }
 0x2bc   :  { %v5217_v7 = vpop.f32.mrf.mxu1  ;;  %v8662_v27 = vpop.f32.mrf.mxu0  ;;  %3355 = vmatmul.mubr.bf16.gmra.mxu0 %v8326_v42 }
 0x2bd   :  { %v8658_v41 = vadd.f32 %v5217_v7, %v5216_v49  ;;  %3362 = vmatprep.mubr.bf16.mxu0 %v8334_v54 }
 0x2be   :  { %v8660_v2 = vpop.f32.mrf.mxu1  ;;  %v2950_v13 = vpop.f32.mrf.mxu0 }
 0x2bf   :  { %10919 = vst [vmem:[#allocation64_spill] sm:$0xff] %v8658_v41  ;;  %10920 = vst [vmem:[#allocation43_spill] sm:$0xff] %v8660_v2  ;;  %v8684_v2 = vpop.permute.xlu1 %2288 }
 0x2c0   :  { %v8666_v35 = vpop.f32.mrf.mxu1  ;;  %v2952_v7 = vpop.f32.mrf.mxu0  ;;  %10927 = vst [vmem:[#allocation70_spill] sm:$0xff] %v8684_v2 }
 0x2c1   :  { %10921 = vst [vmem:[#allocation67_spill] sm:$0xff] %v8666_v35  ;;  %v8682_v35 = vpop.permute.xlu0 %2283 }
 0x2c2   :  { %v5222_v49 = vpop.f32.mrf.mxu1  ;;  %v2954_v48 = vpop.f32.mrf.mxu0  ;;  %10926 = vst [vmem:[#allocation75_spill] sm:$0xff] %v8682_v35 }
 0x2c4   :  { %v5223_v41 = vpop.f32.mrf.mxu1  ;;  %v8679_v54 = vpop.f32.mrf.mxu0  ;;  %3363 = vmatmul.mubr.bf16.gmra.mxu0 %v8348_v8  ;;  %v2752_v8 = vadd.f32 %v8405_v58, %v8466_v32  ;;  %v2768_v58 = vadd.f32 %v8425_v30, %v8433_v26 }
 0x2c5   :  { %v8675_v3 = vadd.f32 %v5223_v41, %v5222_v49  ;;  %3370 = vmatprep.mubr.bf16.mxu0 %v8356_v11  ;;  %v2748_v41 = vadd.f32 %v8399_v21, %v8456_v56  ;;  %v2750_v49 = vadd.f32 %v8401_v36, %v8466_v32  ;;  %v2762_v21 = vadd.f32 %v8417_v47, %v8454_v44  ;;  %v10929_v32 = vld [vmem:[#allocation89_spill] sm:$0xff]  ;;  %v10930_v56 = vld [vmem:[#allocation40_spill] sm:$0xff]  ;;  %v8715_v4 = vpop.permute.xlu0 %2273  ;;  %v8717_v47 = vpop.permute.xlu1 %2278 }
 0x2c6   :  { %v8677_v42 = vpop.f32.mrf.mxu1  ;;  %v2960_v61 = vpop.f32.mrf.mxu0  ;;  %v2766_v36 = vadd.f32 %v8421_v29, %v8433_v26  ;;  %v2772_v51 = vadd.f32 %v10930_v56, %v8442_v28  ;;  %10933 = vst [vmem:[#allocation72_spill] sm:$0xff] %v8715_v4  ;;  %10934 = vst [vmem:[#allocation79_spill] sm:$0xff] %v8717_v47  ;;  %v10935_v29 = vld [vmem:[#allocation42_spill] sm:$0xff]  ;;  %v10937_v26 = vld [vmem:[#allocation37_spill] sm:$0xff]  ;;  %v2786_v53 = vadd.f32 %v10940_v1, %v8715_v4 }
 0x2c7   :  { %10924 = vst [vmem:[#allocation73_spill] sm:$0xff] %v8675_v3  ;;  %10925 = vst [vmem:[#allocation88_spill] sm:$0xff] %v8677_v42  ;;  %v2756_v3 = vadd.f32 %v8407_v62, %v8444_v19  ;;  %v2770_v62 = vadd.f32 %v10929_v32, %v8442_v28  ;;  %v2778_v44 = vadd.f32 %v10935_v29, %v10931_v25  ;;  %v10938_v56 = vld [vmem:[#allocation94_spill] sm:$0xff]  ;;  %v10945_v1 = vld [vmem:[#allocation99_spill] sm:$0xff] }
 0x2c8   :  { %v8687_v57 = vpop.f32.mrf.mxu1  ;;  %v2962_v11 = vpop.f32.mrf.mxu0  ;;  %v8721_v34 = vadd.f32 %v2940_v24, %v2748_v41  ;;  %v8723_v30 = vadd.f32 %v2942_v18, %v2750_v49  ;;  %v2780_v28 = vadd.f32 %v10938_v56, %v10937_v26  ;;  %v8733_v15 = vadd.f32 %v2944_v31, %v2752_v8  ;;  %v10942_v24 = vld [vmem:[#allocation100_spill] sm:$0xff]  ;;  %v10943_v18 = vld [vmem:[#allocation103_spill] sm:$0xff]  ;;  %v10946_v8 = vld [vmem:[#allocation102_spill] sm:$0xff] }
 0x2c9   :  { %10928 = vst [vmem:[#allocation68_spill] sm:$0xff] %v8687_v57  ;;  %v2758_v57 = vadd.f32 %v8411_v52, %v8444_v19  ;;  %v10932_v52 = vld [vmem:[#allocation107_spill] sm:$0xff]  ;;  %v8746_v56 = vadd.f32 %v2954_v48, %v2762_v21  ;;  %v8750_v31 = vadd.f32 %v10945_v1, %v8682_v35  ;;  %v8773_v1 = vadd.f32 %v8662_v27, %v2756_v3 }
 0x2ca   :  { %v5228_v42 = vpop.f32.mrf.mxu1  ;;  %v2776_v19 = vadd.f32 %v10932_v52, %v10931_v25  ;;  %v2964_v0 = vpop.f32.mrf.mxu0  ;;  %v10939_v52 = vld [vmem:[#allocation49_spill] sm:$0xff]  ;;  %v8765_v48 = vmul.f32 0.2, %v8723_v30  ;;  %v8770_v21 = vmul.f32 0.2, %v8733_v15  ;;  %vm3404_vm10 = vcmp.gt.f32.partialorder %v8721_v34, 0.0 }
 0x2cb   :  { %v2782_v46 = vadd.f32 %v10939_v52, %v10937_v26  ;;  %v8744_v49 = vadd.f32 %v2950_v13, %v2758_v57  ;;  %v8754_v52 = vadd.f32 %v10946_v8, %v8682_v35  ;;  %v8762_v57 = vmul.f32 0.2, %v8721_v34 }
 0x2cc   :  { %v5229_v63 = vpop.f32.mrf.mxu1  ;;  %v2968_v29 = vpop.f32.mrf.mxu0  ;;  %3371 = vmatmul.mubr.bf16.gmra.mxu0 %v10942_v24  ;;  %v8757_v24 = vadd.f32 %v8636_v22, %v2746_v55  ;;  %v8767_v13 = vadd.f32 %v2952_v7, %v2760_v37  ;;  %v2961_v55 = vadd.f32 %v2960_v61, %v2768_v58  ;;  %vm3413_vm1 = vcmp.gt.f32.partialorder %v8746_v56, 0.0 }
 0x2cd   :  { %v8725_v32 = vadd.f32 %v5229_v63, %v5228_v42  ;;  %v2788_v63 = vadd.f32 %v10943_v18, %v8715_v4  ;;  %v10944_v42 = vld [vmem:[#allocation61_spill] sm:$0xff]  ;;  %4324 = vmatprep.mubr.bf16.mxu0 %v5773_v17  ;;  %v2965_v18 = vadd.f32 %v2964_v0, %v2772_v51  ;;  %v2969_v51 = vadd.f32 %v2968_v29, %v2776_v19 }
 0x2ce   :  { %v8735_v16 = vpop.f32.mrf.mxu1  ;;  %v8742_v41 = vadd.f32 %v10944_v42, %v8717_v47  ;;  %v2970_v42 = vpop.f32.mrf.mxu0  ;;  %v8776_v8 = vmul.f32 0.2, %v8744_v49  ;;  %v3509_v35 = vmul.f32 0.2, %v8746_v56  ;;  %vm3410_vm2 = vcmp.gt.f32.partialorder %v8744_v49, 0.0 }
 0x2cf   :  { %10936 = vst [vmem:[#allocation84_spill] sm:$0xff] %v8725_v32  ;;  %10941 = vst [vmem:[#allocation65_spill] sm:$0xff] %v8735_v16  ;;  %v2971_v17 = vadd.f32 %v2970_v42, %v2778_v44  ;;  %v2959_v44 = vadd.f32 %v8679_v54, %v2766_v36  ;;  %v2963_v37 = vadd.f32 %v2962_v11, %v2770_v62  ;;  %v3515_v42 = vmul.f32 0.2, %v2965_v18 }
 0x2d0   :  { %v8759_v4 = vpop.f32.mrf.mxu1  ;;  %v2972_v0 = vpop.f32.mrf.mxu0  ;;  %vm3412_vm3 = vcmp.gt.f32.partialorder %v8767_v13, 0.0  ;;  %vm3416_vm5 = vcmp.gt.f32.partialorder %v2961_v55, 0.0  ;;  %vm3419_vm6 = vcmp.gt.f32.partialorder %v2965_v18, 0.0  ;;  %v3517_v26 = vmul.f32 0.2, %v2969_v51 }
 0x2d1   :  { %10947 = vst [vmem:[#allocation62_spill] sm:$0xff] %v8759_v4  ;;  %v2973_v7 = vadd.f32 %v2972_v0, %v2780_v28  ;;  %v3518_v3 = vmul.f32 0.2, %v2971_v17  ;;  %vm3422_vm7 = vcmp.gt.f32.partialorder %v2971_v17, 0.0  ;;  %v3512_v54 = vmul.f32 0.2, %v2961_v55 }
 0x2d2   :  { %v5234_v22 = vpop.f32.mrf.mxu1  ;;  %v2974_v61 = vpop.f32.mrf.mxu0  ;;  %vm3421_vm8 = vcmp.gt.f32.partialorder %v2969_v51, 0.0  ;;  %vm3418_vm11 = vcmp.gt.f32.partialorder %v2963_v37, 0.0  ;;  %v3514_v36 = vmul.f32 0.2, %v2963_v37  ;;  %vm3415_vm12 = vcmp.gt.f32.partialorder %v2959_v44, 0.0 }
 0x2d3   :  { %vm3424_vm4 = vcmp.gt.f32.partialorder %v2973_v7, 0.0  ;;  %v3520_v58 = vmul.f32 0.2, %v2973_v7  ;;  %v2975_v29 = vadd.f32 %v2974_v61, %v2782_v46  ;;  %v3614_v25 = vsel %vm3422_vm7, %v2971_v17, %v3518_v3 }
 0x2d4   :  { %v5235_v27 = vpop.f32.mrf.mxu1  ;;  %v2978_v0 = vpop.f32.mrf.mxu0  ;;  %v3511_v4 = vmul.f32 0.2, %v2959_v44  ;;  %v3613_v16 = vsel %vm3421_vm8, %v2969_v51, %v3517_v26  ;;  %v3610_v17 = vsel %vm3418_vm11, %v2963_v37, %v3514_v36  ;;  %vm3407_vm15 = vcmp.gt.f32.partialorder %v8733_v15, 0.0 }
 0x2d5   :  { %v8783_v19 = vadd.f32 %v5235_v27, %v5234_v22  ;;  %vm3425_vm9 = vcmp.gt.f32.partialorder %v2975_v29, 0.0  ;;  %v3521_v11 = vmul.f32 0.2, %v2975_v29  ;;  %v3616_v62 = vsel %vm3424_vm4, %v2973_v7, %v3520_v58  ;;  %v10956_v58 = vld [vmem:[#allocation104_spill] sm:$0xff] }
 0x2d6   :  { %v8785_v28 = vpop.f32.mrf.mxu1  ;;  %v2979_v46 = vadd.f32 %v2978_v0, %v2786_v53  ;;  %v2980_v27 = vpop.f32.mrf.mxu0  ;;  %v3688_v40 = vpack.c.bf16 %v3616_v62, %v3613_v16  ;;  %v3608_v53 = vsel %vm3416_vm5, %v2961_v55, %v3512_v54  ;;  %v3605_v16 = vsel %vm3413_vm1, %v8746_v56, %v3509_v35 }
 0x2d7   :  { %10948 = vst [vmem:[#allocation14_spill] sm:$0xff] %v8783_v19  ;;  %10949 = vst [vmem:[#allocation80_spill] sm:$0xff] %v8785_v28  ;;  %v8791_v61 = vadd.f32 %v2980_v27, %v2788_v63  ;;  %v3617_v19 = vsel %vm3425_vm9, %v2975_v29, %v3521_v11  ;;  %v3611_v28 = vsel %vm3419_vm6, %v2965_v18, %v3515_v42  ;;  %v3508_v63 = vmul.f32 0.2, %v8767_v13 }
 0x2d8   :  { %v8789_v22 = vpop.f32.mrf.mxu1  ;;  %v2982_v47 = vpop.f32.mrf.mxu0  ;;  %v3689_v6 = vpack.c.bf16 %v3617_v19, %v3614_v25  ;;  %v3523_v60 = vmul.f32 0.2, %v2979_v46  ;;  %vm3427_vm13 = vcmp.gt.f32.partialorder %v2979_v46, 0.0  ;;  %v3686_v42 = vpack.c.bf16 %v3611_v28, %v3608_v53 }
 0x2d9   :  { %10950 = vst [vmem:[#allocation57_spill] sm:$0xff] %v8789_v22  ;;  %v2983_v7 = vadd.f32 %v2982_v47, %v8742_v41  ;;  %vm3409_vm0 = vcmp.gt.f32.partialorder %v8773_v1, 0.0  ;;  %v3505_v47 = vmul.f32 0.2, %v8773_v1  ;;  %v3607_v41 = vsel %vm3415_vm12, %v2959_v44, %v3511_v4  ;;  %v10995_v4 = vld [vmem:[#allocation45_spill] sm:$0xff] }
 0x2da   :  { %v5240_v32 = vpop.f32.mrf.mxu1  ;;  %v8799_v18 = vpop.f32.mrf.mxu0  ;;  %4099 = vmatprep.subr.bf16.mxu1 %v3689_v6  ;;  %v8813_v51 = vsel %vm3427_vm13, %v2979_v46, %v3523_v60  ;;  %v3602_v35 = vsel %vm3410_vm2, %v8744_v49, %v8776_v8  ;;  %v3604_v56 = vsel %vm3412_vm3, %v8767_v13, %v3508_v63  ;;  %v2800_v29 = vadd.f32 %v10956_v58, %v8684_v2 }
 0x2db   :  { %vm3430_vm14 = vcmp.gt.f32.partialorder %v2983_v7, 0.0  ;;  %v3526_v25 = vmul.f32 0.2, %v2983_v7  ;;  %4100 = vmatpush1.bf16.msra.mxu1 %v3688_v40  ;;  %10953 = vst [vmem:[#allocation93_spill] sm:$0xff] %v8813_v51  ;;  %v3683_v19 = vpack.c.bf16 %v3605_v16, %v3602_v35  ;;  %vm3406_vm1 = vcmp.gt.f32.partialorder %v8723_v30, 0.0  ;;  %v11015_v51 = vld [vmem:[#allocation44_spill] sm:$0xff] }
 0x2dc   :  { %v5241_v3 = vpop.f32.mrf.mxu1  ;;  %v2988_v6 = vpop.f32.mrf.mxu0  ;;  %4101 = vmatprep.subr.bf16.mxu1 %v3686_v42  ;;  %v3599_v13 = vsel %vm3407_vm15, %v8733_v15, %v8770_v21  ;;  %vm3403_vm2 = vcmp.gt.f32.partialorder %v8757_v24, 0.0  ;;  %v3601_v8 = vsel %vm3409_vm0, %v8773_v1, %v3505_v47  ;;  %v3596_v36 = vsel %vm3404_vm10, %v8721_v34, %v8762_v57 }
 0x2dd   :  { %v8801_v26 = vadd.f32 %v5241_v3, %v5240_v32  ;;  %v3685_v32 = vpack.c.bf16 %v3610_v17, %v3607_v41  ;;  %v8815_v40 = vsel %vm3430_vm14, %v2983_v7, %v3526_v25  ;;  %v2989_v37 = vadd.f32 %v2988_v6, %v8750_v31  ;;  %v10958_v7 = vld [vmem:[#allocation23_spill] sm:$0xff] }
 0x2de   :  { %v8810_v55 = vpop.f32.mrf.mxu1  ;;  %10954 = vst [vmem:[#allocation113_spill] sm:$0xff] %v8815_v40  ;;  %v2990_v60 = vpop.f32.mrf.mxu0  ;;  %v3499_v31 = vmul.f32 0.2, %v8757_v24  ;;  %v3682_v54 = vpack.c.bf16 %v3604_v56, %v3601_v8  ;;  %v3598_v15 = vsel %vm3406_vm1, %v8723_v30, %v8765_v48  ;;  %v3680_v46 = vpack.c.bf16 %v3599_v13, %v3596_v36 }
 0x2df   :  { %10951 = vst [vmem:[#allocation56_spill] sm:$0xff] %v8801_v26  ;;  %10952 = vst [vmem:[#allocation24_spill] sm:$0xff] %v8810_v55  ;;  %v8833_v49 = vadd.f32 %v2990_v60, %v8754_v52  ;;  %4102 = vmatpush1.bf16.msra.mxu1 %v3685_v32  ;;  %v3529_v52 = vmul.f32 0.2, %v2989_v37  ;;  %vm3433_vm3 = vcmp.gt.f32.partialorder %v2989_v37, 0.0  ;;  %v2806_v53 = vadd.f32 %v10958_v7, %v8671_v59  ;;  %v11020_v26 = vld [vmem:[#allocation34_spill] sm:$0xff] }
 0x2e0   :  { %v8826_v44 = vpop.f32.mrf.mxu1  ;;  %v2992_v0 = vpop.f32.mrf.mxu0  ;;  %4103 = vmatprep.subr.bf16.mxu1 %v3683_v19  ;;  %v3595_v34 = vsel %vm3403_vm2, %v8757_v24, %v3499_v31  ;;  %v10963_v41 = vpack.c.bf16 %v8650_v9, %v8648_v38  ;;  %v10965_v56 = vpack.c.bf16 %v8641_v39, %v8639_v10  ;;  %v10966_v19 = vpack.c.bf16 %v8620_v43, %v8618_v14 }
 0x2e1   :  { %10955 = vst [vmem:[#allocation25_spill] sm:$0xff] %v8826_v44  ;;  %v2993_v11 = vadd.f32 %v2992_v0, %v2800_v29  ;;  %v3679_v48 = vpack.c.bf16 %v3598_v15, %v3595_v34  ;;  %v8861_v63 = vsel %vm3433_vm3, %v2989_v37, %v3529_v52  ;;  %v10968_v38 = vpack.c.bf16 %v8608_v20, %v8606_v23  ;;  %v10972_v20 = vld [vmem:[#allocation74_spill] sm:$0xff] }
 0x2e2   :  { %v5246_v28 = vpop.f32.mrf.mxu1  ;;  %v8850_v62 = vpop.f32.mrf.mxu0  ;;  %10960 = vst [vmem:[#allocation26_spill] sm:$0xff] %v8861_v63  ;;  %v10969_v10 = vpack.c.bf16 %v8585_v50, %v8583_v12  ;;  %v10971_v43 = vpack.c.bf16 %v8569_v5, %v8567_v33  ;;  %v10973_v23 = vpack.c.bf16 %v8548_v45, %v10972_v20  ;;  %v10975_v50 = vld [vmem:[#allocation123_spill] sm:$0xff]  ;;  %v11027_v63 = vld [vmem:[#allocation73_spill] sm:$0xff] }
 0x2e3   :  { %vm3436_vm4 = vcmp.gt.f32.partialorder %v2993_v11, 0.0  ;;  %v3532_v27 = vmul.f32 0.2, %v2993_v11  ;;  %4104 = vmatpush1.bf16.msra.mxu1 %v3682_v54 }
 0x2e4   :  { %v5247_v21 = vpop.f32.mrf.mxu1  ;;  %v2998_v30 = vpop.f32.mrf.mxu0  ;;  %4105 = vmatprep.subr.bf16.mxu1 %v3680_v46 }
 0x2e5   :  { %v8852_v1 = vadd.f32 %v5247_v21, %v5246_v28  ;;  %v8863_v17 = vsel %vm3436_vm4, %v2993_v11, %v3532_v27  ;;  %v8869_v25 = vadd.f32 %v2998_v30, %v2806_v53  ;;  %v10976_v11 = vld [vmem:[#allocation122_spill] sm:$0xff] }
 0x2e6   :  { %v8859_v57 = vpop.f32.mrf.mxu1  ;;  %10961 = vst [vmem:[#allocation29_spill] sm:$0xff] %v8863_v17  ;;  %v8871_v16 = vpop.f32.mrf.mxu0  ;;  %v10977_v36 = vpack.c.bf16 %v10975_v50, %v10976_v11 }
 0x2e7   :  { %10957 = vst [vmem:[#allocation27_spill] sm:$0xff] %v8852_v1  ;;  %10959 = vst [vmem:[#allocation32_spill] sm:$0xff] %v8859_v57  ;;  %4106 = vmatpush1.bf16.msra.mxu1 %v3679_v48  ;;  %v11011_v57 = vld [vmem:[#allocation88_spill] sm:$0xff] }
 0x2e8   :  { %v8867_v42 = vpop.f32.mrf.mxu1  ;;  %v8873_v47 = vpop.f32.mrf.mxu0  ;;  %4107 = vmatprep.subr.bf16.mxu1 %v10963_v41  ;;  %v10981_v41 = vld [vmem:[#allocation105_spill] sm:$0xff]  ;;  %v11012_v1 = vld [vmem:[#allocation68_spill] sm:$0xff] }
 0x2e9   :  { %10962 = vst [vmem:[#allocation91_spill] sm:$0xff] %v8867_v42  ;;  %v11009_v42 = vld [vmem:[#allocation39_spill] sm:$0xff] }
 0x2ea   :  { %v5252_v24 = vpop.f32.mrf.mxu1  ;;  %v8878_v32 = vpop.f32.mrf.mxu0 }
 0x2eb   :  { %4108 = vmatpush1.bf16.msra.mxu1 %v10965_v56  ;;  %v10982_v56 = vld [vmem:[#allocation16_spill] sm:$0xff] }
 0x2ec   :  { %v5253_v6 = vpop.f32.mrf.mxu1  ;;  %v8885_v60 = vpop.f32.mrf.mxu0  ;;  %4109 = vmatprep.subr.bf16.mxu1 %v10966_v19  ;;  %v10983_v19 = vld [vmem:[#allocation20_spill] sm:$0xff] }
 0x2ed   :  { %v8880_v35 = vadd.f32 %v5253_v6, %v5252_v24  ;;  %v10980_v24 = vld [vmem:[#allocation79_spill] sm:$0xff] }
 0x2ee   :  { %v5255_v37 = vpop.f32.mrf.mxu1  ;;  %v8890_v29 = vpop.f32.mrf.mxu0  ;;  %v2792_v6 = vadd.f32 %v10981_v41, %v10980_v24  ;;  %v10993_v41 = vld [vmem:[#allocation78_spill] sm:$0xff] }
 0x2ef   :  { %10964 = vst [vmem:[#allocation82_spill] sm:$0xff] %v8880_v35  ;;  %4110 = vmatpush1.bf16.msra.mxu1 %v10968_v38  ;;  %v11008_v35 = vld [vmem:[#allocation38_spill] sm:$0xff] }
 0x2f0   :  { %v5256_v58 = vpop.f32.mrf.mxu1  ;;  %v8897_v31 = vpop.f32.mrf.mxu0  ;;  %4111 = vmatprep.subr.bf16.mxu1 %v10969_v10  ;;  %v10984_v10 = vld [vmem:[#allocation76_spill] sm:$0xff] }
 0x2f1   :  { %v8892_v9 = vadd.f32 %v5256_v58, %v5255_v37  ;;  %v2802_v37 = vadd.f32 %v10982_v56, %v8684_v2  ;;  %v2808_v58 = vadd.f32 %v10983_v19, %v8671_v59  ;;  %v10994_v19 = vld [vmem:[#allocation52_spill] sm:$0xff]  ;;  %v11000_v2 = vld [vmem:[#allocation55_spill] sm:$0xff] }
 0x2f2   :  { %v5258_v13 = vpop.f32.mrf.mxu1  ;;  %v8902_v8 = vpop.f32.mrf.mxu0 }
 0x2f3   :  { %10967 = vst [vmem:[#allocation8_spill] sm:$0xff] %v8892_v9  ;;  %4112 = vmatpush1.bf16.msra.mxu1 %v10971_v43  ;;  %v8988_v55 = vadd.f32 %v8850_v62, %v2802_v37  ;;  %v11026_v37 = vld [vmem:[#allocation12_spill] sm:$0xff] }
 0x2f4   :  { %v5259_v39 = vpop.f32.mrf.mxu1  ;;  %v8909_v0 = vpop.f32.mrf.mxu0  ;;  %4113 = vmatprep.subr.bf16.mxu1 %v10973_v23  ;;  %v10987_v23 = vld [vmem:[#allocation121_spill] sm:$0xff]  ;;  %v9008_v17 = vadd.f32 %v11027_v63, %v11026_v37  ;;  %v9028_v63 = vadd.f32 %v8799_v18, %v2792_v6 }
 0x2f5   :  { %v8904_v14 = vadd.f32 %v5259_v39, %v5258_v13  ;;  %v10985_v39 = vld [vmem:[#allocation7_spill] sm:$0xff] }
 0x2f6   :  { %v5261_v28 = vpop.f32.mrf.mxu1  ;;  %v8914_v52 = vpop.f32.mrf.mxu0  ;;  %v2810_v43 = vadd.f32 %v10985_v39, %v10984_v10  ;;  %v2826_v39 = vadd.f32 %v10995_v4, %v10994_v19  ;;  %v11004_v4 = vld [vmem:[#allocation35_spill] sm:$0xff] }
 0x2f7   :  { %10970 = vst [vmem:[#allocation30_spill] sm:$0xff] %v8904_v14  ;;  %4114 = vmatpush1.bf16.msra.mxu1 %v10977_v36  ;;  %v10990_v36 = vld [vmem:[#allocation87_spill] sm:$0xff] }
 0x2f8   :  { %v5262_v54 = vpop.f32.mrf.mxu1  ;;  %v8921_v21 = vpop.f32.mrf.mxu0  ;;  %v11006_v14 = vld [vmem:[#allocation43_spill] sm:$0xff]  ;;  %v9043_v37 = vadd.f32 %v8873_v47, %v2810_v43 }
 0x2f9   :  { %v8916_v12 = vadd.f32 %v5262_v54, %v5261_v28  ;;  %v10986_v28 = vld [vmem:[#allocation9_spill] sm:$0xff] }
 0x2fa   :  { %v5264_v15 = vpop.f32.mrf.mxu1  ;;  %v8923_v33 = vpop.f32.mrf.mxu0  ;;  %v2812_v20 = vadd.f32 %v10986_v28, %v10984_v10  ;;  %v10988_v54 = vld [vmem:[#allocation17_spill] sm:$0xff]  ;;  %v10996_v28 = vld [vmem:[#allocation71_spill] sm:$0xff] }
 0x2fb   :  { %10974 = vst [vmem:[#allocation114_spill] sm:$0xff] %v8916_v12  ;;  %v2816_v50 = vadd.f32 %v10988_v54, %v10987_v23  ;;  %v2828_v54 = vadd.f32 %v10996_v28, %v10994_v19  ;;  %v11007_v28 = vld [vmem:[#allocation67_spill] sm:$0xff] }
 0x2fc   :  { %v5265_v5 = vpop.f32.mrf.mxu1  ;;  %v8927_v45 = vpop.f32.mrf.mxu0  ;;  %v5221_v19 = vadd.f32 %v11007_v28, %v11006_v14  ;;  %v11017_v14 = vld [vmem:[#allocation86_spill] sm:$0xff]  ;;  %v11018_v28 = vld [vmem:[#allocation125_spill] sm:$0xff] }
 0x2fd   :  { %v8925_v46 = vadd.f32 %v5265_v5, %v5264_v15  ;;  %v2818_v15 = vadd.f32 %v10990_v36, %v10987_v23  ;;  %v10991_v5 = vld [vmem:[#allocation120_spill] sm:$0xff]  ;;  %v10999_v36 = vld [vmem:[#allocation119_spill] sm:$0xff]  ;;  %v2856_v44 = vadd.f32 %v11018_v28, %v11017_v14  ;;  %v11025_v28 = vld [vmem:[#allocation77_spill] sm:$0xff]  ;;  %v9051_v6 = vadd.f32 %v8885_v60, %v2816_v50 }
 0x2fe   :  { %v5267_v27 = vpop.f32.mrf.mxu1  ;;  %v3030_v53 = vpop.f32.mrf.mxu0  ;;  %v2822_v56 = vadd.f32 %v10993_v41, %v10991_v5  ;;  %v11002_v41 = vld [vmem:[#allocation66_spill] sm:$0xff]  ;;  %v9004_v62 = vadd.f32 %v5221_v19, %v11025_v28 }
 0x2ff   :  { %10978 = vst [vmem:[#allocation31_spill] sm:$0xff] %v8925_v46  ;;  %v11005_v46 = vld [vmem:[#allocation69_spill] sm:$0xff] }
 0x300   :  { %v5268_v7 = vpop.f32.mrf.mxu1  ;;  %v8931_v48 = vpop.f32.mrf.mxu0  ;;  %v9025_v19 = vadd.f32 %v8902_v8, %v2822_v56  ;;  %v9046_v8 = vadd.f32 %v8878_v32, %v2812_v20  ;;  %v9065_v32 = vadd.f32 %v8909_v0, %v2826_v39 }
 0x301   :  { %v8929_v34 = vadd.f32 %v5268_v7, %v5267_v27  ;;  %v10992_v27 = vld [vmem:[#allocation81_spill] sm:$0xff] }
 0x302   :  { %v5270_v30 = vpop.f32.mrf.mxu1  ;;  %v3034_v13 = vpop.f32.mrf.mxu0  ;;  %v2820_v7 = vadd.f32 %v10992_v27, %v10991_v5  ;;  %v11001_v27 = vld [vmem:[#allocation117_spill] sm:$0xff]  ;;  %v2838_v5 = vadd.f32 %v11002_v41, %v11000_v2  ;;  %v5227_v41 = vadd.f32 %v11012_v1, %v11011_v57  ;;  %v11021_v1 = vld [vmem:[#allocation54_spill] sm:$0xff]  ;;  %v9062_v47 = vmul.f32 0.2, %v9025_v19 }
 0x303   :  { %10979 = vst [vmem:[#allocation115_spill] sm:$0xff] %v8929_v34  ;;  %v11003_v34 = vld [vmem:[#allocation47_spill] sm:$0xff]  ;;  %v2860_v57 = vadd.f32 %v11021_v1, %v11020_v26  ;;  %vm3449_vm14 = vcmp.gt.f32.partialorder %v9025_v19, 0.0 }
 0x304   :  { %v5271_v38 = vpop.f32.mrf.mxu1  ;;  %v8955_v59 = vpop.f32.mrf.mxu0  ;;  %v2840_v24 = vadd.f32 %v11004_v4, %v11003_v34  ;;  %v2842_v12 = vadd.f32 %v11005_v46, %v11003_v34  ;;  %v11014_v4 = vld [vmem:[#allocation60_spill] sm:$0xff]  ;;  %v11016_v46 = vld [vmem:[#allocation58_spill] sm:$0xff]  ;;  %v9048_v18 = vadd.f32 %v3030_v53, %v2838_v5 }
 0x305   :  { %v8945_v11 = vadd.f32 %v5271_v38, %v5270_v30  ;;  %v10997_v30 = vld [vmem:[#allocation51_spill] sm:$0xff]  ;;  %v10998_v38 = vld [vmem:[#allocation28_spill] sm:$0xff]  ;;  %v2850_v40 = vadd.f32 %v11015_v51, %v11014_v4  ;;  %v2852_v34 = vadd.f32 %v11016_v46, %v11014_v4  ;;  %v8997_v51 = vadd.f32 %v8871_v16, %v2808_v58  ;;  %v11023_v46 = vld [vmem:[#allocation90_spill] sm:$0xff] }
 0x306   :  { %v5273_v3 = vpop.f32.mrf.mxu1  ;;  %v2830_v10 = vadd.f32 %v10998_v38, %v10997_v30  ;;  %v2832_v23 = vadd.f32 %v10999_v36, %v10997_v30  ;;  %v3040_v38 = vpop.f32.mrf.mxu0  ;;  %v2846_v36 = vadd.f32 %v11009_v42, %v11008_v35  ;;  %v11010_v30 = vld [vmem:[#allocation63_spill] sm:$0xff]  ;;  %v11024_v4 = vld [vmem:[#allocation64_spill] sm:$0xff]  ;;  %v11029_v16 = vld [vmem:[#allocation22_spill] sm:$0xff]  ;;  %v9080_v20 = vmul.f32 0.2, %v9048_v18 }
 0x307   :  { %10989 = vst [vmem:[#allocation6_spill] sm:$0xff] %v8945_v11  ;;  %v2836_v11 = vadd.f32 %v11001_v27, %v11000_v2  ;;  %v2848_v27 = vadd.f32 %v11010_v30, %v11008_v35  ;;  %v11019_v30 = vld [vmem:[#allocation124_spill] sm:$0xff]  ;;  %v9040_v28 = vmul.f32 0.2, %v8997_v51  ;;  %vm3458_vm2 = vcmp.gt.f32.partialorder %v9048_v18, 0.0 }
 0x308   :  { %v5274_v9 = vpop.f32.mrf.mxu1  ;;  %v3042_v42 = vpop.f32.mrf.mxu0  ;;  %v2858_v35 = vadd.f32 %v11019_v30, %v11017_v14  ;;  %v9011_v30 = vadd.f32 %v8890_v29, %v2818_v15  ;;  %v11028_v14 = vld [vmem:[#allocation13_spill] sm:$0xff]  ;;  %v11030_v58 = vld [vmem:[#allocation84_spill] sm:$0xff]  ;;  %v9031_v29 = vmul.f32 0.2, %v8833_v49  ;;  %v9034_v15 = vmul.f32 0.2, %v8988_v55 }
 0x309   :  { %v8979_v2 = vadd.f32 %v5274_v9, %v5273_v3  ;;  %v11022_v3 = vld [vmem:[#allocation53_spill] sm:$0xff]  ;;  %v9071_v43 = vadd.f32 %v8921_v21, %v2830_v10  ;;  %v3041_v0 = vadd.f32 %v3040_v38, %v2848_v27  ;;  %v3043_v21 = vadd.f32 %v3042_v42, %v2850_v40 }
 0x30a   :  { %v2862_v9 = vadd.f32 %v11022_v3, %v11020_v26  ;;  %v3044_v1 = vpop.f32.mrf.mxu0  ;;  %v9014_v3 = vadd.f32 %v5227_v41, %v11028_v14  ;;  %v9018_v26 = vadd.f32 %v11030_v58, %v11029_v16  ;;  %v9037_v41 = vadd.f32 %v8914_v52, %v2828_v54 }
 0x30b   :  { %11013 = vst [vmem:[#allocation118_spill] sm:$0xff] %v8979_v2  ;;  %v9001_v2 = vadd.f32 %v11024_v4, %v11023_v46  ;;  %v11031_v4 = vld [vmem:[#allocation65_spill] sm:$0xff]  ;;  %v11032_v46 = vld [vmem:[#allocation62_spill] sm:$0xff]  ;;  %v9054_v56 = vmul.f32 0.2, %v9011_v30  ;;  %v9056_v52 = vadd.f32 %v3034_v13, %v2842_v12  ;;  %v3045_v54 = vadd.f32 %v3044_v1, %v2852_v34 }
 0x30c   :  { %v9022_v22 = vadd.f32 %v11032_v46, %v11031_v4  ;;  %v3048_v14 = vpop.f32.mrf.mxu0  ;;  %v9059_v58 = vadd.f32 %v8897_v31, %v2820_v7  ;;  %v9068_v60 = vmul.f32 0.2, %v9037_v41  ;;  %v9074_v12 = vadd.f32 %v8923_v33, %v2832_v23 }
 0x30d   :  { %v3049_v34 = vadd.f32 %v3048_v14, %v2856_v44  ;;  %v9077_v31 = vadd.f32 %v8927_v45, %v2836_v11  ;;  %v3557_v5 = vmul.f32 0.2, %v9056_v52  ;;  %v3563_v10 = vmul.f32 0.2, %v3045_v54 }
 0x30e   :  { %v3050_v16 = vpop.f32.mrf.mxu0  ;;  %v3039_v45 = vadd.f32 %v8955_v59, %v2846_v36  ;;  %vm3467_vm6 = vcmp.gt.f32.partialorder %v3045_v54, 0.0  ;;  %vm3452_vm8 = vcmp.gt.f32.partialorder %v9037_v41, 0.0  ;;  %v3560_v38 = vmul.f32 0.2, %v3041_v0 }
 0x30f   :  { %v3051_v53 = vadd.f32 %v3050_v16, %v2858_v35  ;;  %v9083_v35 = vadd.f32 %v8931_v48, %v2840_v24  ;;  %v3565_v11 = vmul.f32 0.2, %v3049_v34  ;;  %vm3469_vm9 = vcmp.gt.f32.partialorder %v3049_v34, 0.0 }
 0x310   :  { %v3052_v13 = vpop.f32.mrf.mxu0  ;;  %vm3464_vm11 = vcmp.gt.f32.partialorder %v3041_v0, 0.0  ;;  %vm3466_vm12 = vcmp.gt.f32.partialorder %v3043_v21, 0.0  ;;  %v3562_v40 = vmul.f32 0.2, %v3043_v21  ;;  %vm3454_vm13 = vcmp.gt.f32.partialorder %v9071_v43, 0.0 }
 0x311   :  { %v3053_v50 = vadd.f32 %v3052_v13, %v2860_v57  ;;  %v3566_v33 = vmul.f32 0.2, %v3051_v53  ;;  %vm3470_vm7 = vcmp.gt.f32.partialorder %v3051_v53, 0.0  ;;  %v3659_v57 = vsel %vm3467_vm6, %v3045_v54, %v3563_v10 }
 0x312   :  { %v3054_v7 = vpop.f32.mrf.mxu0  ;;  %vm3461_vm15 = vcmp.gt.f32.partialorder %v9056_v52, 0.0  ;;  %v3661_v1 = vsel %vm3469_vm9, %v3049_v34, %v3565_v11  ;;  %vm3463_vm0 = vcmp.gt.f32.partialorder %v3039_v45, 0.0  ;;  %v3656_v13 = vsel %vm3464_vm11, %v3041_v0, %v3560_v38 }
 0x313   :  { %vm3472_vm5 = vcmp.gt.f32.partialorder %v3053_v50, 0.0  ;;  %v3568_v44 = vmul.f32 0.2, %v3053_v50  ;;  %v3055_v23 = vadd.f32 %v3054_v7, %v2862_v9  ;;  %v3662_v59 = vsel %vm3470_vm7, %v3051_v53, %v3566_v33 }
 0x314   :  { %v5328_v39 = vpop.f32.mrf.mxu0  ;;  %v3559_v9 = vmul.f32 0.2, %v3039_v45  ;;  %vm3446_vm1 = vcmp.gt.f32.partialorder %v9011_v30, 0.0  ;;  %v3556_v54 = vmul.f32 0.2, %v9083_v35  ;;  %v3658_v53 = vsel %vm3466_vm12, %v3043_v21, %v3562_v40 }
 0x315   :  { %vm3473_vm10 = vcmp.gt.f32.partialorder %v3055_v23, 0.0  ;;  %v3569_v48 = vmul.f32 0.2, %v3055_v23  ;;  %v3664_v24 = vsel %vm3472_vm5, %v3053_v50, %v3568_v44  ;;  %v3710_v10 = vpack.c.bf16 %v3659_v57, %v3656_v13 }
 0x316   :  { %v5329_v27 = vpop.f32.mrf.mxu0  ;;  %v3712_v14 = vpack.c.bf16 %v3664_v24, %v3661_v1  ;;  %v3551_v34 = vmul.f32 0.2, %v9074_v12  ;;  %vm3460_vm3 = vcmp.gt.f32.partialorder %v9083_v35, 0.0  ;;  %vm3455_vm4 = vcmp.gt.f32.partialorder %v9074_v12, 0.0 }
 0x317   :  { %v5330_v42 = vadd.f32 %v5329_v27, %v5328_v39  ;;  %v3665_v36 = vsel %vm3473_vm10, %v3055_v23, %v3569_v48  ;;  %vm3457_vm5 = vcmp.gt.f32.partialorder %v9077_v31, 0.0  ;;  %v3553_v0 = vmul.f32 0.2, %v9077_v31 }
 0x318   :  { %v5331_v4 = vpop.f32.mrf.mxu0  ;;  %v3713_v46 = vpack.c.bf16 %v3665_v36, %v3662_v59  ;;  %v3655_v21 = vsel %vm3463_vm0, %v3039_v45, %v3559_v9  ;;  %vm3440_vm6 = vcmp.gt.f32.partialorder %v8997_v51, 0.0  ;;  %v3652_v39 = vsel %vm3460_vm3, %v9083_v35, %v3556_v54 }
 0x319   :  { %v3253_v16 = vadd.f32 %v5330_v42, %v9001_v2  ;;  %v3653_v2 = vsel %vm3461_vm15, %v9056_v52, %v3557_v5  ;;  %v3709_v44 = vpack.c.bf16 %v3658_v53, %v3655_v21  ;;  %v3650_v52 = vsel %vm3458_vm2, %v9048_v18, %v9080_v20 }
 0x31a   :  { %v5332_v50 = vpop.f32.mrf.mxu0  ;;  %4115 = vmatprep.subr.bf16.mxu1 %v3713_v46  ;;  %v3550_v5 = vmul.f32 0.2, %v9071_v43  ;;  %v3707_v38 = vpack.c.bf16 %v3653_v2, %v3650_v52  ;;  %vm3442_vm9 = vcmp.gt.f32.partialorder %v9043_v37, 0.0  ;;  %vm3437_vm11 = vcmp.gt.f32.partialorder %v8988_v55, 0.0  ;;  %v11038_v52 = vld [vmem:[#allocation98_spill] sm:$0xff] }
 0x31b   :  { %v5333_v7 = vadd.f32 %v5332_v50, %v5331_v4  ;;  %4116 = vmatpush2.bf16.msra.mxu1 %v3712_v14  ;;  %v3477_v23 = vmul.f32 0.2, %v3253_v16  ;;  %vm3381_vm7 = vcmp.gt.f32.partialorder %v3253_v16, 0.0  ;;  %vm3451_vm12 = vcmp.gt.f32.partialorder %v9065_v32, 0.0 }
 0x31c   :  { %v5334_v33 = vpop.f32.mrf.mxu0  ;;  %4117 = vmatprep.subr.bf16.mxu1 %v3710_v10  ;;  %v3547_v18 = vmul.f32 0.2, %v9065_v32  ;;  %v3649_v20 = vsel %vm3457_vm5, %v9077_v31, %v3553_v0  ;;  %v3644_v24 = vsel %vm3452_vm8, %v9037_v41, %v9068_v60  ;;  %v3544_v36 = vmul.f32 0.2, %v9059_v58 }
 0x31d   :  { %v3256_v11 = vadd.f32 %v5333_v7, %v9004_v62  ;;  %v3647_v62 = vsel %vm3455_vm4, %v9074_v12, %v3551_v34  ;;  %v3706_v27 = vpack.c.bf16 %v3652_v39, %v3649_v20  ;;  %v9134_v12 = vsel %vm3381_vm7, %v3253_v16, %v3477_v23  ;;  %v11037_v23 = vld [vmem:[#allocation21_spill] sm:$0xff] }
 0x31e   :  { %v5335_v45 = vpop.f32.mrf.mxu0  ;;  %11033 = vst [vmem:[#allocation59_spill] sm:$0xff] %v9134_v12  ;;  %v3646_v31 = vsel %vm3454_vm13, %v9071_v43, %v3550_v5  ;;  %v3704_v9 = vpack.c.bf16 %v3647_v62, %v3644_v24  ;;  %v3539_v41 = vmul.f32 0.2, %v9046_v8  ;;  %vm3448_vm8 = vcmp.gt.f32.partialorder %v9059_v58, 0.0  ;;  %v11039_v5 = vld [vmem:[#allocation14_spill] sm:$0xff]  ;;  %v11041_v62 = vld [vmem:[#allocation57_spill] sm:$0xff] }
 0x31f   :  { %vm3384_vm10 = vcmp.gt.f32.partialorder %v3256_v11, 0.0  ;;  %v3480_v48 = vmul.f32 0.2, %v3256_v11  ;;  %v5336_v40 = vadd.f32 %v5335_v45, %v5334_v33  ;;  %4118 = vmatpush2.bf16.msra.mxu1 %v3709_v44  ;;  %vm3443_vm15 = vcmp.gt.f32.partialorder %v9046_v8, 0.0 }
 0x320   :  { %v5337_v35 = vpop.f32.mrf.mxu0  ;;  %4119 = vmatprep.subr.bf16.mxu1 %v3707_v38  ;;  %vm3445_vm13 = vcmp.gt.f32.partialorder %v9051_v6, 0.0  ;;  %v3541_v43 = vmul.f32 0.2, %v9051_v6  ;;  %v3643_v4 = vsel %vm3451_vm12, %v9065_v32, %v3547_v18  ;;  %v3640_v54 = vsel %vm3448_vm8, %v9059_v58, %v3544_v36 }
 0x321   :  { %v9136_v42 = vsel %vm3384_vm10, %v3256_v11, %v3480_v48  ;;  %v3261_v59 = vadd.f32 %v5336_v40, %v9008_v17  ;;  %v3641_v17 = vsel %vm3449_vm14, %v9025_v19, %v9062_v47  ;;  %v3703_v14 = vpack.c.bf16 %v3646_v31, %v3643_v4 }
 0x322   :  { %11034 = vst [vmem:[#allocation41_spill] sm:$0xff] %v9136_v42  ;;  %v5338_v57 = vpop.f32.mrf.mxu0  ;;  %v3638_v19 = vsel %vm3446_vm1, %v9011_v30, %v9054_v56  ;;  %v3538_v47 = vmul.f32 0.2, %v9043_v37  ;;  %vm3439_vm2 = vcmp.gt.f32.partialorder %v8869_v25, 0.0  ;;  %v3535_v34 = vmul.f32 0.2, %v8869_v25 }
 0x323   :  { %v5339_v60 = vadd.f32 %v5338_v57, %v5337_v35  ;;  %4120 = vmatpush2.bf16.msra.mxu1 %v3706_v27  ;;  %v3483_v16 = vmul.f32 0.2, %v3261_v59  ;;  %vm3387_vm14 = vcmp.gt.f32.partialorder %v3261_v59, 0.0  ;;  %v3701_v50 = vpack.c.bf16 %v3641_v17, %v3638_v19  ;;  %v11044_v17 = vld [vmem:[#allocation106_spill] sm:$0xff] }
 0x324   :  { %v5340_v46 = vpop.f32.mrf.mxu0  ;;  %4121 = vmatprep.subr.bf16.mxu1 %v3704_v9  ;;  %v3637_v30 = vsel %vm3445_vm13, %v9051_v6, %v3541_v43  ;;  %v3632_v58 = vsel %vm3440_vm6, %v8997_v51, %v9040_v28  ;;  %vm3434_vm1 = vcmp.gt.f32.partialorder %v8833_v49, 0.0  ;;  %v3634_v6 = vsel %vm3442_vm9, %v9043_v37, %v3538_v47 }
 0x325   :  { %v3264_v13 = vadd.f32 %v5339_v60, %v9014_v3  ;;  %v3635_v3 = vsel %vm3443_vm15, %v9046_v8, %v3539_v41  ;;  %v3700_v7 = vpack.c.bf16 %v3640_v54, %v3637_v30  ;;  %v9176_v2 = vsel %vm3387_vm14, %v3261_v59, %v3483_v16  ;;  %v9211_v59 = vpop.f32.mrf.mxu1  ;;  %v11048_v54 = vld [vmem:[#allocation110_spill] sm:$0xff] }
 0x326   :  { %v5341_v53 = vpop.f32.mrf.mxu0  ;;  %11035 = vst [vmem:[#allocation116_spill] sm:$0xff] %v9176_v2  ;;  %v3698_v33 = vpack.c.bf16 %v3635_v3, %v3632_v58  ;;  %v3111_v51 = vadd.f32 %v9022_v22, %v11037_v23  ;;  %v3527_v28 = vmul.f32 0.2, %v9028_v63  ;;  %v3116_v37 = vadd.f32 %v11039_v5, %v11038_v52  ;;  %v11052_v3 = vld [vmem:[#allocation25_spill] sm:$0xff] }
 0x327   :  { %vm3390_vm0 = vcmp.gt.f32.partialorder %v3264_v13, 0.0  ;;  %v3486_v32 = vmul.f32 0.2, %v3264_v13  ;;  %v5342_v10 = vadd.f32 %v5341_v53, %v5340_v46  ;;  %4122 = vmatpush2.bf16.msra.mxu1 %v3703_v14  ;;  %v3524_v39 = vmul.f32 0.2, %v8791_v61  ;;  %v11046_v46 = vld [vmem:[#allocation26_spill] sm:$0xff]  ;;  %v9224_v16 = vpop.f32.mrf.mxu1 }
 0x328   :  { %v5343_v56 = vpop.f32.mrf.mxu0  ;;  %4123 = vmatprep.subr.bf16.mxu1 %v3701_v50  ;;  %vm3431_vm3 = vcmp.gt.f32.partialorder %v9028_v63, 0.0  ;;  %v3631_v22 = vsel %vm3439_vm2, %v8869_v25, %v3535_v34  ;;  %vm3428_vm4 = vcmp.gt.f32.partialorder %v8791_v61, 0.0  ;;  %v11053_v58 = vld [vmem:[#allocation113_spill] sm:$0xff]  ;;  %v5278_v1 = vadd.f32 %v9224_v16, %v9211_v59 }
 0x329   :  { %v9178_v0 = vsel %vm3390_vm0, %v3264_v13, %v3486_v32  ;;  %v3269_v8 = vadd.f32 %v5342_v10, %v9018_v26  ;;  %v3629_v26 = vsel %vm3437_vm11, %v8988_v55, %v9034_v15  ;;  %v3697_v38 = vpack.c.bf16 %v3634_v6, %v3631_v22  ;;  %v11040_v15 = vld [vmem:[#allocation80_spill] sm:$0xff]  ;;  %v9231_v32 = vld [vmem:[%s10256_s5] ss:$8 sps:$4 sm:$0xff]  }
 0x32a   :  { %11036 = vst [vmem:[#allocation18_spill] sm:$0xff] %v9178_v0  ;;  %v5344_v21 = vpop.f32.mrf.mxu0  ;;  %v3626_v55 = vsel %vm3434_vm1, %v8833_v49, %v9031_v29  ;;  %v5239_v18 = vadd.f32 %v11041_v62, %v11040_v15  ;;  %v3623_v27 = vsel %vm3431_vm3, %v9028_v63, %v3527_v28  ;;  %v3620_v57 = vsel %vm3428_vm4, %v8791_v61, %v3524_v39  ;;  %v11045_v63 = vld [vmem:[#allocation29_spill] sm:$0xff]  ;;  %v11049_v61 = vld [vmem:[#allocation56_spill] sm:$0xff] }
 0x32b   :  { %v5345_v11 = vadd.f32 %v5344_v21, %v5343_v56  ;;  %4124 = vmatpush2.bf16.msra.mxu1 %v3700_v7  ;;  %v3489_v48 = vmul.f32 0.2, %v3269_v8  ;;  %vm3393_vm5 = vcmp.gt.f32.partialorder %v3269_v8, 0.0  ;;  %v3695_v35 = vpack.c.bf16 %v3629_v26, %v3626_v55  ;;  %11050 = vst [vmem:[#allocation85_spill] sm:$0xff] %v9231_v32  ;;  %v11051_v10 = vld [vmem:[#allocation24_spill] sm:$0xff]  ;;  %v11054_v7 = vld [vmem:[#allocation93_spill] sm:$0xff]  ;;  %v9243_v21 = vpop.f32.mrf.mxu1 }
 0x32c   :  { %v5346_v45 = vpop.f32.mrf.mxu0  ;;  %4125 = vmatprep.subr.bf16.mxu1 %v3698_v33  ;;  %v3692_v41 = vpack.c.bf16 %v3623_v27, %v3620_v57  ;;  %v3119_v43 = vadd.f32 %v5239_v18, %v11044_v17  ;;  %v11047_v14 = vpack.c.bf16 %v11045_v63, %v11046_v46  ;;  %v3124_v53 = vadd.f32 %v11049_v61, %v11048_v54  ;;  %v9241_v6 = vld [vmem:[%s10256_s5 + $0x14] ss:$8 sps:$4 sm:$0xff]   ;;  %v9261_v62 = vld [vmem:[%s10256_s5 + $0x10] ss:$8 sps:$4 sm:$0xff]   ;;  %v9268_v27 = vld [vmem:[%s10256_s5 + $0x24] ss:$8 sps:$4 sm:$0xff]  }
 0x32d   :  { %v3272_v40 = vadd.f32 %v5345_v11, %v3111_v51  ;;  %v9213_v49 = vsel %vm3393_vm5, %v3269_v8, %v3489_v48  ;;  %v5245_v34 = vadd.f32 %v11052_v3, %v11051_v10  ;;  %v11055_v8 = vpack.c.bf16 %v11053_v58, %v11054_v7  ;;  %11056 = vst [vmem:[#allocation10_spill] sm:$0xff] %v9241_v6  ;;  %v11057_v52 = vld [vmem:[#allocation97_spill] sm:$0xff]  ;;  %v9254_v39 = vpop.f32.mrf.mxu1  ;;  %v11058_v48 = vld [vmem:[#allocation95_spill] sm:$0xff]  ;;  %v11061_v18 = vld [vmem:[#allocation32_spill] sm:$0xff] }
 0x32e   :  { %v5347_v20 = vpop.f32.mrf.mxu0  ;;  %11042 = vst [vmem:[#allocation83_spill] sm:$0xff] %v9213_v49  ;;  %11060 = vst [vmem:[#allocation92_spill] sm:$0xff] %v9261_v62  ;;  %v9286_v61 = vld [vmem:[%s10256_s5 + $0x20] ss:$8 sps:$4 sm:$0xff]   ;;  %v9398_v16 = vld [vmem:[%s10256_s5 + $0x74] ss:$8 sps:$4 sm:$0xff]  }
 0x32f   :  { %vm3396_vm6 = vcmp.gt.f32.partialorder %v3272_v40, 0.0  ;;  %v3492_v25 = vmul.f32 0.2, %v3272_v40  ;;  %v5348_v24 = vadd.f32 %v5347_v20, %v5346_v45  ;;  %4126 = vmatpush2.bf16.msra.mxu1 %v3697_v38  ;;  %v3127_v5 = vadd.f32 %v5245_v34, %v11057_v52  ;;  %v11062_v20 = vld [vmem:[#allocation91_spill] sm:$0xff]  ;;  %11063 = vst [vmem:[#allocation111_spill] sm:$0xff] %v9268_v27  ;;  %11065 = vst [vmem:[#allocation33_spill] sm:$0xff] %v9286_v61 }
 0x330   :  { %v5349_v36 = vpop.f32.mrf.mxu0  ;;  %4127 = vmatprep.subr.bf16.mxu1 %v3695_v35  ;;  %v5251_v35 = vadd.f32 %v11062_v20, %v11061_v18  ;;  %v11069_v52 = vld [vmem:[#allocation109_spill] sm:$0xff]  ;;  %v11072_v18 = vld [vmem:[#allocation19_spill] sm:$0xff]  ;;  %v11073_v20 = vld [vmem:[#allocation30_spill] sm:$0xff]  ;;  %11093 = vst [vmem:[#allocation49_spill] sm:$0xff] %v9398_v16 }
 0x331   :  { %v9215_v29 = vsel %vm3396_vm6, %v3272_v40, %v3492_v25  ;;  %v3277_v31 = vadd.f32 %v5348_v24, %v3116_v37  ;;  %v11059_v40 = vld [vmem:[#allocation27_spill] sm:$0xff]  ;;  %v11103_v0 = vld [vmem:[#allocation60_spill] sm:$0xff] }
 0x332   :  { %11043 = vst [vmem:[#allocation15_spill] sm:$0xff] %v9215_v29  ;;  %v5350_v9 = vpop.f32.mrf.mxu0  ;;  %v3132_v55 = vadd.f32 %v11059_v40, %v11058_v48  ;;  %v9478_v49 = vld [vmem:[%s10256_s5 + $0xb0] ss:$8 sps:$4 sm:$0xff]  }
 0x333   :  { %v5351_v4 = vadd.f32 %v5350_v9, %v5349_v36  ;;  %4128 = vmatpush2.bf16.msra.mxu1 %v11047_v14  ;;  %v3495_v19 = vmul.f32 0.2, %v3277_v31  ;;  %vm3399_vm7 = vcmp.gt.f32.partialorder %v3277_v31, 0.0  ;;  %v9270_v36 = vpop.f32.mrf.mxu1 }
 0x334   :  { %v5352_v13 = vpop.f32.mrf.mxu0  ;;  %4129 = vmatprep.subr.bf16.mxu1 %v3692_v41 }
 0x335   :  { %v3280_v47 = vadd.f32 %v5351_v4, %v3119_v43  ;;  %v9245_v23 = vsel %vm3399_vm7, %v3277_v31, %v3495_v19  ;;  %v11064_v4 = vld [vmem:[#allocation50_spill] sm:$0xff]  ;;  %v9281_v14 = vpop.f32.mrf.mxu1 }
 0x336   :  { %v5353_v50 = vpop.f32.mrf.mxu0  ;;  %v3135_v63 = vadd.f32 %v5251_v35, %v11064_v4  ;;  %v3148_v35 = vadd.f32 %v11073_v20, %v11072_v18 }
 0x337   :  { %vm3402_vm9 = vcmp.gt.f32.partialorder %v3280_v47, 0.0  ;;  %v3498_v30 = vmul.f32 0.2, %v3280_v47  ;;  %v5354_v56 = vadd.f32 %v5353_v50, %v5352_v13  ;;  %4130 = vmatpush2.bf16.msra.mxu1 %v11055_v8  ;;  %v11067_v50 = vld [vmem:[#allocation82_spill] sm:$0xff] }
 0x338   :  { %v5355_v33 = vpop.f32.mrf.mxu0 }
 0x339   :  { %v9247_v51 = vsel %vm3402_vm9, %v3280_v47, %v3498_v30  ;;  %v3285_v28 = vadd.f32 %v5354_v56, %v3124_v53  ;;  %v11066_v53 = vld [vmem:[#allocation46_spill] sm:$0xff]  ;;  %v9293_v30 = vld [vmem:[%s10256_s5 + $0x34] ss:$8 sps:$4 sm:$0xff]   ;;  %v9295_v56 = vpop.f32.mrf.mxu1 }
 0x33a   :  { %v5356_v11 = vpop.f32.mrf.mxu0  ;;  %4132 = vmatmul.mubr.bf16.vlgmr.msra.gmra.mxu1 %v9231_v32  ;;  %v3140_v10 = vadd.f32 %v11067_v50, %v11066_v53  ;;  %11068 = vst [vmem:[#allocation11_spill] sm:$0xff] %v9293_v30 }
 0x33b   :  { %v5357_v37 = vadd.f32 %v5356_v11, %v5355_v33  ;;  %4141 = vmatprep.mubr.bf16.mxu1 %v9241_v6  ;;  %v3501_v45 = vmul.f32 0.2, %v3285_v28  ;;  %vm3405_vm10 = vcmp.gt.f32.partialorder %v3285_v28, 0.0  ;;  %v9441_v11 = vld [vmem:[%s10256_s5 + $0x80] ss:$8 sps:$4 sm:$0xff]  }
 0x33c   :  { %v5358_v22 = vpop.f32.mrf.mxu0  ;;  %11098 = vst [vmem:[#allocation99_spill] sm:$0xff] %v9441_v11 }
 0x33d   :  { %v3288_v38 = vadd.f32 %v5357_v37, %v3127_v5  ;;  %v9272_v57 = vsel %vm3405_vm10, %v3285_v28, %v3501_v45  ;;  %v11070_v5 = vld [vmem:[#allocation8_spill] sm:$0xff]  ;;  %v9307_v45 = vpop.f32.mrf.mxu1 }
 0x33e   :  { %v5359_v15 = vpop.f32.mrf.mxu0  ;;  %v3143_v37 = vadd.f32 %v11070_v5, %v11069_v52  ;;  %v11078_v52 = vld [vmem:[#allocation72_spill] sm:$0xff]  ;;  %v11079_v5 = vld [vmem:[#allocation31_spill] sm:$0xff] }
 0x33f   :  { %vm3408_vm11 = vcmp.gt.f32.partialorder %v3288_v38, 0.0  ;;  %v3504_v25 = vmul.f32 0.2, %v3288_v38  ;;  %v5360_v24 = vadd.f32 %v5359_v15, %v5358_v22  ;;  %v9312_v15 = vld [vmem:[%s10256_s5 + $0x30] ss:$8 sps:$4 sm:$0xff]  }
 0x340   :  { %v5361_v31 = vpop.f32.mrf.mxu0  ;;  %11071 = vst [vmem:[#allocation96_spill] sm:$0xff] %v9312_v15 }
 0x341   :  { %v9274_v9 = vsel %vm3408_vm11, %v3288_v38, %v3504_v25  ;;  %v3293_v41 = vadd.f32 %v5360_v24, %v3132_v55 }
 0x342   :  { %v5362_v17 = vpop.f32.mrf.mxu0  ;;  %4142 = vmatmul.mubr.bf16.gmra.mxu1 %v9261_v62 }
 0x343   :  { %v5363_v46 = vadd.f32 %v5362_v17, %v5361_v31  ;;  %4151 = vmatprep.mubr.bf16.mxu1 %v9268_v27  ;;  %v3507_v19 = vmul.f32 0.2, %v3293_v41  ;;  %vm3411_vm12 = vcmp.gt.f32.partialorder %v3293_v41, 0.0  ;;  %v9319_v31 = vld [vmem:[%s10256_s5 + $0x44] ss:$8 sps:$4 sm:$0xff]  }
 0x344   :  { %v5364_v13 = vpop.f32.mrf.mxu0  ;;  %11074 = vst [vmem:[#allocation36_spill] sm:$0xff] %v9319_v31  ;;  %v9470_v27 = vld [vmem:[%s10256_s5 + $0xb4] ss:$8 sps:$4 sm:$0xff]  }
 0x345   :  { %v3296_v47 = vadd.f32 %v5363_v46, %v3135_v63  ;;  %v9297_v7 = vsel %vm3411_vm12, %v3293_v41, %v3507_v19  ;;  %v9321_v41 = vpop.f32.mrf.mxu1  ;;  %v9446_v19 = vld [vmem:[%s10256_s5 + $0x94] ss:$8 sps:$4 sm:$0xff]  }
 0x346   :  { %v5365_v54 = vpop.f32.mrf.mxu0  ;;  %11099 = vst [vmem:[#allocation102_spill] sm:$0xff] %v9446_v19 }
 0x347   :  { %vm3414_vm8 = vcmp.gt.f32.partialorder %v3296_v47, 0.0  ;;  %v3510_v3 = vmul.f32 0.2, %v3296_v47  ;;  %v5366_v34 = vadd.f32 %v5365_v54, %v5364_v13  ;;  %v11076_v54 = vld [vmem:[#allocation114_spill] sm:$0xff] }
 0x348   :  { %v5367_v58 = vpop.f32.mrf.mxu0 }
 0x349   :  { %v9299_v8 = vsel %vm3414_vm8, %v3296_v47, %v3510_v3  ;;  %v3301_v33 = vadd.f32 %v5366_v34, %v3140_v10  ;;  %v11075_v47 = vld [vmem:[#allocation37_spill] sm:$0xff]  ;;  %v9333_v10 = vpop.f32.mrf.mxu1 }
 0x34a   :  { %v5368_v28 = vpop.f32.mrf.mxu0  ;;  %4152 = vmatmul.mubr.bf16.gmra.mxu1 %v9286_v61  ;;  %v3151_v53 = vadd.f32 %v11076_v54, %v11075_v47  ;;  %v9465_v61 = vld [vmem:[%s10256_s5 + $0xa0] ss:$8 sps:$4 sm:$0xff]  }
 0x34b   :  { %v5369_v22 = vadd.f32 %v5368_v28, %v5367_v58  ;;  %4161 = vmatprep.mubr.bf16.mxu1 %v9293_v30  ;;  %v3513_v48 = vmul.f32 0.2, %v3301_v33  ;;  %vm3417_vm15 = vcmp.gt.f32.partialorder %v3301_v33, 0.0  ;;  %v9338_v28 = vld [vmem:[%s10256_s5 + $0x40] ss:$8 sps:$4 sm:$0xff]   ;;  %11102 = vst [vmem:[#allocation74_spill] sm:$0xff] %v9465_v61 }
 0x34c   :  { %v5370_v38 = vpop.f32.mrf.mxu0  ;;  %11077 = vst [vmem:[#allocation112_spill] sm:$0xff] %v9338_v28 }
 0x34d   :  { %v3304_v40 = vadd.f32 %v5369_v22, %v3143_v37  ;;  %v9323_v4 = vsel %vm3417_vm15, %v3301_v33, %v3513_v48  ;;  %v3156_v37 = vadd.f32 %v11079_v5, %v11078_v52  ;;  %v9345_v48 = vld [vmem:[%s10256_s5 + $0x54] ss:$8 sps:$4 sm:$0xff]   ;;  %v11085_v52 = vld [vmem:[#allocation6_spill] sm:$0xff] }
 0x34e   :  { %v5371_v55 = vpop.f32.mrf.mxu0  ;;  %11080 = vst [vmem:[#allocation101_spill] sm:$0xff] %v9345_v48 }
 0x34f   :  { %vm3420_vm13 = vcmp.gt.f32.partialorder %v3304_v40, 0.0  ;;  %v3516_v25 = vmul.f32 0.2, %v3304_v40  ;;  %v5372_v24 = vadd.f32 %v5371_v55, %v5370_v38 }
 0x350   :  { %v5373_v17 = vpop.f32.mrf.mxu0 }
 0x351   :  { %v9325_v63 = vsel %vm3420_vm13, %v3304_v40, %v3516_v25  ;;  %v3309_v46 = vadd.f32 %v5372_v24, %v3148_v35  ;;  %v9347_v40 = vpop.f32.mrf.mxu1 }
 0x352   :  { %v5374_v13 = vpop.f32.mrf.mxu0  ;;  %4162 = vmatmul.mubr.bf16.gmra.mxu1 %v9312_v15 }
 0x353   :  { %v5375_v50 = vadd.f32 %v5374_v13, %v5373_v17  ;;  %4171 = vmatprep.mubr.bf16.mxu1 %v9319_v31  ;;  %v3519_v34 = vmul.f32 0.2, %v3309_v46  ;;  %vm3423_vm14 = vcmp.gt.f32.partialorder %v3309_v46, 0.0  ;;  %v11081_v17 = vld [vmem:[#allocation79_spill] sm:$0xff] }
 0x354   :  { %v5376_v3 = vpop.f32.mrf.mxu0  ;;  %v11082_v13 = vld [vmem:[#allocation115_spill] sm:$0xff] }
 0x355   :  { %v3312_v58 = vadd.f32 %v5375_v50, %v3151_v53  ;;  %v9349_v18 = vsel %vm3423_vm14, %v3309_v46, %v3519_v34  ;;  %v3159_v47 = vadd.f32 %v11082_v13, %v11081_v17  ;;  %v9359_v53 = vpop.f32.mrf.mxu1 }
 0x356   :  { %v5377_v33 = vpop.f32.mrf.mxu0 }
 0x357   :  { %vm3426_vm0 = vcmp.gt.f32.partialorder %v3312_v58, 0.0  ;;  %v3522_v22 = vmul.f32 0.2, %v3312_v58  ;;  %v5378_v38 = vadd.f32 %v5377_v33, %v5376_v3  ;;  %v11084_v33 = vld [vmem:[#allocation75_spill] sm:$0xff] }
 0x358   :  { %v5379_v55 = vpop.f32.mrf.mxu0  ;;  %v3164_v5 = vadd.f32 %v11085_v52, %v11084_v33  ;;  %v11092_v33 = vld [vmem:[#allocation48_spill] sm:$0xff] }
 0x359   :  { %v9351_v20 = vsel %vm3426_vm0, %v3312_v58, %v3522_v22  ;;  %v3317_v35 = vadd.f32 %v5378_v38, %v3156_v37  ;;  %v9364_v58 = vld [vmem:[%s10256_s5 + $0x50] ss:$8 sps:$4 sm:$0xff]   ;;  %v9371_v38 = vld [vmem:[%s10256_s5 + $0x64] ss:$8 sps:$4 sm:$0xff]  }
 0x35a   :  { %v5380_v25 = vpop.f32.mrf.mxu0  ;;  %4172 = vmatmul.mubr.bf16.gmra.mxu1 %v9338_v28  ;;  %11083 = vst [vmem:[#allocation89_spill] sm:$0xff] %v9364_v58  ;;  %11086 = vst [vmem:[#allocation40_spill] sm:$0xff] %v9371_v38 }
 0x35b   :  { %v5381_v54 = vadd.f32 %v5380_v25, %v5379_v55  ;;  %4181 = vmatprep.mubr.bf16.mxu1 %v9345_v48  ;;  %v3525_v46 = vmul.f32 0.2, %v3317_v35  ;;  %vm3429_vm2 = vcmp.gt.f32.partialorder %v3317_v35, 0.0  ;;  %v9373_v55 = vpop.f32.mrf.mxu1  ;;  %v9458_v48 = vld [vmem:[%s10256_s5 + $0xa4] ss:$8 sps:$4 sm:$0xff]  }
 0x35c   :  { %v5382_v50 = vpop.f32.mrf.mxu0  ;;  %11101 = vst [vmem:[#allocation23_spill] sm:$0xff] %v9458_v48 }
 0x35d   :  { %v3320_v3 = vadd.f32 %v5381_v54, %v3159_v47  ;;  %v9375_v13 = vsel %vm3429_vm2, %v3317_v35, %v3525_v46 }
 0x35e   :  { %v5383_v34 = vpop.f32.mrf.mxu0  ;;  %11087 = vst [vmem:[#allocation107_spill] sm:$0xff] %v9375_v13 }
 0x35f   :  { %vm3432_vm1 = vcmp.gt.f32.partialorder %v3320_v3, 0.0  ;;  %v3528_v37 = vmul.f32 0.2, %v3320_v3  ;;  %v5384_v22 = vadd.f32 %v5383_v34, %v5382_v50  ;;  %v11089_v50 = vld [vmem:[#allocation70_spill] sm:$0xff] }
 0x360   :  { %v5385_v25 = vpop.f32.mrf.mxu0  ;;  %v11090_v34 = vld [vmem:[#allocation118_spill] sm:$0xff] }
 0x361   :  { %v3325_v17 = vadd.f32 %v5384_v22, %v3164_v5  ;;  %v9377_v47 = vsel %vm3432_vm1, %v3320_v3, %v3528_v37  ;;  %v3167_v52 = vadd.f32 %v11090_v34, %v11089_v50  ;;  %v9387_v5 = vpop.f32.mrf.mxu1  ;;  %v9392_v22 = vld [vmem:[%s10256_s5 + $0x60] ss:$8 sps:$4 sm:$0xff]   ;;  %v3172_v50 = vadd.f32 %v5278_v1, %v11092_v33 }
 0x362   :  { %11088 = vst [vmem:[#allocation42_spill] sm:$0xff] %v9377_v47  ;;  %v5386_v54 = vpop.f32.mrf.mxu0  ;;  %4182 = vmatmul.mubr.bf16.gmra.mxu1 %v9364_v58  ;;  %11091 = vst [vmem:[#allocation94_spill] sm:$0xff] %v9392_v22  ;;  %v9453_v58 = vld [vmem:[%s10256_s5 + $0x90] ss:$8 sps:$4 sm:$0xff]  }
 0x363   :  { %v5387_v44 = vadd.f32 %v5386_v54, %v5385_v25  ;;  %4191 = vmatprep.mubr.bf16.mxu1 %v9371_v38  ;;  %v3531_v46 = vmul.f32 0.2, %v3325_v17  ;;  %vm3435_vm3 = vcmp.gt.f32.partialorder %v3325_v17, 0.0  ;;  %v5297_v25 = vpop.f32.mrf.mxu1  ;;  %11100 = vst [vmem:[#allocation104_spill] sm:$0xff] %v9453_v58 }
 0x364   :  { %v5388_v35 = vpop.f32.mrf.mxu0 }
 0x365   :  { %v3328_v3 = vadd.f32 %v5387_v44, %v3167_v52  ;;  %v9404_v52 = vsel %vm3435_vm3, %v3325_v17, %v3531_v46  ;;  %v5298_v33 = vpop.f32.mrf.mxu1  ;;  %v9421_v17 = vld [vmem:[%s10256_s5 + $0x70] ss:$8 sps:$4 sm:$0xff]   ;;  %v9426_v46 = vld [vmem:[%s10256_s5 + $0x84] ss:$8 sps:$4 sm:$0xff]  }
 0x366   :  { %v5389_v37 = vpop.f32.mrf.mxu0  ;;  %11094 = vst [vmem:[#allocation108_spill] sm:$0xff] %v9404_v52  ;;  %11096 = vst [vmem:[#allocation103_spill] sm:$0xff] %v9421_v17  ;;  %v5299_v2 = vadd.f32 %v5298_v33, %v5297_v25 }
 0x367   :  { %vm3438_vm4 = vcmp.gt.f32.partialorder %v3328_v3, 0.0  ;;  %v3534_v34 = vmul.f32 0.2, %v3328_v3  ;;  %v5390_v59 = vadd.f32 %v5389_v37, %v5388_v35  ;;  %11097 = vst [vmem:[#allocation61_spill] sm:$0xff] %v9426_v46 }
 0x368   :  { %v9400_v54 = vpop.f32.mrf.mxu0 }
 0x369   :  { %v9402_v44 = vadd.f32 %v5390_v59, %v3172_v50  ;;  %v9406_v60 = vsel %vm3438_vm4, %v3328_v3, %v3534_v34  ;;  %v5300_v3 = vpop.f32.mrf.mxu1 }
 0x36a   :  { %11095 = vst [vmem:[#allocation100_spill] sm:$0xff] %v9406_v60  ;;  %v9408_v26 = vpop.f32.mrf.mxu0  ;;  %4192 = vmatmul.mubr.bf16.gmra.mxu1 %v9392_v22 }
 0x36b   :  { %4201 = vmatprep.mubr.bf16.mxu1 %v9398_v16  ;;  %v5301_v59 = vpop.f32.mrf.mxu1  ;;  %vm3441_vm0 = vcmp.gt.f32.partialorder %v9402_v44, 0.0 }
 0x36c   :  { %v9414_v35 = vpop.f32.mrf.mxu0  ;;  %v5302_v13 = vadd.f32 %v5301_v59, %v5300_v3 }
 0x36d   :  { %v5303_v24 = vpop.f32.mrf.mxu1 }
 0x36e   :  { %v9416_v37 = vpop.f32.mrf.mxu0 }
 0x370   :  { %v9428_v50 = vpop.f32.mrf.mxu0 }
 0x372   :  { %v9430_v34 = vpop.f32.mrf.mxu0  ;;  %4202 = vmatmul.mubr.bf16.gmra.mxu1 %v9421_v17 }
 0x373   :  { %4211 = vmatprep.mubr.bf16.mxu1 %v9426_v46  ;;  %v5304_v46 = vpop.f32.mrf.mxu1 }
 0x374   :  { %v9434_v1 = vpop.f32.mrf.mxu0  ;;  %v5305_v32 = vadd.f32 %v5304_v46, %v5303_v24  ;;  %v11104_v24 = vld [vmem:[#allocation86_spill] sm:$0xff] }
 0x375   :  { %v5306_v28 = vpop.f32.mrf.mxu1 }
 0x376   :  { %v9436_v43 = vpop.f32.mrf.mxu0  ;;  %v3207_v52 = vadd.f32 %v5305_v32, %v11103_v0  ;;  %v11105_v32 = vld [vmem:[#allocation38_spill] sm:$0xff] }
 0x378   :  { %v5403_v16 = vpop.f32.mrf.mxu0 }
 0x37a   :  { %v5404_v17 = vpop.f32.mrf.mxu0  ;;  %4212 = vmatmul.mubr.bf16.gmra.mxu1 %v9441_v11 }
 0x37b   :  { %4221 = vmatprep.mubr.bf16.mxu1 %v9446_v19  ;;  %v5307_v19 = vpop.f32.mrf.mxu1 }
 0x37c   :  { %v5406_v22 = vpop.f32.mrf.mxu0 }
 0x37d   :  { %v5309_v62 = vpop.f32.mrf.mxu1 }
 0x37e   :  { %v5407_v38 = vpop.f32.mrf.mxu0 }
 0x380   :  { %v5409_v31 = vpop.f32.mrf.mxu0 }
 0x382   :  { %v5410_v15 = vpop.f32.mrf.mxu0  ;;  %4222 = vmatmul.mubr.bf16.gmra.mxu1 %v9453_v58  ;;  %v5310_v58 = vpop.f32.mrf.mxu1 }
 0x383   :  { %4231 = vmatprep.mubr.bf16.mxu1 %v9458_v48  ;;  %v5308_v48 = vadd.f32 %v5307_v19, %v5306_v28  ;;  %v5311_v29 = vadd.f32 %v5310_v58, %v5309_v62  ;;  %v9484_v28 = vld [vmem:[%s10256_s5 + $0xc4] ss:$8 sps:$4 sm:$0xff]   ;;  %v5411_v25 = vadd.f32 %v5410_v15, %v5409_v31  ;;  %v5287_v15 = vadd.f32 %v9307_v45, %v9295_v56  ;;  %v9508_v56 = vld [vmem:[%s10256_s5 + $0xc0] ss:$8 sps:$4 sm:$0xff]   ;;  %v9513_v45 = vld [vmem:[%s10256_s5 + $0xd4] ss:$8 sps:$4 sm:$0xff]  }
 0x384   :  { %v5412_v11 = vpop.f32.mrf.mxu0 }
 0x385   :  { %v3212_v46 = vadd.f32 %v5308_v48, %v11104_v24  ;;  %v5284_v48 = vadd.f32 %v9281_v14, %v9270_v36  ;;  %v5290_v36 = vadd.f32 %v9333_v10, %v9321_v41  ;;  %v11108_v14 = vld [vmem:[#allocation55_spill] sm:$0xff] }
 0x386   :  { %v5413_v30 = vpop.f32.mrf.mxu0 }
 0x388   :  { %v5415_v6 = vpop.f32.mrf.mxu0 }
 0x38a   :  { %v5416_v12 = vpop.f32.mrf.mxu0  ;;  %4232 = vmatmul.mubr.bf16.gmra.mxu1 %v9465_v61  ;;  %v5414_v61 = vadd.f32 %v5413_v30, %v5412_v11  ;;  %v11107_v11 = vld [vmem:[#allocation34_spill] sm:$0xff] }
 0x38b   :  { %4241 = vmatprep.mubr.bf16.mxu1 %v9470_v27  ;;  %v5417_v47 = vadd.f32 %v5416_v12, %v5415_v6  ;;  %v5296_v12 = vadd.f32 %v9387_v5, %v9373_v55  ;;  %v3204_v6 = vadd.f32 %v5302_v13, %v11105_v32  ;;  %v3215_v58 = vadd.f32 %v5311_v29, %v11107_v11 }
 0x38c   :  { %v5418_v42 = vpop.f32.mrf.mxu0  ;;  %v5408_v55 = vadd.f32 %v5407_v38, %v5406_v22  ;;  %v11110_v22 = vld [vmem:[#allocation52_spill] sm:$0xff] }
 0x38d   :  { %v3368_v33 = vadd.f32 %v5417_v47, %v3207_v52  ;;  %v3365_v5 = vadd.f32 %v5414_v61, %v3204_v6  ;;  %v3196_v31 = vadd.f32 %v5296_v12, %v11108_v14  ;;  %v11109_v52 = vld [vmem:[#allocation51_spill] sm:$0xff]  ;;  %v5402_v61 = vadd.f32 %v9436_v43, %v9434_v1 }
 0x38e   :  { %v5419_v60 = vpop.f32.mrf.mxu0  ;;  %v5399_v43 = vadd.f32 %v9430_v34, %v9428_v50  ;;  %v5281_v12 = vadd.f32 %v9254_v39, %v9243_v21  ;;  %v5393_v21 = vadd.f32 %v9408_v26, %v9400_v54  ;;  %v9541_v54 = vld [vmem:[%s10256_s5 + $0xe4] ss:$8 sps:$4 sm:$0xff]  }
 0x38f   :  { %v5420_v19 = vadd.f32 %v5419_v60, %v5418_v42  ;;  %v5293_v42 = vadd.f32 %v9359_v53, %v9347_v40  ;;  %v11106_v60 = vld [vmem:[#allocation47_spill] sm:$0xff]  ;;  %v5405_v40 = vadd.f32 %v5404_v17, %v5403_v16  ;;  %v3564_v53 = vmul.f32 0.2, %v3368_v33 }
 0x390   :  { %v5421_v0 = vpop.f32.mrf.mxu0  ;;  %v3199_v62 = vadd.f32 %v5299_v2, %v11106_v60  ;;  %vm3468_vm5 = vcmp.gt.f32.partialorder %v3368_v33, 0.0  ;;  %v3357_v41 = vadd.f32 %v5408_v55, %v3196_v31  ;;  %v3561_v10 = vmul.f32 0.2, %v3365_v5 }
 0x391   :  { %v3373_v3 = vadd.f32 %v5420_v19, %v3212_v46  ;;  %v3191_v29 = vadd.f32 %v5293_v42, %v11109_v52  ;;  %v3188_v16 = vadd.f32 %v5290_v36, %v11110_v22  ;;  %vm3465_vm9 = vcmp.gt.f32.partialorder %v3365_v5, 0.0  ;;  %v11123_v22 = vld [vmem:[#allocation108_spill] sm:$0xff] }
 0x392   :  { %v5422_v30 = vpop.f32.mrf.mxu0  ;;  %4242 = vmatmul.mubr.bf16.gmra.mxu1 %v9478_v49  ;;  %v3360_v2 = vadd.f32 %v5411_v25, %v3199_v62  ;;  %v3660_v19 = vsel %vm3468_vm5, %v3368_v33, %v3564_v53  ;;  %v5396_v25 = vadd.f32 %v9416_v37, %v9414_v35  ;;  %v3555_v50 = vmul.f32 0.2, %v3357_v41  ;;  %v9535_v37 = vld [vmem:[%s10256_s5 + $0xd0] ss:$8 sps:$4 sm:$0xff]  }
 0x393   :  { %v5423_v59 = vadd.f32 %v5422_v30, %v5421_v0  ;;  %4251 = vmatprep.mubr.bf16.mxu1 %v9484_v28  ;;  %v3567_v13 = vmul.f32 0.2, %v3373_v3  ;;  %vm3471_vm6 = vcmp.gt.f32.partialorder %v3373_v3, 0.0  ;;  %v3352_v1 = vadd.f32 %v5405_v40, %v3191_v29  ;;  %v11111_v0 = vld [vmem:[#allocation120_spill] sm:$0xff] }
 0x394   :  { %v3558_v17 = vmul.f32 0.2, %v3360_v2  ;;  %v3183_v32 = vadd.f32 %v5287_v15, %v11111_v0  ;;  %vm3462_vm10 = vcmp.gt.f32.partialorder %v3360_v2, 0.0  ;;  %v3349_v42 = vadd.f32 %v5402_v61, %v3188_v16  ;;  %v11134_v0 = vld [vmem:[#allocation85_spill] sm:$0xff] }
 0x395   :  { %v3376_v47 = vadd.f32 %v5423_v59, %v3215_v58  ;;  %v3663_v24 = vsel %vm3471_vm6, %v3373_v3, %v3567_v13  ;;  %v3657_v34 = vsel %vm3465_vm9, %v3365_v5, %v3561_v10  ;;  %v11112_v3 = vld [vmem:[#allocation121_spill] sm:$0xff]  ;;  %vm3459_vm11 = vcmp.gt.f32.partialorder %v3357_v41, 0.0  ;;  %v9575_v10 = vld [vmem:[%s10256_s5 + $0xf0] ss:$8 sps:$4 sm:$0xff]  }
 0x396   :  { %v3180_v60 = vadd.f32 %v5284_v48, %v11112_v3  ;;  %v3711_v33 = vpack.c.bf16 %v3660_v19, %v3657_v34  ;;  %v3344_v39 = vadd.f32 %v5399_v43, %v3183_v32  ;;  %v3552_v62 = vmul.f32 0.2, %v3352_v1  ;;  %v11114_v48 = vld [vmem:[#allocation76_spill] sm:$0xff]  ;;  %v11125_v43 = vld [vmem:[#allocation18_spill] sm:$0xff]  ;;  %v11132_v19 = vld [vmem:[#allocation59_spill] sm:$0xff]  ;;  %v9599_v34 = vpop.permute.xlu0 %3851  ;;  %v9601_v3 = vpop.permute.xlu1 %3856 }
 0x397   :  { %vm3474_vm7 = vcmp.gt.f32.partialorder %v3376_v47, 0.0  ;;  %v3570_v38 = vmul.f32 0.2, %v3376_v47  ;;  %v11113_v30 = vpack.c.bf16 %v9351_v20, %v9349_v18  ;;  %v3654_v35 = vsel %vm3462_vm10, %v3360_v2, %v3558_v17  ;;  %v11129_v17 = vld [vmem:[#allocation107_spill] sm:$0xff]  ;;  %v11135_v32 = vld [vmem:[#allocation10_spill] sm:$0xff]  ;;  %11140 = vst [vmem:[#allocation123_spill] sm:$0xff] %v9599_v34 }
 0x398   :  { %vm3456_vm12 = vcmp.gt.f32.partialorder %v3352_v1, 0.0  ;;  %v3175_v11 = vadd.f32 %v5281_v12, %v11114_v48  ;;  %v3341_v58 = vadd.f32 %v5396_v25, %v3180_v60  ;;  %v3549_v55 = vmul.f32 0.2, %v3349_v42  ;;  %v11137_v25 = vld [vmem:[#allocation111_spill] sm:$0xff]  ;;  %11141 = vst [vmem:[#allocation122_spill] sm:$0xff] %v9601_v3  ;;  %v11142_v60 = vld [vmem:[#allocation96_spill] sm:$0xff] }
 0x399   :  { %v3666_v46 = vsel %vm3474_vm7, %v3376_v47, %v3570_v38  ;;  %v3651_v26 = vsel %vm3459_vm11, %v3357_v41, %v3555_v50  ;;  %vm3453_vm8 = vcmp.gt.f32.partialorder %v3349_v42, 0.0  ;;  %v3546_v5 = vmul.f32 0.2, %v3344_v39  ;;  %v9560_v47 = vld [vmem:[%s10256_s5 + $0xf4] ss:$8 sps:$4 sm:$0xff]  }
 0x39a   :  { %4252 = vmatmul.mubr.bf16.gmra.mxu1 %v9508_v56  ;;  %v3714_v6 = vpack.c.bf16 %v3666_v46, %v3663_v24  ;;  %v3708_v18 = vpack.c.bf16 %v3654_v35, %v3651_v26  ;;  %v3336_v20 = vadd.f32 %v5393_v21, %v3175_v11  ;;  %v11115_v59 = vpack.c.bf16 %v9325_v63, %v9323_v4  ;;  %v9554_v4 = vld [vmem:[%s10256_s5 + $0xe0] ss:$8 sps:$4 sm:$0xff]   ;;  %v11139_v50 = vld [vmem:[#allocation11_spill] sm:$0xff]  ;;  %v9605_v21 = vpop.permute.xlu0 %3841 }
 0x39b   :  { %4261 = vmatprep.mubr.bf16.mxu1 %v9513_v45  ;;  %v3648_v15 = vsel %vm3456_vm12, %v3352_v1, %v3552_v62  ;;  %vm3450_vm15 = vcmp.gt.f32.partialorder %v3344_v39, 0.0  ;;  %v3543_v36 = vmul.f32 0.2, %v3341_v58  ;;  %v3645_v14 = vsel %vm3453_vm8, %v3349_v42, %v3549_v55  ;;  %v11126_v1 = vld [vmem:[#allocation116_spill] sm:$0xff]  ;;  %v11131_v46 = vld [vmem:[#allocation41_spill] sm:$0xff]  ;;  %11144 = vst [vmem:[#allocation105_spill] sm:$0xff] %v9605_v21 }
 0x39c   :  { %5424 = vmatprep.subr.bf16.mxu0 %v3714_v6  ;;  %vm3447_vm13 = vcmp.gt.f32.partialorder %v3341_v58, 0.0  ;;  %v3705_v31 = vpack.c.bf16 %v3648_v15, %v3645_v14  ;;  %v3540_v40 = vmul.f32 0.2, %v3336_v20  ;;  %v11116_v2 = vpack.c.bf16 %v9299_v8, %v9297_v7  ;;  %v11136_v6 = vld [vmem:[#allocation92_spill] sm:$0xff]  ;;  %v11138_v42 = vld [vmem:[#allocation33_spill] sm:$0xff] }
 0x39d   :  { %5425 = vmatpush3.bf16.msra.mxu0 %v11113_v30  ;;  %v3642_v53 = vsel %vm3450_vm15, %v3344_v39, %v3546_v5  ;;  %vm3444_vm14 = vcmp.gt.f32.partialorder %v3336_v20, 0.0  ;;  %v3537_v63 = vmul.f32 0.2, %v9402_v44  ;;  %v3639_v13 = vsel %vm3447_vm13, %v3341_v58, %v3543_v36  ;;  %v9607_v39 = vpop.permute.xlu1 %3846  ;;  %v11147_v30 = vld [vmem:[#allocation112_spill] sm:$0xff]  ;;  %v11148_v35 = vld [vmem:[#allocation101_spill] sm:$0xff]  ;;  %v11156_v5 = vld [vmem:[#allocation94_spill] sm:$0xff] }
 0x39e   :  { %5426 = vmatprep.subr.bf16.mxu0 %v3711_v33  ;;  %v3702_v7 = vpack.c.bf16 %v3642_v53, %v3639_v13  ;;  %v11117_v8 = vpack.c.bf16 %v9274_v9, %v9272_v57  ;;  %v3636_v52 = vsel %vm3444_vm14, %v3336_v20, %v3540_v40  ;;  %v11118_v41 = vpack.c.bf16 %v9247_v51, %v9245_v23  ;;  %v11119_v57 = vld [vmem:[#allocation15_spill] sm:$0xff]  ;;  %v11128_v51 = vld [vmem:[#allocation42_spill] sm:$0xff]  ;;  %v11143_v33 = vld [vmem:[#allocation36_spill] sm:$0xff]  ;;  %v9609_v62 = vpop.permute.xlu0 %3831 }
 0x39f   :  { %v3633_v29 = vsel %vm3441_vm0, %v9402_v44, %v3537_v63  ;;  %v11120_v9 = vld [vmem:[#allocation83_spill] sm:$0xff]  ;;  %v11122_v44 = vld [vmem:[#allocation100_spill] sm:$0xff]  ;;  %v11127_v23 = vpack.c.bf16 %v11125_v43, %v11126_v1  ;;  %v11130_v24 = vpack.c.bf16 %v11128_v51, %v11129_v17  ;;  %v11133_v12 = vpack.c.bf16 %v11131_v46, %v11132_v19  ;;  %11145 = vst [vmem:[#allocation16_spill] sm:$0xff] %v9607_v39  ;;  %v11151_v58 = vld [vmem:[#allocation89_spill] sm:$0xff] }
 0x3a0   :  { %v3699_v61 = vpack.c.bf16 %v3636_v52, %v3633_v29  ;;  %v11121_v38 = vpack.c.bf16 %v11119_v57, %v11120_v9  ;;  %v11124_v16 = vpack.c.bf16 %v11122_v44, %v11123_v22  ;;  %11146 = vst [vmem:[#allocation20_spill] sm:$0xff] %v9609_v62  ;;  %v11152_v55 = vld [vmem:[#allocation40_spill] sm:$0xff]  ;;  %v11162_v40 = vld [vmem:[#allocation61_spill] sm:$0xff]  ;;  %v11166_v29 = vld [vmem:[#allocation102_spill] sm:$0xff] }
 0x3a1   :  { %5427 = vmatpush3.bf16.msra.mxu0 %v11115_v59  ;;  %v9613_v48 = vpop.permute.xlu1 %3836  ;;  %v11157_v59 = vld [vmem:[#allocation49_spill] sm:$0xff]  ;;  %v11170_v19 = vld [vmem:[#allocation104_spill] sm:$0xff] }
 0x3a2   :  { %4262 = vmatmul.mubr.bf16.gmra.mxu1 %v9535_v37  ;;  %5428 = vmatprep.subr.bf16.mxu0 %v3708_v18  ;;  %11149 = vst [vmem:[#allocation7_spill] sm:$0xff] %v9613_v48  ;;  %v9615_v11 = vpop.permute.xlu0 %3821 }
 0x3a3   :  { %4271 = vmatprep.mubr.bf16.mxu1 %v9541_v54  ;;  %11150 = vst [vmem:[#allocation9_spill] sm:$0xff] %v9615_v11 }
 0x3a5   :  { %5429 = vmatpush3.bf16.msra.mxu0 %v11116_v2  ;;  %v9619_v26 = vpop.permute.xlu1 %3826 }
 0x3a6   :  { %5430 = vmatprep.subr.bf16.mxu0 %v3705_v31  ;;  %11153 = vst [vmem:[#allocation17_spill] sm:$0xff] %v9619_v26  ;;  %v9621_v18 = vpop.permute.xlu0 %3811  ;;  %v11161_v31 = vld [vmem:[#allocation103_spill] sm:$0xff] }
 0x3a7   :  { %11154 = vst [vmem:[#allocation87_spill] sm:$0xff] %v9621_v18 }
 0x3a9   :  { %5431 = vmatpush3.bf16.msra.mxu0 %v11117_v8  ;;  %v9623_v20 = vpop.permute.xlu1 %3816  ;;  %v11165_v8 = vld [vmem:[#allocation99_spill] sm:$0xff] }
 0x3aa   :  { %4272 = vmatmul.mubr.bf16.gmra.mxu1 %v9554_v4  ;;  %5432 = vmatprep.subr.bf16.mxu0 %v3702_v7  ;;  %11155 = vst [vmem:[#allocation81_spill] sm:$0xff] %v9623_v20  ;;  %v9627_v15 = vpop.permute.xlu0 %3801 }
 0x3ab   :  { %4281 = vmatprep.mubr.bf16.mxu1 %v9560_v47  ;;  %11158 = vst [vmem:[#allocation78_spill] sm:$0xff] %v9627_v15 }
 0x3ad   :  { %5433 = vmatpush3.bf16.msra.mxu0 %v11118_v41  ;;  %v9629_v36 = vpop.permute.xlu1 %3806 }
 0x3ae   :  { %5434 = vmatprep.subr.bf16.mxu0 %v3699_v61  ;;  %11159 = vst [vmem:[#allocation45_spill] sm:$0xff] %v9629_v36  ;;  %v9631_v14 = vpop.permute.xlu0 %3791 }
 0x3af   :  { %11160 = vst [vmem:[#allocation71_spill] sm:$0xff] %v9631_v14 }
 0x3b1   :  { %5435 = vmatpush3.bf16.msra.mxu0 %v11121_v38  ;;  %v9635_v2 = vpop.permute.xlu1 %3796 }
 0x3b2   :  { %4282 = vmatmul.mubr.bf16.gmra.mxu1 %v9575_v10  ;;  %5436 = vmatprep.subr.bf16.mxu0 %v11124_v16  ;;  %11163 = vst [vmem:[#allocation28_spill] sm:$0xff] %v9635_v2  ;;  %v9637_v53 = vpop.permute.xlu0 %3781 }
 0x3b3   :  { %11164 = vst [vmem:[#allocation119_spill] sm:$0xff] %v9637_v53 }
 0x3b5   :  { %5437 = vmatpush3.bf16.msra.mxu0 %v11127_v23  ;;  %v9643_v61 = vpop.permute.xlu1 %3786 }
 0x3b6   :  { %5438 = vmatprep.subr.bf16.mxu0 %v11130_v24  ;;  %11167 = vst [vmem:[#allocation117_spill] sm:$0xff] %v9643_v61 }
 0x3b9   :  { %5439 = vmatpush3.bf16.msra.mxu0 %v11133_v12 }
 0x3bc   :  { %4325 = vmatmul.mubr.bf16.vlgmr.msra.gmra.mxu0 %v11134_v0  ;;  %v11171_v0 = vld [vmem:[#allocation23_spill] sm:$0xff] }
 0x3bd   :  { %4332 = vmatprep.mubr.bf16.mxu0 %v11135_v32 }
 0x3c4   :  { %4333 = vmatmul.mubr.bf16.gmra.mxu0 %v11136_v6 }
 0x3c5   :  { %4340 = vmatprep.mubr.bf16.mxu0 %v11137_v25 }
 0x3cc   :  { %4341 = vmatmul.mubr.bf16.gmra.mxu0 %v11138_v42 }
 0x3cd   :  { %4348 = vmatprep.mubr.bf16.mxu0 %v11139_v50 }
 0x3d4   :  { %4349 = vmatmul.mubr.bf16.gmra.mxu0 %v11142_v60 }
 0x3d5   :  { %4356 = vmatprep.mubr.bf16.mxu0 %v11143_v33 }
 0x3dc   :  { %4357 = vmatmul.mubr.bf16.gmra.mxu0 %v11147_v30 }
 0x3dd   :  { %4364 = vmatprep.mubr.bf16.mxu0 %v11148_v35 }
 0x3e4   :  { %4365 = vmatmul.mubr.bf16.gmra.mxu0 %v11151_v58 }
 0x3e5   :  { %4372 = vmatprep.mubr.bf16.mxu0 %v11152_v55 }
 0x3ec   :  { %4373 = vmatmul.mubr.bf16.gmra.mxu0 %v11156_v5 }
 0x3ed   :  { %4380 = vmatprep.mubr.bf16.mxu0 %v11157_v59 }
 0x3f4   :  { %4381 = vmatmul.mubr.bf16.gmra.mxu0 %v11161_v31 }
 0x3f5   :  { %4388 = vmatprep.mubr.bf16.mxu0 %v11162_v40 }
 0x3fa   :  { %v4133_v63 = vpop.f32.mrf.mxu1 }
 0x3fb   :  { %v4134_v13 = vadd.f32 %v4133_v63, %v9637_v53 }
 0x3fc   :  { %v4135_v7 = vpop.f32.mrf.mxu1  ;;  %4389 = vmatmul.mubr.bf16.gmra.mxu0 %v11165_v8 }
 0x3fd   :  { %v4136_v52 = vadd.f32 %v4135_v7, %v9637_v53  ;;  %4396 = vmatprep.mubr.bf16.mxu0 %v11166_v29  ;;  %v4549_v41 = vmul.f32 0.2, %v4134_v13  ;;  %vm4453_vm2 = vcmp.gt.f32.partialorder %v4134_v13, 0.0 }
 0x3fe   :  { %v4137_v57 = vpop.f32.mrf.mxu1 }
 0x3ff   :  { %v4138_v9 = vadd.f32 %v4137_v57, %v9643_v61  ;;  %v4550_v44 = vmul.f32 0.2, %v4136_v52  ;;  %v9647_v43 = vsel %vm4453_vm2, %v4134_v13, %v4549_v41  ;;  %vm4454_vm3 = vcmp.gt.f32.partialorder %v4136_v52, 0.0  ;;  %v11173_v13 = vld [vmem:[#allocation74_spill] sm:$0xff]  ;;  %v9679_v41 = vpop.permute.xlu0 %3931 }
 0x400   :  { %v4139_v38 = vpop.f32.mrf.mxu1  ;;  %11168 = vst [vmem:[#allocation66_spill] sm:$0xff] %v9647_v43  ;;  %11174 = vst [vmem:[#allocation43_spill] sm:$0xff] %v9679_v41 }
 0x401   :  { %vm4456_vm1 = vcmp.gt.f32.partialorder %v4138_v9, 0.0  ;;  %v4552_v22 = vmul.f32 0.2, %v4138_v9  ;;  %v4140_v16 = vadd.f32 %v4139_v38, %v9643_v61  ;;  %v9657_v32 = vsel %vm4454_vm3, %v4136_v52, %v4550_v44  ;;  %v9681_v38 = vpop.permute.xlu1 %3936 }
 0x402   :  { %v4143_v1 = vpop.f32.mrf.mxu1  ;;  %11172 = vst [vmem:[#allocation69_spill] sm:$0xff] %v9657_v32  ;;  %11175 = vst [vmem:[#allocation67_spill] sm:$0xff] %v9681_v38 }
 0x403   :  { %v9649_v23 = vsel %vm4456_vm1, %v4138_v9, %v4552_v22  ;;  %vm4457_vm4 = vcmp.gt.f32.partialorder %v4140_v16, 0.0  ;;  %v4553_v51 = vmul.f32 0.2, %v4140_v16  ;;  %v4144_v17 = vadd.f32 %v4143_v1, %v9631_v14 }
 0x404   :  { %11169 = vst [vmem:[#allocation35_spill] sm:$0xff] %v9649_v23  ;;  %v4145_v46 = vpop.f32.mrf.mxu1  ;;  %4397 = vmatmul.mubr.bf16.gmra.mxu0 %v11170_v19  ;;  %v5862_v19 = vmov 1966171168  }
 0x405   :  { %v4146_v12 = vadd.f32 %v4145_v46, %v9631_v14  ;;  %4404 = vmatprep.mubr.bf16.mxu0 %v11171_v0  ;;  %v9659_v6 = vsel %vm4457_vm4, %v4140_v16, %v4553_v51  ;;  %v4555_v50 = vmul.f32 0.2, %v4144_v17  ;;  %vm4459_vm5 = vcmp.gt.f32.partialorder %v4144_v17, 0.0  ;;  %v9687_v1 = vpop.permute.xlu1 %3926 }
 0x406   :  { %v4147_v25 = vpop.f32.mrf.mxu1  ;;  %11177 = vst [vmem:[#allocation63_spill] sm:$0xff] %v9687_v1 }
 0x407   :  { %v4148_v60 = vadd.f32 %v4147_v25, %v9635_v2  ;;  %v4556_v30 = vmul.f32 0.2, %v4146_v12  ;;  %vm4460_vm7 = vcmp.gt.f32.partialorder %v4146_v12, 0.0  ;;  %v9665_v5 = vsel %vm4459_vm5, %v4144_v17, %v4555_v50 }
 0x408   :  { %v4149_v33 = vpop.f32.mrf.mxu1 }
 0x409   :  { %vm4462_vm6 = vcmp.gt.f32.partialorder %v4148_v60, 0.0  ;;  %v4558_v35 = vmul.f32 0.2, %v4148_v60  ;;  %v4150_v58 = vadd.f32 %v4149_v33, %v9635_v2  ;;  %v9673_v7 = vsel %vm4460_vm7, %v4146_v12, %v4556_v30 }
 0x40a   :  { %v4153_v55 = vpop.f32.mrf.mxu1  ;;  %v4810_v12 = vunpack.c.l.s4 %v5862_v19 }
 0x40b   :  { %v9667_v59 = vsel %vm4462_vm6, %v4148_v60, %v4558_v35  ;;  %vm4463_vm9 = vcmp.gt.f32.partialorder %v4150_v58, 0.0  ;;  %v4559_v31 = vmul.f32 0.2, %v4150_v58 }
 0x40c   :  { %v4155_v63 = vpop.f32.mrf.mxu1  ;;  %4405 = vmatmul.mubr.bf16.gmra.mxu0 %v11173_v13  ;;  %v4811_v60 = vunpack.c.0.s8 %v4810_v12 }
 0x40d   :  { %4412 = vmatprep.mubr.bf16.mxu0 %v9470_v27  ;;  %v9675_v8 = vsel %vm4463_vm9, %v4150_v58, %v4559_v31  ;;  %v9685_v27 = vpop.permute.xlu0 %3921  ;;  %v9710_v31 = vld.sshfl [vmem:[%s10258_s7] sm:$0x11 pattern:$0x75316420]  ;;  %v9724_v24 = vadd.f32 %v4155_v63, %v9627_v15  ;;  %s5863_s7 = smov [#allocation3]  }
 0x40e   :  { %v4157_v52 = vpop.f32.mrf.mxu1  ;;  %11176 = vst [vmem:[#allocation39_spill] sm:$0xff] %v9685_v27  ;;  %11184 = vst [vmem:[#allocation54_spill] sm:$0xff] %v9710_v31  ;;  %v4808_v12 = vcombine.high %v9710_v31, %v9710_v31  ;;  %s4959_s2 = sshll.u32 %s5863_s7, 4  ;;  %s4960_s2 = int_to_ptr.vmem [resolvable:$true] %s4959_s2 }
 0x40f   :  { %s5839_s23 = scalar_lea.vmem %s4960_s2, 48  ;;  %s5843_s4 = scalar_lea.vmem %s4960_s2, 64 }
 0x410   :  { %v4159_v57 = vpop.f32.mrf.mxu1  ;;  %p5840_p0 = scmp.ne.s32.totalorder %s4960_s2, %s5839_s23  ;;  %p5844_p1 = scmp.lt.s32.totalorder %s4960_s2, %s4960_s2 }
 0x411   :  { %v9689_v17 = vpop.permute.xlu0 %3911  ;;  %v9730_v40 = vadd.f32 %v4159_v57, %v9629_v36  ;;  %v9748_v57 = vadd.f32 %v4157_v52, %v9629_v36  ;;  %p5845_p2 = scmp.lt.s32.totalorder %s5843_s4, %s5839_s23 }
 0x412   :  { %v4163_v9 = vpop.f32.mrf.mxu1  ;;  %11178 = vst [vmem:[#allocation88_spill] sm:$0xff] %v9689_v17 }
 0x413   :  { %p5846_p3 = por %p5845_p2, %p5844_p1 }
 0x414   :  { %v4165_v44 = vpop.f32.mrf.mxu1  ;;  %4413 = vmatmul.mubr.bf16.gmra.mxu0 %v9478_v49  ;;  %v9693_v49 = vpop.permute.xlu1 %3916 }
 0x415   :  { %4420 = vmatprep.mubr.bf16.mxu0 %v9484_v28  ;;  %11179 = vst [vmem:[#allocation68_spill] sm:$0xff] %v9693_v49  ;;  %v10458_v28 = vlaneseq  ;;  %v9695_v50 = vpop.permute.xlu0 %3901  ;;  %p5847_p4 = pnand %p5846_p3, %p5840_p0 }
 0x416   :  { %v4167_v22 = vpop.f32.mrf.mxu1  ;;  %11180 = vst [vmem:[#allocation44_spill] sm:$0xff] %v9695_v50 }
 0x417   :  { %v9698_v30 = vshrl.u32 %v10458_v28, 7 }
 0x418   :  { %v4169_v16 = vpop.f32.mrf.mxu1 }
 0x419   :  { %11181 = vst [vmem:[#allocation58_spill] sm:$0xff] %v9698_v30  ;;  %v9712_v13 = vpop.permute.xlu0 %3891 }
 0x41a   :  { %v4173_v51 = vpop.f32.mrf.mxu1  ;;  %11185 = vst [vmem:[#allocation53_spill] sm:$0xff] %v9712_v13 }
 0x41b   :  { %v9742_v63 = vadd.f32 %v4173_v51, %v9615_v11  ;;  %v9762_v51 = vadd.f32 %v4163_v9, %v9621_v18 }
 0x41c   :  { %v4175_v46 = vpop.f32.mrf.mxu1  ;;  %4421 = vmatmul.mubr.bf16.gmra.mxu0 %v9508_v56  ;;  %v9702_v56 = vpop.permute.xlu1 %3906 }
 0x41d   :  { %4428 = vmatprep.mubr.bf16.mxu0 %v9513_v45  ;;  %11182 = vst [vmem:[#allocation125_spill] sm:$0xff] %v9702_v56  ;;  %v9705_v45 = vsub.s32 %v4811_v60, %v9698_v30  ;;  %v9727_v42 = vpop.permute.xlu0 %3881  ;;  %v9736_v30 = vadd.f32 %v4153_v55, %v9627_v15  ;;  %v9751_v31 = vadd.f32 %v4175_v46, %v9615_v11  ;;  %vm4477_vm9 = vcmp.gt.f32.partialorder %v9742_v63, 0.0 }
 0x41e   :  { %v4177_v0 = vpop.f32.mrf.mxu1  ;;  %11188 = vst [vmem:[#allocation77_spill] sm:$0xff] %v9727_v42 }
 0x41f   :  { %11183 = vst [vmem:[#allocation124_spill] sm:$0xff] %v9705_v45  ;;  %vm4478_vm2 = vcmp.gt.f32.partialorder %v9751_v31, 0.0 }
 0x420   :  { %v4179_v25 = vpop.f32.mrf.mxu1  ;;  %v9719_v28 = vpop.permute.xlu1 %3896 }
 0x421   :  { %11187 = vst [vmem:[#allocation64_spill] sm:$0xff] %v9719_v28  ;;  %v9782_v9 = vpop.permute.xlu0 %3871 }
 0x422   :  { %v4183_v33 = vpop.f32.mrf.mxu1 }
 0x423   :  { %v9768_v52 = vadd.f32 %v4183_v33, %v9609_v62  ;;  %v9788_v33 = vmul.f32 0.2, %v9742_v63 }
 0x424   :  { %v4185_v35 = vpop.f32.mrf.mxu1  ;;  %4429 = vmatmul.mubr.bf16.gmra.mxu0 %v9535_v37  ;;  %v9756_v55 = vpop.permute.xlu1 %3886 }
 0x425   :  { %4436 = vmatprep.mubr.bf16.mxu0 %v9541_v54  ;;  %v9717_v54 = vrot.slane %v4808_v12, %v9705_v45  ;;  %v9733_v12 = vadd.f32 %v4165_v44, %v9621_v18  ;;  %v9754_v44 = vadd.f32 %v4177_v0, %v9619_v26  ;;  %11189 = vst [vmem:[#allocation12_spill] sm:$0xff] %v9756_v55  ;;  %v9823_v27 = vpop.permute.xlu0 %3861  ;;  %vm4483_vm1 = vcmp.gt.f32.partialorder %v9768_v52, 0.0 }
 0x426   :  { %v4187_v58 = vpop.f32.mrf.mxu1  ;;  %v9765_v45 = vadd.f32 %v4179_v25, %v9619_v26  ;;  %v9774_v0 = vadd.f32 %v4167_v22, %v9623_v20  ;;  %v9777_v11 = vadd.f32 %v4185_v35, %v9609_v62  ;;  %v9794_v35 = vmul.f32 0.2, %v9751_v31 }
 0x427   :  { %11186 = vst [vmem:[#allocation90_spill] sm:$0xff] %v9717_v54  ;;  %4857 = vmatprep.mubr.bf16.mxu1 %v9717_v54  ;;  %v9771_v46 = vmul.f32 0.2, %v9733_v12  ;;  %v9800_v62 = vadd.f32 %v4187_v58, %v9613_v48 }
 0x428   :  { %v4189_v19 = vpop.f32.mrf.mxu1  ;;  %v9804_v2 = vmul.f32 0.2, %v9765_v45  ;;  %vm4484_vm10 = vcmp.gt.f32.partialorder %v9777_v11, 0.0  ;;  %v9813_v61 = vmul.f32 0.2, %v9777_v11  ;;  %vm4481_vm13 = vcmp.gt.f32.partialorder %v9765_v45, 0.0 }
 0x429   :  { %v9780_v15 = vadd.f32 %v4189_v19, %v9613_v48  ;;  %v9797_v19 = vmul.f32 0.2, %v9754_v44  ;;  %v9818_v48 = vpop.permute.xlu1 %3876  ;;  %vm4486_vm8 = vcmp.gt.f32.partialorder %v9800_v62, 0.0 }
 0x42a   :  { %v4193_v37 = vpop.f32.mrf.mxu1 }
 0x42b   :  { %vm4487_vm11 = vcmp.gt.f32.partialorder %v9780_v15, 0.0  ;;  %v4583_v58 = vmul.f32 0.2, %v9780_v15  ;;  %v4194_v53 = vadd.f32 %v4193_v37, %v9605_v21 }
 0x42c   :  { %v4195_v60 = vpop.f32.mrf.mxu1  ;;  %4437 = vmatmul.mubr.bf16.gmra.mxu0 %v9554_v4  ;;  %v9739_v4 = vadd.f32 %v4169_v16, %v9623_v20  ;;  %v9759_v16 = vmul.f32 0.2, %v9730_v40 }
 0x42d   :  { %4444 = vmatprep.mubr.bf16.mxu0 %v9560_v47  ;;  %v9745_v47 = vmul.f32 0.2, %v9724_v24  ;;  %v4196_v26 = vadd.f32 %v4195_v60, %v9605_v21  ;;  %v9807_v60 = vmul.f32 0.2, %v9768_v52  ;;  %vm4489_vm5 = vcmp.gt.f32.partialorder %v4194_v53, 0.0  ;;  %v9835_v55 = vpop.permute.xlu1 %3866 }
 0x42e   :  { %v4197_v29 = vpop.f32.mrf.mxu1  ;;  %v9785_v25 = vmul.f32 0.2, %v9739_v4 }
 0x42f   :  { %vm4490_vm12 = vcmp.gt.f32.partialorder %v4196_v26, 0.0 }
 0x430   :  { %v4199_v54 = vpop.f32.mrf.mxu1 }
 0x431   :  { %v4200_v18 = vadd.f32 %v4199_v54, %v9607_v39  ;;  %v4198_v54 = vadd.f32 %v4197_v29, %v9607_v39  ;;  %v4586_v29 = vmul.f32 0.2, %v4196_v26 }
 0x432   :  { %v4203_v36 = vpop.f32.mrf.mxu1 }
 0x433   :  { %v4589_v39 = vmul.f32 0.2, %v4200_v18  ;;  %vm4493_vm14 = vcmp.gt.f32.partialorder %v4200_v18, 0.0  ;;  %vm4492_vm6 = vcmp.gt.f32.partialorder %v4198_v54, 0.0 }
 0x434   :  { %v4205_v22 = vpop.f32.mrf.mxu1  ;;  %4445 = vmatmul.mubr.bf16.gmra.mxu0 %v9575_v10  ;;  %v4204_v10 = vadd.f32 %v4203_v36, %v9599_v34 }
 0x435   :  { %v4206_v20 = vadd.f32 %v4205_v22, %v9599_v34  ;;  %v4685_v13 = vsel %vm4493_vm14, %v4200_v18, %v4589_v39 }
 0x436   :  { %v4207_v14 = vpop.f32.mrf.mxu1  ;;  %v4591_v56 = vmul.f32 0.2, %v4204_v10  ;;  %vm4495_vm3 = vcmp.gt.f32.partialorder %v4204_v10, 0.0 }
 0x437   :  { %v4208_v22 = vadd.f32 %v4207_v14, %v9601_v3  ;;  %v4592_v34 = vmul.f32 0.2, %v4206_v20  ;;  %v4588_v14 = vmul.f32 0.2, %v4198_v54  ;;  %vm4496_vm0 = vcmp.gt.f32.partialorder %v4206_v20, 0.0 }
 0x438   :  { %v4209_v36 = vpop.f32.mrf.mxu1 }
 0x439   :  { %vm4498_vm15 = vcmp.gt.f32.partialorder %v4208_v22, 0.0  ;;  %v4594_v49 = vmul.f32 0.2, %v4208_v22  ;;  %v4210_v38 = vadd.f32 %v4209_v36, %v9601_v3  ;;  %v4585_v36 = vmul.f32 0.2, %v4194_v53 }
 0x43a   :  { %v4213_v37 = vpop.f32.mrf.mxu1  ;;  %v4688_v17 = vsel %vm4496_vm0, %v4206_v20, %v4592_v34  ;;  %vm4469_vm0 = vcmp.gt.f32.partialorder %v9730_v40, 0.0 }
 0x43b   :  { %vm4499_vm4 = vcmp.gt.f32.partialorder %v4210_v38, 0.0  ;;  %v4595_v21 = vmul.f32 0.2, %v4210_v38  ;;  %v4214_v41 = vadd.f32 %v4213_v37, %v9823_v27  ;;  %v4690_v3 = vsel %vm4498_vm15, %v4208_v22, %v4594_v49 }
 0x43c   :  { %v4215_v50 = vpop.f32.mrf.mxu1  ;;  %v4687_v37 = vsel %vm4495_vm3, %v4204_v10, %v4591_v56  ;;  %v4682_v49 = vsel %vm4490_vm12, %v4196_v26, %v4586_v29  ;;  %vm4472_vm15 = vcmp.gt.f32.partialorder %v9733_v12, 0.0  ;;  %v4684_v22 = vsel %vm4492_vm6, %v4198_v54, %v4588_v14 }
 0x43d   :  { %v4216_v1 = vadd.f32 %v4215_v50, %v9823_v27  ;;  %v4691_v28 = vsel %vm4499_vm4, %v4210_v38, %v4595_v21  ;;  %v4597_v42 = vmul.f32 0.2, %v4214_v41  ;;  %v4762_v32 = vpack.c.bf16 %v4690_v3, %v4687_v37 }
 0x43e   :  { %v4217_v43 = vpop.f32.mrf.mxu1  ;;  %v4763_v23 = vpack.c.bf16 %v4691_v28, %v4688_v17  ;;  %vm4501_vm7 = vcmp.gt.f32.partialorder %v4214_v41, 0.0  ;;  %v4582_v21 = vmul.f32 0.2, %v9800_v62  ;;  %v4681_v39 = vsel %vm4489_vm5, %v4194_v53, %v4585_v36 }
 0x43f   :  { %v4218_v34 = vadd.f32 %v4217_v43, %v9835_v55  ;;  %v4760_v20 = vpack.c.bf16 %v4685_v13, %v4682_v49  ;;  %v4679_v38 = vsel %vm4487_vm11, %v9780_v15, %v4583_v58  ;;  %vm4474_vm12 = vcmp.gt.f32.partialorder %v9774_v0, 0.0 }
 0x440   :  { %v4219_v18 = vpop.f32.mrf.mxu1  ;;  %4825 = vmatprep.subr.bf16.mxu1 %v4763_v23  ;;  %v4598_v26 = vmul.f32 0.2, %v4216_v1  ;;  %v4759_v43 = vpack.c.bf16 %v4684_v22, %v4681_v39  ;;  %v9851_v53 = vsel %vm4501_vm7, %v4214_v41, %v4597_v42  ;;  %vm4502_vm3 = vcmp.gt.f32.partialorder %v4216_v1, 0.0 }
 0x441   :  { %vm4504_vm14 = vcmp.gt.f32.partialorder %v4218_v34, 0.0  ;;  %v4600_v17 = vmul.f32 0.2, %v4218_v34  ;;  %v4220_v3 = vadd.f32 %v4219_v18, %v9835_v55  ;;  %4826 = vmatpush1.bf16.msra.mxu1 %v4762_v32  ;;  %v4676_v15 = vsel %vm4484_vm10, %v9777_v11, %v9813_v61 }
 0x442   :  { %v4223_v23 = vpop.f32.mrf.mxu1  ;;  %4827 = vmatprep.subr.bf16.mxu1 %v4760_v20  ;;  %vm4471_vm11 = vcmp.gt.f32.partialorder %v9762_v51, 0.0  ;;  %vm4466_vm5 = vcmp.gt.f32.partialorder %v9724_v24, 0.0  ;;  %vm4480_vm6 = vcmp.gt.f32.partialorder %v9754_v44, 0.0  ;;  %v4678_v42 = vsel %vm4486_vm8, %v9800_v62, %v4582_v21 }
 0x443   :  { %v9858_v28 = vsel %vm4504_vm14, %v4218_v34, %v4600_v17  ;;  %vm4505_vm4 = vcmp.gt.f32.partialorder %v4220_v3, 0.0  ;;  %v4601_v32 = vmul.f32 0.2, %v4220_v3  ;;  %v4224_v50 = vadd.f32 %v4223_v23, %v9782_v9 }
 0x444   :  { %v4225_v11 = vpop.f32.mrf.mxu1  ;;  %v4757_v61 = vpack.c.bf16 %v4679_v38, %v4676_v15  ;;  %v4673_v13 = vsel %vm4481_vm13, %v9765_v45, %v9804_v2  ;;  %v9874_v54 = vsel %vm4502_vm3, %v4216_v1, %v4598_v26  ;;  %v4570_v62 = vmul.f32 0.2, %v9774_v0 }
 0x445   :  { %v4226_v56 = vadd.f32 %v4225_v11, %v9782_v9  ;;  %4828 = vmatpush1.bf16.msra.mxu1 %v4759_v43  ;;  %v9876_v10 = vsel %vm4505_vm4, %v4220_v3, %v4601_v32  ;;  %v4675_v58 = vsel %vm4483_vm1, %v9768_v52, %v9807_v60  ;;  %v4670_v14 = vsel %vm4478_vm2, %v9751_v31, %v9794_v35 }
 0x446   :  { %v4227_v29 = vpop.f32.mrf.mxu1  ;;  %4829 = vmatprep.subr.bf16.mxu1 %v4757_v61  ;;  %v4672_v1 = vsel %vm4480_vm6, %v9754_v44, %v9797_v19  ;;  %v4756_v45 = vpack.c.bf16 %v4678_v42, %v4675_v58  ;;  %v4603_v36 = vmul.f32 0.2, %v4224_v50  ;;  %v4669_v52 = vsel %vm4477_vm9, %v9742_v63, %v9788_v33 }
 0x447   :  { %v4228_v37 = vadd.f32 %v4227_v29, %v9818_v48  ;;  %vm4507_vm10 = vcmp.gt.f32.partialorder %v4224_v50, 0.0  ;;  %v4754_v31 = vpack.c.bf16 %v4673_v13, %v4670_v14  ;;  %vm11190_vm8 = vcmp.gt.f32.partialorder %v9739_v4, 0.0  ;;  %v11195_v29 = vld [vmem:[#allocation35_spill] sm:$0xff]  ;;  %v11196_v14 = vld [vmem:[#allocation66_spill] sm:$0xff] }
 0x448   :  { %v4229_v60 = vpop.f32.mrf.mxu1  ;;  %v4667_v35 = vsel %vm11190_vm8, %v9739_v4, %v9785_v25  ;;  %v4604_v49 = vmul.f32 0.2, %v4226_v56  ;;  %v4567_v22 = vmul.f32 0.2, %v9762_v51  ;;  %v4753_v34 = vpack.c.bf16 %v4672_v1, %v4669_v52 }
 0x449   :  { %vm4510_vm13 = vcmp.gt.f32.partialorder %v4228_v37, 0.0  ;;  %v4606_v44 = vmul.f32 0.2, %v4228_v37  ;;  %v4230_v19 = vadd.f32 %v4229_v60, %v9818_v48  ;;  %4830 = vmatpush1.bf16.msra.mxu1 %v4756_v45  ;;  %vm4508_vm2 = vcmp.gt.f32.partialorder %v4226_v56, 0.0 }
 0x44a   :  { %v4233_v21 = vpop.f32.mrf.mxu1  ;;  %4831 = vmatprep.subr.bf16.mxu1 %v4754_v31  ;;  %v4664_v63 = vsel %vm4472_vm15, %v9733_v12, %v9771_v46  ;;  %v9908_v33 = vsel %vm4507_vm10, %v4224_v50, %v4603_v36  ;;  %v4564_v39 = vmul.f32 0.2, %v9748_v57  ;;  %v4666_v18 = vsel %vm4474_vm12, %v9774_v0, %v4570_v62 }
 0x44b   :  { %v9910_v4 = vsel %vm4510_vm13, %v4228_v37, %v4606_v44  ;;  %vm4511_vm1 = vcmp.gt.f32.partialorder %v4230_v19, 0.0  ;;  %v4607_v25 = vmul.f32 0.2, %v4230_v19  ;;  %v4751_v26 = vpack.c.bf16 %v4667_v35, %v4664_v63  ;;  %v11200_v44 = vld [vmem:[#allocation53_spill] sm:$0xff] }
 0x44c   :  { %v4235_v38 = vpop.f32.mrf.mxu1  ;;  %vm4468_vm7 = vcmp.gt.f32.partialorder %v9748_v57, 0.0  ;;  %v4661_v12 = vsel %vm4469_vm0, %v9730_v40, %v9759_v16  ;;  %v9924_v46 = vsel %vm4508_vm2, %v4226_v56, %v4604_v49  ;;  %v4561_v0 = vmul.f32 0.2, %v9736_v30  ;;  %v11199_v49 = vld [vmem:[#allocation12_spill] sm:$0xff] }
 0x44d   :  { %4832 = vmatpush1.bf16.msra.mxu1 %v4753_v34  ;;  %v9926_v17 = vsel %vm4511_vm1, %v4230_v19, %v4607_v25  ;;  %v4663_v3 = vsel %vm4471_vm11, %v9762_v51, %v4567_v22  ;;  %vm4465_vm9 = vcmp.gt.f32.partialorder %v9736_v30, 0.0  ;;  %v4658_v40 = vsel %vm4466_vm5, %v9724_v24, %v9745_v47  ;;  %v11201_v34 = vld [vmem:[#allocation64_spill] sm:$0xff] }
 0x44e   :  { %v4237_v43 = vpop.f32.mrf.mxu1  ;;  %4833 = vmatprep.subr.bf16.mxu1 %v4751_v26  ;;  %v4750_v15 = vpack.c.bf16 %v4666_v18, %v4663_v3  ;;  %v4660_v16 = vsel %vm4468_vm7, %v9748_v57, %v4564_v39  ;;  %v4748_v50 = vpack.c.bf16 %v4661_v12, %v4658_v40  ;;  %v4657_v51 = vsel %vm4465_vm9, %v9736_v30, %v4561_v0  ;;  %v11193_v57 = vld [vmem:[#allocation69_spill] sm:$0xff]  ;;  %v11202_v26 = vld [vmem:[#allocation88_spill] sm:$0xff] }
 0x44f   :  { %v4747_v11 = vpack.c.bf16 %v4660_v16, %v4657_v51  ;;  %v11191_v13 = vpack.c.bf16 %v9675_v8, %v9673_v7  ;;  %v11192_v24 = vpack.c.bf16 %v9667_v59, %v9665_v5  ;;  %v11194_v58 = vpack.c.bf16 %v9659_v6, %v11193_v57  ;;  %v11198_v59 = vld [vmem:[#allocation77_spill] sm:$0xff] }
 0x450   :  { %v4239_v32 = vpop.f32.mrf.mxu1  ;;  %v11197_v1 = vpack.c.bf16 %v11195_v29, %v11196_v14  ;;  %v9954_v35 = vadd.f32 %v4235_v38, %v11198_v59  ;;  %v9966_v39 = vadd.f32 %v4233_v21, %v11198_v59  ;;  %v9972_v38 = vadd.f32 %v4237_v43, %v11199_v49  ;;  %v11203_v21 = vld [vmem:[#allocation63_spill] sm:$0xff] }
 0x451   :  { %4834 = vmatpush1.bf16.msra.mxu1 %v4750_v15  ;;  %v9957_v6 = vadd.f32 %v4239_v32, %v11199_v49  ;;  %v11207_v29 = vld [vmem:[#allocation39_spill] sm:$0xff] }
 0x452   :  { %v4243_v42 = vpop.f32.mrf.mxu1  ;;  %4835 = vmatprep.subr.bf16.mxu1 %v4748_v50  ;;  %v9969_v18 = vmul.f32 0.2, %v9954_v35  ;;  %v11204_v50 = vld [vmem:[#allocation44_spill] sm:$0xff]  ;;  %vm4514_vm9 = vcmp.gt.f32.partialorder %v9954_v35, 0.0 }
 0x453   :  { %v9978_v0 = vmul.f32 0.2, %v9957_v6  ;;  %v9981_v3 = vadd.f32 %v4243_v42, %v11200_v44 }
 0x454   :  { %v4245_v61 = vpop.f32.mrf.mxu1 }
 0x455   :  { %4836 = vmatpush1.bf16.msra.mxu1 %v4747_v11  ;;  %v9960_v19 = vadd.f32 %v4245_v61, %v11200_v44  ;;  %v11205_v11 = vld [vmem:[#allocation43_spill] sm:$0xff] }
 0x456   :  { %v4247_v56 = vpop.f32.mrf.mxu1  ;;  %4837 = vmatprep.subr.bf16.mxu1 %v11191_v13  ;;  %v11206_v13 = vld [vmem:[#allocation125_spill] sm:$0xff] }
 0x457   :  { %v9984_v15 = vmul.f32 0.2, %v9960_v19  ;;  %v9988_v32 = vadd.f32 %v4247_v56, %v11201_v34  ;;  %vm4520_vm13 = vcmp.gt.f32.partialorder %v9960_v19, 0.0 }
 0x458   :  { %v4249_v62 = vpop.f32.mrf.mxu1 }
 0x459   :  { %4838 = vmatpush1.bf16.msra.mxu1 %v11192_v24  ;;  %v9963_v63 = vadd.f32 %v4249_v62, %v11201_v34 }
 0x45a   :  { %v4253_v47 = vpop.f32.mrf.mxu1  ;;  %4839 = vmatprep.subr.bf16.mxu1 %v11194_v58 }
 0x45b   :  { %v9991_v43 = vmul.f32 0.2, %v9963_v63  ;;  %v9994_v51 = vadd.f32 %v4253_v47, %v11204_v50  ;;  %vm4523_vm6 = vcmp.gt.f32.partialorder %v9963_v63, 0.0 }
 0x45c   :  { %v4255_v30 = vpop.f32.mrf.mxu1 }
 0x45d   :  { %4840 = vmatpush1.bf16.msra.mxu1 %v11197_v1  ;;  %v9998_v42 = vadd.f32 %v4255_v30, %v11204_v50  ;;  %v11208_v1 = vld [vmem:[#allocation67_spill] sm:$0xff] }
 0x45e   :  { %v4257_v45 = vpop.f32.mrf.mxu1 }
 0x45f   :  { %v10001_v62 = vadd.f32 %v4257_v45, %v11206_v13  ;;  %vm4526_vm0 = vcmp.gt.f32.partialorder %v9998_v42, 0.0 }
 0x460   :  { %v4259_v36 = vpop.f32.mrf.mxu1 }
 0x461   :  { %v10004_v24 = vadd.f32 %v4259_v36, %v11206_v13 }
 0x462   :  { %v4263_v37 = vpop.f32.mrf.mxu1 }
 0x463   :  { %v10008_v58 = vadd.f32 %v4263_v37, %v11202_v26  ;;  %vm4529_vm7 = vcmp.gt.f32.partialorder %v10004_v24, 0.0 }
 0x464   :  { %v4265_v7 = vpop.f32.mrf.mxu1 }
 0x465   :  { %v9975_v12 = vadd.f32 %v4265_v7, %v11202_v26  ;;  %v11209_v7 = vld [vmem:[#allocation68_spill] sm:$0xff] }
 0x466   :  { %v4267_v8 = vpop.f32.mrf.mxu1 }
 0x467   :  { %v10011_v47 = vmul.f32 0.2, %v9975_v12  ;;  %vm4532_vm2 = vcmp.gt.f32.partialorder %v9975_v12, 0.0 }
 0x468   :  { %v4269_v52 = vpop.f32.mrf.mxu1 }
 0x469   :  { %v4270_v45 = vadd.f32 %v4269_v52, %v11209_v7 }
 0x46a   :  { %v4273_v60 = vpop.f32.mrf.mxu1 }
 0x46b   :  { %v4274_v20 = vadd.f32 %v4273_v60, %v11207_v29  ;;  %vm4535_vm10 = vcmp.gt.f32.partialorder %v4270_v45, 0.0 }
 0x46c   :  { %v4275_v31 = vpop.f32.mrf.mxu1 }
 0x46d   :  { %v4276_v14 = vadd.f32 %v4275_v31, %v11207_v29  ;;  %v4633_v60 = vmul.f32 0.2, %v4274_v20  ;;  %vm4537_vm8 = vcmp.gt.f32.partialorder %v4274_v20, 0.0 }
 0x46e   :  { %v4277_v5 = vpop.f32.mrf.mxu1 }
 0x46f   :  { %v4278_v36 = vadd.f32 %v4277_v5, %v11203_v21  ;;  %vm4538_vm4 = vcmp.gt.f32.partialorder %v4276_v14, 0.0 }
 0x470   :  { %v4279_v22 = vpop.f32.mrf.mxu1 }
 0x471   :  { %v4280_v40 = vadd.f32 %v4279_v22, %v11203_v21  ;;  %v10016_v22 = vadd.f32 %v4267_v8, %v11209_v7  ;;  %v4634_v8 = vmul.f32 0.2, %v4276_v14  ;;  %v4636_v5 = vmul.f32 0.2, %v4278_v36 }
 0x472   :  { %v4283_v25 = vpop.f32.mrf.mxu1  ;;  %vm4540_vm5 = vcmp.gt.f32.partialorder %v4278_v36, 0.0 }
 0x473   :  { %v4284_v56 = vadd.f32 %v4283_v25, %v11205_v11  ;;  %vm4541_vm12 = vcmp.gt.f32.partialorder %v4280_v40, 0.0  ;;  %v4730_v7 = vsel %vm4538_vm4, %v4276_v14, %v4634_v8  ;;  %vm4534_vm1 = vcmp.gt.f32.partialorder %v10016_v22, 0.0 }
 0x474   :  { %v4285_v16 = vpop.f32.mrf.mxu1  ;;  %vm4522_vm4 = vcmp.gt.f32.partialorder %v9988_v32, 0.0 }
 0x475   :  { %v4286_v61 = vadd.f32 %v4285_v16, %v11205_v11  ;;  %v4637_v16 = vmul.f32 0.2, %v4280_v40  ;;  %v4639_v31 = vmul.f32 0.2, %v4284_v56  ;;  %vm4543_vm3 = vcmp.gt.f32.partialorder %v4284_v56, 0.0 }
 0x476   :  { %v4287_v57 = vpop.f32.mrf.mxu1 }
 0x477   :  { %v4288_v30 = vadd.f32 %v4287_v57, %v11208_v1  ;;  %v4640_v41 = vmul.f32 0.2, %v4286_v61  ;;  %vm4544_vm14 = vcmp.gt.f32.partialorder %v4286_v61, 0.0  ;;  %v4631_v57 = vmul.f32 0.2, %v4270_v45 }
 0x478   :  { %v4289_v25 = vpop.f32.mrf.mxu1  ;;  %v4735_v34 = vsel %vm4543_vm3, %v4284_v56, %v4639_v31  ;;  %v4625_v56 = vmul.f32 0.2, %v10004_v24 }
 0x479   :  { %vm4546_vm15 = vcmp.gt.f32.partialorder %v4288_v30, 0.0  ;;  %v4642_v37 = vmul.f32 0.2, %v4288_v30  ;;  %v4290_v2 = vadd.f32 %v4289_v25, %v11208_v1  ;;  %v4736_v49 = vsel %vm4544_vm14, %v4286_v61, %v4640_v41 }
 0x47a   :  { %v4733_v25 = vsel %vm4541_vm12, %v4280_v40, %v4637_v16  ;;  %v4630_v41 = vmul.f32 0.2, %v10016_v22  ;;  %vm4525_vm12 = vcmp.gt.f32.partialorder %v9994_v51, 0.0  ;;  %vm4528_vm14 = vcmp.gt.f32.partialorder %v10001_v62, 0.0  ;;  %v11211_v16 = vld [vmem:[#allocation117_spill] sm:$0xff] }
 0x47b   :  { %vm4547_vm11 = vcmp.gt.f32.partialorder %v4290_v2, 0.0  ;;  %v4643_v52 = vmul.f32 0.2, %v4290_v2  ;;  %v4738_v23 = vsel %vm4546_vm15, %v4288_v30, %v4642_v37  ;;  %v4784_v61 = vpack.c.bf16 %v4733_v25, %v4730_v7 }
 0x47c   :  { %v5440_v59 = vpop.f32.mrf.mxu0  ;;  %v4786_v26 = vpack.c.bf16 %v4738_v23, %v4735_v34  ;;  %v4627_v34 = vmul.f32 0.2, %v10008_v58  ;;  %vm4531_vm15 = vcmp.gt.f32.partialorder %v10008_v58, 0.0  ;;  %v4618_v25 = vmul.f32 0.2, %v9988_v32 }
 0x47d   :  { %v4739_v44 = vsel %vm4547_vm11, %v4290_v2, %v4643_v52  ;;  %v4732_v2 = vsel %vm4540_vm5, %v4278_v36, %v4636_v5  ;;  %vm4519_vm5 = vcmp.gt.f32.partialorder %v9981_v3, 0.0 }
 0x47e   :  { %v5441_v50 = vpop.f32.mrf.mxu0  ;;  %v4787_v13 = vpack.c.bf16 %v4739_v44, %v4736_v49  ;;  %v11210_v49 = vld [vmem:[#allocation119_spill] sm:$0xff]  ;;  %v4622_v44 = vmul.f32 0.2, %v9998_v42  ;;  %v4723_v31 = vsel %vm4531_vm15, %v10008_v58, %v4627_v34 }
 0x47f   :  { %v5442_v1 = vadd.f32 %v5441_v50, %v5440_v59  ;;  %v4727_v59 = vsel %vm4535_vm10, %v4270_v45, %v4631_v57  ;;  %v4729_v50 = vsel %vm4537_vm8, %v4274_v20, %v4633_v60  ;;  %v4726_v20 = vsel %vm4534_vm1, %v10016_v22, %v4630_v41 }
 0x480   :  { %v5443_v40 = vpop.f32.mrf.mxu0  ;;  %4841 = vmatprep.subr.bf16.mxu1 %v4787_v13  ;;  %v4783_v13 = vpack.c.bf16 %v4732_v2, %v4729_v50  ;;  %v4718_v22 = vsel %vm4526_vm0, %v9998_v42, %v4622_v44  ;;  %v4780_v52 = vpack.c.bf16 %v4726_v20, %v4723_v31  ;;  %vm4517_vm0 = vcmp.gt.f32.partialorder %v9957_v6, 0.0 }
 0x481   :  { %v4327_v23 = vadd.f32 %v5442_v1, %v11210_v49  ;;  %4842 = vmatpush2.bf16.msra.mxu1 %v4786_v26  ;;  %v4724_v26 = vsel %vm4532_vm2, %v9975_v12, %v10011_v47  ;;  %v4624_v1 = vmul.f32 0.2, %v10001_v62  ;;  %v4721_v12 = vsel %vm4529_vm7, %v10004_v24, %v4625_v56 }
 0x482   :  { %v5444_v14 = vpop.f32.mrf.mxu0  ;;  %4843 = vmatprep.subr.bf16.mxu1 %v4784_v61  ;;  %v4781_v45 = vpack.c.bf16 %v4727_v59, %v4724_v26  ;;  %v4621_v47 = vmul.f32 0.2, %v9994_v51  ;;  %v4778_v60 = vpack.c.bf16 %v4721_v12, %v4718_v22  ;;  %v4715_v61 = vsel %vm4523_vm6, %v9963_v63, %v9991_v43 }
 0x483   :  { %v5445_v30 = vadd.f32 %v5444_v14, %v5443_v40  ;;  %v4551_v36 = vmul.f32 0.2, %v4327_v23  ;;  %vm4455_vm3 = vcmp.gt.f32.partialorder %v4327_v23, 0.0  ;;  %v4720_v24 = vsel %vm4528_vm14, %v10001_v62, %v4624_v1  ;;  %v11212_v40 = vld [vmem:[#allocation71_spill] sm:$0xff] }
 0x484   :  { %v5446_v7 = vpop.f32.mrf.mxu0  ;;  %v4615_v56 = vmul.f32 0.2, %v9981_v3  ;;  %v4717_v62 = vsel %vm4525_vm12, %v9994_v51, %v4621_v47  ;;  %v4712_v63 = vsel %vm4520_vm13, %v9960_v19, %v9984_v15  ;;  %vm4513_vm6 = vcmp.gt.f32.partialorder %v9966_v39, 0.0 }
 0x485   :  { %v4330_v37 = vadd.f32 %v5445_v30, %v11211_v16  ;;  %4844 = vmatpush2.bf16.msra.mxu1 %v4783_v13  ;;  %v10064_v41 = vsel %vm4455_vm3, %v4327_v23, %v4551_v36  ;;  %v4777_v59 = vpack.c.bf16 %v4720_v24, %v4717_v62  ;;  %v4612_v43 = vmul.f32 0.2, %v9972_v38  ;;  %v11213_v13 = vld [vmem:[#allocation28_spill] sm:$0xff] }
 0x486   :  { %v5447_v8 = vpop.f32.mrf.mxu0  ;;  %4845 = vmatprep.subr.bf16.mxu1 %v4781_v45  ;;  %v4714_v51 = vsel %vm4522_vm4, %v9988_v32, %v4618_v25  ;;  %v4775_v50 = vpack.c.bf16 %v4715_v61, %v4712_v63  ;;  %vm4516_vm10 = vcmp.gt.f32.partialorder %v9972_v38, 0.0  ;;  %v4709_v19 = vsel %vm4517_vm0, %v9957_v6, %v9978_v0  ;;  %v11221_v63 = vld [vmem:[#allocation54_spill] sm:$0xff] }
 0x487   :  { %vm4458_vm11 = vcmp.gt.f32.partialorder %v4330_v37, 0.0  ;;  %v4554_v57 = vmul.f32 0.2, %v4330_v37  ;;  %v5448_v5 = vadd.f32 %v5447_v8, %v5446_v7  ;;  %v4609_v15 = vmul.f32 0.2, %v9966_v39 }
 0x488   :  { %v5449_v58 = vpop.f32.mrf.mxu0  ;;  %v4711_v26 = vsel %vm4519_vm5, %v9981_v3, %v4615_v56  ;;  %v4706_v32 = vsel %vm4514_vm9, %v9954_v35, %v9969_v18  ;;  %v4708_v36 = vsel %vm4516_vm10, %v9972_v38, %v4612_v43  ;;  %v11214_v3 = vld [vmem:[#allocation78_spill] sm:$0xff]  ;;  %v11216_v25 = vpack.c.bf16 %v9926_v17, %v9924_v46 }
 0x489   :  { %v10066_v2 = vsel %vm4458_vm11, %v4330_v37, %v4554_v57  ;;  %v4335_v42 = vadd.f32 %v5448_v5, %v11212_v40  ;;  %4846 = vmatpush2.bf16.msra.mxu1 %v4780_v52  ;;  %v4774_v20 = vpack.c.bf16 %v4714_v51, %v4711_v26  ;;  %v4772_v6 = vpack.c.bf16 %v4709_v19, %v4706_v32  ;;  %v11215_v52 = vld [vmem:[#allocation45_spill] sm:$0xff]  ;;  %v11225_v26 = vld [vmem:[#allocation90_spill] sm:$0xff] }
 0x48a   :  { %v5450_v49 = vpop.f32.mrf.mxu0  ;;  %4847 = vmatprep.subr.bf16.mxu1 %v4778_v60  ;;  %v4705_v47 = vsel %vm4513_vm6, %v9966_v39, %v4609_v15  ;;  %v11218_v56 = vpack.c.bf16 %v9910_v4, %v9908_v33  ;;  %v11223_v33 = vpack.c.bf16 %v9858_v28, %v9851_v53  ;;  %v11224_v19 = vld [vmem:[#allocation9_spill] sm:$0xff]  ;;  %v11233_v53 = vld [vmem:[#allocation68_spill] sm:$0xff] }
 0x48b   :  { %v5451_v44 = vadd.f32 %v5450_v49, %v5449_v58  ;;  %v4557_v14 = vmul.f32 0.2, %v4335_v42  ;;  %vm4461_vm8 = vcmp.gt.f32.partialorder %v4335_v42, 0.0  ;;  %v4771_v31 = vpack.c.bf16 %v4708_v36, %v4705_v47 }
 0x48c   :  { %v5452_v34 = vpop.f32.mrf.mxu0  ;;  %v11219_v49 = vpack.c.bf16 %v9876_v10, %v9874_v54 }
 0x48d   :  { %v4338_v30 = vadd.f32 %v5451_v44, %v11213_v13  ;;  %4848 = vmatpush2.bf16.msra.mxu1 %v4777_v59  ;;  %v10103_v0 = vsel %vm4461_vm8, %v4335_v42, %v4557_v14  ;;  %v11217_v42 = vld [vmem:[#allocation87_spill] sm:$0xff]  ;;  %v11220_v44 = vld [vmem:[#allocation124_spill] sm:$0xff] }
 0x48e   :  { %v5453_v1 = vpop.f32.mrf.mxu0  ;;  %4849 = vmatprep.subr.bf16.mxu1 %v4775_v50  ;;  %v10132_v43 = vrot.slane %v11221_v63, %v11220_v44 }
 0x48f   :  { %vm4464_vm13 = vcmp.gt.f32.partialorder %v4338_v30, 0.0  ;;  %v4560_v7 = vmul.f32 0.2, %v4338_v30  ;;  %v5454_v45 = vadd.f32 %v5453_v1, %v5452_v34  ;;  %v11222_v34 = vld [vmem:[#allocation81_spill] sm:$0xff] }
 0x490   :  { %v5455_v16 = vpop.f32.mrf.mxu0 }
 0x491   :  { %v10105_v37 = vsel %vm4464_vm13, %v4338_v30, %v4560_v7  ;;  %v4343_v12 = vadd.f32 %v5454_v45, %v11214_v3  ;;  %4850 = vmatpush2.bf16.msra.mxu1 %v4774_v20  ;;  %v11226_v7 = vld [vmem:[#allocation17_spill] sm:$0xff] }
 0x492   :  { %v5456_v35 = vpop.f32.mrf.mxu0  ;;  %4851 = vmatprep.subr.bf16.mxu1 %v4772_v6 }
 0x493   :  { %v5457_v38 = vadd.f32 %v5456_v35, %v5455_v16  ;;  %v4563_v22 = vmul.f32 0.2, %v4343_v12  ;;  %vm4467_vm2 = vcmp.gt.f32.partialorder %v4343_v12, 0.0  ;;  %v11227_v35 = vld [vmem:[#allocation20_spill] sm:$0xff] }
 0x494   :  { %v5458_v8 = vpop.f32.mrf.mxu0 }
 0x495   :  { %v4346_v57 = vadd.f32 %v5457_v38, %v11215_v52  ;;  %4852 = vmatpush2.bf16.msra.mxu1 %v4771_v31  ;;  %v10117_v60 = vsel %vm4467_vm2, %v4343_v12, %v4563_v22 }
 0x496   :  { %v5459_v5 = vpop.f32.mrf.mxu0  ;;  %4853 = vmatprep.subr.bf16.mxu1 %v11216_v25 }
 0x497   :  { %vm4470_vm1 = vcmp.gt.f32.partialorder %v4346_v57, 0.0  ;;  %v4566_v39 = vmul.f32 0.2, %v4346_v57  ;;  %v5460_v24 = vadd.f32 %v5459_v5, %v5458_v8  ;;  %v11228_v5 = vld [vmem:[#allocation7_spill] sm:$0xff] }
 0x498   :  { %v5461_v58 = vpop.f32.mrf.mxu0 }
 0x499   :  { %v10119_v40 = vsel %vm4470_vm1, %v4346_v57, %v4566_v39  ;;  %v4351_v61 = vadd.f32 %v5460_v24, %v11217_v42  ;;  %4854 = vmatpush2.bf16.msra.mxu1 %v11218_v56 }
 0x49a   :  { %v5462_v62 = vpop.f32.mrf.mxu0  ;;  %4855 = vmatprep.subr.bf16.mxu1 %v11219_v49 }
 0x49b   :  { %v5463_v17 = vadd.f32 %v5462_v62, %v5461_v58  ;;  %v4569_v51 = vmul.f32 0.2, %v4351_v61  ;;  %vm4473_vm7 = vcmp.gt.f32.partialorder %v4351_v61, 0.0  ;;  %v11229_v62 = vld [vmem:[#allocation105_spill] sm:$0xff] }
 0x49c   :  { %v5464_v59 = vpop.f32.mrf.mxu0 }
 0x49d   :  { %v4354_v50 = vadd.f32 %v5463_v17, %v11222_v34  ;;  %4856 = vmatpush2.bf16.msra.mxu1 %v11223_v33  ;;  %v10139_v13 = vsel %vm4473_vm7, %v4351_v61, %v4569_v51 }
 0x49e   :  { %v5465_v4 = vpop.f32.mrf.mxu0 }
 0x49f   :  { %vm4476_vm9 = vcmp.gt.f32.partialorder %v4354_v50, 0.0  ;;  %v4572_v54 = vmul.f32 0.2, %v4354_v50  ;;  %v5466_v10 = vadd.f32 %v5465_v4, %v5464_v59 }
 0x4a0   :  { %v5467_v14 = vpop.f32.mrf.mxu0  ;;  %4858 = vmatmul.mubr.bf16.vlgmr.msra.gmra.mxu1 %v10132_v43 }
 0x4a1   :  { %v10141_v30 = vsel %vm4476_vm9, %v4354_v50, %v4572_v54  ;;  %v4359_v15 = vadd.f32 %v5466_v10, %v11224_v19  ;;  %4898 = vmatprep.mubr.bf16.mxu1 %v11225_v26  ;;  %v11230_v50 = vld [vmem:[#allocation16_spill] sm:$0xff]  ;;  %v11231_v26 = vld [vmem:[#allocation123_spill] sm:$0xff] }
 0x4a2   :  { %v5468_v1 = vpop.f32.mrf.mxu0 }
 0x4a3   :  { %v5469_v28 = vadd.f32 %v5468_v1, %v5467_v14  ;;  %v4575_v20 = vmul.f32 0.2, %v4359_v15  ;;  %vm4479_vm15 = vcmp.gt.f32.partialorder %v4359_v15, 0.0 }
 0x4a4   :  { %v5470_v32 = vpop.f32.mrf.mxu0 }
 0x4a5   :  { %v4362_v45 = vadd.f32 %v5469_v28, %v11226_v7  ;;  %v10148_v12 = vsel %vm4479_vm15, %v4359_v15, %v4575_v20 }
 0x4a6   :  { %v5471_v36 = vpop.f32.mrf.mxu0 }
 0x4a7   :  { %vm4482_vm12 = vcmp.gt.f32.partialorder %v4362_v45, 0.0  ;;  %v4578_v16 = vmul.f32 0.2, %v4362_v45  ;;  %v5472_v6 = vadd.f32 %v5471_v36, %v5470_v32  ;;  %v11232_v36 = vld [vmem:[#allocation122_spill] sm:$0xff] }
 0x4a8   :  { %v5473_v3 = vpop.f32.mrf.mxu0 }
 0x4a9   :  { %v10150_v47 = vsel %vm4482_vm12, %v4362_v45, %v4578_v16  ;;  %v4367_v31 = vadd.f32 %v5472_v6, %v11227_v35 }
 0x4aa   :  { %v5474_v38 = vpop.f32.mrf.mxu0 }
 0x4ab   :  { %v5475_v22 = vadd.f32 %v5474_v38, %v5473_v3  ;;  %v4581_v57 = vmul.f32 0.2, %v4367_v31  ;;  %vm4485_vm14 = vcmp.gt.f32.partialorder %v4367_v31, 0.0 }
 0x4ac   :  { %v5476_v52 = vpop.f32.mrf.mxu0 }
 0x4ad   :  { %v4370_v25 = vadd.f32 %v5475_v22, %v11228_v5  ;;  %v10156_v61 = vsel %vm4485_vm14, %v4367_v31, %v4581_v57 }
 0x4ae   :  { %v5477_v39 = vpop.f32.mrf.mxu0 }
 0x4af   :  { %vm4488_vm3 = vcmp.gt.f32.partialorder %v4370_v25, 0.0  ;;  %v4584_v24 = vmul.f32 0.2, %v4370_v25  ;;  %v5478_v58 = vadd.f32 %v5477_v39, %v5476_v52 }
 0x4b0   :  { %v5479_v42 = vpop.f32.mrf.mxu0 }
 0x4b1   :  { %v10158_v56 = vsel %vm4488_vm3, %v4370_v25, %v4584_v24  ;;  %v4375_v49 = vadd.f32 %v5478_v58, %v11229_v62 }
 0x4b2   :  { %v5480_v17 = vpop.f32.mrf.mxu0 }
 0x4b3   :  { %v5481_v63 = vadd.f32 %v5480_v17, %v5479_v42  ;;  %v4587_v34 = vmul.f32 0.2, %v4375_v49  ;;  %vm4491_vm11 = vcmp.gt.f32.partialorder %v4375_v49, 0.0 }
 0x4b4   :  { %v5482_v51 = vpop.f32.mrf.mxu0 }
 0x4b5   :  { %v4378_v33 = vadd.f32 %v5481_v63, %v11230_v50  ;;  %v10164_v19 = vsel %vm4491_vm11, %v4375_v49, %v4587_v34 }
 0x4b6   :  { %v5483_v4 = vpop.f32.mrf.mxu0 }
 0x4b7   :  { %vm4494_vm4 = vcmp.gt.f32.partialorder %v4378_v33, 0.0  ;;  %v4590_v54 = vmul.f32 0.2, %v4378_v33  ;;  %v5484_v10 = vadd.f32 %v5483_v4, %v5482_v51 }
 0x4b8   :  { %v5485_v14 = vpop.f32.mrf.mxu0 }
 0x4b9   :  { %v10166_v15 = vsel %vm4494_vm4, %v4378_v33, %v4590_v54  ;;  %v4383_v1 = vadd.f32 %v5484_v10, %v11231_v26 }
 0x4ba   :  { %v5486_v28 = vpop.f32.mrf.mxu0 }
 0x4bb   :  { %v5487_v20 = vadd.f32 %v5486_v28, %v5485_v14  ;;  %v4593_v45 = vmul.f32 0.2, %v4383_v1  ;;  %vm4497_vm0 = vcmp.gt.f32.partialorder %v4383_v1, 0.0 }
 0x4bc   :  { %v5488_v7 = vpop.f32.mrf.mxu0 }
 0x4bd   :  { %v4386_v16 = vadd.f32 %v5487_v20, %v11232_v36  ;;  %v10172_v38 = vsel %vm4497_vm0, %v4383_v1, %v4593_v45 }
 0x4be   :  { %v5489_v6 = vpop.f32.mrf.mxu0 }
 0x4bf   :  { %vm4500_vm5 = vcmp.gt.f32.partialorder %v4386_v16, 0.0  ;;  %v4596_v3 = vmul.f32 0.2, %v4386_v16  ;;  %v5490_v35 = vadd.f32 %v5489_v6, %v5488_v7 }
 0x4c0   :  { %v5491_v31 = vpop.f32.mrf.mxu0 }
 0x4c1   :  { %v10174_v22 = vsel %vm4500_vm5, %v4386_v16, %v4596_v3  ;;  %v4391_v52 = vadd.f32 %v5490_v35, %v9823_v27 }
 0x4c2   :  { %v5492_v57 = vpop.f32.mrf.mxu0  ;;  %v4764_v5 = vpack.c.bf16 %v10174_v22, %v10172_v38 }
 0x4c3   :  { %v5493_v25 = vadd.f32 %v5492_v57, %v5491_v31  ;;  %v4599_v24 = vmul.f32 0.2, %v4391_v52  ;;  %vm4503_vm6 = vcmp.gt.f32.partialorder %v4391_v52, 0.0 }
 0x4c4   :  { %v5494_v39 = vpop.f32.mrf.mxu0 }
 0x4c5   :  { %v4394_v58 = vadd.f32 %v5493_v25, %v9835_v55  ;;  %v10181_v51 = vsel %vm4503_vm6, %v4391_v52, %v4599_v24 }
 0x4c6   :  { %v5495_v42 = vpop.f32.mrf.mxu0 }
 0x4c7   :  { %vm4506_vm10 = vcmp.gt.f32.partialorder %v4394_v58, 0.0  ;;  %v4602_v62 = vmul.f32 0.2, %v4394_v58  ;;  %v5496_v49 = vadd.f32 %v5495_v42, %v5494_v39 }
 0x4c8   :  { %v5497_v17 = vpop.f32.mrf.mxu0 }
 0x4c9   :  { %v4399_v63 = vadd.f32 %v5496_v49, %v9782_v9  ;;  %v10183_v27 = vsel %vm4506_vm10, %v4394_v58, %v4602_v62 }
 0x4ca   :  { %v5498_v34 = vpop.f32.mrf.mxu0 }
 0x4cb   :  { %v5499_v33 = vadd.f32 %v5498_v34, %v5497_v17  ;;  %v4605_v55 = vmul.f32 0.2, %v4399_v63  ;;  %vm4509_vm8 = vcmp.gt.f32.partialorder %v4399_v63, 0.0 }
 0x4cc   :  { %v10187_v4 = vpop.f32.mrf.mxu0 }
 0x4cd   :  { %v4402_v54 = vadd.f32 %v5499_v33, %v9818_v48  ;;  %v10192_v26 = vsel %vm4509_vm8, %v4399_v63, %v4605_v55 }
 0x4ce   :  { %v10190_v10 = vpop.f32.mrf.mxu0 }
 0x4cf   :  { %vm4512_vm13 = vcmp.gt.f32.partialorder %v4402_v54, 0.0  ;;  %v4608_v14 = vmul.f32 0.2, %v4402_v54 }
 0x4d0   :  { %v5503_v9 = vpop.f32.mrf.mxu0 }
 0x4d1   :  { %v10194_v1 = vsel %vm4512_vm13, %v4402_v54, %v4608_v14 }
 0x4d2   :  { %v5504_v28 = vpop.f32.mrf.mxu0 }
 0x4d4   :  { %v5506_v7 = vpop.f32.mrf.mxu0 }
 0x4d6   :  { %v5507_v45 = vpop.f32.mrf.mxu0 }
 0x4d8   :  { %v5509_v36 = vpop.f32.mrf.mxu0 }
 0x4da   :  { %v5510_v16 = vpop.f32.mrf.mxu0 }
 0x4dc   :  { %v5512_v6 = vpop.f32.mrf.mxu0 }
 0x4de   :  { %v5513_v48 = vpop.f32.mrf.mxu0 }
 0x4e0   :  { %v5515_v3 = vpop.f32.mrf.mxu0 }
 0x4e2   :  { %v5516_v35 = vpop.f32.mrf.mxu0 }
 0x4e3   :  { %v5517_v46 = vadd.f32 %v5516_v35, %v5515_v3 }
 0x4e4   :  { %v5518_v31 = vpop.f32.mrf.mxu0 }
 0x4e6   :  { %v5519_v52 = vpop.f32.mrf.mxu0 }
 0x4e7   :  { %v5520_v50 = vadd.f32 %v5519_v52, %v5518_v31  ;;  %v11236_v31 = vld [vmem:[#allocation125_spill] sm:$0xff] }
 0x4e8   :  { %v5521_v57 = vpop.f32.mrf.mxu0  ;;  %v4426_v52 = vadd.f32 %v5517_v46, %v11236_v31 }
 0x4ea   :  { %v5522_v25 = vpop.f32.mrf.mxu0  ;;  %vm4530_vm14 = vcmp.gt.f32.partialorder %v4426_v52, 0.0 }
 0x4eb   :  { %v5523_v55 = vadd.f32 %v5522_v25, %v5521_v57  ;;  %v11235_v57 = vld [vmem:[#allocation88_spill] sm:$0xff] }
 0x4ec   :  { %v5524_v39 = vpop.f32.mrf.mxu0  ;;  %v4431_v25 = vadd.f32 %v5520_v50, %v11235_v57 }
 0x4ed   :  { %v4434_v8 = vadd.f32 %v5523_v55, %v11233_v53  ;;  %v11241_v55 = vpack.c.bf16 %v10166_v15, %v10164_v19 }
 0x4ee   :  { %v5525_v24 = vpop.f32.mrf.mxu0  ;;  %vm4533_vm12 = vcmp.gt.f32.partialorder %v4431_v25, 0.0 }
 0x4ef   :  { %v5526_v63 = vadd.f32 %v5525_v24, %v5524_v39  ;;  %v5514_v39 = vadd.f32 %v5513_v48, %v5512_v6  ;;  %v5511_v24 = vadd.f32 %v5510_v16, %v5509_v36  ;;  %vm4536_vm15 = vcmp.gt.f32.partialorder %v4434_v8, 0.0 }
 0x4f0   :  { %v5527_v58 = vpop.f32.mrf.mxu0  ;;  %v4629_v48 = vmul.f32 0.2, %v4431_v25  ;;  %v4626_v16 = vmul.f32 0.2, %v4426_v52 }
 0x4f1   :  { %v4439_v18 = vadd.f32 %v5526_v63, %v11207_v29  ;;  %v4632_v29 = vmul.f32 0.2, %v4434_v8  ;;  %v11238_v63 = vld [vmem:[#allocation64_spill] sm:$0xff] }
 0x4f2   :  { %v5528_v42 = vpop.f32.mrf.mxu0  ;;  %v4418_v36 = vadd.f32 %v5511_v24, %v11238_v63  ;;  %v4722_v38 = vsel %vm4530_vm14, %v4426_v52, %v4626_v16 }
 0x4f3   :  { %v5529_v49 = vadd.f32 %v5528_v42, %v5527_v58  ;;  %v11234_v58 = vld [vmem:[#allocation67_spill] sm:$0xff]  ;;  %vm4539_vm9 = vcmp.gt.f32.partialorder %v4439_v18, 0.0  ;;  %v4728_v46 = vsel %vm4536_vm15, %v4434_v8, %v4632_v29  ;;  %v11242_v8 = vld [vmem:[#allocation77_spill] sm:$0xff] }
 0x4f4   :  { %v5530_v62 = vpop.f32.mrf.mxu0  ;;  %vm4524_vm11 = vcmp.gt.f32.partialorder %v4418_v36, 0.0 }
 0x4f5   :  { %v4442_v54 = vadd.f32 %v5529_v49, %v11203_v21  ;;  %v4635_v21 = vmul.f32 0.2, %v4439_v18 }
 0x4f6   :  { %v5531_v17 = vpop.f32.mrf.mxu0 }
 0x4f7   :  { %v5532_v34 = vadd.f32 %v5531_v17, %v5530_v62  ;;  %v4638_v59 = vmul.f32 0.2, %v4442_v54  ;;  %vm4542_vm2 = vcmp.gt.f32.partialorder %v4442_v54, 0.0  ;;  %v5508_v62 = vadd.f32 %v5507_v45, %v5506_v7 }
 0x4f8   :  { %v5533_v33 = vpop.f32.mrf.mxu0  ;;  %v4731_v49 = vsel %vm4539_vm9, %v4439_v18, %v4635_v21  ;;  %v5505_v17 = vadd.f32 %v5504_v28, %v5503_v9  ;;  %v4725_v45 = vsel %vm4533_vm12, %v4431_v25, %v4629_v48  ;;  %v11240_v9 = vld [vmem:[#allocation12_spill] sm:$0xff] }
 0x4f9   :  { %v4447_v14 = vadd.f32 %v5532_v34, %v11205_v11  ;;  %v4734_v53 = vsel %vm4542_vm2, %v4442_v54, %v4638_v59  ;;  %v5502_v59 = vadd.f32 %v10190_v10, %v10187_v4  ;;  %v4782_v34 = vpack.c.bf16 %v4728_v46, %v4725_v45 }
 0x4fa   :  { %v5534_v23 = vpop.f32.mrf.mxu0  ;;  %v4785_v50 = vpack.c.bf16 %v4734_v53, %v4731_v49  ;;  %v4410_v28 = vadd.f32 %v5505_v17, %v11240_v9  ;;  %v11252_v45 = vlaneseq }
 0x4fb   :  { %v5535_v20 = vadd.f32 %v5534_v23, %v5533_v33  ;;  %v4641_v32 = vmul.f32 0.2, %v4447_v14  ;;  %vm4545_vm1 = vcmp.gt.f32.partialorder %v4447_v14, 0.0  ;;  %v4620_v33 = vmul.f32 0.2, %v4418_v36 }
 0x4fc   :  { %v4407_v22 = vadd.f32 %v5502_v59, %v11242_v8  ;;  %v4614_v54 = vmul.f32 0.2, %v4410_v28  ;;  %vm4518_vm0 = vcmp.gt.f32.partialorder %v4410_v28, 0.0  ;;  %vm4950_vm6 = vcmp.lt.s32.totalorder %v11252_v45, 384 }
 0x4fd   :  { %v4450_v42 = vadd.f32 %v5535_v20, %v11234_v58  ;;  %v4737_v23 = vsel %vm4545_vm1, %v4447_v14, %v4641_v32  ;;  %v11237_v20 = vld [vmem:[#allocation44_spill] sm:$0xff]  ;;  %v11239_v32 = vld [vmem:[#allocation53_spill] sm:$0xff]  ;;  %v11243_v14 = vpack.c.bf16 %v10158_v56, %v10156_v61  ;;  %v4716_v58 = vsel %vm4524_vm11, %v4418_v36, %v4620_v33 }
 0x4fe   :  { %v4423_v6 = vadd.f32 %v5514_v39, %v11237_v20  ;;  %v4415_v7 = vadd.f32 %v5508_v62, %v11239_v32  ;;  %vm4515_vm5 = vcmp.gt.f32.partialorder %v4407_v22, 0.0  ;;  %v11244_v39 = vpack.c.bf16 %v10150_v47, %v10148_v12 }
 0x4ff   :  { %vm4548_vm7 = vcmp.gt.f32.partialorder %v4450_v42, 0.0  ;;  %v4644_v11 = vmul.f32 0.2, %v4450_v42  ;;  %v4710_v57 = vsel %vm4518_vm0, %v4410_v28, %v4614_v54  ;;  %v11246_v61 = vpack.c.bf16 %v10119_v40, %v10117_v60  ;;  %v11251_v60 = vld [vmem:[#allocation58_spill] sm:$0xff] }
 0x500   :  { %v4623_v18 = vmul.f32 0.2, %v4423_v6  ;;  %vm4527_vm3 = vcmp.gt.f32.partialorder %v4423_v6, 0.0  ;;  %vm4521_vm4 = vcmp.gt.f32.partialorder %v4415_v7, 0.0  ;;  %v11247_v56 = vpack.c.bf16 %v10194_v1, %v10192_v26 }
 0x501   :  { %v4740_v3 = vsel %vm4548_vm7, %v4450_v42, %v4644_v11  ;;  %v4611_v42 = vmul.f32 0.2, %v4407_v22  ;;  %v11245_v11 = vpack.c.bf16 %v10141_v30, %v10139_v13  ;;  %v11248_v12 = vpack.c.bf16 %v10105_v37, %v10103_v0  ;;  %v4794_v30 = vpop.permute.xlu0 %4793 }
 0x502   :  { %v4788_v35 = vpack.c.bf16 %v4740_v3, %v4737_v23  ;;  %v4719_v4 = vsel %vm4527_vm3, %v4423_v6, %v4623_v18  ;;  %v11249_v47 = vpack.c.bf16 %v10183_v27, %v10181_v51  ;;  %v11250_v13 = vpack.c.bf16 %v10066_v2, %v10064_v41 }
 0x503   :  { %v4779_v10 = vpack.c.bf16 %v4722_v38, %v4719_v4  ;;  %v4707_v25 = vsel %vm4515_vm5, %v4407_v22, %v4611_v42  ;;  %v4798_v40 = vsub.s32 0, %v11251_v60 }
 0x504   :  { %5536 = vmatprep.subr.bf16.mxu1 %v4788_v35  ;;  %v4773_v21 = vpack.c.bf16 %v4710_v57, %v4707_v25 }
 0x505   :  { %5537 = vmatpush3.bf16.msra.mxu1 %v4764_v5  ;;  %v4617_v5 = vmul.f32 0.2, %v4415_v7  ;;  %v4799_v24 = vrot.slane %v4794_v30, %v4798_v40 }
 0x506   :  { %5538 = vmatprep.subr.bf16.mxu1 %v4785_v50 }
 0x507   :  { %v4713_v19 = vsel %vm4521_vm4, %v4415_v7, %v4617_v5 }
 0x508   :  { %v4776_v15 = vpack.c.bf16 %v4716_v58, %v4713_v19 }
 0x509   :  { %5539 = vmatpush3.bf16.msra.mxu1 %v11241_v55 }
 0x50a   :  { %5540 = vmatprep.subr.bf16.mxu1 %v4782_v34 }
 0x50d   :  { %5541 = vmatpush3.bf16.msra.mxu1 %v11243_v14 }
 0x50e   :  { %5542 = vmatprep.subr.bf16.mxu1 %v4779_v10 }
 0x511   :  { %5543 = vmatpush3.bf16.msra.mxu1 %v11244_v39 }
 0x512   :  { %5544 = vmatprep.subr.bf16.mxu1 %v4776_v15 }
 0x515   :  { %5545 = vmatpush3.bf16.msra.mxu1 %v11245_v11 }
 0x516   :  { %5546 = vmatprep.subr.bf16.mxu1 %v4773_v21 }
 0x519   :  { %5547 = vmatpush3.bf16.msra.mxu1 %v11246_v61 }
 0x51a   :  { %5548 = vmatprep.subr.bf16.mxu1 %v11247_v56 }
 0x51d   :  { %5549 = vmatpush3.bf16.msra.mxu1 %v11248_v12 }
 0x51e   :  { %5550 = vmatprep.subr.bf16.mxu1 %v11249_v47 }
 0x521   :  { %5551 = vmatpush3.bf16.msra.mxu1 %v11250_v13 }
 0x524   :  { %4899 = vmatmul.mubr.bf16.vlgmr.msra.gmra.mxu1 %v10132_v43 }
 0x560   :  { %v4859_v26 = vpop.f32.mrf.mxu1 }
 0x561   :  { %v4860_v1 = vadd.f32 %v4859_v26, %v4799_v24 }
 0x562   :  { %v4861_v31 = vpop.f32.mrf.mxu1 }
 0x563   :  { %v4906_v52 = vsub.f32 0.0, %v4860_v1  ;;  %v4862_v0 = vadd.f32 %v4861_v31, %v4799_v24 }
 0x564   :  { %v4863_v37 = vpop.f32.mrf.mxu1 }
 0x565   :  { %v4909_v29 = vmul.f32 1.442695, %v4906_v52  ;;  %v4907_v23 = vsub.f32 0.0, %v4862_v0 }
 0x566   :  { %v4864_v51 = vpop.f32.mrf.mxu1 }
 0x567   :  { %5819 = vpow2.f32 %v4909_v29  ;;  %v4911_v27 = vmul.f32 1.442695, %v4907_v23 }
 0x569   :  { %5821 = vpow2.f32 %v4911_v27 }
 0x574   :  { %v5820_v41 = vpop.eup %5819 }
 0x575   :  { %v4915_v2 = vadd.f32 1.0, %v5820_v41 }
 0x576   :  { %v5822_v3 = vpop.eup %5821 }
 0x577   :  { %v4916_v43 = vadd.f32 1.0, %v5822_v3  ;;  %5823 = vrcp.f32 %v4915_v2 }
 0x579   :  { %5825 = vrcp.f32 %v4916_v43 }
 0x584   :  { %v5824_v53 = vpop.eup %5823 }
 0x586   :  { %v5826_v35 = vpop.eup %5825 }
 0x587   :  { %v4924_v62 = vcombine.low %v5824_v53, %v5826_v35 }
 0x589   :  { %v4931_v32 = vrot.slane %v4924_v62, %v11220_v44 }
 0x5e4   :  { %v5552_v20 = vpop.f32.mrf.mxu1 }
 0x5e6   :  { %v5553_v6 = vpop.f32.mrf.mxu1 }
 0x5e7   :  { %v5554_v48 = vadd.f32 %v5553_v6, %v5552_v20 }
 0x5e8   :  { %v5555_v49 = vpop.f32.mrf.mxu1 }
 0x5e9   :  { %v4901_v50 = vadd.f32 %v5554_v48, %v4799_v24 }
 0x5ea   :  { %v5556_v17 = vpop.f32.mrf.mxu1 }
 0x5eb   :  { %v4908_v63 = vsub.f32 0.0, %v4901_v50 }
 0x5ed   :  { %v4913_v36 = vmul.f32 1.442695, %v4908_v63 }
 0x5ef   :  { %5827 = vpow2.f32 %v4913_v36 }
 0x5fc   :  { %v5828_v16 = vpop.eup %5827 }
 0x5fd   :  { %v4917_v46 = vadd.f32 1.0, %v5828_v16 }
 0x5ff   :  { %5829 = vrcp.f32 %v4917_v46 }
 0x60c   :  { %v5830_v59 = vpop.eup %5829 }
 0x60d   :  { %v4938_v7 = vrot.slane %v5830_v59, %v11220_v44 }
 0x60f   :  { %v4939_v18 = vcombine.low %v4931_v32, %v4938_v7 }
 0x611   :  { %v4946_v34 = vrot.slane %v4939_v18, %v11220_v44 }
 0x613   :  { %4952 = vst.msk [vmem:[#allocation3] sm:$0x7] %vm4950_vm6, %v4946_v34 }
 0x614   :  { %5850 = shalt.err (!%p5847_p4)
}
 0x615   :  { %4962 = dma.vmem_to_hbm [thread:$0]  %s4960_s2, 48, %s10260_s9, [#allocation4]  }
 0x616   :  { %5859 = dma.done.wait [#allocation4], 48  }
 0x617   :  { %5860 = vsyncadd [#allocation4], 4294967248 }
 0x618   :  { %4966 = vsyncpa [#allocation4], 1 }

</bundles_post_ra>
